<compile_context>
chip_gen: v7x
topology: tpu7x:2x2x1
jax: 0.10.0
libtpu: 0.0.40
codegen_flags: <defaults>
</compile_context>

<pallas_src>
import functools

import jax
import jax.numpy as jnp
from jax.experimental import pallas as pl
from jax.experimental.pallas import tpu as pltpu

# YARDS_CLIP is not defined in the snippet; deterministic synthetic range.
YARDS_CLIP = (-15, 50)
TARGET_SIZE = YARDS_CLIP[1] - YARDS_CLIP[0] + 1   # 66

N_CHANNELS = 10
H, W = 11, 10
EPS = 1e-5

CIN_PAD = 16     # 10 input channels padded for the first MXU matmul
C96_PAD = 128    # 96-wide channels padded to a full lane width
OUT_PAD = 128    # 66-wide output padded for unmasked lane-dense stores


# --------------------------------------------------------------------------
# Generation-aware configuration
# --------------------------------------------------------------------------
def _tpu_generation():
    try:
        kind = jax.devices()[0].device_kind.lower()
    except Exception:
        return None
    for gen in (7, 6, 5, 4):
        if (f"v{gen}" in kind) or (f"tpu{gen}" in kind) or (f"tpu {gen}" in kind):
            return gen
    return None


@functools.lru_cache(maxsize=None)
def _device_config():
    """(activation dtype, max batch tile, vmem_limit_bytes) for this chip."""
    gen = _tpu_generation()
    if gen == 7:
        # 2 TCs x 64 MiB VMEM: bf16 activations, modest tile, <=48 MiB budget.
        return jnp.bfloat16, 128, 48 * 1024 * 1024
    if gen == 6:
        # bf16 VPU + 128 MiB VMEM: big tile, bf16 activations.
        return jnp.bfloat16, 256, 100 * 1024 * 1024
    if gen == 5:
        # No bf16 VPU on v5e/v5p: keep activations f32 but raise the tile.
        return jnp.float32, 192, 100 * 1024 * 1024
    # Unknown / older generation: fall back to the previously validated envelope.
    return jnp.float32, 64, 48 * 1024 * 1024


def _pick_batch_tile(batch, bt_max):
    # Multiples of 16 keep every in-kernel reshape aligned to the bf16/f32
    # sublane tiles; aim for >= 2 grid steps whenever the batch can be split
    # so v7x's two TensorCores both get work (harmless on single-TC chips).
    half = ((batch + 1) // 2 + 15) // 16 * 16
    return max(16, min(bt_max, half))


# --------------------------------------------------------------------------
# Kernel
# --------------------------------------------------------------------------
def _make_kernel(acts_dtype):
    act = acts_dtype
    c1 = 0.7 / (0.3 * H)      # first-pool avg/max ratio (0.3 folded into w4)
    c2 = 0.7 / (0.3 * W)      # second-pool avg/max ratio (0.3 folded into w7)

    def kernel(
        x_ref,                               # (H, W, BT, CIN_PAD) bf16
        w1, b1, w2, b2, w3, b3,              # net1: 1x1 Conv2d (+bias) x3
        w4, b4, w5, b5, w6, b6,              # bn1/bn4/bn5 folded; 0.3*pool in w4
        s6, t6,                              # bn6 affine (applied pre-pool)
        w7,                                  # net3[0] Linear, 0.3*pool folded
        w8, b8,                              # net3[1] Linear, bn7 folded
        ln_g, ln_b,                          # LayerNorm(256)
        w9, b9,                              # out head (padded to OUT_PAD)
        o_ref,                               # (BT, OUT_PAD) f32
    ):
        f32 = jnp.float32
        HH, WW, BT, CIN = x_ref.shape

        def mm(a, w_ref):
            # bf16 operands on the MXU, f32 accumulation.
            return jnp.dot(a.astype(jnp.bfloat16), w_ref[...],
                           preferred_element_type=f32)

        def bias_relu(z, b_ref):
            # bias-add + ReLU in the activation dtype (bf16 on v6e/v7x).
            return jnp.maximum(z.astype(act) + b_ref[...], 0)

        # ---- net1: three 1x1 Conv2d + ReLU over all H*W*BT positions -------
        x = x_ref[...].reshape(HH * WW * BT, CIN)
        h = bias_relu(mm(x, w1), b1)
        h = bias_relu(mm(h, w2), b2)
        h = bias_relu(mm(h, w3), b3)                  # (H*W*BT, 128)

        # ---- 0.3*MaxPool2d((H,1)) + 0.7*AvgPool2d((H,1)) --------------------
        # Rows are ordered (h, w, b): the H reduction is an unrolled slab-wise
        # running max/sum over the leading axis (VPU only, no relayout).  The
        # 0.3 factor is folded into w4 at trace time.
        h = h.reshape(HH, WW * BT, 128)
        hmax = h[0]
        hsum = h[0]
        for k in range(1, HH):
            hk = h[k]
            hmax = jnp.maximum(hmax, hk)
            hsum = hsum + hk
        p = hmax + c1 * hsum                          # (W*BT, 128)

        # ---- bn1 + net2 (bn1/bn4/bn5 pre-folded into w4/b4, w5/b5, w6/b6) --
        g = bias_relu(mm(p, w4), b4)                  # (W*BT, 160)
        g = bias_relu(mm(g, w5), b5)                  # (W*BT, 128)  (96 real)
        g = bias_relu(mm(g, w6), b6)                  # (W*BT, 128)  (96 real)
        # bn6 applied explicitly: the max-pool below only commutes with an
        # affine when its scale is positive, which trained gammas may violate.
        g = g * s6[...] + t6[...]

        # ---- 0.3*MaxPool1d(W) + 0.7*AvgPool1d(W) (0.3 folded into w7) -------
        g = g.reshape(WW, BT, 128)
        gmax = g[0]
        gsum = g[0]
        for k in range(1, WW):
            gk = g[k]
            gmax = jnp.maximum(gmax, gk)
            gsum = gsum + gk
        q = gmax + c2 * gsum                          # (BT, 128)

        # ---- net3 (bn7 folded into w8) + LayerNorm, all in f32 (tiny) -------
        f = jnp.maximum(mm(q, w7), 0.0)               # (BT, 128)  (96 real)
        f = jnp.maximum(mm(f, w8) + b8[...], 0.0)     # (BT, 256)
        mu = jnp.mean(f, axis=-1, keepdims=True)
        d = f - mu
        var = jnp.mean(d * d, axis=-1, keepdims=True)
        f = d * jax.lax.rsqrt(var + EPS) * ln_g[...] + ln_b[...]

        # TODO(synk): nn.Dropout is identity in eval mode; training-mode masking not modeled.

        # ---- out head (lane-dense padded store; wrapper slices to 66) --------
        o_ref[...] = (mm(f, w9) + b9[...]).astype(o_ref.dtype)

    return kernel


# --------------------------------------------------------------------------
# Parameters (PyTorch-shaped), BN/pool folding + lane padding, JAX reference
# --------------------------------------------------------------------------
def init_params(key):
    """Raw eval-mode parameters mirroring the PyTorch module.

    Conv/Linear weights ~ U(-0.1, 0.1), biases = 0 (weights_init).
    BatchNorm / LayerNorm use default init (gamma=1, beta=0, running mean=0,
    running var=1).  Weights are stored (in_features, out_features).
    """
    ks = jax.random.split(key, 9)
    u = lambda k, s: jax.random.uniform(k, s, jnp.float32, -0.1, 0.1)
    bn = lambda c: (jnp.ones((c,), jnp.float32), jnp.zeros((c,), jnp.float32),
                    jnp.zeros((c,), jnp.float32), jnp.ones((c,), jnp.float32))
    return {
        "w1": u(ks[0], (N_CHANNELS, 128)), "b1": jnp.zeros((128,), jnp.float32),
        "w2": u(ks[1], (128, 160)), "b2": jnp.zeros((160,), jnp.float32),
        "w3": u(ks[2], (160, 128)), "b3": jnp.zeros((128,), jnp.float32),
        "bn1": bn(128),
        "w4": u(ks[3], (128, 160)), "bn4": bn(160),
        "w5": u(ks[4], (160, 96)), "bn5": bn(96),
        "w6": u(ks[5], (96, 96)), "bn6": bn(96),
        "w7": u(ks[6], (96, 96)), "bn7": bn(96),
        "w8": u(ks[7], (96, 256)),
        "ln_g": jnp.ones((256,), jnp.float32), "ln_b": jnp.zeros((256,), jnp.float32),
        "w9": u(ks[8], (256, TARGET_SIZE)), "b9": jnp.zeros((TARGET_SIZE,), jnp.float32),
    }


def fold_and_pad_params(P, acts_dtype=None):
    """Trace-time preprocessing.

    * Folds every eval-mode BN affine except bn6 into the following matmul
      (bn6 must act before the second max-pool, so it is passed separately).
    * Folds the 0.3 pooling coefficient of each pool into w4 / w7.
    * Pads narrow dims to lane-friendly widths.

    Returns the flat kernel argument list (weights bf16; activation-side
    biases/affines in the activation dtype; tail biases/LN in f32) in the
    exact order expected by the kernel.
    """
    f32, bf16 = jnp.float32, jnp.bfloat16
    act = acts_dtype if acts_dtype is not None else _device_config()[0]

    def affine(bnp):
        g, b, rm, rv = bnp
        s = g * jax.lax.rsqrt(rv + EPS)
        return s, b - rm * s

    def pad_w(w, rows, cols):
        r, c = w.shape
        return jnp.pad(w, ((0, rows - r), (0, cols - c)))

    def pad_v(v, n):
        return jnp.pad(v, (0, n - v.shape[0]))

    s1, t1 = affine(P["bn1"])
    s4, t4 = affine(P["bn4"])
    s5, t5 = affine(P["bn5"])
    s6, t6 = affine(P["bn6"])
    s7, t7 = affine(P["bn7"])

    # net1 (plain conv biases).
    w1 = pad_w(P["w1"], CIN_PAD, 128);                       b1 = P["b1"]
    w2 = P["w2"];                                            b2 = P["b2"]
    w3 = P["w3"];                                            b3 = P["b3"]
    # bn1 acts after the first pool -> fold into w4/b4; also fold the pool's
    # 0.3 coefficient (kernel computes max + (0.7/(0.3*H))*sum).
    w4 = 0.3 * (s1[:, None] * P["w4"]);                      b4 = t1 @ P["w4"]
    # Post-ReLU bn4/bn5 fold into the next layer's matmul.
    w5 = pad_w(s4[:, None] * P["w5"], 160, C96_PAD);         b5 = pad_v(t4 @ P["w5"], C96_PAD)
    w6 = pad_w(s5[:, None] * P["w6"], C96_PAD, C96_PAD);     b6 = pad_v(t5 @ P["w6"], C96_PAD)
    # bn6 is applied explicitly inside the kernel (pre-pool).
    s6p = pad_v(s6, C96_PAD);                                t6p = pad_v(t6, C96_PAD)
    # Second pool's 0.3 folds into w7 (Linear(96, 96, bias=False)).
    w7 = pad_w(0.3 * P["w7"], C96_PAD, C96_PAD)
    # bn7 folds into w8.
    w8 = pad_w(s7[:, None] * P["w8"], C96_PAD, 256);         b8 = t7 @ P["w8"]
    w9 = pad_w(P["w9"], 256, OUT_PAD);                       b9 = pad_v(P["b9"], OUT_PAD)

    act_v = lambda v: v.reshape(1, -1).astype(act)
    f32_v = lambda v: v.reshape(1, -1).astype(f32)
    bfw = lambda w: w.astype(bf16)

    return [
        bfw(w1), act_v(b1), bfw(w2), act_v(b2), bfw(w3), act_v(b3),
        bfw(w4), act_v(b4), bfw(w5), act_v(b5), bfw(w6), act_v(b6),
        act_v(s6p), act_v(t6p),
        bfw(w7),
        bfw(w8), f32_v(b8),
        f32_v(P["ln_g"]), f32_v(P["ln_b"]),
        bfw(w9), f32_v(b9),
    ]


def reference_forward(x_nchw, P):
    """Pure-JAX f32 reference of the eval-mode forward (no folding/padding)."""
    relu = jax.nn.relu

    def bn(v, bnp):
        g, b, rm, rv = bnp
        return (v - rm) * jax.lax.rsqrt(rv + EPS) * g + b

    x = jnp.transpose(x_nchw, (0, 2, 3, 1)).astype(jnp.float32)      # (B,H,W,10)
    h = relu(x @ P["w1"] + P["b1"])
    h = relu(h @ P["w2"] + P["b2"])
    h = relu(h @ P["w3"] + P["b3"])                                   # (B,H,W,128)
    p = 0.3 * h.max(axis=1) + 0.7 * h.mean(axis=1)                    # (B,W,128)
    p = bn(p, P["bn1"])
    g1 = bn(relu(p @ P["w4"]), P["bn4"])
    g2 = bn(relu(g1 @ P["w5"]), P["bn5"])
    g3 = bn(relu(g2 @ P["w6"]), P["bn6"])                             # (B,W,96)
    q = 0.3 * g3.max(axis=1) + 0.7 * g3.mean(axis=1)                  # (B,96)
    f1 = bn(relu(q @ P["w7"]), P["bn7"])
    f2 = relu(f1 @ P["w8"])                                           # (B,256)
    mu = f2.mean(-1, keepdims=True)
    var = ((f2 - mu) ** 2).mean(-1, keepdims=True)
    f2 = (f2 - mu) * jax.lax.rsqrt(var + EPS) * P["ln_g"] + P["ln_b"]
    return f2 @ P["w9"] + P["b9"]                                     # (B,66)


# --------------------------------------------------------------------------
# Wrapper (jit this together with callers so the transpose/pad/cast and the
# final slice fuse into the same XLA program as the pallas_call)
# --------------------------------------------------------------------------
def nfl_rush_net_forward(x_nchw, kernel_args, *, batch_tile=None):
    acts_dtype, bt_max, vmem_limit = _device_config()

    B, C, HH, WW = x_nchw.shape
    assert (C, HH, WW) == (N_CHANNELS, H, W)
    BT = batch_tile or _pick_batch_tile(B, bt_max)
    B_pad = ((B + BT - 1) // BT) * BT
    grid = (B_pad // BT,)

    # NCHW -> (H, W, B, C): both poolings become leading-axis slab reductions
    # in the kernel, and a batch tile is a contiguous block along axis 2.
    x = jnp.transpose(x_nchw, (2, 3, 0, 1)).astype(jnp.float32)
    x = jnp.pad(x, ((0, 0), (0, 0), (0, B_pad - B), (0, CIN_PAD - C)))
    x = x.astype(jnp.bfloat16)

    x_spec = pl.BlockSpec((H, W, BT, CIN_PAD), lambda i: (0, 0, i, 0))
    # Weights / biases: constant index_map -> VMEM-resident across grid steps.
    param_specs = [pl.BlockSpec(a.shape, lambda i: (0, 0)) for a in kernel_args]
    out_spec = pl.BlockSpec((BT, OUT_PAD), lambda i: (i, 0))

    out_padded = pl.pallas_call(
        _make_kernel(acts_dtype),
        out_shape=jax.ShapeDtypeStruct((B_pad, OUT_PAD), jnp.float32),
        grid=grid,
        in_specs=[x_spec] + param_specs,
        out_specs=out_spec,
        compiler_params=pltpu.CompilerParams(
            # Independent batch tiles -> megacore sharding on v7x.
            dimension_semantics=("parallel",),
            vmem_limit_bytes=vmem_limit,
        ),
    )(x, *kernel_args)

    return out_padded[:B, :TARGET_SIZE]


# --------------------------------------------------------------------------
# Demo / self-check
# --------------------------------------------------------------------------
if __name__ == "__main__":
    key = jax.random.PRNGKey(0)
    k_x, k_p = jax.random.split(key)

    params = init_params(k_p)
    kernel_args = fold_and_pad_params(params)

    # Fuse host-side prologue (transpose/pad/cast) + kernel + output slice.
    fwd = jax.jit(nfl_rush_net_forward)

    # Small demo batch (padded internally to a single batch tile).
    B = 2
    x = jax.random.normal(k_x, (B, N_CHANNELS, H, W), jnp.float32)
    out = fwd(x, kernel_args)
    jax.block_until_ready(out)
    assert out.shape == (B, TARGET_SIZE)
    err = float(jnp.max(jnp.abs(out - reference_forward(x, params))))
    assert err < 1e-1, f"max abs err vs f32 reference: {err}"

    # A batch that exercises multiple grid steps and batch padding.
    # (For real benchmarking, use realistic batch sizes, e.g. >= 4096.)
    B2 = 200
    x2 = jax.random.normal(k_x, (B2, N_CHANNELS, H, W), jnp.float32)
    out2 = fwd(x2, kernel_args)
    jax.block_until_ready(out2)
    assert out2.shape == (B2, TARGET_SIZE)
    err2 = float(jnp.max(jnp.abs(out2 - reference_forward(x2, params))))
    assert err2 < 1e-1, f"max abs err vs f32 reference: {err2}"

    print("KERNEL_OK")
</pallas_src>

<mosaic_0001>
module attributes {stable_mosaic.version = 11 : i64} {
  func.func @kernel(%arg0: i32, %arg1: memref<11x10x16x16xbf16, #tpu.memory_space<vmem>>, %arg2: memref<16x128xbf16, #tpu.memory_space<vmem>>, %arg3: memref<1x128xf32, #tpu.memory_space<vmem>>, %arg4: memref<128x160xbf16, #tpu.memory_space<vmem>>, %arg5: memref<1x160xf32, #tpu.memory_space<vmem>>, %arg6: memref<160x128xbf16, #tpu.memory_space<vmem>>, %arg7: memref<1x128xf32, #tpu.memory_space<vmem>>, %arg8: memref<128x160xbf16, #tpu.memory_space<vmem>>, %arg9: memref<1x160xf32, #tpu.memory_space<vmem>>, %arg10: memref<160x128xbf16, #tpu.memory_space<vmem>>, %arg11: memref<1x128xf32, #tpu.memory_space<vmem>>, %arg12: memref<128x128xbf16, #tpu.memory_space<vmem>>, %arg13: memref<1x128xf32, #tpu.memory_space<vmem>>, %arg14: memref<1x128xf32, #tpu.memory_space<vmem>>, %arg15: memref<1x128xf32, #tpu.memory_space<vmem>>, %arg16: memref<128x128xbf16, #tpu.memory_space<vmem>>, %arg17: memref<128x256xbf16, #tpu.memory_space<vmem>>, %arg18: memref<1x256xf32, #tpu.memory_space<vmem>>, %arg19: memref<1x256xf32, #tpu.memory_space<vmem>>, %arg20: memref<1x256xf32, #tpu.memory_space<vmem>>, %arg21: memref<256x128xbf16, #tpu.memory_space<vmem>>, %arg22: memref<1x128xf32, #tpu.memory_space<vmem>>, %arg23: memref<16x128xf32, #tpu.memory_space<vmem>>) attributes {dimension_semantics = [#tpu.dimension_semantics<parallel>], iteration_bounds = array<i64: 1>, scalar_prefetch = 0 : i64, scratch_operands = 0 : i64, tpu.core_type = #tpu.core_type<tc>, window_params = [{transform_indices = @transform_0, window_bounds = array<i64: 11, 10, 16, 16>}, {pipeline_mode = #tpu.pipeline_mode<synchronous>, transform_indices = @transform_1, window_bounds = array<i64: 16, 128>}, {pipeline_mode = #tpu.pipeline_mode<synchronous>, transform_indices = @transform_2, window_bounds = array<i64: 1, 128>}, {pipeline_mode = #tpu.pipeline_mode<synchronous>, transform_indices = @transform_3, window_bounds = array<i64: 128, 160>}, {pipeline_mode = #tpu.pipeline_mode<synchronous>, transform_indices = @transform_4, window_bounds = array<i64: 1, 160>}, {pipeline_mode = #tpu.pipeline_mode<synchronous>, transform_indices = @transform_5, window_bounds = array<i64: 160, 128>}, {pipeline_mode = #tpu.pipeline_mode<synchronous>, transform_indices = @transform_6, window_bounds = array<i64: 1, 128>}, {pipeline_mode = #tpu.pipeline_mode<synchronous>, transform_indices = @transform_7, window_bounds = array<i64: 128, 160>}, {pipeline_mode = #tpu.pipeline_mode<synchronous>, transform_indices = @transform_8, window_bounds = array<i64: 1, 160>}, {pipeline_mode = #tpu.pipeline_mode<synchronous>, transform_indices = @transform_9, window_bounds = array<i64: 160, 128>}, {pipeline_mode = #tpu.pipeline_mode<synchronous>, transform_indices = @transform_10, window_bounds = array<i64: 1, 128>}, {pipeline_mode = #tpu.pipeline_mode<synchronous>, transform_indices = @transform_11, window_bounds = array<i64: 128, 128>}, {pipeline_mode = #tpu.pipeline_mode<synchronous>, transform_indices = @transform_12, window_bounds = array<i64: 1, 128>}, {pipeline_mode = #tpu.pipeline_mode<synchronous>, transform_indices = @transform_13, window_bounds = array<i64: 1, 128>}, {pipeline_mode = #tpu.pipeline_mode<synchronous>, transform_indices = @transform_14, window_bounds = array<i64: 1, 128>}, {pipeline_mode = #tpu.pipeline_mode<synchronous>, transform_indices = @transform_15, window_bounds = array<i64: 128, 128>}, {pipeline_mode = #tpu.pipeline_mode<synchronous>, transform_indices = @transform_16, window_bounds = array<i64: 128, 256>}, {pipeline_mode = #tpu.pipeline_mode<synchronous>, transform_indices = @transform_17, window_bounds = array<i64: 1, 256>}, {pipeline_mode = #tpu.pipeline_mode<synchronous>, transform_indices = @transform_18, window_bounds = array<i64: 1, 256>}, {pipeline_mode = #tpu.pipeline_mode<synchronous>, transform_indices = @transform_19, window_bounds = array<i64: 1, 256>}, {pipeline_mode = #tpu.pipeline_mode<synchronous>, transform_indices = @transform_20, window_bounds = array<i64: 256, 128>}, {pipeline_mode = #tpu.pipeline_mode<synchronous>, transform_indices = @transform_21, window_bounds = array<i64: 1, 128>}, {transform_indices = @transform_22, window_bounds = array<i64: 16, 128>}]} {
    %c0 = arith.constant 0 : index
    %c0_0 = arith.constant 0 : index
    %c0_1 = arith.constant 0 : index
    %c0_2 = arith.constant 0 : index
    %0 = vector.load %arg1[%c0, %c0_0, %c0_1, %c0_2] : memref<11x10x16x16xbf16, #tpu.memory_space<vmem>>, vector<11x10x16x16xbf16>
    %1 = vector.shape_cast %0 : vector<11x10x16x16xbf16> to vector<1760x16xbf16>
    %c0_3 = arith.constant 0 : index
    %c0_4 = arith.constant 0 : index
    %2 = vector.load %arg2[%c0_3, %c0_4] : memref<16x128xbf16, #tpu.memory_space<vmem>>, vector<16x128xbf16>
    %cst = arith.constant dense<0.000000e+00> : vector<1760x128xf32>
    %3 = tpu.matmul %1, %2, %cst {dimension_numbers = #tpu.dot_dimension_numbers<[1], [0], [0], [1], [0, 0, 1, 1], [], []>} : vector<1760x16xbf16>, vector<16x128xbf16>, vector<1760x128xf32> -> vector<1760x128xf32>
    %c0_5 = arith.constant 0 : index
    %c0_6 = arith.constant 0 : index
    %4 = vector.load %arg3[%c0_5, %c0_6] : memref<1x128xf32, #tpu.memory_space<vmem>>, vector<1x128xf32>
    %5 = vector.broadcast %4 : vector<1x128xf32> to vector<1760x128xf32>
    %6 = arith.addf %3, %5 : vector<1760x128xf32>
    %cst_7 = arith.constant 0.000000e+00 : f32
    %7 = vector.broadcast %cst_7 : f32 to vector<1760x128xf32>
    %8 = arith.maximumf %6, %7 : vector<1760x128xf32>
    %9 = arith.truncf %8 : vector<1760x128xf32> to vector<1760x128xbf16>
    %c0_8 = arith.constant 0 : index
    %c0_9 = arith.constant 0 : index
    %10 = vector.load %arg4[%c0_8, %c0_9] : memref<128x160xbf16, #tpu.memory_space<vmem>>, vector<128x160xbf16>
    %cst_10 = arith.constant dense<0.000000e+00> : vector<1760x160xf32>
    %11 = tpu.matmul %9, %10, %cst_10 {dimension_numbers = #tpu.dot_dimension_numbers<[1], [0], [0], [1], [0, 0, 1, 1], [], []>} : vector<1760x128xbf16>, vector<128x160xbf16>, vector<1760x160xf32> -> vector<1760x160xf32>
    %c0_11 = arith.constant 0 : index
    %c0_12 = arith.constant 0 : index
    %12 = vector.load %arg5[%c0_11, %c0_12] : memref<1x160xf32, #tpu.memory_space<vmem>>, vector<1x160xf32>
    %13 = vector.broadcast %12 : vector<1x160xf32> to vector<1760x160xf32>
    %14 = arith.addf %11, %13 : vector<1760x160xf32>
    %cst_13 = arith.constant 0.000000e+00 : f32
    %15 = vector.broadcast %cst_13 : f32 to vector<1760x160xf32>
    %16 = arith.maximumf %14, %15 : vector<1760x160xf32>
    %17 = arith.truncf %16 : vector<1760x160xf32> to vector<1760x160xbf16>
    %c0_14 = arith.constant 0 : index
    %c0_15 = arith.constant 0 : index
    %18 = vector.load %arg6[%c0_14, %c0_15] : memref<160x128xbf16, #tpu.memory_space<vmem>>, vector<160x128xbf16>
    %cst_16 = arith.constant dense<0.000000e+00> : vector<1760x128xf32>
    %19 = tpu.matmul %17, %18, %cst_16 {dimension_numbers = #tpu.dot_dimension_numbers<[1], [0], [0], [1], [0, 0, 1, 1], [], []>} : vector<1760x160xbf16>, vector<160x128xbf16>, vector<1760x128xf32> -> vector<1760x128xf32>
    %c0_17 = arith.constant 0 : index
    %c0_18 = arith.constant 0 : index
    %20 = vector.load %arg7[%c0_17, %c0_18] : memref<1x128xf32, #tpu.memory_space<vmem>>, vector<1x128xf32>
    %21 = vector.broadcast %20 : vector<1x128xf32> to vector<1760x128xf32>
    %22 = arith.addf %19, %21 : vector<1760x128xf32>
    %cst_19 = arith.constant 0.000000e+00 : f32
    %23 = vector.broadcast %cst_19 : f32 to vector<1760x128xf32>
    %24 = arith.maximumf %22, %23 : vector<1760x128xf32>
    %25 = vector.shape_cast %24 : vector<1760x128xf32> to vector<11x160x128xf32>
    %26 = vector.extract_strided_slice %25 {offsets = [0, 0, 0], sizes = [1, 160, 128], strides = [1, 1, 1]} : vector<11x160x128xf32> to vector<1x160x128xf32>
    %27 = vector.shape_cast %26 : vector<1x160x128xf32> to vector<160x128xf32>
    %28 = vector.extract_strided_slice %25 {offsets = [0, 0, 0], sizes = [1, 160, 128], strides = [1, 1, 1]} : vector<11x160x128xf32> to vector<1x160x128xf32>
    %29 = vector.shape_cast %28 : vector<1x160x128xf32> to vector<160x128xf32>
    %30 = vector.extract_strided_slice %25 {offsets = [1, 0, 0], sizes = [1, 160, 128], strides = [1, 1, 1]} : vector<11x160x128xf32> to vector<1x160x128xf32>
    %31 = vector.shape_cast %30 : vector<1x160x128xf32> to vector<160x128xf32>
    %32 = arith.maximumf %27, %31 : vector<160x128xf32>
    %33 = arith.addf %29, %31 : vector<160x128xf32>
    %34 = vector.extract_strided_slice %25 {offsets = [2, 0, 0], sizes = [1, 160, 128], strides = [1, 1, 1]} : vector<11x160x128xf32> to vector<1x160x128xf32>
    %35 = vector.shape_cast %34 : vector<1x160x128xf32> to vector<160x128xf32>
    %36 = arith.maximumf %32, %35 : vector<160x128xf32>
    %37 = arith.addf %33, %35 : vector<160x128xf32>
    %38 = vector.extract_strided_slice %25 {offsets = [3, 0, 0], sizes = [1, 160, 128], strides = [1, 1, 1]} : vector<11x160x128xf32> to vector<1x160x128xf32>
    %39 = vector.shape_cast %38 : vector<1x160x128xf32> to vector<160x128xf32>
    %40 = arith.maximumf %36, %39 : vector<160x128xf32>
    %41 = arith.addf %37, %39 : vector<160x128xf32>
    %42 = vector.extract_strided_slice %25 {offsets = [4, 0, 0], sizes = [1, 160, 128], strides = [1, 1, 1]} : vector<11x160x128xf32> to vector<1x160x128xf32>
    %43 = vector.shape_cast %42 : vector<1x160x128xf32> to vector<160x128xf32>
    %44 = arith.maximumf %40, %43 : vector<160x128xf32>
    %45 = arith.addf %41, %43 : vector<160x128xf32>
    %46 = vector.extract_strided_slice %25 {offsets = [5, 0, 0], sizes = [1, 160, 128], strides = [1, 1, 1]} : vector<11x160x128xf32> to vector<1x160x128xf32>
    %47 = vector.shape_cast %46 : vector<1x160x128xf32> to vector<160x128xf32>
    %48 = arith.maximumf %44, %47 : vector<160x128xf32>
    %49 = arith.addf %45, %47 : vector<160x128xf32>
    %50 = vector.extract_strided_slice %25 {offsets = [6, 0, 0], sizes = [1, 160, 128], strides = [1, 1, 1]} : vector<11x160x128xf32> to vector<1x160x128xf32>
    %51 = vector.shape_cast %50 : vector<1x160x128xf32> to vector<160x128xf32>
    %52 = arith.maximumf %48, %51 : vector<160x128xf32>
    %53 = arith.addf %49, %51 : vector<160x128xf32>
    %54 = vector.extract_strided_slice %25 {offsets = [7, 0, 0], sizes = [1, 160, 128], strides = [1, 1, 1]} : vector<11x160x128xf32> to vector<1x160x128xf32>
    %55 = vector.shape_cast %54 : vector<1x160x128xf32> to vector<160x128xf32>
    %56 = arith.maximumf %52, %55 : vector<160x128xf32>
    %57 = arith.addf %53, %55 : vector<160x128xf32>
    %58 = vector.extract_strided_slice %25 {offsets = [8, 0, 0], sizes = [1, 160, 128], strides = [1, 1, 1]} : vector<11x160x128xf32> to vector<1x160x128xf32>
    %59 = vector.shape_cast %58 : vector<1x160x128xf32> to vector<160x128xf32>
    %60 = arith.maximumf %56, %59 : vector<160x128xf32>
    %61 = arith.addf %57, %59 : vector<160x128xf32>
    %62 = vector.extract_strided_slice %25 {offsets = [9, 0, 0], sizes = [1, 160, 128], strides = [1, 1, 1]} : vector<11x160x128xf32> to vector<1x160x128xf32>
    %63 = vector.shape_cast %62 : vector<1x160x128xf32> to vector<160x128xf32>
    %64 = arith.maximumf %60, %63 : vector<160x128xf32>
    %65 = arith.addf %61, %63 : vector<160x128xf32>
    %66 = vector.extract_strided_slice %25 {offsets = [10, 0, 0], sizes = [1, 160, 128], strides = [1, 1, 1]} : vector<11x160x128xf32> to vector<1x160x128xf32>
    %67 = vector.shape_cast %66 : vector<1x160x128xf32> to vector<160x128xf32>
    %68 = arith.maximumf %64, %67 : vector<160x128xf32>
    %69 = arith.addf %65, %67 : vector<160x128xf32>
    %cst_20 = arith.constant 0.212121218 : f32
    %70 = vector.broadcast %cst_20 : f32 to vector<160x128xf32>
    %71 = arith.mulf %70, %69 : vector<160x128xf32>
    %72 = arith.addf %68, %71 : vector<160x128xf32>
    %73 = arith.truncf %72 : vector<160x128xf32> to vector<160x128xbf16>
    %c0_21 = arith.constant 0 : index
    %c0_22 = arith.constant 0 : index
    %74 = vector.load %arg8[%c0_21, %c0_22] : memref<128x160xbf16, #tpu.memory_space<vmem>>, vector<128x160xbf16>
    %cst_23 = arith.constant dense<0.000000e+00> : vector<160x160xf32>
    %75 = tpu.matmul %73, %74, %cst_23 {dimension_numbers = #tpu.dot_dimension_numbers<[1], [0], [0], [1], [0, 0, 1, 1], [], []>} : vector<160x128xbf16>, vector<128x160xbf16>, vector<160x160xf32> -> vector<160x160xf32>
    %c0_24 = arith.constant 0 : index
    %c0_25 = arith.constant 0 : index
    %76 = vector.load %arg9[%c0_24, %c0_25] : memref<1x160xf32, #tpu.memory_space<vmem>>, vector<1x160xf32>
    %77 = vector.broadcast %76 : vector<1x160xf32> to vector<160x160xf32>
    %78 = arith.addf %75, %77 : vector<160x160xf32>
    %cst_26 = arith.constant 0.000000e+00 : f32
    %79 = vector.broadcast %cst_26 : f32 to vector<160x160xf32>
    %80 = arith.maximumf %78, %79 : vector<160x160xf32>
    %81 = arith.truncf %80 : vector<160x160xf32> to vector<160x160xbf16>
    %c0_27 = arith.constant 0 : index
    %c0_28 = arith.constant 0 : index
    %82 = vector.load %arg10[%c0_27, %c0_28] : memref<160x128xbf16, #tpu.memory_space<vmem>>, vector<160x128xbf16>
    %cst_29 = arith.constant dense<0.000000e+00> : vector<160x128xf32>
    %83 = tpu.matmul %81, %82, %cst_29 {dimension_numbers = #tpu.dot_dimension_numbers<[1], [0], [0], [1], [0, 0, 1, 1], [], []>} : vector<160x160xbf16>, vector<160x128xbf16>, vector<160x128xf32> -> vector<160x128xf32>
    %c0_30 = arith.constant 0 : index
    %c0_31 = arith.constant 0 : index
    %84 = vector.load %arg11[%c0_30, %c0_31] : memref<1x128xf32, #tpu.memory_space<vmem>>, vector<1x128xf32>
    %85 = vector.broadcast %84 : vector<1x128xf32> to vector<160x128xf32>
    %86 = arith.addf %83, %85 : vector<160x128xf32>
    %cst_32 = arith.constant 0.000000e+00 : f32
    %87 = vector.broadcast %cst_32 : f32 to vector<160x128xf32>
    %88 = arith.maximumf %86, %87 : vector<160x128xf32>
    %89 = arith.truncf %88 : vector<160x128xf32> to vector<160x128xbf16>
    %c0_33 = arith.constant 0 : index
    %c0_34 = arith.constant 0 : index
    %90 = vector.load %arg12[%c0_33, %c0_34] : memref<128x128xbf16, #tpu.memory_space<vmem>>, vector<128x128xbf16>
    %cst_35 = arith.constant dense<0.000000e+00> : vector<160x128xf32>
    %91 = tpu.matmul %89, %90, %cst_35 {dimension_numbers = #tpu.dot_dimension_numbers<[1], [0], [0], [1], [0, 0, 1, 1], [], []>} : vector<160x128xbf16>, vector<128x128xbf16>, vector<160x128xf32> -> vector<160x128xf32>
    %c0_36 = arith.constant 0 : index
    %c0_37 = arith.constant 0 : index
    %92 = vector.load %arg13[%c0_36, %c0_37] : memref<1x128xf32, #tpu.memory_space<vmem>>, vector<1x128xf32>
    %93 = vector.broadcast %92 : vector<1x128xf32> to vector<160x128xf32>
    %94 = arith.addf %91, %93 : vector<160x128xf32>
    %cst_38 = arith.constant 0.000000e+00 : f32
    %95 = vector.broadcast %cst_38 : f32 to vector<160x128xf32>
    %96 = arith.maximumf %94, %95 : vector<160x128xf32>
    %c0_39 = arith.constant 0 : index
    %c0_40 = arith.constant 0 : index
    %97 = vector.load %arg14[%c0_39, %c0_40] : memref<1x128xf32, #tpu.memory_space<vmem>>, vector<1x128xf32>
    %98 = vector.broadcast %97 : vector<1x128xf32> to vector<160x128xf32>
    %99 = arith.mulf %96, %98 : vector<160x128xf32>
    %c0_41 = arith.constant 0 : index
    %c0_42 = arith.constant 0 : index
    %100 = vector.load %arg15[%c0_41, %c0_42] : memref<1x128xf32, #tpu.memory_space<vmem>>, vector<1x128xf32>
    %101 = vector.broadcast %100 : vector<1x128xf32> to vector<160x128xf32>
    %102 = arith.addf %99, %101 : vector<160x128xf32>
    %103 = vector.shape_cast %102 : vector<160x128xf32> to vector<10x16x128xf32>
    %104 = vector.extract_strided_slice %103 {offsets = [0, 0, 0], sizes = [1, 16, 128], strides = [1, 1, 1]} : vector<10x16x128xf32> to vector<1x16x128xf32>
    %105 = vector.shape_cast %104 : vector<1x16x128xf32> to vector<16x128xf32>
    %106 = vector.extract_strided_slice %103 {offsets = [0, 0, 0], sizes = [1, 16, 128], strides = [1, 1, 1]} : vector<10x16x128xf32> to vector<1x16x128xf32>
    %107 = vector.shape_cast %106 : vector<1x16x128xf32> to vector<16x128xf32>
    %108 = vector.extract_strided_slice %103 {offsets = [1, 0, 0], sizes = [1, 16, 128], strides = [1, 1, 1]} : vector<10x16x128xf32> to vector<1x16x128xf32>
    %109 = vector.shape_cast %108 : vector<1x16x128xf32> to vector<16x128xf32>
    %110 = arith.maximumf %105, %109 : vector<16x128xf32>
    %111 = arith.addf %107, %109 : vector<16x128xf32>
    %112 = vector.extract_strided_slice %103 {offsets = [2, 0, 0], sizes = [1, 16, 128], strides = [1, 1, 1]} : vector<10x16x128xf32> to vector<1x16x128xf32>
    %113 = vector.shape_cast %112 : vector<1x16x128xf32> to vector<16x128xf32>
    %114 = arith.maximumf %110, %113 : vector<16x128xf32>
    %115 = arith.addf %111, %113 : vector<16x128xf32>
    %116 = vector.extract_strided_slice %103 {offsets = [3, 0, 0], sizes = [1, 16, 128], strides = [1, 1, 1]} : vector<10x16x128xf32> to vector<1x16x128xf32>
    %117 = vector.shape_cast %116 : vector<1x16x128xf32> to vector<16x128xf32>
    %118 = arith.maximumf %114, %117 : vector<16x128xf32>
    %119 = arith.addf %115, %117 : vector<16x128xf32>
    %120 = vector.extract_strided_slice %103 {offsets = [4, 0, 0], sizes = [1, 16, 128], strides = [1, 1, 1]} : vector<10x16x128xf32> to vector<1x16x128xf32>
    %121 = vector.shape_cast %120 : vector<1x16x128xf32> to vector<16x128xf32>
    %122 = arith.maximumf %118, %121 : vector<16x128xf32>
    %123 = arith.addf %119, %121 : vector<16x128xf32>
    %124 = vector.extract_strided_slice %103 {offsets = [5, 0, 0], sizes = [1, 16, 128], strides = [1, 1, 1]} : vector<10x16x128xf32> to vector<1x16x128xf32>
    %125 = vector.shape_cast %124 : vector<1x16x128xf32> to vector<16x128xf32>
    %126 = arith.maximumf %122, %125 : vector<16x128xf32>
    %127 = arith.addf %123, %125 : vector<16x128xf32>
    %128 = vector.extract_strided_slice %103 {offsets = [6, 0, 0], sizes = [1, 16, 128], strides = [1, 1, 1]} : vector<10x16x128xf32> to vector<1x16x128xf32>
    %129 = vector.shape_cast %128 : vector<1x16x128xf32> to vector<16x128xf32>
    %130 = arith.maximumf %126, %129 : vector<16x128xf32>
    %131 = arith.addf %127, %129 : vector<16x128xf32>
    %132 = vector.extract_strided_slice %103 {offsets = [7, 0, 0], sizes = [1, 16, 128], strides = [1, 1, 1]} : vector<10x16x128xf32> to vector<1x16x128xf32>
    %133 = vector.shape_cast %132 : vector<1x16x128xf32> to vector<16x128xf32>
    %134 = arith.maximumf %130, %133 : vector<16x128xf32>
    %135 = arith.addf %131, %133 : vector<16x128xf32>
    %136 = vector.extract_strided_slice %103 {offsets = [8, 0, 0], sizes = [1, 16, 128], strides = [1, 1, 1]} : vector<10x16x128xf32> to vector<1x16x128xf32>
    %137 = vector.shape_cast %136 : vector<1x16x128xf32> to vector<16x128xf32>
    %138 = arith.maximumf %134, %137 : vector<16x128xf32>
    %139 = arith.addf %135, %137 : vector<16x128xf32>
    %140 = vector.extract_strided_slice %103 {offsets = [9, 0, 0], sizes = [1, 16, 128], strides = [1, 1, 1]} : vector<10x16x128xf32> to vector<1x16x128xf32>
    %141 = vector.shape_cast %140 : vector<1x16x128xf32> to vector<16x128xf32>
    %142 = arith.maximumf %138, %141 : vector<16x128xf32>
    %143 = arith.addf %139, %141 : vector<16x128xf32>
    %cst_43 = arith.constant 0.233333334 : f32
    %144 = vector.broadcast %cst_43 : f32 to vector<16x128xf32>
    %145 = arith.mulf %144, %143 : vector<16x128xf32>
    %146 = arith.addf %142, %145 : vector<16x128xf32>
    %147 = arith.truncf %146 : vector<16x128xf32> to vector<16x128xbf16>
    %c0_44 = arith.constant 0 : index
    %c0_45 = arith.constant 0 : index
    %148 = vector.load %arg16[%c0_44, %c0_45] : memref<128x128xbf16, #tpu.memory_space<vmem>>, vector<128x128xbf16>
    %cst_46 = arith.constant dense<0.000000e+00> : vector<16x128xf32>
    %149 = tpu.matmul %147, %148, %cst_46 {dimension_numbers = #tpu.dot_dimension_numbers<[1], [0], [0], [1], [0, 0, 1, 1], [], []>} : vector<16x128xbf16>, vector<128x128xbf16>, vector<16x128xf32> -> vector<16x128xf32>
    %cst_47 = arith.constant 0.000000e+00 : f32
    %150 = vector.broadcast %cst_47 : f32 to vector<16x128xf32>
    %151 = arith.maximumf %149, %150 : vector<16x128xf32>
    %152 = arith.truncf %151 : vector<16x128xf32> to vector<16x128xbf16>
    %c0_48 = arith.constant 0 : index
    %c0_49 = arith.constant 0 : index
    %153 = vector.load %arg17[%c0_48, %c0_49] : memref<128x256xbf16, #tpu.memory_space<vmem>>, vector<128x256xbf16>
    %cst_50 = arith.constant dense<0.000000e+00> : vector<16x256xf32>
    %154 = tpu.matmul %152, %153, %cst_50 {dimension_numbers = #tpu.dot_dimension_numbers<[1], [0], [0], [1], [0, 0, 1, 1], [], []>} : vector<16x128xbf16>, vector<128x256xbf16>, vector<16x256xf32> -> vector<16x256xf32>
    %c0_51 = arith.constant 0 : index
    %c0_52 = arith.constant 0 : index
    %155 = vector.load %arg18[%c0_51, %c0_52] : memref<1x256xf32, #tpu.memory_space<vmem>>, vector<1x256xf32>
    %156 = vector.broadcast %155 : vector<1x256xf32> to vector<16x256xf32>
    %157 = arith.addf %154, %156 : vector<16x256xf32>
    %cst_53 = arith.constant 0.000000e+00 : f32
    %158 = vector.broadcast %cst_53 : f32 to vector<16x256xf32>
    %159 = arith.maximumf %157, %158 : vector<16x256xf32>
    %cst_54 = arith.constant dense<0.000000e+00> : vector<16xf32>
    %160 = vector.multi_reduction <add>, %159, %cst_54 [1] : vector<16x256xf32> to vector<16xf32>
    %161 = vector.shape_cast %160 : vector<16xf32> to vector<16x1xf32>
    %cst_55 = arith.constant 2.560000e+02 : f32
    %162 = vector.broadcast %cst_55 : f32 to vector<16x1xf32>
    %163 = arith.divf %161, %162 : vector<16x1xf32>
    %164 = vector.broadcast %163 : vector<16x1xf32> to vector<16x256xf32>
    %165 = arith.subf %159, %164 : vector<16x256xf32>
    %166 = arith.mulf %165, %165 : vector<16x256xf32>
    %cst_56 = arith.constant dense<0.000000e+00> : vector<16xf32>
    %167 = vector.multi_reduction <add>, %166, %cst_56 [1] : vector<16x256xf32> to vector<16xf32>
    %168 = vector.shape_cast %167 : vector<16xf32> to vector<16x1xf32>
    %cst_57 = arith.constant 2.560000e+02 : f32
    %169 = vector.broadcast %cst_57 : f32 to vector<16x1xf32>
    %170 = arith.divf %168, %169 : vector<16x1xf32>
    %cst_58 = arith.constant 9.99999974E-6 : f32
    %171 = vector.broadcast %cst_58 : f32 to vector<16x1xf32>
    %172 = arith.addf %170, %171 : vector<16x1xf32>
    %173 = math.rsqrt %172 : vector<16x1xf32>
    %174 = vector.broadcast %173 : vector<16x1xf32> to vector<16x256xf32>
    %175 = arith.mulf %165, %174 : vector<16x256xf32>
    %c0_59 = arith.constant 0 : index
    %c0_60 = arith.constant 0 : index
    %176 = vector.load %arg19[%c0_59, %c0_60] : memref<1x256xf32, #tpu.memory_space<vmem>>, vector<1x256xf32>
    %177 = vector.broadcast %176 : vector<1x256xf32> to vector<16x256xf32>
    %178 = arith.mulf %175, %177 : vector<16x256xf32>
    %c0_61 = arith.constant 0 : index
    %c0_62 = arith.constant 0 : index
    %179 = vector.load %arg20[%c0_61, %c0_62] : memref<1x256xf32, #tpu.memory_space<vmem>>, vector<1x256xf32>
    %180 = vector.broadcast %179 : vector<1x256xf32> to vector<16x256xf32>
    %181 = arith.addf %178, %180 : vector<16x256xf32>
    %182 = arith.truncf %181 : vector<16x256xf32> to vector<16x256xbf16>
    %c0_63 = arith.constant 0 : index
    %c0_64 = arith.constant 0 : index
    %183 = vector.load %arg21[%c0_63, %c0_64] : memref<256x128xbf16, #tpu.memory_space<vmem>>, vector<256x128xbf16>
    %cst_65 = arith.constant dense<0.000000e+00> : vector<16x128xf32>
    %184 = tpu.matmul %182, %183, %cst_65 {dimension_numbers = #tpu.dot_dimension_numbers<[1], [0], [0], [1], [0, 0, 1, 1], [], []>} : vector<16x256xbf16>, vector<256x128xbf16>, vector<16x128xf32> -> vector<16x128xf32>
    %c0_66 = arith.constant 0 : index
    %c0_67 = arith.constant 0 : index
    %185 = vector.load %arg22[%c0_66, %c0_67] : memref<1x128xf32, #tpu.memory_space<vmem>>, vector<1x128xf32>
    %186 = vector.broadcast %185 : vector<1x128xf32> to vector<16x128xf32>
    %187 = arith.addf %184, %186 : vector<16x128xf32>
    %c0_68 = arith.constant 0 : index
    %c0_69 = arith.constant 0 : index
    %188 = vector.load %arg23[%c0_68, %c0_69] : memref<16x128xf32, #tpu.memory_space<vmem>>, vector<16x128xf32>
    tpu.vector_store %arg23[%c0_68, %c0_69], %187 {strides = array<i32>} : memref<16x128xf32, #tpu.memory_space<vmem>>, vector<16x128xf32>,
    return
  }
  func.func @transform_0(%arg0: i32) -> (i32, i32, i32, i32) {
    %c0_i32 = arith.constant 0 : i32
    %c0_i32_0 = arith.constant 0 : i32
    %c0_i32_1 = arith.constant 0 : i32
    %c0_i32_2 = arith.constant 0 : i32
    return %c0_i32, %c0_i32_0, %arg0, %c0_i32_1 : i32, i32, i32, i32
  }
  func.func @transform_1(%arg0: i32) -> (i32, i32) {
    %c0_i32 = arith.constant 0 : i32
    %c0_i32_0 = arith.constant 0 : i32
    %c0_i32_1 = arith.constant 0 : i32
    return %c0_i32, %c0_i32_0 : i32, i32
  }
  func.func @transform_2(%arg0: i32) -> (i32, i32) {
    %c0_i32 = arith.constant 0 : i32
    %c0_i32_0 = arith.constant 0 : i32
    %c0_i32_1 = arith.constant 0 : i32
    return %c0_i32, %c0_i32_0 : i32, i32
  }
  func.func @transform_3(%arg0: i32) -> (i32, i32) {
    %c0_i32 = arith.constant 0 : i32
    %c0_i32_0 = arith.constant 0 : i32
    %c0_i32_1 = arith.constant 0 : i32
    return %c0_i32, %c0_i32_0 : i32, i32
  }
  func.func @transform_4(%arg0: i32) -> (i32, i32) {
    %c0_i32 = arith.constant 0 : i32
    %c0_i32_0 = arith.constant 0 : i32
    %c0_i32_1 = arith.constant 0 : i32
    return %c0_i32, %c0_i32_0 : i32, i32
  }
  func.func @transform_5(%arg0: i32) -> (i32, i32) {
    %c0_i32 = arith.constant 0 : i32
    %c0_i32_0 = arith.constant 0 : i32
    %c0_i32_1 = arith.constant 0 : i32
    return %c0_i32, %c0_i32_0 : i32, i32
  }
  func.func @transform_6(%arg0: i32) -> (i32, i32) {
    %c0_i32 = arith.constant 0 : i32
    %c0_i32_0 = arith.constant 0 : i32
    %c0_i32_1 = arith.constant 0 : i32
    return %c0_i32, %c0_i32_0 : i32, i32
  }
  func.func @transform_7(%arg0: i32) -> (i32, i32) {
    %c0_i32 = arith.constant 0 : i32
    %c0_i32_0 = arith.constant 0 : i32
    %c0_i32_1 = arith.constant 0 : i32
    return %c0_i32, %c0_i32_0 : i32, i32
  }
  func.func @transform_8(%arg0: i32) -> (i32, i32) {
    %c0_i32 = arith.constant 0 : i32
    %c0_i32_0 = arith.constant 0 : i32
    %c0_i32_1 = arith.constant 0 : i32
    return %c0_i32, %c0_i32_0 : i32, i32
  }
  func.func @transform_9(%arg0: i32) -> (i32, i32) {
    %c0_i32 = arith.constant 0 : i32
    %c0_i32_0 = arith.constant 0 : i32
    %c0_i32_1 = arith.constant 0 : i32
    return %c0_i32, %c0_i32_0 : i32, i32
  }
  func.func @transform_10(%arg0: i32) -> (i32, i32) {
    %c0_i32 = arith.constant 0 : i32
    %c0_i32_0 = arith.constant 0 : i32
    %c0_i32_1 = arith.constant 0 : i32
    return %c0_i32, %c0_i32_0 : i32, i32
  }
  func.func @transform_11(%arg0: i32) -> (i32, i32) {
    %c0_i32 = arith.constant 0 : i32
    %c0_i32_0 = arith.constant 0 : i32
    %c0_i32_1 = arith.constant 0 : i32
    return %c0_i32, %c0_i32_0 : i32, i32
  }
  func.func @transform_12(%arg0: i32) -> (i32, i32) {
    %c0_i32 = arith.constant 0 : i32
    %c0_i32_0 = arith.constant 0 : i32
    %c0_i32_1 = arith.constant 0 : i32
    return %c0_i32, %c0_i32_0 : i32, i32
  }
  func.func @transform_13(%arg0: i32) -> (i32, i32) {
    %c0_i32 = arith.constant 0 : i32
    %c0_i32_0 = arith.constant 0 : i32
    %c0_i32_1 = arith.constant 0 : i32
    return %c0_i32, %c0_i32_0 : i32, i32
  }
  func.func @transform_14(%arg0: i32) -> (i32, i32) {
    %c0_i32 = arith.constant 0 : i32
    %c0_i32_0 = arith.constant 0 : i32
    %c0_i32_1 = arith.constant 0 : i32
    return %c0_i32, %c0_i32_0 : i32, i32
  }
  func.func @transform_15(%arg0: i32) -> (i32, i32) {
    %c0_i32 = arith.constant 0 : i32
    %c0_i32_0 = arith.constant 0 : i32
    %c0_i32_1 = arith.constant 0 : i32
    return %c0_i32, %c0_i32_0 : i32, i32
  }
  func.func @transform_16(%arg0: i32) -> (i32, i32) {
    %c0_i32 = arith.constant 0 : i32
    %c0_i32_0 = arith.constant 0 : i32
    %c0_i32_1 = arith.constant 0 : i32
    return %c0_i32, %c0_i32_0 : i32, i32
  }
  func.func @transform_17(%arg0: i32) -> (i32, i32) {
    %c0_i32 = arith.constant 0 : i32
    %c0_i32_0 = arith.constant 0 : i32
    %c0_i32_1 = arith.constant 0 : i32
    return %c0_i32, %c0_i32_0 : i32, i32
  }
  func.func @transform_18(%arg0: i32) -> (i32, i32) {
    %c0_i32 = arith.constant 0 : i32
    %c0_i32_0 = arith.constant 0 : i32
    %c0_i32_1 = arith.constant 0 : i32
    return %c0_i32, %c0_i32_0 : i32, i32
  }
  func.func @transform_19(%arg0: i32) -> (i32, i32) {
    %c0_i32 = arith.constant 0 : i32
    %c0_i32_0 = arith.constant 0 : i32
    %c0_i32_1 = arith.constant 0 : i32
    return %c0_i32, %c0_i32_0 : i32, i32
  }
  func.func @transform_20(%arg0: i32) -> (i32, i32) {
    %c0_i32 = arith.constant 0 : i32
    %c0_i32_0 = arith.constant 0 : i32
    %c0_i32_1 = arith.constant 0 : i32
    return %c0_i32, %c0_i32_0 : i32, i32
  }
  func.func @transform_21(%arg0: i32) -> (i32, i32) {
    %c0_i32 = arith.constant 0 : i32
    %c0_i32_0 = arith.constant 0 : i32
    %c0_i32_1 = arith.constant 0 : i32
    return %c0_i32, %c0_i32_0 : i32, i32
  }
  func.func @transform_22(%arg0: i32) -> (i32, i32) {
    %c0_i32 = arith.constant 0 : i32
    %c0_i32_0 = arith.constant 0 : i32
    return %arg0, %c0_i32 : i32, i32
  }
}

</mosaic_0001>

<bundles_post_ra>
// kernel: nfl_rush_net_forward.1
= control target key start
LH: loop header
LB: loop body
LE: loop exit
PB: predicated region body
PF: predicated region fallthrough
CT: control target
= control target key end

     0   :  { %vm857_vm0 = vcmask 130048   ;;  %v12558_v4 = vmov 0   ;;  %vm4419_vm1 = vcmask 261120   ;;  %vm8844_vm2 = vmmov 0   ;;  %s12530_s1 = inlined_call_operand.vmem [shape: bf16[16,128], index: 1, kind: input, shape index: {}]   ;;  %s12531_s0 = inlined_call_operand.vmem [shape: bf16[11,10,16,16], index: 0, kind: input, shape index: {}]   ;;  %s12532_s5 = inlined_call_operand.vmem [shape: bf16[160,128], index: 5, kind: input, shape index: {}]   ;;  %s12533_s3 = inlined_call_operand.vmem [shape: bf16[128,160], index: 3, kind: input, shape index: {}]   ;;  %s12534_s2 = inlined_call_operand.vmem [shape: f32[1,128], index: 2, kind: input, shape index: {}]   ;;  %s12535_s4 = inlined_call_operand.vmem [shape: f32[1,160], index: 4, kind: input, shape index: {}]   ;;  %s12536_s7 = inlined_call_operand.vmem [shape: bf16[128,160], index: 7, kind: input, shape index: {}]   ;;  %s12537_s6 = inlined_call_operand.vmem [shape: f32[1,128], index: 6, kind: input, shape index: {}]   ;;  %s12538_s9 = inlined_call_operand.vmem [shape: bf16[160,128], index: 9, kind: input, shape index: {}]   ;;  %s12539_s11 = inlined_call_operand.vmem [shape: bf16[128,128], index: 11, kind: input, shape index: {}]   ;;  %s12540_s8 = inlined_call_operand.vmem [shape: f32[1,160], index: 8, kind: input, shape index: {}]   ;;  %s12541_s10 = inlined_call_operand.vmem [shape: f32[1,128], index: 10, kind: input, shape index: {}]   ;;  %s12542_s15 = inlined_call_operand.vmem [shape: bf16[128,128], index: 15, kind: input, shape index: {}]   ;;  %s12543_s16 = inlined_call_operand.vmem [shape: bf16[128,256], index: 16, kind: input, shape index: {}]   ;;  %s12544_s12 = inlined_call_operand.vmem [shape: f32[1,128], index: 12, kind: input, shape index: {}]   ;;  %s12545_s13 = inlined_call_operand.vmem [shape: f32[1,128], index: 13, kind: input, shape index: {}]   ;;  %s12546_s14 = inlined_call_operand.vmem [shape: f32[1,128], index: 14, kind: input, shape index: {}]   ;;  %s12547_s17 = inlined_call_operand.vmem [shape: f32[1,256], index: 17, kind: input, shape index: {}]   ;;  %s12548_s20 = inlined_call_operand.vmem [shape: bf16[256,128], index: 20, kind: input, shape index: {}]   ;;  %s12549_s18 = inlined_call_operand.vmem [shape: f32[1,256], index: 18, kind: input, shape index: {}]   ;;  %s12550_s19 = inlined_call_operand.vmem [shape: f32[1,256], index: 19, kind: input, shape index: {}]   ;;  %s12551_s21 = inlined_call_operand.vmem [shape: f32[1,128], index: 21, kind: input, shape index: {}]   ;;  %s12552_s22 = inlined_call_operand.vmem [shape: f32[16,128], index: 22, kind: output, shape index: {}]  }
   0x1   :  { %12565 = sst [smem:[#allocation39_spill]] %s12530_s1 }
   0x2   :  { %12566 = sst [smem:[#allocation40_spill]] %s12531_s0  ;;  %s12572_s29 = sld [smem:[#allocation39_spill]] }
   0x3   :  { %12567 = sst [smem:[#allocation41_spill]] %s12532_s5  ;;  %s12573_s1 = sld [smem:[#allocation40_spill]] }
   0x4   :  { %12568 = sst [smem:[#allocation42_spill]] %s12533_s3  ;;  %s12574_s28 = sld [smem:[#allocation41_spill]] }
   0x5   :  { %12569 = sst [smem:[#allocation43_spill]] %s12534_s2  ;;  %s12575_s30 = sld [smem:[#allocation42_spill]] }
   0x6   :  { %12570 = sst [smem:[#allocation44_spill]] %s12535_s4 }
   0x7   :  { %12571 = sst [smem:[#allocation45_spill]] %s12536_s7  ;;  %s12598_s0 = sld [smem:[#allocation44_spill]] }
   0x8   :  { %v8596_v0 = vld [vmem:[%s12572_s29] sm:$0xff]   ;;  %s12576_s29 = sld [smem:[#allocation43_spill]]  ;;  %s12601_s4 = sld [smem:[#allocation45_spill]] }
   0x9   :  { %v8597_v1 = vld [vmem:[%s12573_s1] sm:$0xff]   ;;  %8313 = vmatprep.subr.bf16.mxu0 %v8596_v0  ;;  %v8598_v2 = vld [vmem:[%s12573_s1 + $0x8] sm:$0xff]   ;;  %8591 = vmatprep.subr.bf16.mxu1 %v8596_v0  ;;  %v8599_v3 = vld [vmem:[%s12573_s1 + $0x10] sm:$0xff]  }
   0xa   :  { %8314 = vmatpush3.bf16.msra.mxu0 %v8596_v0  ;;  %8315 = vmatprep.mubr.msk.bf16.mxu0 %vm857_vm0, %v8597_v1  ;;  %v8600_v5 = vld [vmem:[%s12573_s1 + $0x18] sm:$0xff]   ;;  %v8601_v6 = vld [vmem:[%s12573_s1 + $0x20] sm:$0xff]   ;;  %v8602_v8 = vld [vmem:[%s12573_s1 + $0x28] sm:$0xff]  }
   0xb   :  { %4750 = vmatprep.subr.bf16.mxu0 %v12558_v4  ;;  %8592 = vmatpush3.bf16.msra.mxu1 %v8596_v0  ;;  %v8609_v7 = vld [vmem:[%s12574_s28] sm:$0xff]   ;;  %v8614_v9 = vld [vmem:[%s12574_s28 + $0x8] sm:$0xff]   ;;  %v8603_v10 = vld [vmem:[%s12573_s1 + $0x30] sm:$0xff]  }
   0xc   :  { %v8617_v11 = vld [vmem:[%s12573_s1 + $0x2d0] sm:$0xff]   ;;  %v8618_v12 = vld [vmem:[%s12573_s1 + $0x2d8] sm:$0xff]   ;;  %v8620_v14 = vld [vmem:[%s12575_s30] ss:$8 sps:$4 sm:$0xff]  }
   0xd   :  { %8316 = vmatmul.mubr.msk.bf16.vlgmr.msra.gmra.mrb[0].mxu0 %vm857_vm0, %v8598_v2  ;;  %8495 = vmatprep.mubr.msk.bf16.mxu1 %vm857_vm0, %v8617_v11  ;;  %v8604_v13 = vld [vmem:[%s12573_s1 + $0x38] sm:$0xff]   ;;  %v8622_v15 = vld [vmem:[%s12575_s30 + $0x4] ss:$8 sps:$4 sm:$0xff]   ;;  %v8629_v21 = vld [vmem:[%s12573_s1 + $0x2f0] sm:$0xff]  }
   0xe   :  { %8319 = vmatprep.mubr.msk.bf16.mxu0 %vm857_vm0, %v8599_v3  ;;  %4751 = vmatpush1.bf16.msra.mxu0 %v8609_v7  ;;  %v8605_v16 = vld [vmem:[%s12573_s1 + $0x40] sm:$0xff]   ;;  %v8625_v18 = vld [vmem:[%s12573_s1 + $0x2e8] sm:$0xff]   ;;  %v8626_v19 = vld [vmem:[%s12575_s30 + $0x10] ss:$8 sps:$4 sm:$0xff]  }
   0xf   :  { %4752 = vmatprep.subr.bf16.mxu0 %v12558_v4  ;;  %8496 = vmatmul.mubr.msk.bf16.vlgmr.msra.gmra.mrb[0].mxu1 %vm857_vm0, %v8618_v12  ;;  %v8624_v17 = vld [vmem:[%s12573_s1 + $0x2e0] sm:$0xff]   ;;  %v8628_v20 = vld [vmem:[%s12575_s30 + $0x14] ss:$8 sps:$4 sm:$0xff]   ;;  %v8606_v23 = vld [vmem:[%s12573_s1 + $0x48] sm:$0xff]  }
  0x10   :  { %2539 = vmatprep.subr.bf16.mxu1 %v8622_v15  ;;  %8499 = vmatprep.mubr.msk.bf16.mxu1 %vm857_vm0, %v8624_v17  ;;  %v8631_v22 = vld [vmem:[%s12574_s28 + $0x10] sm:$0xff]   ;;  %v8634_v25 = vld [vmem:[%s12575_s30 + $0x20] ss:$8 sps:$4 sm:$0xff]   ;;  %v8636_v26 = vld [vmem:[%s12575_s30 + $0x24] ss:$8 sps:$4 sm:$0xff]  }
  0x11   :  { %2540 = vmatpush1.bf16.msra.mxu1 %v8620_v14  ;;  %v8607_v24 = vld [vmem:[%s12573_s1 + $0x50] sm:$0xff]   ;;  %v8630_v27 = vld [vmem:[%s12573_s1 + $0x2f8] sm:$0xff]   ;;  %v8637_v28 = vld [vmem:[%s12573_s1 + $0x300] sm:$0xff]  }
  0x12   :  { %4753 = vmatpush1.bf16.msra.mxu0 %v8614_v9  ;;  %2541 = vmatprep.subr.bf16.mxu1 %v8628_v20  ;;  %v8608_v29 = vld [vmem:[%s12573_s1 + $0x58] sm:$0xff]   ;;  %v8610_v30 = vld [vmem:[%s12573_s1 + $0x60] sm:$0xff]   ;;  %v8638_v33 = vld [vmem:[%s12573_s1 + $0x308] sm:$0xff]  }
  0x13   :  { %4754 = vmatprep.subr.bf16.mxu0 %v12558_v4  ;;  %v8643_v31 = vld [vmem:[%s12575_s30 + $0x30] ss:$8 sps:$4 sm:$0xff]   ;;  %v8645_v32 = vld [vmem:[%s12575_s30 + $0x34] ss:$8 sps:$4 sm:$0xff]   ;;  %v8650_v35 = vld [vmem:[%s12575_s30 + $0x40] ss:$8 sps:$4 sm:$0xff]  }
  0x14   :  { %v8641_v34 = vld [vmem:[%s12573_s1 + $0x310] sm:$0xff]   ;;  %v8652_v36 = vld [vmem:[%s12575_s30 + $0x44] ss:$8 sps:$4 sm:$0xff]   ;;  %v8642_v39 = vld [vmem:[%s12573_s1 + $0x318] sm:$0xff]  }
  0x15   :  { %8320 = vmatmul.mubr.msk.bf16.gmra.mrb[4].mxu0 %vm857_vm0, %v8600_v5  ;;  %2542 = vmatpush1.bf16.msra.mxu1 %v8626_v19  ;;  %v8611_v37 = vld [vmem:[%s12573_s1 + $0x68] sm:$0xff]   ;;  %v8612_v38 = vld [vmem:[%s12573_s1 + $0x70] sm:$0xff]   ;;  %v8648_v40 = vld [vmem:[%s12573_s1 + $0x320] sm:$0xff]  }
  0x16   :  { %8323 = vmatprep.mubr.msk.bf16.mxu0 %vm857_vm0, %v8601_v6  ;;  %4755 = vmatpush1.bf16.msra.mxu0 %v8631_v22  ;;  %v8657_v41 = vld [vmem:[%s12575_s30 + $0x50] ss:$8 sps:$4 sm:$0xff]   ;;  %v8659_v42 = vld [vmem:[%s12575_s30 + $0x54] ss:$8 sps:$4 sm:$0xff]   ;;  %v8615_v45 = vld [vmem:[%s12573_s1 + $0x80] sm:$0xff]  }
  0x17   :  { %8500 = vmatmul.mubr.msk.bf16.gmra.mrb[4].mxu1 %vm857_vm0, %v8625_v18  ;;  %4756 = vmatprep.subr.bf16.mxu0 %v12558_v4  ;;  %v8661_v43 = vld [vmem:[%s12574_s28 + $0x18] sm:$0xff]   ;;  %v8649_v46 = vld [vmem:[%s12573_s1 + $0x328] sm:$0xff]   ;;  %v8655_v47 = vld [vmem:[%s12573_s1 + $0x330] sm:$0xff]  }
  0x18   :  { %8503 = vmatprep.mubr.msk.bf16.mxu1 %vm857_vm0, %v8629_v21  ;;  %2543 = vmatprep.subr.bf16.mxu1 %v8636_v26  ;;  %v8613_v44 = vld [vmem:[%s12573_s1 + $0x78] sm:$0xff]   ;;  %v8667_v48 = vld [vmem:[%s12575_s30 + $0x60] ss:$8 sps:$4 sm:$0xff]   ;;  %v8669_v49 = vld [vmem:[%s12575_s30 + $0x64] ss:$8 sps:$4 sm:$0xff]  }
  0x19   :  { %2544 = vmatpush1.bf16.msra.mxu1 %v8634_v25  ;;  %v8616_v50 = vld [vmem:[%s12573_s1 + $0x88] sm:$0xff]   ;;  %v8619_v51 = vld [vmem:[%s12573_s1 + $0x90] sm:$0xff]   ;;  %v8656_v52 = vld [vmem:[%s12573_s1 + $0x338] sm:$0xff]  }
  0x1a   :  { %2545 = vmatprep.subr.bf16.mxu1 %v8645_v32  ;;  %4757 = vmatpush1.bf16.msra.mxu0 %v8661_v43  ;;  %v8663_v53 = vld [vmem:[%s12573_s1 + $0x340] sm:$0xff]   ;;  %v8676_v54 = vld [vmem:[%s12575_s30 + $0x70] ss:$8 sps:$4 sm:$0xff]   ;;  %v8678_v55 = vld [vmem:[%s12575_s30 + $0x74] ss:$8 sps:$4 sm:$0xff]  }
  0x1b   :  { %4758 = vmatprep.subr.bf16.mxu0 %v12558_v4  ;;  %v8623_v56 = vld [vmem:[%s12573_s1 + $0x98] sm:$0xff]   ;;  %v8632_v57 = vld [vmem:[%s12573_s1 + $0xa0] sm:$0xff]   ;;  %v8664_v58 = vld [vmem:[%s12573_s1 + $0x348] sm:$0xff]  }
  0x1c   :  { %v8670_v59 = vld [vmem:[%s12573_s1 + $0x350] sm:$0xff]   ;;  %v8633_v60 = vld [vmem:[%s12573_s1 + $0xa8] sm:$0xff]   ;;  %v8671_v62 = vld [vmem:[%s12573_s1 + $0x358] sm:$0xff]  }
  0x1d   :  { %8324 = vmatmul.mubr.msk.bf16.gmra.mrb[8].mxu0 %vm857_vm0, %v8602_v8  ;;  %2546 = vmatpush1.bf16.msra.mxu1 %v8643_v31  ;;  %v8639_v61 = vld [vmem:[%s12573_s1 + $0xb0] sm:$0xff]   ;;  %v8674_v63 = vld [vmem:[%s12573_s1 + $0x360] sm:$0xff]   ;;  %v8640_v0 = vld [vmem:[%s12573_s1 + $0xb8] sm:$0xff]  }
  0x1e   :  { %8327 = vmatprep.mubr.msk.bf16.mxu0 %vm857_vm0, %v8603_v10  ;;  %2547 = vmatprep.subr.bf16.mxu1 %v8652_v36  ;;  %v8646_v1 = vld [vmem:[%s12573_s1 + $0xc0] sm:$0xff]   ;;  %v8675_v2 = vld [vmem:[%s12573_s1 + $0x368] sm:$0xff]   ;;  %v8653_v5 = vld [vmem:[%s12573_s1 + $0xd0] sm:$0xff]  }
  0x1f   :  { %8504 = vmatmul.mubr.msk.bf16.gmra.mrb[8].mxu1 %vm857_vm0, %v8630_v27  ;;  %v8647_v3 = vld [vmem:[%s12573_s1 + $0xc8] sm:$0xff]   ;;  %v8683_v6 = vld [vmem:[%s12574_s28 + $0x20] sm:$0xff]   ;;  %v8654_v7 = vld [vmem:[%s12573_s1 + $0xd8] sm:$0xff]  }
  0x20   :  { %8507 = vmatprep.mubr.msk.bf16.mxu1 %vm857_vm0, %v8637_v28  ;;  %4759 = vmatpush1.bf16.msra.mxu0 %v8683_v6  ;;  %v8660_v8 = vld [vmem:[%s12573_s1 + $0xe0] sm:$0xff]   ;;  %v8662_v9 = vld [vmem:[%s12573_s1 + $0xe8] sm:$0xff]   ;;  %v8665_v10 = vld [vmem:[%s12573_s1 + $0xf0] sm:$0xff]  }
  0x21   :  { %2548 = vmatpush1.bf16.msra.mxu1 %v8650_v35  ;;  %4760 = vmatprep.subr.bf16.mxu0 %v12558_v4  ;;  %v8666_v11 = vld [vmem:[%s12573_s1 + $0xf8] sm:$0xff]   ;;  %v8672_v12 = vld [vmem:[%s12573_s1 + $0x100] sm:$0xff]   ;;  %v8679_v14 = vld [vmem:[%s12573_s1 + $0x110] sm:$0xff]  }
  0x22   :  { %2549 = vmatprep.subr.bf16.mxu1 %v8659_v42  ;;  %v8680_v15 = vld [vmem:[%s12573_s1 + $0x118] sm:$0xff]   ;;  %v8693_v17 = vld [vmem:[%s12574_s28 + $0x28] sm:$0xff]   ;;  %v8684_v19 = vld [vmem:[%s12573_s1 + $0x130] sm:$0xff]  }
  0x23   :  { %v8682_v18 = vld [vmem:[%s12573_s1 + $0x128] sm:$0xff]   ;;  %v8685_v20 = vld [vmem:[%s12573_s1 + $0x138] sm:$0xff]   ;;  %v8686_v21 = vld [vmem:[%s12573_s1 + $0x140] sm:$0xff]  }
  0x24   :  { %4761 = vmatpush1.bf16.msra.mxu0 %v8693_v17  ;;  %v8687_v22 = vld [vmem:[%s12573_s1 + $0x148] sm:$0xff]   ;;  %v8690_v25 = vld [vmem:[%s12573_s1 + $0x160] sm:$0xff]   ;;  %v8703_v26 = vld [vmem:[%s12574_s28 + $0x30] sm:$0xff]  }
  0x25   :  { %8328 = vmatmul.mubr.msk.bf16.gmra.mrb[12].mxu0 %vm857_vm0, %v8604_v13  ;;  %2550 = vmatpush1.bf16.msra.mxu1 %v8657_v41  ;;  %v8673_v13 = vld [vmem:[%s12573_s1 + $0x108] sm:$0xff]   ;;  %v8692_v28 = vld [vmem:[%s12573_s1 + $0x170] sm:$0xff]   ;;  %v8702_v42 = vld [vmem:[%s12573_s1 + $0x1b8] sm:$0xff]  }
  0x26   :  { %8331 = vmatprep.mubr.msk.bf16.mxu0 %vm857_vm0, %v8605_v16  ;;  %2551 = vmatprep.subr.bf16.mxu1 %v8669_v49  ;;  %v8681_v16 = vld [vmem:[%s12573_s1 + $0x120] sm:$0xff]   ;;  %v8691_v27 = vld [vmem:[%s12573_s1 + $0x168] sm:$0xff]   ;;  %v8697_v32 = vld [vmem:[%s12573_s1 + $0x190] sm:$0xff]  }
  0x27   :  { %8508 = vmatmul.mubr.msk.bf16.gmra.mrb[12].mxu1 %vm857_vm0, %v8638_v33  ;;  %4762 = vmatprep.subr.bf16.mxu0 %v12558_v4  ;;  %v8696_v31 = vld [vmem:[%s12573_s1 + $0x188] sm:$0xff]   ;;  %v8698_v33 = vld [vmem:[%s12573_s1 + $0x198] sm:$0xff]   ;;  %v8701_v36 = vld [vmem:[%s12573_s1 + $0x1b0] sm:$0xff]  }
  0x28   :  { %8511 = vmatprep.mubr.msk.bf16.mxu1 %vm857_vm0, %v8641_v34  ;;  %4763 = vmatpush1.bf16.msra.mxu0 %v8703_v26  ;;  %v8699_v34 = vld [vmem:[%s12573_s1 + $0x1a0] sm:$0xff]   ;;  %v8700_v35 = vld [vmem:[%s12573_s1 + $0x1a8] sm:$0xff]  }
  0x29   :  { %2552 = vmatpush1.bf16.msra.mxu1 %v8667_v48  ;;  %4764 = vmatprep.subr.bf16.mxu0 %v12558_v4 }
  0x2a   :  { %2553 = vmatprep.subr.bf16.mxu1 %v8678_v55 }
  0x2d   :  { %8332 = vmatmul.mubr.msk.bf16.gmra.mrb[16].mxu0 %vm857_vm0, %v8606_v23  ;;  %2554 = vmatpush1.bf16.msra.mxu1 %v8676_v54  ;;  %v8688_v23 = vld [vmem:[%s12573_s1 + $0x150] sm:$0xff]  }
  0x2e   :  { %8335 = vmatprep.mubr.msk.bf16.mxu0 %vm857_vm0, %v8607_v24  ;;  %v8689_v24 = vld [vmem:[%s12573_s1 + $0x158] sm:$0xff]  }
  0x2f   :  { %8512 = vmatmul.mubr.msk.bf16.gmra.mrb[16].mxu1 %vm857_vm0, %v8642_v39 }
  0x30   :  { %8515 = vmatprep.mubr.msk.bf16.mxu1 %vm857_vm0, %v8648_v40 }
  0x35   :  { %8336 = vmatmul.mubr.msk.bf16.gmra.mrb[20].mxu0 %vm857_vm0, %v8608_v29  ;;  %v8694_v29 = vld [vmem:[%s12573_s1 + $0x178] sm:$0xff]  }
  0x36   :  { %8339 = vmatprep.mubr.msk.bf16.mxu0 %vm857_vm0, %v8610_v30  ;;  %v8695_v30 = vld [vmem:[%s12573_s1 + $0x180] sm:$0xff]  }
  0x37   :  { %8516 = vmatmul.mubr.msk.bf16.gmra.mrb[20].mxu1 %vm857_vm0, %v8649_v46 }
  0x38   :  { %8519 = vmatprep.mubr.msk.bf16.mxu1 %vm857_vm0, %v8655_v47 }
  0x3d   :  { %8340 = vmatmul.mubr.msk.bf16.gmra.mrb[24].mxu0 %vm857_vm0, %v8611_v37  ;;  %v8713_v37 = vld [vmem:[%s12574_s28 + $0x38] sm:$0xff]  }
  0x3e   :  { %8343 = vmatprep.mubr.msk.bf16.mxu0 %vm857_vm0, %v8612_v38  ;;  %4765 = vmatpush1.bf16.msra.mxu0 %v8713_v37  ;;  %v9347_v38 = vld [vmem:[%s12576_s29] ss:$0 sm:$0xff] }
  0x3f   :  { %8520 = vmatmul.mubr.msk.bf16.gmra.mrb[24].mxu1 %vm857_vm0, %v8656_v52  ;;  %4766 = vmatprep.subr.bf16.mxu0 %v12558_v4 }
  0x40   :  { %8523 = vmatprep.mubr.msk.bf16.mxu1 %vm857_vm0, %v8663_v53 }
  0x45   :  { %8344 = vmatmul.mubr.msk.bf16.gmra.mrb[28].mxu0 %vm857_vm0, %v8613_v44 }
  0x46   :  { %8347 = vmatprep.mubr.msk.bf16.mxu0 %vm857_vm0, %v8615_v45  ;;  %v8704_v45 = vld [vmem:[%s12573_s1 + $0x1c0] sm:$0xff]  }
  0x47   :  { %8524 = vmatmul.mubr.msk.bf16.gmra.mrb[28].mxu1 %vm857_vm0, %v8664_v58  ;;  %v8705_v58 = vld [vmem:[%s12573_s1 + $0x1c8] sm:$0xff]  }
  0x48   :  { %8527 = vmatprep.mubr.msk.bf16.mxu1 %vm857_vm0, %v8670_v59 }
  0x4d   :  { %8348 = vmatmul.mubr.msk.bf16.gmra.mrb[32].mxu0 %vm857_vm0, %v8616_v50 }
  0x4e   :  { %8351 = vmatprep.mubr.msk.bf16.mxu0 %vm857_vm0, %v8619_v51 }
  0x4f   :  { %8528 = vmatmul.mubr.msk.bf16.gmra.mrb[32].mxu1 %vm857_vm0, %v8671_v62 }
  0x50   :  { %8531 = vmatprep.mubr.msk.bf16.mxu1 %vm857_vm0, %v8674_v63 }
  0x55   :  { %8352 = vmatmul.mubr.msk.bf16.gmra.mrb[36].mxu0 %vm857_vm0, %v8623_v56 }
  0x56   :  { %8355 = vmatprep.mubr.msk.bf16.mxu0 %vm857_vm0, %v8632_v57 }
  0x57   :  { %8532 = vmatmul.mubr.msk.bf16.gmra.mrb[36].mxu1 %vm857_vm0, %v8675_v2 }
  0x58   :  { %2571 = vmatprep.mubr.bf16.mxu1 %v12558_v4 }
  0x5d   :  { %8356 = vmatmul.mubr.msk.bf16.gmra.mrb[40].mxu0 %vm857_vm0, %v8633_v60 }
  0x5e   :  { %8359 = vmatprep.mubr.msk.bf16.mxu0 %vm857_vm0, %v8639_v61  ;;  %v8706_v61 = vld [vmem:[%s12573_s1 + $0x1d0] sm:$0xff]  }
  0x65   :  { %8360 = vmatmul.mubr.msk.bf16.gmra.mrb[44].mxu0 %vm857_vm0, %v8640_v0 }
  0x66   :  { %8363 = vmatprep.mubr.msk.bf16.mxu0 %vm857_vm0, %v8646_v1 }
  0x6d   :  { %8364 = vmatmul.mubr.msk.bf16.gmra.mrb[48].mxu0 %vm857_vm0, %v8647_v3 }
  0x6e   :  { %8367 = vmatprep.mubr.msk.bf16.mxu0 %vm857_vm0, %v8653_v5 }
  0x75   :  { %8368 = vmatmul.mubr.msk.bf16.gmra.mrb[52].mxu0 %vm857_vm0, %v8654_v7 }
  0x76   :  { %8371 = vmatprep.mubr.msk.bf16.mxu0 %vm857_vm0, %v8660_v8 }
  0x7d   :  { %8372 = vmatmul.mubr.msk.bf16.gmra.mrb[56].mxu0 %vm857_vm0, %v8662_v9 }
  0x7e   :  { %8375 = vmatprep.mubr.msk.bf16.mxu0 %vm857_vm0, %v8665_v10 }
  0x85   :  { %8376 = vmatmul.mubr.msk.bf16.gmra.mrb[60].mxu0 %vm857_vm0, %v8666_v11  ;;  %v8707_v11 = vld [vmem:[%s12573_s1 + $0x1d8] sm:$0xff]  }
  0x86   :  { %8379 = vmatprep.mubr.msk.bf16.mxu0 %vm857_vm0, %v8672_v12 }
  0x8d   :  { %8380 = vmatmul.mubr.msk.bf16.gmra.mrb[64].mxu0 %vm857_vm0, %v8673_v13 }
  0x8e   :  { %8383 = vmatprep.mubr.msk.bf16.mxu0 %vm857_vm0, %v8679_v14  ;;  %v8708_v14 = vld [vmem:[%s12573_s1 + $0x1e0] sm:$0xff]  }
  0x95   :  { %8384 = vmatmul.mubr.msk.bf16.gmra.mrb[68].mxu0 %vm857_vm0, %v8680_v15 }
  0x96   :  { %8387 = vmatprep.mubr.msk.bf16.mxu0 %vm857_vm0, %v8681_v16 }
  0x9d   :  { %8388 = vmatmul.mubr.msk.bf16.gmra.mrb[72].mxu0 %vm857_vm0, %v8682_v18 }
  0x9e   :  { %8391 = vmatprep.mubr.msk.bf16.mxu0 %vm857_vm0, %v8684_v19 }
  0xa5   :  { %8392 = vmatmul.mubr.msk.bf16.gmra.mrb[76].mxu0 %vm857_vm0, %v8685_v20 }
  0xa6   :  { %8395 = vmatprep.mubr.msk.bf16.mxu0 %vm857_vm0, %v8686_v21 }
  0xad   :  { %8396 = vmatmul.mubr.msk.bf16.gmra.mrb[80].mxu0 %vm857_vm0, %v8687_v22 }
  0xae   :  { %8399 = vmatprep.mubr.msk.bf16.mxu0 %vm857_vm0, %v8688_v23 }
  0xb5   :  { %8400 = vmatmul.mubr.msk.bf16.gmra.mrb[84].mxu0 %vm857_vm0, %v8689_v24 }
  0xb6   :  { %8403 = vmatprep.mubr.msk.bf16.mxu0 %vm857_vm0, %v8690_v25 }
  0xbd   :  { %8404 = vmatmul.mubr.msk.bf16.gmra.mrb[88].mxu0 %vm857_vm0, %v8691_v27 }
  0xbe   :  { %8407 = vmatprep.mubr.msk.bf16.mxu0 %vm857_vm0, %v8692_v28 }
  0xc5   :  { %8408 = vmatmul.mubr.msk.bf16.gmra.mrb[92].mxu0 %vm857_vm0, %v8694_v29 }
  0xc6   :  { %8411 = vmatprep.mubr.msk.bf16.mxu0 %vm857_vm0, %v8695_v30 }
  0xcd   :  { %8412 = vmatmul.mubr.msk.bf16.gmra.mrb[96].mxu0 %vm857_vm0, %v8696_v31 }
  0xce   :  { %8415 = vmatprep.mubr.msk.bf16.mxu0 %vm857_vm0, %v8697_v32 }
  0xd5   :  { %8416 = vmatmul.mubr.msk.bf16.gmra.mrb[100].mxu0 %vm857_vm0, %v8698_v33 }
  0xd6   :  { %8419 = vmatprep.mubr.msk.bf16.mxu0 %vm857_vm0, %v8699_v34 }
  0xdd   :  { %8420 = vmatmul.mubr.msk.bf16.gmra.mrb[104].mxu0 %vm857_vm0, %v8700_v35 }
  0xde   :  { %8423 = vmatprep.mubr.msk.bf16.mxu0 %vm857_vm0, %v8701_v36 }
  0xe0   :  { %v8317_v39 = vpop.f32.mrb[0].mxu0 }
  0xe1   :  { %v1231_v40 = vadd.f32 %v8317_v39, %v9347_v38  ;;  %v1222_v41 = vpop.f32.mrb[1].mxu0 }
  0xe2   :  { %v1223_v43 = vadd.f32 %v9347_v38, %v1222_v41  ;;  %v8318_v44 = vpop.f32.mrb[2].mxu0  ;;  %v8497_v15 = vpop.f32.mrb[0].mxu1 }
  0xe3   :  { %v1234_v46 = vadd.f32 %v8318_v44, %v9347_v38  ;;  %v1225_v47 = vpop.f32.mrb[3].mxu0  ;;  %v2103_v49 = vmax.f32 %v1231_v40, 0.0  ;;  %v1951_v19 = vadd.f32 %v8497_v15, %v9347_v38  ;;  %v1942_v20 = vpop.f32.mrb[1].mxu1  ;;  %v8709_v40 = vld [vmem:[%s12573_s1 + $0x1e8] sm:$0xff]   ;;  %v8710_v44 = vld [vmem:[%s12573_s1 + $0x1f0] sm:$0xff]  }
  0xe4   :  { %v1226_v48 = vadd.f32 %v9347_v38, %v1225_v47  ;;  %v2101_v51 = vmax.f32 %v1223_v43, 0.0  ;;  %v1943_v23 = vadd.f32 %v9347_v38, %v1942_v20  ;;  %v8498_v24 = vpop.f32.mrb[2].mxu1  ;;  %v8723_v47 = vld [vmem:[%s12574_s28 + $0x40] sm:$0xff]  }
  0xe5   :  { %v2104_v50 = vmax.f32 %v1234_v46, 0.0  ;;  %8424 = vmatmul.mubr.msk.bf16.gmra.mrb[108].mxu0 %vm857_vm0, %v8702_v42  ;;  %v2283_v26 = vmax.f32 %v1951_v19, 0.0  ;;  %v1954_v27 = vadd.f32 %v8498_v24, %v9347_v38  ;;  %v1945_v28 = vpop.f32.mrb[3].mxu1 }
  0xe6   :  { %v2102_v52 = vmax.f32 %v1226_v48, 0.0  ;;  %8427 = vmatprep.mubr.msk.bf16.mxu0 %vm857_vm0, %v8704_v45  ;;  %v2281_v30 = vmax.f32 %v1943_v23, 0.0  ;;  %v1946_v31 = vadd.f32 %v9347_v38, %v1945_v28  ;;  %4767 = vmatpush1.bf16.msra.mxu0 %v8723_v47  ;;  %v8715_v47 = vld [vmem:[%s12573_s1 + $0x210] sm:$0xff]  }
  0xe7   :  { %v2322_v53 = vpack.c.bf16 %v2104_v50, %v2103_v49  ;;  %v2284_v33 = vmax.f32 %v1954_v27, 0.0  ;;  %4768 = vmatprep.subr.bf16.mxu0 %v12558_v4 }
  0xe8   :  { %v2321_v54 = vpack.c.bf16 %v2102_v52, %v2101_v51  ;;  %v8321_v55 = vpop.f32.mrb[4].mxu0  ;;  %v2282_v36 = vmax.f32 %v1946_v31, 0.0 }
  0xe9   :  { %v1247_v56 = vadd.f32 %v8321_v55, %v9347_v38  ;;  %v1238_v57 = vpop.f32.mrb[5].mxu0  ;;  %v9402_v41 = vpack.c.bf16 %v2284_v33, %v2283_v26 }
  0xea   :  { %2572 = vmatmul.mubr.bf16.vlgmr.msra.gmra.mrb[40].mxu1 %v2321_v54  ;;  %v1239_v59 = vadd.f32 %v9347_v38, %v1238_v57  ;;  %v8322_v60 = vpop.f32.mrb[6].mxu0  ;;  %v9408_v45 = vpack.c.bf16 %v2282_v36, %v2281_v30  ;;  %v8501_v46 = vpop.f32.mrb[4].mxu1 }
  0xeb   :  { %v2107_v62 = vmax.f32 %v1247_v56, 0.0  ;;  %v1250_v63 = vadd.f32 %v8322_v60, %v9347_v38  ;;  %v1241_v0 = vpop.f32.mrb[7].mxu0  ;;  %2581 = vmatprep.mubr.bf16.mxu1 %v12558_v4  ;;  %12577 = vst [vmem:[#allocation2_spill] sm:$0xff] %v9402_v41  ;;  %v1967_v51 = vadd.f32 %v8501_v46, %v9347_v38  ;;  %v1958_v52 = vpop.f32.mrb[5].mxu1 }
  0xec   :  { %v2105_v1 = vmax.f32 %v1239_v59, 0.0  ;;  %v1242_v2 = vadd.f32 %v9347_v38, %v1241_v0  ;;  %12578 = vst [vmem:[#allocation3_spill] sm:$0xff] %v9408_v45  ;;  %v1959_v55 = vadd.f32 %v9347_v38, %v1958_v52  ;;  %v8502_v56 = vpop.f32.mrb[6].mxu1 }
  0xed   :  { %v2108_v3 = vmax.f32 %v1250_v63, 0.0  ;;  %8428 = vmatmul.mubr.msk.bf16.gmra.mrb[112].mxu0 %vm857_vm0, %v8705_v58  ;;  %v2287_v58 = vmax.f32 %v1967_v51, 0.0  ;;  %v1970_v59 = vadd.f32 %v8502_v56, %v9347_v38  ;;  %v1961_v60 = vpop.f32.mrb[7].mxu1 }
  0xee   :  { %v2106_v5 = vmax.f32 %v1242_v2, 0.0  ;;  %8431 = vmatprep.mubr.msk.bf16.mxu0 %vm857_vm0, %v8706_v61  ;;  %v1962_v63 = vadd.f32 %v9347_v38, %v1961_v60 }
  0xef   :  { %v9375_v6 = vpack.c.bf16 %v2108_v3, %v2107_v62  ;;  %v2285_v62 = vmax.f32 %v1959_v55, 0.0 }
  0xf0   :  { %v2323_v7 = vpack.c.bf16 %v2106_v5, %v2105_v1  ;;  %v8325_v8 = vpop.f32.mrb[8].mxu0  ;;  %v2288_v1 = vmax.f32 %v1970_v59, 0.0  ;;  %v2286_v5 = vmax.f32 %v1962_v63, 0.0 }
  0xf1   :  { %v1263_v9 = vadd.f32 %v8325_v8, %v9347_v38  ;;  %v1254_v10 = vpop.f32.mrb[9].mxu0 }
  0xf2   :  { %2582 = vmatmul.mubr.bf16.gmra.mrb[44].mxu1 %v2322_v53  ;;  %v1255_v12 = vadd.f32 %v9347_v38, %v1254_v10  ;;  %v8326_v13 = vpop.f32.mrb[10].mxu0  ;;  %v9431_v10 = vpack.c.bf16 %v2288_v1, %v2287_v58  ;;  %v8505_v15 = vpop.f32.mrb[8].mxu1 }
  0xf3   :  { %2591 = vmatprep.mubr.bf16.mxu1 %v12558_v4  ;;  %v2111_v16 = vmax.f32 %v1263_v9, 0.0  ;;  %v1266_v17 = vadd.f32 %v8326_v13, %v9347_v38  ;;  %v1257_v18 = vpop.f32.mrb[11].mxu0  ;;  %v8711_v9 = vld [vmem:[%s12573_s1 + $0x1f8] sm:$0xff]   ;;  %v8712_v13 = vld [vmem:[%s12573_s1 + $0x200] sm:$0xff]   ;;  %v1983_v19 = vadd.f32 %v8505_v15, %v9347_v38  ;;  %v1974_v20 = vpop.f32.mrb[9].mxu1 }
  0xf4   :  { %v2109_v21 = vmax.f32 %v1255_v12, 0.0  ;;  %v1258_v22 = vadd.f32 %v9347_v38, %v1257_v18  ;;  %12579 = vst [vmem:[#allocation4_spill] sm:$0xff] %v9431_v10  ;;  %v8506_v23 = vpop.f32.mrb[10].mxu1 }
  0xf5   :  { %v2112_v25 = vmax.f32 %v1266_v17, 0.0  ;;  %8432 = vmatmul.mubr.msk.bf16.gmra.mrb[116].mxu0 %vm857_vm0, %v8707_v11  ;;  %v1986_v26 = vadd.f32 %v8506_v23, %v9347_v38  ;;  %v1977_v27 = vpop.f32.mrb[11].mxu1 }
  0xf6   :  { %v2110_v29 = vmax.f32 %v1258_v22, 0.0  ;;  %8435 = vmatprep.mubr.msk.bf16.mxu0 %vm857_vm0, %v8708_v14  ;;  %v9438_v14 = vpack.c.bf16 %v2286_v5, %v2285_v62  ;;  %v1975_v22 = vadd.f32 %v9347_v38, %v1974_v20  ;;  %v1978_v30 = vadd.f32 %v9347_v38, %v1977_v27 }
  0xf7   :  { %v9394_v32 = vpack.c.bf16 %v2112_v25, %v2111_v16  ;;  %v2291_v25 = vmax.f32 %v1983_v19, 0.0  ;;  %v2292_v33 = vmax.f32 %v1986_v26, 0.0 }
  0xf8   :  { %v9396_v34 = vpack.c.bf16 %v2110_v29, %v2109_v21  ;;  %v8329_v35 = vpop.f32.mrb[12].mxu0  ;;  %12580 = vst [vmem:[#allocation5_spill] sm:$0xff] %v9438_v14  ;;  %v2289_v29 = vmax.f32 %v1975_v22, 0.0 }
  0xf9   :  { %v1279_v37 = vadd.f32 %v8329_v35, %v9347_v38  ;;  %v1270_v39 = vpop.f32.mrb[13].mxu0 }
  0xfa   :  { %2592 = vmatmul.mubr.bf16.gmra.mrb[48].mxu1 %v2323_v7  ;;  %v1271_v42 = vadd.f32 %v9347_v38, %v1270_v39  ;;  %v8330_v43 = vpop.f32.mrb[14].mxu0 }
  0xfb   :  { %2601 = vmatprep.mubr.bf16.mxu1 %v12558_v4  ;;  %v2115_v48 = vmax.f32 %v1279_v37, 0.0  ;;  %v1282_v49 = vadd.f32 %v8330_v43, %v9347_v38  ;;  %v1273_v50 = vpop.f32.mrb[15].mxu0  ;;  %v2290_v37 = vmax.f32 %v1978_v30, 0.0  ;;  %v9457_v43 = vpack.c.bf16 %v2292_v33, %v2291_v25 }
  0xfc   :  { %v2113_v53 = vmax.f32 %v1271_v42, 0.0  ;;  %v1274_v54 = vadd.f32 %v9347_v38, %v1273_v50  ;;  %v8714_v42 = vld [vmem:[%s12573_s1 + $0x208] sm:$0xff]  }
  0xfd   :  { %v2116_v57 = vmax.f32 %v1282_v49, 0.0  ;;  %8436 = vmatmul.mubr.msk.bf16.gmra.mrb[120].mxu0 %vm857_vm0, %v8709_v40  ;;  %12581 = vst [vmem:[#allocation6_spill] sm:$0xff] %v9457_v43  ;;  %v8509_v49 = vpop.f32.mrb[12].mxu1 }
  0xfe   :  { %v2114_v61 = vmax.f32 %v1274_v54, 0.0  ;;  %8439 = vmatprep.mubr.msk.bf16.mxu0 %vm857_vm0, %v8710_v44  ;;  %v1990_v54 = vpop.f32.mrb[13].mxu1 }
  0xff   :  { %v9423_v0 = vpack.c.bf16 %v2116_v57, %v2115_v48  ;;  %v9464_v48 = vpack.c.bf16 %v2290_v37, %v2289_v29  ;;  %v1991_v56 = vadd.f32 %v9347_v38, %v1990_v54  ;;  %v8510_v57 = vpop.f32.mrb[14].mxu1 }
 0x100   :  { %v9425_v2 = vpack.c.bf16 %v2114_v61, %v2113_v53  ;;  %v8333_v3 = vpop.f32.mrb[16].mxu0  ;;  %v1999_v53 = vadd.f32 %v8509_v49, %v9347_v38  ;;  %v2002_v60 = vadd.f32 %v8510_v57, %v9347_v38  ;;  %v1993_v61 = vpop.f32.mrb[15].mxu1 }
 0x101   :  { %v1295_v7 = vadd.f32 %v8333_v3, %v9347_v38  ;;  %v1286_v8 = vpop.f32.mrb[17].mxu0  ;;  %12582 = vst [vmem:[#allocation7_spill] sm:$0xff] %v9464_v48  ;;  %v2293_v63 = vmax.f32 %v1991_v56, 0.0  ;;  %v1994_v1 = vadd.f32 %v9347_v38, %v1993_v61 }
 0x102   :  { %2602 = vmatmul.mubr.bf16.gmra.mrb[52].mxu1 %v9375_v6  ;;  %v1287_v11 = vadd.f32 %v9347_v38, %v1286_v8  ;;  %v8334_v12 = vpop.f32.mrb[18].mxu0  ;;  %v2295_v59 = vmax.f32 %v1999_v53, 0.0  ;;  %v2296_v5 = vmax.f32 %v2002_v60, 0.0  ;;  %v8513_v20 = vpop.f32.mrb[16].mxu1 }
 0x103   :  { %2611 = vmatprep.mubr.bf16.mxu1 %v12558_v4  ;;  %v2119_v16 = vmax.f32 %v1295_v7, 0.0  ;;  %v1298_v17 = vadd.f32 %v8334_v12, %v9347_v38  ;;  %v1289_v18 = vpop.f32.mrb[19].mxu0  ;;  %v2015_v23 = vadd.f32 %v8513_v20, %v9347_v38 }
 0x104   :  { %v2117_v6 = vmax.f32 %v1287_v11, 0.0  ;;  %v1290_v21 = vadd.f32 %v9347_v38, %v1289_v18  ;;  %v9483_v15 = vpack.c.bf16 %v2296_v5, %v2295_v59  ;;  %v8717_v18 = vld [vmem:[%s12573_s1 + $0x220] sm:$0xff]  }
 0x105   :  { %v2120_v24 = vmax.f32 %v1298_v17, 0.0  ;;  %8440 = vmatmul.mubr.msk.bf16.gmra.mrb[124].mxu0 %vm857_vm0, %v8711_v9  ;;  %v2294_v9 = vmax.f32 %v1994_v1, 0.0  ;;  %v2299_v29 = vmax.f32 %v2015_v23, 0.0 }
 0x106   :  { %v2118_v28 = vmax.f32 %v1290_v21, 0.0  ;;  %8443 = vmatprep.mubr.msk.bf16.mxu0 %vm857_vm0, %v8712_v13  ;;  %v8716_v13 = vld [vmem:[%s12573_s1 + $0x218] sm:$0xff]   ;;  %12583 = vst [vmem:[#allocation8_spill] sm:$0xff] %v9483_v15 }
 0x107   :  { %v9449_v31 = vpack.c.bf16 %v2120_v24, %v2119_v16  ;;  %v9490_v19 = vpack.c.bf16 %v2294_v9, %v2293_v63  ;;  %v2006_v24 = vpop.f32.mrb[17].mxu1 }
 0x108   :  { %v9451_v35 = vpack.c.bf16 %v2118_v28, %v2117_v6  ;;  %v8337_v36 = vpop.f32.mrb[20].mxu0  ;;  %v2007_v26 = vadd.f32 %v9347_v38, %v2006_v24  ;;  %v8514_v27 = vpop.f32.mrb[18].mxu1  ;;  %v8720_v24 = vld [vmem:[%s12573_s1 + $0x238] sm:$0xff]  }
 0x109   :  { %v1311_v39 = vadd.f32 %v8337_v36, %v9347_v38  ;;  %v1302_v40 = vpop.f32.mrb[21].mxu0  ;;  %12584 = vst [vmem:[#allocation9_spill] sm:$0xff] %v9490_v19  ;;  %v2018_v30 = vadd.f32 %v8514_v27, %v9347_v38  ;;  %v2009_v33 = vpop.f32.mrb[19].mxu1  ;;  %v8721_v27 = vld [vmem:[%s12573_s1 + $0x240] sm:$0xff]  }
 0x10a   :  { %2612 = vmatmul.mubr.bf16.gmra.mrb[56].mxu1 %v9396_v34  ;;  %v1303_v44 = vadd.f32 %v9347_v38, %v1302_v40  ;;  %v8338_v46 = vpop.f32.mrb[22].mxu0  ;;  %v2297_v37 = vmax.f32 %v2007_v26, 0.0  ;;  %v8517_v56 = vpop.f32.mrb[20].mxu1 }
 0x10b   :  { %2621 = vmatprep.mubr.bf16.mxu1 %v12558_v4  ;;  %v2123_v50 = vmax.f32 %v1311_v39, 0.0  ;;  %v1314_v51 = vadd.f32 %v8338_v46, %v9347_v38  ;;  %v1305_v52 = vpop.f32.mrb[23].mxu0  ;;  %v2010_v39 = vadd.f32 %v9347_v38, %v2009_v33  ;;  %v2031_v60 = vadd.f32 %v8517_v56, %v9347_v38  ;;  %v2022_v61 = vpop.f32.mrb[21].mxu1 }
 0x10c   :  { %v2121_v34 = vmax.f32 %v1303_v44, 0.0  ;;  %v1306_v55 = vadd.f32 %v9347_v38, %v1305_v52  ;;  %v2023_v63 = vadd.f32 %v9347_v38, %v2022_v61  ;;  %v8518_v1 = vpop.f32.mrb[22].mxu1 }
 0x10d   :  { %v2124_v58 = vmax.f32 %v1314_v51, 0.0  ;;  %8444 = vmatmul.mubr.msk.bf16.gmra.mrb[128].mxu0 %vm857_vm0, %v8714_v42  ;;  %v2300_v42 = vmax.f32 %v2018_v30, 0.0  ;;  %v8718_v51 = vld [vmem:[%s12573_s1 + $0x228] sm:$0xff]   ;;  %v2034_v9 = vadd.f32 %v8518_v1, %v9347_v38 }
 0x10e   :  { %v2122_v62 = vmax.f32 %v1306_v55, 0.0  ;;  %8447 = vmatprep.mubr.msk.bf16.mxu0 %vm857_vm0, %v8715_v47  ;;  %v2298_v47 = vmax.f32 %v2010_v39, 0.0  ;;  %v8733_v30 = vld [vmem:[%s12574_s28 + $0x48] sm:$0xff]  }
 0x10f   :  { %v9475_v3 = vpack.c.bf16 %v2124_v58, %v2123_v50  ;;  %v9509_v52 = vpack.c.bf16 %v2300_v42, %v2299_v29  ;;  %4769 = vmatpush1.bf16.msra.mxu0 %v8733_v30  ;;  %v8722_v1 = vld [vmem:[%s12573_s1 + $0x248] sm:$0xff]  }
 0x110   :  { %v9477_v7 = vpack.c.bf16 %v2122_v62, %v2121_v34  ;;  %v8341_v8 = vpop.f32.mrb[24].mxu0  ;;  %v8719_v34 = vld [vmem:[%s12573_s1 + $0x230] sm:$0xff]   ;;  %v9516_v55 = vpack.c.bf16 %v2298_v47, %v2297_v37 }
 0x111   :  { %v1327_v11 = vadd.f32 %v8341_v8, %v9347_v38  ;;  %v1318_v12 = vpop.f32.mrb[25].mxu0  ;;  %12585 = vst [vmem:[#allocation10_spill] sm:$0xff] %v9509_v52  ;;  %v2303_v8 = vmax.f32 %v2031_v60, 0.0 }
 0x112   :  { %2622 = vmatmul.mubr.bf16.gmra.mrb[60].mxu1 %v9394_v32  ;;  %v1319_v16 = vadd.f32 %v9347_v38, %v1318_v12  ;;  %v8342_v17 = vpop.f32.mrb[26].mxu0  ;;  %12586 = vst [vmem:[#allocation11_spill] sm:$0xff] %v9516_v55 }
 0x113   :  { %2631 = vmatprep.mubr.bf16.mxu1 %v12558_v4  ;;  %v2127_v6 = vmax.f32 %v1327_v11, 0.0  ;;  %v1330_v21 = vadd.f32 %v8342_v17, %v9347_v38  ;;  %v1321_v22 = vpop.f32.mrb[27].mxu0  ;;  %v2025_v11 = vpop.f32.mrb[23].mxu1 }
 0x114   :  { %v2125_v32 = vmax.f32 %v1319_v16, 0.0  ;;  %v1322_v25 = vadd.f32 %v9347_v38, %v1321_v22  ;;  %v2026_v16 = vadd.f32 %v9347_v38, %v2025_v11  ;;  %v8521_v29 = vpop.f32.mrb[24].mxu1  ;;  %v8724_v11 = vld [vmem:[%s12573_s1 + $0x250] sm:$0xff]  }
 0x115   :  { %v2128_v28 = vmax.f32 %v1330_v21, 0.0  ;;  %8448 = vmatmul.mubr.msk.bf16.gmra.mrb[132].mxu0 %vm857_vm0, %v8716_v13  ;;  %v2301_v13 = vmax.f32 %v2023_v63, 0.0  ;;  %v2047_v37 = vadd.f32 %v8521_v29, %v9347_v38  ;;  %v2038_v39 = vpop.f32.mrb[25].mxu1 }
 0x116   :  { %v2126_v36 = vmax.f32 %v1322_v25, 0.0  ;;  %8451 = vmatprep.mubr.msk.bf16.mxu0 %vm857_vm0, %v8717_v18  ;;  %v2304_v18 = vmax.f32 %v2034_v9, 0.0  ;;  %v2302_v21 = vmax.f32 %v2026_v16, 0.0  ;;  %v2039_v47 = vadd.f32 %v9347_v38, %v2038_v39 }
 0x117   :  { %v9501_v40 = vpack.c.bf16 %v2128_v28, %v2127_v6 }
 0x118   :  { %v9503_v44 = vpack.c.bf16 %v2126_v36, %v2125_v32  ;;  %v8345_v46 = vpop.f32.mrb[28].mxu0  ;;  %v9535_v32 = vpack.c.bf16 %v2304_v18, %v2303_v8  ;;  %v9542_v28 = vpack.c.bf16 %v2302_v21, %v2301_v13  ;;  %v2305_v56 = vmax.f32 %v2039_v47, 0.0 }
 0x119   :  { %v1343_v49 = vadd.f32 %v8345_v46, %v9347_v38  ;;  %v1334_v50 = vpop.f32.mrb[29].mxu0 }
 0x11a   :  { %2632 = vmatmul.mubr.bf16.gmra.mrb[64].mxu1 %v9425_v2  ;;  %v1335_v53 = vadd.f32 %v9347_v38, %v1334_v50  ;;  %v8346_v54 = vpop.f32.mrb[30].mxu0  ;;  %12587 = vst [vmem:[#allocation12_spill] sm:$0xff] %v9535_v32  ;;  %12588 = vst [vmem:[#allocation13_spill] sm:$0xff] %v9542_v28 }
 0x11b   :  { %2641 = vmatprep.mubr.bf16.mxu1 %v12558_v4  ;;  %v2131_v57 = vmax.f32 %v1343_v49, 0.0  ;;  %v1346_v58 = vadd.f32 %v8346_v54, %v9347_v38  ;;  %v1337_v59 = vpop.f32.mrb[31].mxu0  ;;  %v8522_v49 = vpop.f32.mrb[26].mxu1 }
 0x11c   :  { %v2129_v2 = vmax.f32 %v1335_v53, 0.0  ;;  %v1338_v62 = vadd.f32 %v9347_v38, %v1337_v59  ;;  %v2050_v53 = vadd.f32 %v8522_v49, %v9347_v38  ;;  %v2041_v54 = vpop.f32.mrb[27].mxu1 }
 0x11d   :  { %v2132_v5 = vmax.f32 %v1346_v58, 0.0  ;;  %8452 = vmatmul.mubr.msk.bf16.gmra.mrb[136].mxu0 %vm857_vm0, %v8718_v51  ;;  %v2307_v51 = vmax.f32 %v2047_v37, 0.0  ;;  %v8525_v13 = vpop.f32.mrb[28].mxu1 }
 0x11e   :  { %v2130_v12 = vmax.f32 %v1338_v62, 0.0  ;;  %8455 = vmatprep.mubr.msk.bf16.mxu0 %vm857_vm0, %v8719_v34  ;;  %v2308_v59 = vmax.f32 %v2050_v53, 0.0  ;;  %v2063_v21 = vadd.f32 %v8525_v13, %v9347_v38 }
 0x11f   :  { %v9527_v17 = vpack.c.bf16 %v2132_v5, %v2131_v57  ;;  %v2042_v57 = vadd.f32 %v9347_v38, %v2041_v54 }
 0x120   :  { %v9529_v20 = vpack.c.bf16 %v2130_v12, %v2129_v2  ;;  %v8349_v6 = vpop.f32.mrb[32].mxu0  ;;  %v9564_v5 = vpack.c.bf16 %v2308_v59, %v2307_v51  ;;  %v8725_v51 = vld [vmem:[%s12573_s1 + $0x258] sm:$0xff]  }
 0x121   :  { %v1359_v22 = vadd.f32 %v8349_v6, %v9347_v38  ;;  %v1350_v23 = vpop.f32.mrb[33].mxu0  ;;  %v2306_v2 = vmax.f32 %v2042_v57, 0.0 }
 0x122   :  { %2642 = vmatmul.mubr.bf16.gmra.mrb[68].mxu1 %v9423_v0  ;;  %v1351_v25 = vadd.f32 %v9347_v38, %v1350_v23  ;;  %v8350_v26 = vpop.f32.mrb[34].mxu0  ;;  %12589 = vst [vmem:[#allocation14_spill] sm:$0xff] %v9564_v5 }
 0x123   :  { %2651 = vmatprep.mubr.bf16.mxu1 %v12558_v4  ;;  %v2135_v33 = vmax.f32 %v1359_v22, 0.0  ;;  %v1362_v36 = vadd.f32 %v8350_v26, %v9347_v38  ;;  %v1353_v0 = vpop.f32.mrb[35].mxu0  ;;  %v9571_v12 = vpack.c.bf16 %v2306_v2, %v2305_v56  ;;  %v2054_v22 = vpop.f32.mrb[29].mxu1  ;;  %v8726_v56 = vld [vmem:[%s12573_s1 + $0x260] sm:$0xff]  }
 0x124   :  { %v2133_v42 = vmax.f32 %v1351_v25, 0.0  ;;  %v1354_v46 = vadd.f32 %v9347_v38, %v1353_v0  ;;  %v8526_v25 = vpop.f32.mrb[30].mxu1 }
 0x125   :  { %v2136_v50 = vmax.f32 %v1362_v36, 0.0  ;;  %8456 = vmatmul.mubr.msk.bf16.gmra.mrb[140].mxu0 %vm857_vm0, %v8720_v24  ;;  %12590 = vst [vmem:[#allocation15_spill] sm:$0xff] %v9571_v12  ;;  %v2055_v24 = vadd.f32 %v9347_v38, %v2054_v22  ;;  %v2066_v29 = vadd.f32 %v8526_v25, %v9347_v38  ;;  %v2057_v30 = vpop.f32.mrb[31].mxu1 }
 0x126   :  { %v2134_v34 = vmax.f32 %v1354_v46, 0.0  ;;  %8459 = vmatprep.mubr.msk.bf16.mxu0 %vm857_vm0, %v8721_v27  ;;  %v2311_v27 = vmax.f32 %v2063_v21, 0.0  ;;  %v2058_v0 = vadd.f32 %v9347_v38, %v2057_v30  ;;  %v8529_v59 = vpop.f32.mrb[32].mxu1 }
 0x127   :  { %v9556_v58 = vpack.c.bf16 %v2136_v50, %v2135_v33  ;;  %v2309_v36 = vmax.f32 %v2055_v24, 0.0  ;;  %v2312_v39 = vmax.f32 %v2066_v29, 0.0 }
 0x128   :  { %v9558_v60 = vpack.c.bf16 %v2134_v34, %v2133_v42  ;;  %v8353_v61 = vpop.f32.mrb[36].mxu0  ;;  %v2310_v47 = vmax.f32 %v2058_v0, 0.0 }
 0x129   :  { %v1375_v62 = vadd.f32 %v8353_v61, %v9347_v38  ;;  %v1366_v63 = vpop.f32.mrb[37].mxu0  ;;  %v9590_v53 = vpack.c.bf16 %v2312_v39, %v2311_v27 }
 0x12a   :  { %2652 = vmatmul.mubr.bf16.gmra.mrb[72].mxu1 %v9451_v35  ;;  %v1367_v8 = vadd.f32 %v9347_v38, %v1366_v63  ;;  %v8354_v9 = vpop.f32.mrb[38].mxu0  ;;  %v9597_v57 = vpack.c.bf16 %v2310_v47, %v2309_v36  ;;  %v2079_v63 = vadd.f32 %v8529_v59, %v9347_v38 }
 0x12b   :  { %2661 = vmatprep.mubr.bf16.mxu1 %v12558_v4  ;;  %v2139_v16 = vmax.f32 %v1375_v62, 0.0  ;;  %v1378_v18 = vadd.f32 %v8354_v9, %v9347_v38  ;;  %v1369_v6 = vpop.f32.mrb[39].mxu0  ;;  %12591 = vst [vmem:[#allocation16_spill] sm:$0xff] %v9590_v53 }
 0x12c   :  { %v2137_v35 = vmax.f32 %v1367_v8, 0.0  ;;  %v1370_v23 = vadd.f32 %v9347_v38, %v1369_v6  ;;  %12592 = vst [vmem:[#allocation17_spill] sm:$0xff] %v9597_v57 }
 0x12d   :  { %v2140_v26 = vmax.f32 %v1378_v18, 0.0  ;;  %8460 = vmatmul.mubr.msk.bf16.gmra.mrb[144].mxu0 %vm857_vm0, %v8722_v1  ;;  %v2070_v1 = vpop.f32.mrb[33].mxu1 }
 0x12e   :  { %v2138_v33 = vmax.f32 %v1370_v23, 0.0  ;;  %8463 = vmatprep.mubr.msk.bf16.mxu0 %vm857_vm0, %v8724_v11  ;;  %v2071_v9 = vadd.f32 %v9347_v38, %v2070_v1  ;;  %v8530_v11 = vpop.f32.mrb[34].mxu1 }
 0x12f   :  { %v9582_v37 = vpack.c.bf16 %v2140_v26, %v2139_v16  ;;  %v2315_v16 = vmax.f32 %v2079_v63, 0.0  ;;  %v2082_v18 = vadd.f32 %v8530_v11, %v9347_v38  ;;  %v2073_v6 = vpop.f32.mrb[35].mxu1 }
 0x130   :  { %v9584_v42 = vpack.c.bf16 %v2138_v33, %v2137_v35  ;;  %v8357_v46 = vpop.f32.mrb[40].mxu0  ;;  %v2313_v22 = vmax.f32 %v2071_v9, 0.0  ;;  %v2074_v35 = vadd.f32 %v9347_v38, %v2073_v6  ;;  %v8727_v33 = vld [vmem:[%s12573_s1 + $0x268] sm:$0xff]  }
 0x131   :  { %v1391_v49 = vadd.f32 %v8357_v46, %v9347_v38  ;;  %v1382_v50 = vpop.f32.mrb[41].mxu0  ;;  %v2316_v24 = vmax.f32 %v2082_v18, 0.0  ;;  %v8728_v46 = vld [vmem:[%s12573_s1 + $0x270] sm:$0xff]  }
 0x132   :  { %2662 = vmatmul.mubr.bf16.gmra.mrb[76].mxu1 %v9449_v31  ;;  %v1383_v54 = vadd.f32 %v9347_v38, %v1382_v50  ;;  %v8358_v34 = vpop.f32.mrb[42].mxu0  ;;  %v2314_v27 = vmax.f32 %v2074_v35, 0.0 }
 0x133   :  { %2671 = vmatprep.mubr.bf16.mxu1 %v12558_v4  ;;  %v2143_v61 = vmax.f32 %v1391_v49, 0.0  ;;  %v1394_v2 = vadd.f32 %v8358_v34, %v9347_v38  ;;  %v1385_v62 = vpop.f32.mrb[43].mxu0  ;;  %v9616_v36 = vpack.c.bf16 %v2316_v24, %v2315_v16  ;;  %v8533_v49 = vpop.f32.mrb[36].mxu1  ;;  %v8729_v24 = vld [vmem:[%s12573_s1 + $0x278] sm:$0xff]  }
 0x134   :  { %v2141_v31 = vmax.f32 %v1383_v54, 0.0  ;;  %v1386_v8 = vadd.f32 %v9347_v38, %v1385_v62  ;;  %v9623_v47 = vpack.c.bf16 %v2314_v27, %v2313_v22  ;;  %v2095_v34 = vadd.f32 %v8533_v49, %v9347_v38 }
 0x135   :  { %v2144_v13 = vmax.f32 %v1394_v2, 0.0  ;;  %8464 = vmatmul.mubr.msk.bf16.gmra.mrb[148].mxu0 %vm857_vm0, %v8725_v51  ;;  %12593 = vst [vmem:[#allocation18_spill] sm:$0xff] %v9616_v36 }
 0x136   :  { %v2142_v21 = vmax.f32 %v1386_v8, 0.0  ;;  %8467 = vmatprep.mubr.msk.bf16.mxu0 %vm857_vm0, %v8726_v56  ;;  %12594 = vst [vmem:[#allocation19_spill] sm:$0xff] %v9623_v47  ;;  %v2086_v56 = vpop.f32.mrb[37].mxu1  ;;  %v2319_v63 = vmax.f32 %v2095_v34, 0.0 }
 0x137   :  { %v9608_v23 = vpack.c.bf16 %v2144_v13, %v2143_v61  ;;  %v2087_v61 = vadd.f32 %v9347_v38, %v2086_v56  ;;  %v8534_v2 = vpop.f32.mrb[38].mxu1 }
 0x138   :  { %v8361_v25 = vpop.f32.mrb[44].mxu0  ;;  %v9610_v26 = vpack.c.bf16 %v2142_v21, %v2141_v31  ;;  %v2098_v1 = vadd.f32 %v8534_v2, %v9347_v38  ;;  %v2089_v31 = vpop.f32.mrb[39].mxu1 }
 0x139   :  { %v1407_v29 = vadd.f32 %v8361_v25, %v9347_v38  ;;  %v1398_v30 = vpop.f32.mrb[45].mxu0  ;;  %v2317_v9 = vmax.f32 %v2087_v61, 0.0  ;;  %v2090_v11 = vadd.f32 %v9347_v38, %v2089_v31  ;;  %v8731_v61 = vld [vmem:[%s12573_s1 + $0x288] sm:$0xff]  }
 0x13a   :  { %2672 = vmatmul.mubr.bf16.gmra.mrb[80].mxu1 %v9477_v7  ;;  %v1399_v0 = vadd.f32 %v9347_v38, %v1398_v30  ;;  %v8362_v39 = vpop.f32.mrb[46].mxu0  ;;  %v2320_v16 = vmax.f32 %v2098_v1, 0.0  ;;  %v8730_v30 = vld [vmem:[%s12573_s1 + $0x280] sm:$0xff]  }
 0x13b   :  { %2681 = vmatprep.mubr.bf16.mxu1 %v12558_v4  ;;  %v2147_v50 = vmax.f32 %v1407_v29, 0.0  ;;  %v1410_v51 = vadd.f32 %v8362_v39, %v9347_v38  ;;  %v1401_v54 = vpop.f32.mrb[47].mxu0  ;;  %v2318_v21 = vmax.f32 %v2090_v11, 0.0 }
 0x13c   :  { %v2145_v7 = vmax.f32 %v1399_v0, 0.0  ;;  %v1402_v59 = vadd.f32 %v9347_v38, %v1401_v54  ;;  %v9642_v25 = vpack.c.bf16 %v2320_v16, %v2319_v63  ;;  %v8732_v63 = vld [vmem:[%s12573_s1 + $0x290] sm:$0xff]  }
 0x13d   :  { %v2148_v62 = vmax.f32 %v1410_v51, 0.0  ;;  %8468 = vmatmul.mubr.msk.bf16.gmra.mrb[152].mxu0 %vm857_vm0, %v8727_v33  ;;  %v9649_v33 = vpack.c.bf16 %v2318_v21, %v2317_v9 }
 0x13e   :  { %v2146_v8 = vmax.f32 %v1402_v59, 0.0  ;;  %8471 = vmatprep.mubr.msk.bf16.mxu0 %vm857_vm0, %v8728_v46  ;;  %12595 = vst [vmem:[#allocation20_spill] sm:$0xff] %v9642_v25 }
 0x13f   :  { %v9634_v13 = vpack.c.bf16 %v2148_v62, %v2147_v50  ;;  %12596 = vst [vmem:[#allocation21_spill] sm:$0xff] %v9649_v33 }
 0x140   :  { %v8365_v18 = vpop.f32.mrb[48].mxu0  ;;  %v9636_v6 = vpack.c.bf16 %v2146_v8, %v2145_v7 }
 0x141   :  { %v1423_v22 = vadd.f32 %v8365_v18, %v9347_v38  ;;  %v1414_v35 = vpop.f32.mrb[49].mxu0 }
 0x142   :  { %2682 = vmatmul.mubr.bf16.gmra.mrb[84].mxu1 %v9475_v3  ;;  %v1415_v27 = vadd.f32 %v9347_v38, %v1414_v35  ;;  %v8366_v29 = vpop.f32.mrb[50].mxu0 }
 0x143   :  { %2691 = vmatprep.mubr.bf16.mxu1 %v12558_v4  ;;  %v2151_v0 = vmax.f32 %v1423_v22, 0.0  ;;  %v1426_v39 = vadd.f32 %v8366_v29, %v9347_v38  ;;  %v1417_v46 = vpop.f32.mrb[51].mxu0 }
 0x144   :  { %v2149_v49 = vmax.f32 %v1415_v27, 0.0  ;;  %v1418_v50 = vadd.f32 %v9347_v38, %v1417_v46  ;;  %v8734_v27 = vld [vmem:[%s12573_s1 + $0x298] sm:$0xff]  }
 0x145   :  { %v2152_v51 = vmax.f32 %v1426_v39, 0.0  ;;  %8472 = vmatmul.mubr.msk.bf16.gmra.mrb[156].mxu0 %vm857_vm0, %v8729_v24 }
 0x146   :  { %v2150_v3 = vmax.f32 %v1418_v50, 0.0  ;;  %8475 = vmatprep.mubr.msk.bf16.mxu0 %vm857_vm0, %v8730_v30 }
 0x147   :  { %v9656_v54 = vpack.c.bf16 %v2152_v51, %v2151_v0  ;;  %v8735_v0 = vld [vmem:[%s12573_s1 + $0x2a0] sm:$0xff]  }
 0x148   :  { %v8369_v34 = vpop.f32.mrb[52].mxu0  ;;  %v9658_v56 = vpack.c.bf16 %v2150_v3, %v2149_v49 }
 0x149   :  { %v1439_v7 = vadd.f32 %v8369_v34, %v9347_v38  ;;  %v1430_v59 = vpop.f32.mrb[53].mxu0 }
 0x14a   :  { %2692 = vmatmul.mubr.bf16.gmra.mrb[88].mxu1 %v9503_v44  ;;  %v1431_v2 = vadd.f32 %v9347_v38, %v1430_v59  ;;  %v8370_v62 = vpop.f32.mrb[54].mxu0 }
 0x14b   :  { %2701 = vmatprep.mubr.bf16.mxu1 %v12558_v4  ;;  %v2155_v1 = vmax.f32 %v1439_v7, 0.0  ;;  %v1442_v31 = vadd.f32 %v8370_v62, %v9347_v38  ;;  %v1433_v8 = vpop.f32.mrb[55].mxu0  ;;  %v8736_v62 = vld [vmem:[%s12573_s1 + $0x2a8] sm:$0xff]  }
 0x14c   :  { %v2153_v9 = vmax.f32 %v1431_v2, 0.0  ;;  %v1434_v11 = vadd.f32 %v9347_v38, %v1433_v8 }
 0x14d   :  { %v2156_v16 = vmax.f32 %v1442_v31, 0.0  ;;  %8476 = vmatmul.mubr.msk.bf16.gmra.mrb[160].mxu0 %vm857_vm0, %v8731_v61  ;;  %v8737_v31 = vld [vmem:[%s12573_s1 + $0x2b0] sm:$0xff]  }
 0x14e   :  { %v2154_v44 = vmax.f32 %v1434_v11, 0.0  ;;  %8479 = vmatprep.mubr.msk.bf16.mxu0 %vm857_vm0, %v8732_v63 }
 0x14f   :  { %v9674_v18 = vpack.c.bf16 %v2156_v16, %v2155_v1 }
 0x150   :  { %v8373_v21 = vpop.f32.mrb[56].mxu0  ;;  %v9676_v22 = vpack.c.bf16 %v2154_v44, %v2153_v9 }
 0x151   :  { %v1455_v35 = vadd.f32 %v8373_v21, %v9347_v38  ;;  %v1446_v24 = vpop.f32.mrb[57].mxu0 }
 0x152   :  { %2702 = vmatmul.mubr.bf16.gmra.mrb[92].mxu1 %v9501_v40  ;;  %v1447_v29 = vadd.f32 %v9347_v38, %v1446_v24  ;;  %v8374_v30 = vpop.f32.mrb[58].mxu0 }
 0x153   :  { %2711 = vmatprep.mubr.bf16.mxu1 %v12558_v4  ;;  %v2159_v39 = vmax.f32 %v1455_v35, 0.0  ;;  %v1458_v46 = vadd.f32 %v8374_v30, %v9347_v38  ;;  %v1449_v49 = vpop.f32.mrb[59].mxu0 }
 0x154   :  { %v2157_v50 = vmax.f32 %v1447_v29, 0.0  ;;  %v1450_v51 = vadd.f32 %v9347_v38, %v1449_v49  ;;  %v8739_v49 = vld [vmem:[%s12573_s1 + $0x2c0] sm:$0xff]  }
 0x155   :  { %v2160_v3 = vmax.f32 %v1458_v46, 0.0  ;;  %8480 = vmatmul.mubr.msk.bf16.gmra.mrb[164].mxu0 %vm857_vm0, %v8734_v27 }
 0x156   :  { %v2158_v40 = vmax.f32 %v1450_v51, 0.0  ;;  %8483 = vmatprep.mubr.msk.bf16.mxu0 %vm857_vm0, %v8735_v0  ;;  %v8738_v0 = vld [vmem:[%s12573_s1 + $0x2b8] sm:$0xff]  }
 0x157   :  { %v9692_v34 = vpack.c.bf16 %v2160_v3, %v2159_v39 }
 0x158   :  { %v8377_v7 = vpop.f32.mrb[60].mxu0  ;;  %v9694_v59 = vpack.c.bf16 %v2158_v40, %v2157_v50 }
 0x159   :  { %v1471_v61 = vadd.f32 %v8377_v7, %v9347_v38  ;;  %v1462_v2 = vpop.f32.mrb[61].mxu0 }
 0x15a   :  { %2712 = vmatmul.mubr.bf16.gmra.mrb[96].mxu1 %v9529_v20  ;;  %v1463_v63 = vadd.f32 %v9347_v38, %v1462_v2  ;;  %v8378_v1 = vpop.f32.mrb[62].mxu0 }
 0x15b   :  { %2721 = vmatprep.mubr.bf16.mxu1 %v12558_v4  ;;  %v2163_v8 = vmax.f32 %v1471_v61, 0.0  ;;  %v1474_v9 = vadd.f32 %v8378_v1, %v9347_v38  ;;  %v1465_v11 = vpop.f32.mrb[63].mxu0 }
 0x15c   :  { %v2161_v16 = vmax.f32 %v1463_v63, 0.0  ;;  %v1466_v44 = vadd.f32 %v9347_v38, %v1465_v11 }
 0x15d   :  { %v2164_v21 = vmax.f32 %v1474_v9, 0.0  ;;  %8484 = vmatmul.mubr.msk.bf16.gmra.mrb[168].mxu0 %vm857_vm0, %v8736_v62 }
 0x15e   :  { %v2162_v20 = vmax.f32 %v1466_v44, 0.0  ;;  %8487 = vmatprep.mubr.msk.bf16.mxu0 %vm857_vm0, %v8737_v31 }
 0x15f   :  { %v9710_v35 = vpack.c.bf16 %v2164_v21, %v2163_v8  ;;  %v8740_v8 = vld [vmem:[%s12573_s1 + $0x2c8] sm:$0xff]  }
 0x160   :  { %v8381_v24 = vpop.f32.mrb[64].mxu0  ;;  %v9712_v27 = vpack.c.bf16 %v2162_v20, %v2161_v16 }
 0x161   :  { %v1487_v29 = vadd.f32 %v8381_v24, %v9347_v38  ;;  %v1478_v30 = vpop.f32.mrb[65].mxu0 }
 0x162   :  { %2722 = vmatmul.mubr.bf16.gmra.mrb[100].mxu1 %v9527_v17  ;;  %v1479_v39 = vadd.f32 %v9347_v38, %v1478_v30  ;;  %v8382_v46 = vpop.f32.mrb[66].mxu0 }
 0x163   :  { %2731 = vmatprep.mubr.bf16.mxu1 %v12558_v4  ;;  %v2167_v50 = vmax.f32 %v1487_v29, 0.0  ;;  %v1490_v51 = vadd.f32 %v8382_v46, %v9347_v38  ;;  %v1481_v3 = vpop.f32.mrb[67].mxu0 }
 0x164   :  { %v2165_v40 = vmax.f32 %v1479_v39, 0.0  ;;  %v1482_v7 = vadd.f32 %v9347_v38, %v1481_v3 }
 0x165   :  { %v2168_v61 = vmax.f32 %v1490_v51, 0.0  ;;  %8488 = vmatmul.mubr.msk.bf16.gmra.mrb[172].mxu0 %vm857_vm0, %v8738_v0 }
 0x166   :  { %v2166_v17 = vmax.f32 %v1482_v7, 0.0  ;;  %8491 = vmatprep.mubr.msk.bf16.mxu0 %vm857_vm0, %v8739_v49 }
 0x167   :  { %v9728_v2 = vpack.c.bf16 %v2168_v61, %v2167_v50 }
 0x168   :  { %v8385_v62 = vpop.f32.mrb[68].mxu0  ;;  %v9730_v63 = vpack.c.bf16 %v2166_v17, %v2165_v40  ;;  %v9754_v17 = vld [vmem:[%s12576_s29] ss:$0 sm:$0xff] }
 0x169   :  { %v1503_v1 = vadd.f32 %v8385_v62, %v9347_v38  ;;  %v1494_v31 = vpop.f32.mrb[69].mxu0 }
 0x16a   :  { %2732 = vmatmul.mubr.bf16.gmra.mrb[104].mxu1 %v9558_v60  ;;  %v1495_v9 = vadd.f32 %v9347_v38, %v1494_v31  ;;  %v8386_v11 = vpop.f32.mrb[70].mxu0 }
 0x16b   :  { %2741 = vmatprep.mubr.bf16.mxu1 %v12558_v4  ;;  %v2171_v16 = vmax.f32 %v1503_v1, 0.0  ;;  %v1506_v44 = vadd.f32 %v8386_v11, %v9347_v38  ;;  %v1497_v21 = vpop.f32.mrb[71].mxu0 }
 0x16c   :  { %v2169_v20 = vmax.f32 %v1495_v9, 0.0  ;;  %v1498_v24 = vadd.f32 %v9347_v38, %v1497_v21 }
 0x16d   :  { %v2172_v29 = vmax.f32 %v1506_v44, 0.0  ;;  %8492 = vmatmul.mubr.msk.bf16.gmra.mrb[176].mxu0 %vm857_vm0, %v8740_v8 }
 0x16e   :  { %v2170_v30 = vmax.f32 %v1498_v24, 0.0 }
 0x16f   :  { %v9742_v0 = vpack.c.bf16 %v2172_v29, %v2171_v16 }
 0x170   :  { %v8389_v39 = vpop.f32.mrb[72].mxu0  ;;  %v9744_v60 = vpack.c.bf16 %v2170_v30, %v2169_v20 }
 0x171   :  { %v1519_v46 = vadd.f32 %v8389_v39, %v9347_v38  ;;  %v1510_v49 = vpop.f32.mrb[73].mxu0 }
 0x172   :  { %2742 = vmatmul.mubr.bf16.gmra.mrb[108].mxu1 %v9556_v58  ;;  %v1511_v50 = vadd.f32 %v9347_v38, %v1510_v49  ;;  %v8390_v51 = vpop.f32.mrb[74].mxu0 }
 0x173   :  { %2751 = vmatprep.mubr.bf16.mxu1 %v12558_v4  ;;  %v2175_v3 = vmax.f32 %v1519_v46, 0.0  ;;  %v1522_v40 = vadd.f32 %v8390_v51, %v9347_v38  ;;  %v1513_v7 = vpop.f32.mrb[75].mxu0 }
 0x174   :  { %v2173_v61 = vmax.f32 %v1511_v50, 0.0  ;;  %v1514_v62 = vadd.f32 %v9754_v17, %v1513_v7 }
 0x175   :  { %v2176_v1 = vmax.f32 %v1522_v40, 0.0 }
 0x176   :  { %v2174_v31 = vmax.f32 %v1514_v62, 0.0 }
 0x177   :  { %v9757_v58 = vpack.c.bf16 %v2176_v1, %v2175_v3 }
 0x178   :  { %v8393_v8 = vpop.f32.mrb[76].mxu0  ;;  %v9759_v9 = vpack.c.bf16 %v2174_v31, %v2173_v61 }
 0x179   :  { %v1535_v11 = vadd.f32 %v9754_v17, %v8393_v8  ;;  %v1526_v16 = vpop.f32.mrb[77].mxu0 }
 0x17a   :  { %2752 = vmatmul.mubr.bf16.gmra.mrb[112].mxu1 %v9584_v42  ;;  %v1527_v38 = vadd.f32 %v9754_v17, %v1526_v16  ;;  %v8394_v44 = vpop.f32.mrb[78].mxu0 }
 0x17b   :  { %2761 = vmatprep.mubr.bf16.mxu1 %v12558_v4  ;;  %v2179_v21 = vmax.f32 %v1535_v11, 0.0  ;;  %v1538_v20 = vadd.f32 %v9754_v17, %v8394_v44  ;;  %v1529_v24 = vpop.f32.mrb[79].mxu0 }
 0x17c   :  { %v2177_v29 = vmax.f32 %v1527_v38, 0.0  ;;  %v1530_v30 = vadd.f32 %v9754_v17, %v1529_v24 }
 0x17d   :  { %v2180_v39 = vmax.f32 %v1538_v20, 0.0 }
 0x17e   :  { %v2178_v46 = vmax.f32 %v1530_v30, 0.0 }
 0x17f   :  { %v9767_v49 = vpack.c.bf16 %v2180_v39, %v2179_v21 }
 0x180   :  { %v8397_v50 = vpop.f32.mrb[80].mxu0  ;;  %v9769_v51 = vpack.c.bf16 %v2178_v46, %v2177_v29 }
 0x181   :  { %v1551_v42 = vadd.f32 %v9754_v17, %v8397_v50  ;;  %v1542_v3 = vpop.f32.mrb[81].mxu0 }
 0x182   :  { %2762 = vmatmul.mubr.bf16.gmra.mrb[116].mxu1 %v9582_v37  ;;  %v1543_v40 = vadd.f32 %v9754_v17, %v1542_v3  ;;  %v8398_v7 = vpop.f32.mrb[82].mxu0 }
 0x183   :  { %2771 = vmatprep.mubr.bf16.mxu1 %v12558_v4  ;;  %v2183_v61 = vmax.f32 %v1551_v42, 0.0  ;;  %v1554_v62 = vadd.f32 %v9754_v17, %v8398_v7  ;;  %v1545_v1 = vpop.f32.mrb[83].mxu0 }
 0x184   :  { %v2181_v31 = vmax.f32 %v1543_v40, 0.0  ;;  %v1546_v8 = vadd.f32 %v9754_v17, %v1545_v1 }
 0x185   :  { %v2184_v11 = vmax.f32 %v1554_v62, 0.0 }
 0x186   :  { %v2182_v16 = vmax.f32 %v1546_v8, 0.0 }
 0x187   :  { %v9777_v38 = vpack.c.bf16 %v2184_v11, %v2183_v61 }
 0x188   :  { %v8401_v44 = vpop.f32.mrb[84].mxu0  ;;  %v9779_v21 = vpack.c.bf16 %v2182_v16, %v2181_v31 }
 0x189   :  { %v1567_v37 = vadd.f32 %v9754_v17, %v8401_v44  ;;  %v1558_v20 = vpop.f32.mrb[85].mxu0 }
 0x18a   :  { %2772 = vmatmul.mubr.bf16.gmra.mrb[120].mxu1 %v9610_v26  ;;  %v1559_v24 = vadd.f32 %v9754_v17, %v1558_v20  ;;  %v8402_v29 = vpop.f32.mrb[86].mxu0 }
 0x18b   :  { %2781 = vmatprep.mubr.bf16.mxu1 %v12558_v4  ;;  %v2187_v30 = vmax.f32 %v1567_v37, 0.0  ;;  %v1570_v39 = vadd.f32 %v9754_v17, %v8402_v29  ;;  %v1561_v46 = vpop.f32.mrb[87].mxu0 }
 0x18c   :  { %v2185_v50 = vmax.f32 %v1559_v24, 0.0  ;;  %v1562_v42 = vadd.f32 %v9754_v17, %v1561_v46 }
 0x18d   :  { %v2188_v3 = vmax.f32 %v1570_v39, 0.0 }
 0x18e   :  { %v2186_v40 = vmax.f32 %v1562_v42, 0.0 }
 0x18f   :  { %v9787_v7 = vpack.c.bf16 %v2188_v3, %v2187_v30 }
 0x190   :  { %v8405_v61 = vpop.f32.mrb[88].mxu0  ;;  %v9789_v62 = vpack.c.bf16 %v2186_v40, %v2185_v50 }
 0x191   :  { %v1583_v26 = vadd.f32 %v9754_v17, %v8405_v61  ;;  %v1574_v1 = vpop.f32.mrb[89].mxu0 }
 0x192   :  { %2782 = vmatmul.mubr.bf16.gmra.mrb[124].mxu1 %v9608_v23  ;;  %v1575_v31 = vadd.f32 %v9754_v17, %v1574_v1  ;;  %v8406_v8 = vpop.f32.mrb[90].mxu0 }
 0x193   :  { %2791 = vmatprep.mubr.bf16.mxu1 %v12558_v4  ;;  %v2191_v11 = vmax.f32 %v1583_v26, 0.0  ;;  %v1586_v16 = vadd.f32 %v9754_v17, %v8406_v8  ;;  %v1577_v44 = vpop.f32.mrb[91].mxu0 }
 0x194   :  { %v2189_v37 = vmax.f32 %v1575_v31, 0.0  ;;  %v1578_v20 = vadd.f32 %v9754_v17, %v1577_v44 }
 0x195   :  { %v2192_v24 = vmax.f32 %v1586_v16, 0.0 }
 0x196   :  { %v2190_v29 = vmax.f32 %v1578_v20, 0.0 }
 0x197   :  { %v9797_v30 = vpack.c.bf16 %v2192_v24, %v2191_v11 }
 0x198   :  { %v8409_v39 = vpop.f32.mrb[92].mxu0  ;;  %v9799_v46 = vpack.c.bf16 %v2190_v29, %v2189_v37 }
 0x199   :  { %v1599_v23 = vadd.f32 %v9754_v17, %v8409_v39  ;;  %v1590_v50 = vpop.f32.mrb[93].mxu0 }
 0x19a   :  { %2792 = vmatmul.mubr.bf16.gmra.mrb[128].mxu1 %v9636_v6  ;;  %v1591_v42 = vadd.f32 %v9754_v17, %v1590_v50  ;;  %v8410_v3 = vpop.f32.mrb[94].mxu0 }
 0x19b   :  { %2801 = vmatprep.mubr.bf16.mxu1 %v12558_v4  ;;  %v2195_v40 = vmax.f32 %v1599_v23, 0.0  ;;  %v1602_v61 = vadd.f32 %v9754_v17, %v8410_v3  ;;  %v1593_v26 = vpop.f32.mrb[95].mxu0 }
 0x19c   :  { %v2193_v1 = vmax.f32 %v1591_v42, 0.0  ;;  %v1594_v31 = vadd.f32 %v9754_v17, %v1593_v26 }
 0x19d   :  { %v2196_v8 = vmax.f32 %v1602_v61, 0.0 }
 0x19e   :  { %v2194_v11 = vmax.f32 %v1594_v31, 0.0 }
 0x19f   :  { %v9807_v16 = vpack.c.bf16 %v2196_v8, %v2195_v40 }
 0x1a0   :  { %v8413_v44 = vpop.f32.mrb[96].mxu0  ;;  %v9809_v37 = vpack.c.bf16 %v2194_v11, %v2193_v1 }
 0x1a1   :  { %v1615_v6 = vadd.f32 %v9754_v17, %v8413_v44  ;;  %v1606_v20 = vpop.f32.mrb[97].mxu0 }
 0x1a2   :  { %2802 = vmatmul.mubr.bf16.gmra.mrb[132].mxu1 %v9634_v13  ;;  %v1607_v24 = vadd.f32 %v9754_v17, %v1606_v20  ;;  %v8414_v29 = vpop.f32.mrb[98].mxu0 }
 0x1a3   :  { %2811 = vmatprep.mubr.bf16.mxu1 %v12558_v4  ;;  %v2199_v39 = vmax.f32 %v1615_v6, 0.0  ;;  %v1618_v23 = vadd.f32 %v9754_v17, %v8414_v29  ;;  %v1609_v50 = vpop.f32.mrb[99].mxu0 }
 0x1a4   :  { %v2197_v42 = vmax.f32 %v1607_v24, 0.0  ;;  %v1610_v3 = vadd.f32 %v9754_v17, %v1609_v50  ;;  %v2449_v50 = vlaneseq }
 0x1a5   :  { %v2200_v40 = vmax.f32 %v1618_v23, 0.0 }
 0x1a6   :  { %v2198_v61 = vmax.f32 %v1610_v3, 0.0 }
 0x1a7   :  { %v9817_v26 = vpack.c.bf16 %v2200_v40, %v2199_v39 }
 0x1a8   :  { %v8417_v1 = vpop.f32.mrb[100].mxu0  ;;  %v9819_v31 = vpack.c.bf16 %v2198_v61, %v2197_v42 }
 0x1a9   :  { %v1631_v13 = vadd.f32 %v9754_v17, %v8417_v1  ;;  %v1622_v8 = vpop.f32.mrb[101].mxu0 }
 0x1aa   :  { %2812 = vmatmul.mubr.bf16.gmra.mrb[136].mxu1 %v9658_v56  ;;  %v1623_v11 = vadd.f32 %v9754_v17, %v1622_v8  ;;  %v8418_v44 = vpop.f32.mrb[102].mxu0 }
 0x1ab   :  { %2821 = vmatprep.mubr.bf16.mxu1 %v12558_v4  ;;  %v2203_v6 = vmax.f32 %v1631_v13, 0.0  ;;  %v1634_v20 = vadd.f32 %v9754_v17, %v8418_v44  ;;  %v1625_v24 = vpop.f32.mrb[103].mxu0  ;;  %v2450_v13 = vshrl.u32 %v2449_v50, 7 }
 0x1ac   :  { %v2201_v29 = vmax.f32 %v1623_v11, 0.0  ;;  %v1626_v39 = vadd.f32 %v9754_v17, %v1625_v24 }
 0x1ad   :  { %v2204_v23 = vmax.f32 %v1634_v20, 0.0  ;;  %v9842_v50 = vsub.s32 1, %v2450_v13 }
 0x1ae   :  { %v2202_v42 = vmax.f32 %v1626_v39, 0.0 }
 0x1af   :  { %v9827_v3 = vpack.c.bf16 %v2204_v23, %v2203_v6  ;;  %v9837_v23 = vsub.s32 0, %v2450_v13  ;;  %12599 = vst [vmem:[#allocation23_spill] sm:$0xff] %v9842_v50  ;;  %v12600_v13 = vmov 0  }
 0x1b0   :  { %v8421_v40 = vpop.f32.mrb[104].mxu0  ;;  %v9829_v61 = vpack.c.bf16 %v2202_v42, %v2201_v29 }
 0x1b1   :  { %v1647_v56 = vadd.f32 %v9754_v17, %v8421_v40  ;;  %v1638_v1 = vpop.f32.mrb[105].mxu0  ;;  %12597 = vst [vmem:[#allocation22_spill] sm:$0xff] %v9837_v23 }
 0x1b2   :  { %2822 = vmatmul.mubr.bf16.gmra.mrb[140].mxu1 %v9656_v54  ;;  %v1639_v8 = vadd.f32 %v9754_v17, %v1638_v1  ;;  %v8422_v44 = vpop.f32.mrb[106].mxu0  ;;  %v2447_v54 = vld [vmem:[%s12598_s0] sm:$0x3] }
 0x1b3   :  { %2831 = vmatprep.mubr.bf16.mxu1 %v12558_v4  ;;  %v2207_v11 = vmax.f32 %v1647_v56, 0.0  ;;  %v1650_v20 = vadd.f32 %v9754_v17, %v8422_v44  ;;  %v1641_v24 = vpop.f32.mrb[107].mxu0  ;;  %v9855_v4 = vrot.slane %v2447_v54, %v9842_v50 }
 0x1b4   :  { %v2205_v6 = vmax.f32 %v1639_v8, 0.0  ;;  %v1642_v39 = vadd.f32 %v9754_v17, %v1641_v24 }
 0x1b5   :  { %v2208_v29 = vmax.f32 %v1650_v20, 0.0  ;;  %v9851_v20 = vrot.slane %v2447_v54, %v9837_v23 }
 0x1b6   :  { %v2206_v42 = vmax.f32 %v1642_v39, 0.0 }
 0x1b7   :  { %v9844_v40 = vpack.c.bf16 %v2208_v29, %v2207_v11 }
 0x1b8   :  { %v8425_v1 = vpop.f32.mrb[108].mxu0  ;;  %v9846_v56 = vpack.c.bf16 %v2206_v42, %v2205_v6 }
 0x1b9   :  { %v1663_v44 = vadd.f32 %v9754_v17, %v8425_v1  ;;  %v1654_v8 = vpop.f32.mrb[109].mxu0 }
 0x1ba   :  { %2832 = vmatmul.mubr.bf16.gmra.mrb[144].mxu1 %v9676_v22  ;;  %v1655_v24 = vadd.f32 %v9754_v17, %v1654_v8  ;;  %v8426_v39 = vpop.f32.mrb[110].mxu0 }
 0x1bb   :  { %2841 = vmatprep.mubr.bf16.mxu1 %v12600_v13  ;;  %v2211_v11 = vmax.f32 %v1663_v44, 0.0  ;;  %v1666_v6 = vadd.f32 %v9754_v17, %v8426_v39  ;;  %v1657_v29 = vpop.f32.mrb[111].mxu0 }
 0x1bc   :  { %v2209_v42 = vmax.f32 %v1655_v24, 0.0  ;;  %v1658_v1 = vadd.f32 %v9754_v17, %v1657_v29 }
 0x1bd   :  { %v2573_v25 = vpop.f32.mrb[40].mxu1  ;;  %v2212_v22 = vmax.f32 %v1666_v6, 0.0 }
 0x1be   :  { %v2574_v23 = vadd.f32 %v2573_v25, %v9851_v20  ;;  %v2575_v33 = vpop.f32.mrb[41].mxu1  ;;  %v2210_v36 = vmax.f32 %v1658_v1, 0.0 }
 0x1bf   :  { %v2576_v8 = vadd.f32 %v2575_v33, %v9855_v4  ;;  %v2577_v47 = vpop.f32.mrb[42].mxu1  ;;  %v9862_v54 = vpack.c.bf16 %v2212_v22, %v2211_v11 }
 0x1c0   :  { %v2578_v50 = vadd.f32 %v2577_v47, %v9851_v20  ;;  %v2579_v44 = vpop.f32.mrb[43].mxu1  ;;  %v9865_v53 = vpack.c.bf16 %v2210_v36, %v2209_v42  ;;  %v8429_v39 = vpop.f32.mrb[112].mxu0  ;;  %v3672_v57 = vmax.f32 %v2574_v23, 0.0 }
 0x1c1   :  { %v2580_v24 = vadd.f32 %v2579_v44, %v9855_v4  ;;  %v1679_v29 = vadd.f32 %v9754_v17, %v8429_v39  ;;  %v1670_v6 = vpop.f32.mrb[113].mxu0  ;;  %v3673_v11 = vmax.f32 %v2576_v8, 0.0 }
 0x1c2   :  { %v3674_v25 = vmax.f32 %v2578_v50, 0.0  ;;  %2842 = vmatmul.mubr.bf16.gmra.mrb[148].mxu1 %v9674_v18  ;;  %v1671_v33 = vadd.f32 %v9754_v17, %v1670_v6  ;;  %v8430_v1 = vpop.f32.mrb[114].mxu0 }
 0x1c3   :  { %v3675_v22 = vmax.f32 %v2580_v24, 0.0  ;;  %2851 = vmatprep.mubr.bf16.mxu1 %v12600_v13  ;;  %v2215_v47 = vmax.f32 %v1679_v29, 0.0  ;;  %v1682_v36 = vadd.f32 %v9754_v17, %v8430_v1  ;;  %v1673_v42 = vpop.f32.mrb[115].mxu0 }
 0x1c4   :  { %v4112_v5 = vpack.c.bf16 %v3674_v25, %v3672_v57  ;;  %v2213_v44 = vmax.f32 %v1671_v33, 0.0  ;;  %v1674_v39 = vadd.f32 %v9754_v17, %v1673_v42 }
 0x1c5   :  { %v4113_v23 = vpack.c.bf16 %v3675_v22, %v3673_v11  ;;  %v2583_v50 = vpop.f32.mrb[44].mxu1  ;;  %v2216_v12 = vmax.f32 %v1682_v36, 0.0 }
 0x1c6   :  { %v2584_v18 = vadd.f32 %v2583_v50, %v9851_v20  ;;  %v2585_v6 = vpop.f32.mrb[45].mxu1  ;;  %v2214_v32 = vmax.f32 %v1674_v39, 0.0 }
 0x1c7   :  { %v2586_v8 = vadd.f32 %v2585_v6, %v9855_v4  ;;  %v2587_v24 = vpop.f32.mrb[46].mxu1  ;;  %7954 = vmatprep.mubr.msk.bf16.mxu0 %vm4419_vm1, %v4113_v23  ;;  %v9877_v29 = vpack.c.bf16 %v2216_v12, %v2215_v47 }
 0x1c8   :  { %v2588_v57 = vadd.f32 %v2587_v24, %v9851_v20  ;;  %v2589_v25 = vpop.f32.mrb[47].mxu1  ;;  %4783 = vmatmul.mubr.bf16.vlgmr.msra.gmra.mrb[180].mxu0 %v4112_v5  ;;  %v9880_v33 = vpack.c.bf16 %v2214_v32, %v2213_v44  ;;  %v8433_v1 = vpop.f32.mrb[116].mxu0  ;;  %v3676_v42 = vmax.f32 %v2584_v18, 0.0 }
 0x1c9   :  { %v2590_v11 = vadd.f32 %v2589_v25, %v9855_v4  ;;  %v1695_v22 = vadd.f32 %v9754_v17, %v8433_v1  ;;  %v1686_v36 = vpop.f32.mrb[117].mxu0  ;;  %v3677_v47 = vmax.f32 %v2586_v8, 0.0 }
 0x1ca   :  { %v3678_v39 = vmax.f32 %v2588_v57, 0.0  ;;  %2852 = vmatmul.mubr.bf16.gmra.mrb[152].mxu1 %v9694_v59  ;;  %v1687_v23 = vadd.f32 %v9754_v17, %v1686_v36  ;;  %v8434_v12 = vpop.f32.mrb[118].mxu0 }
 0x1cb   :  { %v3679_v50 = vmax.f32 %v2590_v11, 0.0  ;;  %2861 = vmatprep.mubr.bf16.mxu1 %v12600_v13  ;;  %v2219_v5 = vmax.f32 %v1695_v22, 0.0  ;;  %v1698_v32 = vadd.f32 %v9754_v17, %v8434_v12  ;;  %v1689_v44 = vpop.f32.mrb[119].mxu0 }
 0x1cc   :  { %v4114_v6 = vpack.c.bf16 %v3678_v39, %v3676_v42  ;;  %v2217_v24 = vmax.f32 %v1687_v23, 0.0  ;;  %v1690_v25 = vadd.f32 %v9754_v17, %v1689_v44 }
 0x1cd   :  { %v4115_v1 = vpack.c.bf16 %v3679_v50, %v3677_v47  ;;  %v2593_v18 = vpop.f32.mrb[48].mxu1  ;;  %v2220_v57 = vmax.f32 %v1698_v32, 0.0 }
 0x1ce   :  { %v2594_v59 = vadd.f32 %v2593_v18, %v9851_v20  ;;  %v2595_v28 = vpop.f32.mrb[49].mxu1  ;;  %v2218_v36 = vmax.f32 %v1690_v25, 0.0 }
 0x1cf   :  { %v2596_v8 = vadd.f32 %v2595_v28, %v9855_v4  ;;  %v2597_v11 = vpop.f32.mrb[50].mxu1  ;;  %7955 = vmatprep.mubr.msk.bf16.mxu0 %vm4419_vm1, %v4115_v1  ;;  %v9892_v22 = vpack.c.bf16 %v2220_v57, %v2219_v5 }
 0x1d0   :  { %v2598_v12 = vadd.f32 %v2597_v11, %v9851_v20  ;;  %v2599_v42 = vpop.f32.mrb[51].mxu1  ;;  %4791 = vmatmul.mubr.bf16.gmra.mrb[184].mxu0 %v4114_v6  ;;  %v9895_v39 = vpack.c.bf16 %v2218_v36, %v2217_v24  ;;  %v8437_v23 = vpop.f32.mrb[120].mxu0  ;;  %v3680_v44 = vmax.f32 %v2594_v59, 0.0 }
 0x1d1   :  { %v2600_v47 = vadd.f32 %v2599_v42, %v9855_v4  ;;  %v1711_v50 = vadd.f32 %v9754_v17, %v8437_v23  ;;  %v1702_v32 = vpop.f32.mrb[121].mxu0  ;;  %v3681_v1 = vmax.f32 %v2596_v8, 0.0 }
 0x1d2   :  { %v3682_v25 = vmax.f32 %v2598_v12, 0.0  ;;  %2862 = vmatmul.mubr.bf16.gmra.mrb[156].mxu1 %v9692_v34  ;;  %v1703_v28 = vadd.f32 %v9754_v17, %v1702_v32  ;;  %v8438_v5 = vpop.f32.mrb[122].mxu0 }
 0x1d3   :  { %v3683_v18 = vmax.f32 %v2600_v47, 0.0  ;;  %2871 = vmatprep.mubr.bf16.mxu1 %v12600_v13  ;;  %v2223_v6 = vmax.f32 %v1711_v50, 0.0  ;;  %v1714_v24 = vadd.f32 %v9754_v17, %v8438_v5  ;;  %v1705_v57 = vpop.f32.mrb[123].mxu0 }
 0x1d4   :  { %v4116_v36 = vpack.c.bf16 %v3682_v25, %v3680_v44  ;;  %v2221_v11 = vmax.f32 %v1703_v28, 0.0  ;;  %v1706_v42 = vadd.f32 %v9754_v17, %v1705_v57 }
 0x1d5   :  { %v4117_v23 = vpack.c.bf16 %v3683_v18, %v3681_v1  ;;  %v2603_v59 = vpop.f32.mrb[52].mxu1  ;;  %v2224_v12 = vmax.f32 %v1714_v24, 0.0 }
 0x1d6   :  { %v2604_v34 = vadd.f32 %v2603_v59, %v9851_v20  ;;  %v2605_v52 = vpop.f32.mrb[53].mxu1  ;;  %v2222_v32 = vmax.f32 %v1706_v42, 0.0 }
 0x1d7   :  { %v2606_v8 = vadd.f32 %v2605_v52, %v9855_v4  ;;  %v2607_v47 = vpop.f32.mrb[54].mxu1  ;;  %7956 = vmatprep.mubr.msk.bf16.mxu0 %vm4419_vm1, %v4117_v23  ;;  %v9907_v50 = vpack.c.bf16 %v2224_v12, %v2223_v6 }
 0x1d8   :  { %v2608_v5 = vadd.f32 %v2607_v47, %v9851_v20  ;;  %v2609_v44 = vpop.f32.mrb[55].mxu1  ;;  %4799 = vmatmul.mubr.bf16.gmra.mrb[188].mxu0 %v4116_v36  ;;  %v9910_v25 = vpack.c.bf16 %v2222_v32, %v2221_v11  ;;  %v8441_v28 = vpop.f32.mrb[124].mxu0  ;;  %v3684_v57 = vmax.f32 %v2604_v34, 0.0 }
 0x1d9   :  { %v2610_v1 = vadd.f32 %v2609_v44, %v9855_v4  ;;  %v1727_v18 = vadd.f32 %v9754_v17, %v8441_v28  ;;  %v1718_v24 = vpop.f32.mrb[125].mxu0  ;;  %v3685_v23 = vmax.f32 %v2606_v8, 0.0  ;;  %v8741_v8 = vld [vmem:[%s12601_s4] ss:$8 sps:$4 sm:$0xff]  }
 0x1da   :  { %v3686_v42 = vmax.f32 %v2608_v5, 0.0  ;;  %2872 = vmatmul.mubr.bf16.gmra.mrb[160].mxu1 %v9712_v27  ;;  %v1719_v52 = vadd.f32 %v9754_v17, %v1718_v24  ;;  %v8442_v6 = vpop.f32.mrb[126].mxu0 }
 0x1db   :  { %v3687_v59 = vmax.f32 %v2610_v1, 0.0  ;;  %2881 = vmatprep.mubr.bf16.mxu1 %v12600_v13  ;;  %v2227_v36 = vmax.f32 %v1727_v18, 0.0  ;;  %v1730_v11 = vadd.f32 %v9754_v17, %v8442_v6  ;;  %v1721_v12 = vpop.f32.mrb[127].mxu0 }
 0x1dc   :  { %v4118_v32 = vpack.c.bf16 %v3686_v42, %v3684_v57  ;;  %v2225_v47 = vmax.f32 %v1719_v52, 0.0  ;;  %v1722_v44 = vadd.f32 %v9754_v17, %v1721_v12  ;;  %v8743_v42 = vld [vmem:[%s12601_s4 + $0x4] ss:$8 sps:$4 sm:$0xff]  }
 0x1dd   :  { %v4119_v28 = vpack.c.bf16 %v3687_v59, %v3685_v23  ;;  %v2613_v34 = vpop.f32.mrb[56].mxu1  ;;  %v2228_v5 = vmax.f32 %v1730_v11, 0.0  ;;  %6441 = vmatprep.subr.bf16.mxu1 %v8743_v42 }
 0x1de   :  { %v2614_v27 = vadd.f32 %v2613_v34, %v9851_v20  ;;  %v2615_v55 = vpop.f32.mrb[57].mxu1  ;;  %v2226_v24 = vmax.f32 %v1722_v44, 0.0  ;;  %6442 = vmatpush1.bf16.msra.mxu1 %v8741_v8 }
 0x1df   :  { %v2616_v1 = vadd.f32 %v2615_v55, %v9855_v4  ;;  %v2617_v18 = vpop.f32.mrb[58].mxu1  ;;  %7957 = vmatprep.mubr.msk.bf16.mxu0 %vm4419_vm1, %v4119_v28  ;;  %v9925_v57 = vpack.c.bf16 %v2228_v5, %v2227_v36 }
 0x1e0   :  { %v2618_v52 = vadd.f32 %v2617_v18, %v9851_v20  ;;  %v2619_v6 = vpop.f32.mrb[59].mxu1  ;;  %4807 = vmatmul.mubr.bf16.gmra.mrb[192].mxu0 %v4118_v32  ;;  %v9931_v23 = vpack.c.bf16 %v2226_v24, %v2225_v47  ;;  %v8445_v59 = vpop.f32.mrb[128].mxu0  ;;  %v3688_v11 = vmax.f32 %v2614_v27, 0.0 }
 0x1e1   :  { %v2620_v12 = vadd.f32 %v2619_v6, %v9855_v4  ;;  %v1743_v55 = vadd.f32 %v9754_v17, %v8445_v59  ;;  %v1734_v44 = vpop.f32.mrb[129].mxu0  ;;  %v3689_v36 = vmax.f32 %v2616_v1, 0.0 }
 0x1e2   :  { %v3690_v28 = vmax.f32 %v2618_v52, 0.0  ;;  %2882 = vmatmul.mubr.bf16.gmra.mrb[164].mxu1 %v9710_v35  ;;  %v1735_v34 = vadd.f32 %v9754_v17, %v1734_v44  ;;  %v8446_v5 = vpop.f32.mrb[130].mxu0 }
 0x1e3   :  { %v3691_v18 = vmax.f32 %v2620_v12, 0.0  ;;  %2891 = vmatprep.mubr.bf16.mxu1 %v12600_v13  ;;  %v2231_v32 = vmax.f32 %v1743_v55, 0.0  ;;  %v1746_v47 = vadd.f32 %v9754_v17, %v8446_v5  ;;  %v1737_v27 = vpop.f32.mrb[131].mxu0 }
 0x1e4   :  { %v4120_v24 = vpack.c.bf16 %v3690_v28, %v3688_v11  ;;  %v2229_v6 = vmax.f32 %v1735_v34, 0.0  ;;  %v1738_v59 = vadd.f32 %v9754_v17, %v1737_v27 }
 0x1e5   :  { %v4121_v42 = vpack.c.bf16 %v3691_v18, %v3689_v36  ;;  %v2623_v1 = vpop.f32.mrb[60].mxu1  ;;  %v2232_v52 = vmax.f32 %v1746_v47, 0.0 }
 0x1e6   :  { %v2624_v35 = vadd.f32 %v2623_v1, %v9851_v20  ;;  %v2625_v15 = vpop.f32.mrb[61].mxu1  ;;  %v2230_v44 = vmax.f32 %v1738_v59, 0.0 }
 0x1e7   :  { %v2626_v12 = vadd.f32 %v2625_v15, %v9855_v4  ;;  %v2627_v19 = vpop.f32.mrb[62].mxu1  ;;  %7958 = vmatprep.mubr.msk.bf16.mxu0 %vm4419_vm1, %v4121_v42  ;;  %v9943_v55 = vpack.c.bf16 %v2232_v52, %v2231_v32 }
 0x1e8   :  { %v2628_v8 = vadd.f32 %v2627_v19, %v9851_v20  ;;  %v2629_v11 = vpop.f32.mrb[63].mxu1  ;;  %4815 = vmatmul.mubr.bf16.gmra.mrb[196].mxu0 %v4120_v24  ;;  %v9946_v28 = vpack.c.bf16 %v2230_v44, %v2229_v6  ;;  %v8449_v36 = vpop.f32.mrb[132].mxu0  ;;  %v3692_v47 = vmax.f32 %v2624_v35, 0.0 }
 0x1e9   :  { %v2630_v34 = vadd.f32 %v2629_v11, %v9855_v4  ;;  %v1759_v5 = vadd.f32 %v9754_v17, %v8449_v36  ;;  %v1750_v18 = vpop.f32.mrb[133].mxu0  ;;  %v3693_v59 = vmax.f32 %v2626_v12, 0.0 }
 0x1ea   :  { %v3694_v27 = vmax.f32 %v2628_v8, 0.0  ;;  %2892 = vmatmul.mubr.bf16.gmra.mrb[168].mxu1 %v9730_v63  ;;  %v1751_v15 = vadd.f32 %v9754_v17, %v1750_v18  ;;  %v8450_v32 = vpop.f32.mrb[134].mxu0 }
 0x1eb   :  { %v3695_v42 = vmax.f32 %v2630_v34, 0.0  ;;  %2901 = vmatprep.mubr.bf16.mxu1 %v12600_v13  ;;  %v2235_v19 = vmax.f32 %v1759_v5, 0.0  ;;  %v1762_v24 = vadd.f32 %v9754_v17, %v8450_v32  ;;  %v1753_v6 = vpop.f32.mrb[135].mxu0 }
 0x1ec   :  { %v4122_v1 = vpack.c.bf16 %v3694_v27, %v3692_v47  ;;  %v2233_v52 = vmax.f32 %v1751_v15, 0.0  ;;  %v1754_v44 = vadd.f32 %v9754_v17, %v1753_v6 }
 0x1ed   :  { %v4123_v11 = vpack.c.bf16 %v3695_v42, %v3693_v59  ;;  %v2633_v35 = vpop.f32.mrb[64].mxu1  ;;  %v2236_v8 = vmax.f32 %v1762_v24, 0.0 }
 0x1ee   :  { %v2634_v63 = vadd.f32 %v2633_v35, %v9851_v20  ;;  %v2635_v36 = vpop.f32.mrb[65].mxu1  ;;  %v2234_v18 = vmax.f32 %v1754_v44, 0.0 }
 0x1ef   :  { %v2636_v12 = vadd.f32 %v2635_v36, %v9855_v4  ;;  %v2637_v34 = vpop.f32.mrb[66].mxu1  ;;  %7959 = vmatprep.mubr.msk.bf16.mxu0 %vm4419_vm1, %v4123_v11  ;;  %v9958_v5 = vpack.c.bf16 %v2236_v8, %v2235_v19 }
 0x1f0   :  { %v2638_v32 = vadd.f32 %v2637_v34, %v9851_v20  ;;  %v2639_v47 = vpop.f32.mrb[67].mxu1  ;;  %4823 = vmatmul.mubr.bf16.gmra.mrb[200].mxu0 %v4122_v1  ;;  %v9961_v27 = vpack.c.bf16 %v2234_v18, %v2233_v52  ;;  %v8453_v15 = vpop.f32.mrb[136].mxu0  ;;  %v3696_v6 = vmax.f32 %v2634_v63, 0.0 }
 0x1f1   :  { %v2640_v59 = vadd.f32 %v2639_v47, %v9855_v4  ;;  %v1775_v42 = vadd.f32 %v9754_v17, %v8453_v15  ;;  %v1766_v24 = vpop.f32.mrb[137].mxu0  ;;  %v3697_v35 = vmax.f32 %v2636_v12, 0.0 }
 0x1f2   :  { %v3698_v44 = vmax.f32 %v2638_v32, 0.0  ;;  %2902 = vmatmul.mubr.bf16.gmra.mrb[172].mxu1 %v9728_v2  ;;  %v1767_v11 = vadd.f32 %v9754_v17, %v1766_v24  ;;  %v8454_v19 = vpop.f32.mrb[138].mxu0 }
 0x1f3   :  { %v3699_v8 = vmax.f32 %v2640_v59, 0.0  ;;  %2911 = vmatprep.mubr.bf16.mxu1 %v12600_v13  ;;  %v2239_v1 = vmax.f32 %v1775_v42, 0.0  ;;  %v1778_v52 = vadd.f32 %v9754_v17, %v8454_v19  ;;  %v1769_v36 = vpop.f32.mrb[139].mxu0 }
 0x1f4   :  { %v4124_v18 = vpack.c.bf16 %v3698_v44, %v3696_v6  ;;  %v2237_v34 = vmax.f32 %v1767_v11, 0.0  ;;  %v1770_v47 = vadd.f32 %v9754_v17, %v1769_v36 }
 0x1f5   :  { %v4125_v15 = vpack.c.bf16 %v3699_v8, %v3697_v35  ;;  %v2643_v63 = vpop.f32.mrb[68].mxu1  ;;  %v2240_v32 = vmax.f32 %v1778_v52, 0.0 }
 0x1f6   :  { %v2644_v2 = vadd.f32 %v2643_v63, %v9851_v20  ;;  %v2645_v43 = vpop.f32.mrb[69].mxu1  ;;  %v2238_v24 = vmax.f32 %v1770_v47, 0.0 }
 0x1f7   :  { %v2646_v12 = vadd.f32 %v2645_v43, %v9855_v4  ;;  %v2647_v59 = vpop.f32.mrb[70].mxu1  ;;  %7960 = vmatprep.mubr.msk.bf16.mxu0 %vm4419_vm1, %v4125_v15  ;;  %v9973_v42 = vpack.c.bf16 %v2240_v32, %v2239_v1 }
 0x1f8   :  { %v2648_v19 = vadd.f32 %v2647_v59, %v9851_v20  ;;  %v2649_v6 = vpop.f32.mrb[71].mxu1  ;;  %4831 = vmatmul.mubr.bf16.gmra.mrb[204].mxu0 %v4124_v18  ;;  %v9976_v44 = vpack.c.bf16 %v2238_v24, %v2237_v34  ;;  %v8457_v11 = vpop.f32.mrb[140].mxu0  ;;  %v3700_v36 = vmax.f32 %v2644_v2, 0.0 }
 0x1f9   :  { %v2650_v35 = vadd.f32 %v2649_v6, %v9855_v4  ;;  %v1791_v8 = vadd.f32 %v9754_v17, %v8457_v11  ;;  %v1782_v52 = vpop.f32.mrb[141].mxu0  ;;  %v3701_v15 = vmax.f32 %v2646_v12, 0.0 }
 0x1fa   :  { %v3702_v47 = vmax.f32 %v2648_v19, 0.0  ;;  %2912 = vmatmul.mubr.bf16.gmra.mrb[176].mxu1 %v9744_v60  ;;  %v1783_v43 = vadd.f32 %v9754_v17, %v1782_v52  ;;  %v8458_v1 = vpop.f32.mrb[142].mxu0 }
 0x1fb   :  { %v3703_v63 = vmax.f32 %v2650_v35, 0.0  ;;  %2921 = vmatprep.mubr.bf16.mxu1 %v12600_v13  ;;  %v2243_v18 = vmax.f32 %v1791_v8, 0.0  ;;  %v1794_v34 = vadd.f32 %v9754_v17, %v8458_v1  ;;  %v1785_v32 = vpop.f32.mrb[143].mxu0 }
 0x1fc   :  { %v4126_v24 = vpack.c.bf16 %v3702_v47, %v3700_v36  ;;  %v2241_v59 = vmax.f32 %v1783_v43, 0.0  ;;  %v1786_v6 = vadd.f32 %v9754_v17, %v1785_v32 }
 0x1fd   :  { %v4127_v11 = vpack.c.bf16 %v3703_v63, %v3701_v15  ;;  %v2653_v2 = vpop.f32.mrb[72].mxu1  ;;  %v2244_v19 = vmax.f32 %v1794_v34, 0.0 }
 0x1fe   :  { %v2654_v60 = vadd.f32 %v2653_v2, %v9851_v20  ;;  %v2655_v48 = vpop.f32.mrb[73].mxu1  ;;  %v2242_v52 = vmax.f32 %v1786_v6, 0.0 }
 0x1ff   :  { %v2656_v12 = vadd.f32 %v2655_v48, %v9855_v4  ;;  %v2657_v35 = vpop.f32.mrb[74].mxu1  ;;  %7961 = vmatprep.mubr.msk.bf16.mxu0 %vm4419_vm1, %v4127_v11  ;;  %v9988_v8 = vpack.c.bf16 %v2244_v19, %v2243_v18 }
 0x200   :  { %v2658_v1 = vadd.f32 %v2657_v35, %v9851_v20  ;;  %v2659_v36 = vpop.f32.mrb[75].mxu1  ;;  %4839 = vmatmul.mubr.bf16.gmra.mrb[208].mxu0 %v4126_v24  ;;  %v9991_v47 = vpack.c.bf16 %v2242_v52, %v2241_v59  ;;  %v8461_v43 = vpop.f32.mrb[144].mxu0  ;;  %v3704_v32 = vmax.f32 %v2654_v60, 0.0 }
 0x201   :  { %v2660_v15 = vadd.f32 %v2659_v36, %v9855_v4  ;;  %v1807_v63 = vadd.f32 %v9754_v17, %v8461_v43  ;;  %v1798_v34 = vpop.f32.mrb[145].mxu0  ;;  %v3705_v11 = vmax.f32 %v2656_v12, 0.0 }
 0x202   :  { %v3706_v6 = vmax.f32 %v2658_v1, 0.0  ;;  %2922 = vmatmul.mubr.bf16.gmra.mrb[180].mxu1 %v9742_v0  ;;  %v1799_v48 = vadd.f32 %v9754_v17, %v1798_v34  ;;  %v8462_v18 = vpop.f32.mrb[146].mxu0 }
 0x203   :  { %v3707_v2 = vmax.f32 %v2660_v15, 0.0  ;;  %2931 = vmatprep.mubr.bf16.mxu1 %v12600_v13  ;;  %v2247_v24 = vmax.f32 %v1807_v63, 0.0  ;;  %v1810_v59 = vadd.f32 %v9754_v17, %v8462_v18  ;;  %v1801_v19 = vpop.f32.mrb[147].mxu0 }
 0x204   :  { %v4128_v52 = vpack.c.bf16 %v3706_v6, %v3704_v32  ;;  %v2245_v35 = vmax.f32 %v1799_v48, 0.0  ;;  %v1802_v36 = vadd.f32 %v9754_v17, %v1801_v19 }
 0x205   :  { %v4129_v43 = vpack.c.bf16 %v3707_v2, %v3705_v11  ;;  %v2663_v60 = vpop.f32.mrb[76].mxu1  ;;  %v2248_v1 = vmax.f32 %v1810_v59, 0.0 }
 0x206   :  { %v2664_v0 = vadd.f32 %v2663_v60, %v9851_v20  ;;  %v2665_v10 = vpop.f32.mrb[77].mxu1  ;;  %v2246_v34 = vmax.f32 %v1802_v36, 0.0 }
 0x207   :  { %v2666_v12 = vadd.f32 %v2665_v10, %v9855_v4  ;;  %v2667_v15 = vpop.f32.mrb[78].mxu1  ;;  %7962 = vmatprep.mubr.msk.bf16.mxu0 %vm4419_vm1, %v4129_v43  ;;  %v10003_v63 = vpack.c.bf16 %v2248_v1, %v2247_v24 }
 0x208   :  { %v2668_v18 = vadd.f32 %v2667_v15, %v9851_v20  ;;  %v2669_v32 = vpop.f32.mrb[79].mxu1  ;;  %4847 = vmatmul.mubr.bf16.gmra.mrb[212].mxu0 %v4128_v52  ;;  %v10006_v6 = vpack.c.bf16 %v2246_v34, %v2245_v35  ;;  %v8465_v48 = vpop.f32.mrb[148].mxu0  ;;  %v3708_v19 = vmax.f32 %v2664_v0, 0.0 }
 0x209   :  { %v2670_v11 = vadd.f32 %v2669_v32, %v9855_v4  ;;  %v1823_v2 = vadd.f32 %v9754_v17, %v8465_v48  ;;  %v1814_v59 = vpop.f32.mrb[149].mxu0  ;;  %v3709_v43 = vmax.f32 %v2666_v12, 0.0 }
 0x20a   :  { %v3710_v36 = vmax.f32 %v2668_v18, 0.0  ;;  %2932 = vmatmul.mubr.bf16.gmra.mrb[184].mxu1 %v9759_v9  ;;  %v1815_v10 = vadd.f32 %v9754_v17, %v1814_v59  ;;  %v8466_v24 = vpop.f32.mrb[150].mxu0 }
 0x20b   :  { %v3711_v60 = vmax.f32 %v2670_v11, 0.0  ;;  %2941 = vmatprep.mubr.bf16.mxu1 %v12600_v13  ;;  %v2251_v52 = vmax.f32 %v1823_v2, 0.0  ;;  %v1826_v35 = vadd.f32 %v9754_v17, %v8466_v24  ;;  %v1817_v1 = vpop.f32.mrb[151].mxu0 }
 0x20c   :  { %v4130_v34 = vpack.c.bf16 %v3710_v36, %v3708_v19  ;;  %v2249_v15 = vmax.f32 %v1815_v10, 0.0  ;;  %v1818_v32 = vadd.f32 %v9754_v17, %v1817_v1 }
 0x20d   :  { %v4131_v48 = vpack.c.bf16 %v3711_v60, %v3709_v43  ;;  %v2673_v0 = vpop.f32.mrb[80].mxu1  ;;  %v2252_v18 = vmax.f32 %v1826_v35, 0.0 }
 0x20e   :  { %v2674_v9 = vadd.f32 %v2673_v0, %v9851_v20  ;;  %v2675_v14 = vpop.f32.mrb[81].mxu1  ;;  %v2250_v59 = vmax.f32 %v1818_v32, 0.0 }
 0x20f   :  { %v2676_v12 = vadd.f32 %v2675_v14, %v9855_v4  ;;  %v2677_v11 = vpop.f32.mrb[82].mxu1  ;;  %7963 = vmatprep.mubr.msk.bf16.mxu0 %vm4419_vm1, %v4131_v48  ;;  %v10018_v2 = vpack.c.bf16 %v2252_v18, %v2251_v52  ;;  %v10029_v14 = vld [vmem:[%s12576_s29] ss:$0 sm:$0xff] }
 0x210   :  { %v2678_v24 = vadd.f32 %v2677_v11, %v9851_v20  ;;  %v2679_v19 = vpop.f32.mrb[83].mxu1  ;;  %4855 = vmatmul.mubr.bf16.gmra.mrb[216].mxu0 %v4130_v34  ;;  %v10021_v36 = vpack.c.bf16 %v2250_v59, %v2249_v15  ;;  %v8469_v10 = vpop.f32.mrb[152].mxu0  ;;  %v3712_v1 = vmax.f32 %v2674_v9, 0.0 }
 0x211   :  { %v2680_v43 = vadd.f32 %v2679_v19, %v9855_v4  ;;  %v1839_v60 = vadd.f32 %v9754_v17, %v8469_v10  ;;  %v1830_v35 = vpop.f32.mrb[153].mxu0  ;;  %v3713_v15 = vmax.f32 %v2676_v12, 0.0 }
 0x212   :  { %v3714_v32 = vmax.f32 %v2678_v24, 0.0  ;;  %2942 = vmatmul.mubr.bf16.gmra.mrb[188].mxu1 %v9757_v58  ;;  %v1831_v52 = vadd.f32 %v10029_v14, %v1830_v35  ;;  %v8470_v34 = vpop.f32.mrb[154].mxu0 }
 0x213   :  { %v3715_v48 = vmax.f32 %v2680_v43, 0.0  ;;  %2951 = vmatprep.mubr.bf16.mxu1 %v12600_v13  ;;  %v2255_v0 = vmax.f32 %v1839_v60, 0.0  ;;  %v1842_v17 = vadd.f32 %v10029_v14, %v8470_v34  ;;  %v1833_v18 = vpop.f32.mrb[155].mxu0 }
 0x214   :  { %v4132_v9 = vpack.c.bf16 %v3714_v32, %v3712_v1  ;;  %v2253_v59 = vmax.f32 %v1831_v52, 0.0  ;;  %v1834_v58 = vadd.f32 %v10029_v14, %v1833_v18 }
 0x215   :  { %v4133_v11 = vpack.c.bf16 %v3715_v48, %v3713_v15  ;;  %v2683_v24 = vpop.f32.mrb[84].mxu1  ;;  %v2256_v19 = vmax.f32 %v1842_v17, 0.0 }
 0x216   :  { %v2684_v10 = vadd.f32 %v2683_v24, %v9851_v20  ;;  %v2685_v41 = vpop.f32.mrb[85].mxu1  ;;  %v2254_v35 = vmax.f32 %v1834_v58, 0.0 }
 0x217   :  { %v2686_v12 = vadd.f32 %v2685_v41, %v9855_v4  ;;  %v2687_v43 = vpop.f32.mrb[86].mxu1  ;;  %7964 = vmatprep.mubr.msk.bf16.mxu0 %vm4419_vm1, %v4133_v11  ;;  %v10038_v60 = vpack.c.bf16 %v2256_v19, %v2255_v0 }
 0x218   :  { %v2688_v34 = vadd.f32 %v2687_v43, %v9851_v20  ;;  %v2689_v1 = vpop.f32.mrb[87].mxu1  ;;  %4863 = vmatmul.mubr.bf16.gmra.mrb[220].mxu0 %v4132_v9  ;;  %v10041_v32 = vpack.c.bf16 %v2254_v35, %v2253_v59  ;;  %v8473_v52 = vpop.f32.mrb[156].mxu0  ;;  %v3716_v18 = vmax.f32 %v2684_v10, 0.0 }
 0x219   :  { %v2690_v15 = vadd.f32 %v2689_v1, %v9855_v4  ;;  %v1855_v48 = vadd.f32 %v10029_v14, %v8473_v52  ;;  %v1846_v17 = vpop.f32.mrb[157].mxu0  ;;  %v3717_v11 = vmax.f32 %v2686_v12, 0.0 }
 0x21a   :  { %v3718_v58 = vmax.f32 %v2688_v34, 0.0  ;;  %2952 = vmatmul.mubr.bf16.gmra.mrb[192].mxu1 %v9769_v51  ;;  %v1847_v41 = vadd.f32 %v10029_v14, %v1846_v17  ;;  %v8474_v0 = vpop.f32.mrb[158].mxu0 }
 0x21b   :  { %v3719_v24 = vmax.f32 %v2690_v15, 0.0  ;;  %2961 = vmatprep.mubr.bf16.mxu1 %v12600_v13  ;;  %v2259_v9 = vmax.f32 %v1855_v48, 0.0  ;;  %v1858_v59 = vadd.f32 %v10029_v14, %v8474_v0  ;;  %v1849_v19 = vpop.f32.mrb[159].mxu0 }
 0x21c   :  { %v4134_v35 = vpack.c.bf16 %v3718_v58, %v3716_v18  ;;  %v2257_v43 = vmax.f32 %v1847_v41, 0.0  ;;  %v1850_v1 = vadd.f32 %v10029_v14, %v1849_v19 }
 0x21d   :  { %v4135_v52 = vpack.c.bf16 %v3719_v24, %v3717_v11  ;;  %v2693_v10 = vpop.f32.mrb[88].mxu1  ;;  %v2260_v34 = vmax.f32 %v1858_v59, 0.0 }
 0x21e   :  { %v2694_v51 = vadd.f32 %v2693_v10, %v9851_v20  ;;  %v2695_v45 = vpop.f32.mrb[89].mxu1  ;;  %v2258_v17 = vmax.f32 %v1850_v1, 0.0 }
 0x21f   :  { %v2696_v12 = vadd.f32 %v2695_v45, %v9855_v4  ;;  %v2697_v15 = vpop.f32.mrb[90].mxu1  ;;  %7965 = vmatprep.mubr.msk.bf16.mxu0 %vm4419_vm1, %v4135_v52  ;;  %v10053_v48 = vpack.c.bf16 %v2260_v34, %v2259_v9 }
 0x220   :  { %v2698_v0 = vadd.f32 %v2697_v15, %v9851_v20  ;;  %v2699_v18 = vpop.f32.mrb[91].mxu1  ;;  %4871 = vmatmul.mubr.bf16.gmra.mrb[224].mxu0 %v4134_v35  ;;  %v10056_v58 = vpack.c.bf16 %v2258_v17, %v2257_v43  ;;  %v8477_v41 = vpop.f32.mrb[160].mxu0  ;;  %v3720_v19 = vmax.f32 %v2694_v51, 0.0 }
 0x221   :  { %12602 = vst [vmem:[#allocation24_spill] sm:$0xff] %v10053_v48  ;;  %v2700_v11 = vadd.f32 %v2699_v18, %v9855_v4  ;;  %v1871_v24 = vadd.f32 %v10029_v14, %v8477_v41  ;;  %v1862_v59 = vpop.f32.mrb[161].mxu0  ;;  %v3721_v52 = vmax.f32 %v2696_v12, 0.0 }
 0x222   :  { %v3722_v1 = vmax.f32 %v2698_v0, 0.0  ;;  %2962 = vmatmul.mubr.bf16.gmra.mrb[196].mxu1 %v9767_v49  ;;  %v1863_v45 = vadd.f32 %v10029_v14, %v1862_v59  ;;  %v8478_v9 = vpop.f32.mrb[162].mxu0 }
 0x223   :  { %v3723_v10 = vmax.f32 %v2700_v11, 0.0  ;;  %2971 = vmatprep.mubr.bf16.mxu1 %v12600_v13  ;;  %v2263_v35 = vmax.f32 %v1871_v24, 0.0  ;;  %v1874_v43 = vadd.f32 %v10029_v14, %v8478_v9  ;;  %v1865_v34 = vpop.f32.mrb[163].mxu0 }
 0x224   :  { %v4136_v17 = vpack.c.bf16 %v3722_v1, %v3720_v19  ;;  %v2261_v15 = vmax.f32 %v1863_v45, 0.0  ;;  %v1866_v18 = vadd.f32 %v10029_v14, %v1865_v34 }
 0x225   :  { %v4137_v41 = vpack.c.bf16 %v3723_v10, %v3721_v52  ;;  %v2703_v51 = vpop.f32.mrb[92].mxu1  ;;  %v2264_v0 = vmax.f32 %v1874_v43, 0.0 }
 0x226   :  { %v2704_v49 = vadd.f32 %v2703_v51, %v9851_v20  ;;  %v2705_v48 = vpop.f32.mrb[93].mxu1  ;;  %v2262_v59 = vmax.f32 %v1866_v18, 0.0 }
 0x227   :  { %v2706_v12 = vadd.f32 %v2705_v48, %v9855_v4  ;;  %v2707_v11 = vpop.f32.mrb[94].mxu1  ;;  %7966 = vmatprep.mubr.msk.bf16.mxu0 %vm4419_vm1, %v4137_v41  ;;  %v10068_v24 = vpack.c.bf16 %v2264_v0, %v2263_v35 }
 0x228   :  { %v2708_v9 = vadd.f32 %v2707_v11, %v9851_v20  ;;  %v2709_v19 = vpop.f32.mrb[95].mxu1  ;;  %4879 = vmatmul.mubr.bf16.gmra.mrb[228].mxu0 %v4136_v17  ;;  %v10071_v1 = vpack.c.bf16 %v2262_v59, %v2261_v15  ;;  %v8481_v45 = vpop.f32.mrb[164].mxu0  ;;  %v3724_v34 = vmax.f32 %v2704_v49, 0.0 }
 0x229   :  { %12603 = vst [vmem:[#allocation25_spill] sm:$0xff] %v10068_v24  ;;  %v2710_v52 = vadd.f32 %v2709_v19, %v9855_v4  ;;  %v1887_v10 = vadd.f32 %v10029_v14, %v8481_v45  ;;  %v1878_v43 = vpop.f32.mrb[165].mxu0  ;;  %v3725_v41 = vmax.f32 %v2706_v12, 0.0 }
 0x22a   :  { %12604 = vst [vmem:[#allocation26_spill] sm:$0xff] %v10071_v1  ;;  %v3726_v18 = vmax.f32 %v2708_v9, 0.0  ;;  %2972 = vmatmul.mubr.bf16.gmra.mrb[200].mxu1 %v9779_v21  ;;  %v1879_v48 = vadd.f32 %v10029_v14, %v1878_v43  ;;  %v8482_v35 = vpop.f32.mrb[166].mxu0 }
 0x22b   :  { %v3727_v51 = vmax.f32 %v2710_v52, 0.0  ;;  %2981 = vmatprep.mubr.bf16.mxu1 %v12600_v13  ;;  %v2267_v17 = vmax.f32 %v1887_v10, 0.0  ;;  %v1890_v15 = vadd.f32 %v10029_v14, %v8482_v35  ;;  %v1881_v0 = vpop.f32.mrb[167].mxu0 }
 0x22c   :  { %v4138_v59 = vpack.c.bf16 %v3726_v18, %v3724_v34  ;;  %v2265_v11 = vmax.f32 %v1879_v48, 0.0  ;;  %v1882_v19 = vadd.f32 %v10029_v14, %v1881_v0 }
 0x22d   :  { %v4139_v45 = vpack.c.bf16 %v3727_v51, %v3725_v41  ;;  %v2713_v49 = vpop.f32.mrb[96].mxu1  ;;  %v2268_v9 = vmax.f32 %v1890_v15, 0.0 }
 0x22e   :  { %v2714_v21 = vadd.f32 %v2713_v49, %v9851_v20  ;;  %v2715_v24 = vpop.f32.mrb[97].mxu1  ;;  %v2266_v43 = vmax.f32 %v1882_v19, 0.0 }
 0x22f   :  { %v2716_v12 = vadd.f32 %v2715_v24, %v9855_v4  ;;  %v2717_v52 = vpop.f32.mrb[98].mxu1  ;;  %7967 = vmatprep.mubr.msk.bf16.mxu0 %vm4419_vm1, %v4139_v45  ;;  %v10083_v10 = vpack.c.bf16 %v2268_v9, %v2267_v17 }
 0x230   :  { %v2718_v35 = vadd.f32 %v2717_v52, %v9851_v20  ;;  %v2719_v34 = vpop.f32.mrb[99].mxu1  ;;  %4887 = vmatmul.mubr.bf16.gmra.mrb[232].mxu0 %v4138_v59  ;;  %v10086_v18 = vpack.c.bf16 %v2266_v43, %v2265_v11  ;;  %v8485_v48 = vpop.f32.mrb[168].mxu0  ;;  %v3728_v0 = vmax.f32 %v2714_v21, 0.0 }
 0x231   :  { %12605 = vst [vmem:[#allocation27_spill] sm:$0xff] %v10083_v10  ;;  %v2720_v41 = vadd.f32 %v2719_v34, %v9855_v4  ;;  %v1903_v51 = vadd.f32 %v10029_v14, %v8485_v48  ;;  %v1894_v15 = vpop.f32.mrb[169].mxu0  ;;  %v3729_v45 = vmax.f32 %v2716_v12, 0.0 }
 0x232   :  { %12606 = vst [vmem:[#allocation28_spill] sm:$0xff] %v10086_v18  ;;  %v3730_v19 = vmax.f32 %v2718_v35, 0.0  ;;  %2982 = vmatmul.mubr.bf16.gmra.mrb[204].mxu1 %v9777_v38  ;;  %v1895_v24 = vadd.f32 %v10029_v14, %v1894_v15  ;;  %v8486_v17 = vpop.f32.mrb[170].mxu0 }
 0x233   :  { %v3731_v49 = vmax.f32 %v2720_v41, 0.0  ;;  %2991 = vmatprep.mubr.bf16.mxu1 %v12600_v13  ;;  %v2271_v59 = vmax.f32 %v1903_v51, 0.0  ;;  %v1906_v11 = vadd.f32 %v10029_v14, %v8486_v17  ;;  %v1897_v9 = vpop.f32.mrb[171].mxu0 }
 0x234   :  { %v4140_v43 = vpack.c.bf16 %v3730_v19, %v3728_v0  ;;  %v2269_v52 = vmax.f32 %v1895_v24, 0.0  ;;  %v1898_v34 = vadd.f32 %v10029_v14, %v1897_v9 }
 0x235   :  { %v4141_v48 = vpack.c.bf16 %v3731_v49, %v3729_v45  ;;  %v2723_v21 = vpop.f32.mrb[100].mxu1  ;;  %v2272_v35 = vmax.f32 %v1906_v11, 0.0 }
 0x236   :  { %v2724_v38 = vadd.f32 %v2723_v21, %v9851_v20  ;;  %v2725_v10 = vpop.f32.mrb[101].mxu1  ;;  %v2270_v15 = vmax.f32 %v1898_v34, 0.0 }
 0x237   :  { %v2726_v12 = vadd.f32 %v2725_v10, %v9855_v4  ;;  %v2727_v41 = vpop.f32.mrb[102].mxu1  ;;  %7968 = vmatprep.mubr.msk.bf16.mxu0 %vm4419_vm1, %v4141_v48  ;;  %v10098_v51 = vpack.c.bf16 %v2272_v35, %v2271_v59 }
 0x238   :  { %v2728_v17 = vadd.f32 %v2727_v41, %v9851_v20  ;;  %v2729_v0 = vpop.f32.mrb[103].mxu1  ;;  %4895 = vmatmul.mubr.bf16.gmra.mrb[236].mxu0 %v4140_v43  ;;  %v10101_v19 = vpack.c.bf16 %v2270_v15, %v2269_v52  ;;  %v8489_v24 = vpop.f32.mrb[172].mxu0  ;;  %v3732_v9 = vmax.f32 %v2724_v38, 0.0 }
 0x239   :  { %12607 = vst [vmem:[#allocation29_spill] sm:$0xff] %v10098_v51  ;;  %v2730_v45 = vadd.f32 %v2729_v0, %v9855_v4  ;;  %v1919_v49 = vadd.f32 %v10029_v14, %v8489_v24  ;;  %v1910_v11 = vpop.f32.mrb[173].mxu0  ;;  %v3733_v48 = vmax.f32 %v2726_v12, 0.0 }
 0x23a   :  { %12608 = vst [vmem:[#allocation30_spill] sm:$0xff] %v10101_v19  ;;  %v3734_v34 = vmax.f32 %v2728_v17, 0.0  ;;  %2992 = vmatmul.mubr.bf16.gmra.mrb[208].mxu1 %v9789_v62  ;;  %v1911_v10 = vadd.f32 %v10029_v14, %v1910_v11  ;;  %v8490_v59 = vpop.f32.mrb[174].mxu0 }
 0x23b   :  { %v3735_v21 = vmax.f32 %v2730_v45, 0.0  ;;  %3001 = vmatprep.mubr.bf16.mxu1 %v12600_v13  ;;  %v2275_v43 = vmax.f32 %v1919_v49, 0.0  ;;  %v1922_v52 = vadd.f32 %v10029_v14, %v8490_v59  ;;  %v1913_v35 = vpop.f32.mrb[175].mxu0 }
 0x23c   :  { %v4142_v15 = vpack.c.bf16 %v3734_v34, %v3732_v9  ;;  %v2273_v41 = vmax.f32 %v1911_v10, 0.0  ;;  %v1914_v0 = vadd.f32 %v10029_v14, %v1913_v35 }
 0x23d   :  { %v4143_v24 = vpack.c.bf16 %v3735_v21, %v3733_v48  ;;  %v2733_v38 = vpop.f32.mrb[104].mxu1  ;;  %v2276_v17 = vmax.f32 %v1922_v52, 0.0 }
 0x23e   :  { %v2734_v62 = vadd.f32 %v2733_v38, %v9851_v20  ;;  %v2735_v51 = vpop.f32.mrb[105].mxu1  ;;  %v2274_v11 = vmax.f32 %v1914_v0, 0.0 }
 0x23f   :  { %v2736_v12 = vadd.f32 %v2735_v51, %v9855_v4  ;;  %v2737_v45 = vpop.f32.mrb[106].mxu1  ;;  %7969 = vmatprep.mubr.msk.bf16.mxu0 %vm4419_vm1, %v4143_v24  ;;  %v10113_v49 = vpack.c.bf16 %v2276_v17, %v2275_v43 }
 0x240   :  { %v2738_v59 = vadd.f32 %v2737_v45, %v9851_v20  ;;  %v2739_v9 = vpop.f32.mrb[107].mxu1  ;;  %4903 = vmatmul.mubr.bf16.gmra.mrb[240].mxu0 %v4142_v15  ;;  %v10116_v34 = vpack.c.bf16 %v2274_v11, %v2273_v41  ;;  %v8493_v10 = vpop.f32.mrb[176].mxu0  ;;  %v3736_v35 = vmax.f32 %v2734_v62, 0.0 }
 0x241   :  { %12609 = vst [vmem:[#allocation31_spill] sm:$0xff] %v10113_v49  ;;  %v2740_v48 = vadd.f32 %v2739_v9, %v9855_v4  ;;  %v1935_v21 = vadd.f32 %v10029_v14, %v8493_v10  ;;  %v1926_v52 = vpop.f32.mrb[177].mxu0  ;;  %v3737_v24 = vmax.f32 %v2736_v12, 0.0 }
 0x242   :  { %12610 = vst [vmem:[#allocation32_spill] sm:$0xff] %v10116_v34  ;;  %v3738_v0 = vmax.f32 %v2738_v59, 0.0  ;;  %3002 = vmatmul.mubr.bf16.gmra.mrb[212].mxu1 %v9787_v7  ;;  %v1927_v51 = vadd.f32 %v10029_v14, %v1926_v52  ;;  %v8494_v43 = vpop.f32.mrb[178].mxu0 }
 0x243   :  { %v3739_v38 = vmax.f32 %v2740_v48, 0.0  ;;  %3011 = vmatprep.mubr.bf16.mxu1 %v12600_v13  ;;  %v2279_v15 = vmax.f32 %v1935_v21, 0.0  ;;  %v1938_v41 = vadd.f32 %v10029_v14, %v8494_v43  ;;  %v1929_v17 = vpop.f32.mrb[179].mxu0 }
 0x244   :  { %v4144_v11 = vpack.c.bf16 %v3738_v0, %v3736_v35  ;;  %v2277_v45 = vmax.f32 %v1927_v51, 0.0  ;;  %v1930_v9 = vadd.f32 %v10029_v14, %v1929_v17  ;;  %v8746_v17 = vld [vmem:[%s12601_s4 + $0x14] ss:$8 sps:$4 sm:$0xff]  }
 0x245   :  { %v4145_v10 = vpack.c.bf16 %v3739_v38, %v3737_v24  ;;  %v2743_v62 = vpop.f32.mrb[108].mxu1  ;;  %v2280_v59 = vmax.f32 %v1938_v41, 0.0  ;;  %6443 = vmatprep.subr.bf16.mxu1 %v8746_v17 }
 0x246   :  { %v2744_v7 = vadd.f32 %v2743_v62, %v9851_v20  ;;  %v2745_v49 = vpop.f32.mrb[109].mxu1  ;;  %v2278_v52 = vmax.f32 %v1930_v9, 0.0 }
 0x247   :  { %v2746_v12 = vadd.f32 %v2745_v49, %v9855_v4  ;;  %v2747_v48 = vpop.f32.mrb[110].mxu1  ;;  %7970 = vmatprep.mubr.msk.bf16.mxu0 %vm4419_vm1, %v4145_v10  ;;  %v10128_v21 = vpack.c.bf16 %v2280_v59, %v2279_v15  ;;  %v8744_v15 = vld [vmem:[%s12601_s4 + $0x10] ss:$8 sps:$4 sm:$0xff]  }
 0x248   :  { %v2748_v43 = vadd.f32 %v2747_v48, %v9851_v20  ;;  %v2749_v35 = vpop.f32.mrb[111].mxu1  ;;  %4911 = vmatmul.mubr.bf16.gmra.mrb[244].mxu0 %v4144_v11  ;;  %v10131_v0 = vpack.c.bf16 %v2278_v52, %v2277_v45  ;;  %v3740_v51 = vmax.f32 %v2744_v7, 0.0  ;;  %6444 = vmatpush1.bf16.msra.mxu1 %v8744_v15 }
 0x249   :  { %12611 = vst [vmem:[#allocation33_spill] sm:$0xff] %v10128_v21  ;;  %v2750_v14 = vadd.f32 %v2749_v35, %v9855_v4  ;;  %v3741_v38 = vmax.f32 %v2746_v12, 0.0 }
 0x24a   :  { %12612 = vst [vmem:[#allocation34_spill] sm:$0xff] %v10131_v0  ;;  %v3742_v24 = vmax.f32 %v2748_v43, 0.0  ;;  %3012 = vmatmul.mubr.bf16.gmra.mrb[216].mxu1 %v9799_v46 }
 0x24b   :  { %v3743_v41 = vmax.f32 %v2750_v14, 0.0  ;;  %3021 = vmatprep.mubr.bf16.mxu1 %v12600_v13 }
 0x24c   :  { %v4146_v49 = vpack.c.bf16 %v3742_v24, %v3740_v51 }
 0x24d   :  { %v4147_v11 = vpack.c.bf16 %v3743_v41, %v3741_v38  ;;  %v2753_v45 = vpop.f32.mrb[112].mxu1 }
 0x24e   :  { %v2754_v9 = vadd.f32 %v2753_v45, %v9851_v20  ;;  %v2755_v10 = vpop.f32.mrb[113].mxu1 }
 0x24f   :  { %v2756_v46 = vadd.f32 %v2755_v10, %v9855_v4  ;;  %v2757_v62 = vpop.f32.mrb[114].mxu1  ;;  %7971 = vmatprep.mubr.msk.bf16.mxu0 %vm4419_vm1, %v4147_v11 }
 0x250   :  { %v2758_v59 = vadd.f32 %v2757_v62, %v9851_v20  ;;  %v2759_v7 = vpop.f32.mrb[115].mxu1  ;;  %4919 = vmatmul.mubr.bf16.gmra.mrb[248].mxu0 %v4146_v49  ;;  %v3744_v12 = vmax.f32 %v2754_v9, 0.0 }
 0x251   :  { %v2760_v52 = vadd.f32 %v2759_v7, %v9855_v4  ;;  %v3745_v43 = vmax.f32 %v2756_v46, 0.0 }
 0x252   :  { %v3746_v48 = vmax.f32 %v2758_v59, 0.0  ;;  %3022 = vmatmul.mubr.bf16.gmra.mrb[220].mxu1 %v9797_v30 }
 0x253   :  { %v3747_v35 = vmax.f32 %v2760_v52, 0.0  ;;  %3031 = vmatprep.mubr.bf16.mxu1 %v12600_v13 }
 0x254   :  { %v4148_v14 = vpack.c.bf16 %v3746_v48, %v3744_v12 }
 0x255   :  { %v4149_v51 = vpack.c.bf16 %v3747_v35, %v3745_v43  ;;  %v2763_v24 = vpop.f32.mrb[116].mxu1 }
 0x256   :  { %v2764_v38 = vadd.f32 %v2763_v24, %v9851_v20  ;;  %v2765_v41 = vpop.f32.mrb[117].mxu1 }
 0x257   :  { %v2766_v15 = vadd.f32 %v2765_v41, %v9855_v4  ;;  %v2767_v17 = vpop.f32.mrb[118].mxu1  ;;  %7972 = vmatprep.mubr.msk.bf16.mxu0 %vm4419_vm1, %v4149_v51 }
 0x258   :  { %v2768_v49 = vadd.f32 %v2767_v17, %v9851_v20  ;;  %v2769_v11 = vpop.f32.mrb[119].mxu1  ;;  %4927 = vmatmul.mubr.bf16.gmra.mrb[252].mxu0 %v4148_v14  ;;  %v3748_v45 = vmax.f32 %v2764_v38, 0.0 }
 0x259   :  { %v2770_v30 = vadd.f32 %v2769_v11, %v9855_v4  ;;  %v3749_v10 = vmax.f32 %v2766_v15, 0.0 }
 0x25a   :  { %v3750_v9 = vmax.f32 %v2768_v49, 0.0  ;;  %3032 = vmatmul.mubr.bf16.gmra.mrb[224].mxu1 %v9809_v37 }
 0x25b   :  { %v3751_v46 = vmax.f32 %v2770_v30, 0.0  ;;  %3041 = vmatprep.mubr.bf16.mxu1 %v12600_v13 }
 0x25c   :  { %v4150_v62 = vpack.c.bf16 %v3750_v9, %v3748_v45 }
 0x25d   :  { %v4151_v59 = vpack.c.bf16 %v3751_v46, %v3749_v10  ;;  %v2773_v7 = vpop.f32.mrb[120].mxu1 }
 0x25e   :  { %v2774_v52 = vadd.f32 %v2773_v7, %v9851_v20  ;;  %v2775_v12 = vpop.f32.mrb[121].mxu1 }
 0x25f   :  { %v2776_v48 = vadd.f32 %v2775_v12, %v9855_v4  ;;  %v2777_v43 = vpop.f32.mrb[122].mxu1  ;;  %7973 = vmatprep.mubr.msk.bf16.mxu0 %vm4419_vm1, %v4151_v59 }
 0x260   :  { %v2778_v35 = vadd.f32 %v2777_v43, %v9851_v20  ;;  %v2779_v14 = vpop.f32.mrb[123].mxu1  ;;  %4935 = vmatmul.mubr.bf16.gmra.mrb[0].mxu0 %v4150_v62  ;;  %v3752_v51 = vmax.f32 %v2774_v52, 0.0 }
 0x261   :  { %v2780_v37 = vadd.f32 %v2779_v14, %v9855_v4  ;;  %v3753_v38 = vmax.f32 %v2776_v48, 0.0 }
 0x262   :  { %v3754_v24 = vmax.f32 %v2778_v35, 0.0  ;;  %3042 = vmatmul.mubr.bf16.gmra.mrb[228].mxu1 %v9807_v16 }
 0x263   :  { %v3755_v41 = vmax.f32 %v2780_v37, 0.0  ;;  %3051 = vmatprep.mubr.bf16.mxu1 %v12600_v13 }
 0x264   :  { %v4152_v15 = vpack.c.bf16 %v3754_v24, %v3752_v51 }
 0x265   :  { %v4153_v17 = vpack.c.bf16 %v3755_v41, %v3753_v38  ;;  %v2783_v49 = vpop.f32.mrb[124].mxu1 }
 0x266   :  { %v2784_v11 = vadd.f32 %v2783_v49, %v9851_v20  ;;  %v2785_v30 = vpop.f32.mrb[125].mxu1 }
 0x267   :  { %v2786_v45 = vadd.f32 %v2785_v30, %v9855_v4  ;;  %v2787_v9 = vpop.f32.mrb[126].mxu1  ;;  %7974 = vmatprep.mubr.msk.bf16.mxu0 %vm4419_vm1, %v4153_v17 }
 0x268   :  { %v2788_v10 = vadd.f32 %v2787_v9, %v9851_v20  ;;  %v2789_v46 = vpop.f32.mrb[127].mxu1  ;;  %4943 = vmatmul.mubr.bf16.gmra.mrb[4].mxu0 %v4152_v15  ;;  %v3756_v62 = vmax.f32 %v2784_v11, 0.0 }
 0x269   :  { %v2790_v16 = vadd.f32 %v2789_v46, %v9855_v4  ;;  %v3757_v7 = vmax.f32 %v2786_v45, 0.0 }
 0x26a   :  { %v3758_v59 = vmax.f32 %v2788_v10, 0.0  ;;  %3052 = vmatmul.mubr.bf16.gmra.mrb[232].mxu1 %v9819_v31 }
 0x26b   :  { %v3759_v52 = vmax.f32 %v2790_v16, 0.0  ;;  %3061 = vmatprep.mubr.bf16.mxu1 %v12600_v13 }
 0x26c   :  { %v4154_v12 = vpack.c.bf16 %v3758_v59, %v3756_v62 }
 0x26d   :  { %v4155_v48 = vpack.c.bf16 %v3759_v52, %v3757_v7  ;;  %v2793_v43 = vpop.f32.mrb[128].mxu1 }
 0x26e   :  { %v2794_v35 = vadd.f32 %v2793_v43, %v9851_v20  ;;  %v2795_v14 = vpop.f32.mrb[129].mxu1 }
 0x26f   :  { %v2796_v37 = vadd.f32 %v2795_v14, %v9855_v4  ;;  %v2797_v51 = vpop.f32.mrb[130].mxu1  ;;  %7975 = vmatprep.mubr.msk.bf16.mxu0 %vm4419_vm1, %v4155_v48 }
 0x270   :  { %v2798_v24 = vadd.f32 %v2797_v51, %v9851_v20  ;;  %v2799_v38 = vpop.f32.mrb[131].mxu1  ;;  %4951 = vmatmul.mubr.bf16.gmra.mrb[8].mxu0 %v4154_v12  ;;  %v3760_v41 = vmax.f32 %v2794_v35, 0.0 }
 0x271   :  { %v2800_v31 = vadd.f32 %v2799_v38, %v9855_v4  ;;  %v3761_v17 = vmax.f32 %v2796_v37, 0.0 }
 0x272   :  { %v3762_v15 = vmax.f32 %v2798_v24, 0.0  ;;  %3062 = vmatmul.mubr.bf16.gmra.mrb[236].mxu1 %v9817_v26 }
 0x273   :  { %v3763_v49 = vmax.f32 %v2800_v31, 0.0  ;;  %3071 = vmatprep.mubr.bf16.mxu1 %v12600_v13 }
 0x274   :  { %v4156_v11 = vpack.c.bf16 %v3762_v15, %v3760_v41 }
 0x275   :  { %v4157_v30 = vpack.c.bf16 %v3763_v49, %v3761_v17  ;;  %v2803_v45 = vpop.f32.mrb[132].mxu1 }
 0x276   :  { %v2804_v9 = vadd.f32 %v2803_v45, %v9851_v20  ;;  %v2805_v10 = vpop.f32.mrb[133].mxu1 }
 0x277   :  { %v2806_v46 = vadd.f32 %v2805_v10, %v9855_v4  ;;  %v2807_v16 = vpop.f32.mrb[134].mxu1  ;;  %7976 = vmatprep.mubr.msk.bf16.mxu0 %vm4419_vm1, %v4157_v30 }
 0x278   :  { %v2808_v62 = vadd.f32 %v2807_v16, %v9851_v20  ;;  %v2809_v59 = vpop.f32.mrb[135].mxu1  ;;  %4959 = vmatmul.mubr.bf16.gmra.mrb[12].mxu0 %v4156_v11  ;;  %v3764_v7 = vmax.f32 %v2804_v9, 0.0 }
 0x279   :  { %v2810_v26 = vadd.f32 %v2809_v59, %v9855_v4  ;;  %v3765_v12 = vmax.f32 %v2806_v46, 0.0 }
 0x27a   :  { %v3766_v52 = vmax.f32 %v2808_v62, 0.0  ;;  %3072 = vmatmul.mubr.bf16.gmra.mrb[240].mxu1 %v9829_v61 }
 0x27b   :  { %v3767_v48 = vmax.f32 %v2810_v26, 0.0  ;;  %3081 = vmatprep.mubr.bf16.mxu1 %v12600_v13 }
 0x27c   :  { %v4158_v43 = vpack.c.bf16 %v3766_v52, %v3764_v7 }
 0x27d   :  { %v4159_v35 = vpack.c.bf16 %v3767_v48, %v3765_v12  ;;  %v2813_v14 = vpop.f32.mrb[136].mxu1 }
 0x27e   :  { %v2814_v37 = vadd.f32 %v2813_v14, %v9851_v20  ;;  %v2815_v51 = vpop.f32.mrb[137].mxu1 }
 0x27f   :  { %v2816_v24 = vadd.f32 %v2815_v51, %v9855_v4  ;;  %v2817_v38 = vpop.f32.mrb[138].mxu1  ;;  %7977 = vmatprep.mubr.msk.bf16.mxu0 %vm4419_vm1, %v4159_v35 }
 0x280   :  { %v2818_v31 = vadd.f32 %v2817_v38, %v9851_v20  ;;  %v2819_v41 = vpop.f32.mrb[139].mxu1  ;;  %4967 = vmatmul.mubr.bf16.gmra.mrb[16].mxu0 %v4158_v43  ;;  %v3768_v15 = vmax.f32 %v2814_v37, 0.0 }
 0x281   :  { %v2820_v61 = vadd.f32 %v2819_v41, %v9855_v4  ;;  %v3769_v49 = vmax.f32 %v2816_v24, 0.0 }
 0x282   :  { %v3770_v17 = vmax.f32 %v2818_v31, 0.0  ;;  %3082 = vmatmul.mubr.bf16.gmra.mrb[244].mxu1 %v9827_v3 }
 0x283   :  { %v3771_v11 = vmax.f32 %v2820_v61, 0.0  ;;  %3091 = vmatprep.mubr.bf16.mxu1 %v12600_v13 }
 0x284   :  { %v4160_v30 = vpack.c.bf16 %v3770_v17, %v3768_v15 }
 0x285   :  { %v4161_v45 = vpack.c.bf16 %v3771_v11, %v3769_v49  ;;  %v2823_v9 = vpop.f32.mrb[140].mxu1 }
 0x286   :  { %v2824_v10 = vadd.f32 %v2823_v9, %v9851_v20  ;;  %v2825_v46 = vpop.f32.mrb[141].mxu1 }
 0x287   :  { %v2826_v16 = vadd.f32 %v2825_v46, %v9855_v4  ;;  %v2827_v62 = vpop.f32.mrb[142].mxu1  ;;  %7978 = vmatprep.mubr.msk.bf16.mxu0 %vm4419_vm1, %v4161_v45 }
 0x288   :  { %v2828_v59 = vadd.f32 %v2827_v62, %v9851_v20  ;;  %v2829_v26 = vpop.f32.mrb[143].mxu1  ;;  %4975 = vmatmul.mubr.bf16.gmra.mrb[20].mxu0 %v4160_v30  ;;  %v3772_v7 = vmax.f32 %v2824_v10, 0.0 }
 0x289   :  { %v2830_v3 = vadd.f32 %v2829_v26, %v9855_v4  ;;  %v3773_v12 = vmax.f32 %v2826_v16, 0.0 }
 0x28a   :  { %v3774_v52 = vmax.f32 %v2828_v59, 0.0  ;;  %3092 = vmatmul.mubr.bf16.gmra.mrb[248].mxu1 %v9846_v56 }
 0x28b   :  { %v3775_v48 = vmax.f32 %v2830_v3, 0.0  ;;  %3101 = vmatprep.mubr.bf16.mxu1 %v12600_v13 }
 0x28c   :  { %v4162_v43 = vpack.c.bf16 %v3774_v52, %v3772_v7 }
 0x28d   :  { %v4163_v35 = vpack.c.bf16 %v3775_v48, %v3773_v12  ;;  %v2833_v14 = vpop.f32.mrb[144].mxu1 }
 0x28e   :  { %v2834_v37 = vadd.f32 %v2833_v14, %v9851_v20  ;;  %v2835_v51 = vpop.f32.mrb[145].mxu1 }
 0x28f   :  { %v2836_v24 = vadd.f32 %v2835_v51, %v9855_v4  ;;  %v2837_v38 = vpop.f32.mrb[146].mxu1  ;;  %7979 = vmatprep.mubr.msk.bf16.mxu0 %vm4419_vm1, %v4163_v35 }
 0x290   :  { %v2838_v31 = vadd.f32 %v2837_v38, %v9851_v20  ;;  %v2839_v41 = vpop.f32.mrb[147].mxu1  ;;  %4983 = vmatmul.mubr.bf16.gmra.mrb[24].mxu0 %v4162_v43  ;;  %v3776_v61 = vmax.f32 %v2834_v37, 0.0 }
 0x291   :  { %v2840_v56 = vadd.f32 %v2839_v41, %v9855_v4  ;;  %v3777_v17 = vmax.f32 %v2836_v24, 0.0 }
 0x292   :  { %v3778_v15 = vmax.f32 %v2838_v31, 0.0  ;;  %3102 = vmatmul.mubr.bf16.gmra.mrb[252].mxu1 %v9844_v40 }
 0x293   :  { %v3779_v49 = vmax.f32 %v2840_v56, 0.0  ;;  %3111 = vmatprep.mubr.bf16.mxu1 %v12600_v13 }
 0x294   :  { %v4164_v11 = vpack.c.bf16 %v3778_v15, %v3776_v61 }
 0x295   :  { %v4165_v30 = vpack.c.bf16 %v3779_v49, %v3777_v17  ;;  %v2843_v45 = vpop.f32.mrb[148].mxu1 }
 0x296   :  { %v2844_v9 = vadd.f32 %v2843_v45, %v9851_v20  ;;  %v2845_v10 = vpop.f32.mrb[149].mxu1 }
 0x297   :  { %v2846_v46 = vadd.f32 %v2845_v10, %v9855_v4  ;;  %v2847_v16 = vpop.f32.mrb[150].mxu1  ;;  %7980 = vmatprep.mubr.msk.bf16.mxu0 %vm4419_vm1, %v4165_v30 }
 0x298   :  { %v2848_v62 = vadd.f32 %v2847_v16, %v9851_v20  ;;  %v2849_v59 = vpop.f32.mrb[151].mxu1  ;;  %4991 = vmatmul.mubr.bf16.gmra.mrb[28].mxu0 %v4164_v11  ;;  %v3780_v26 = vmax.f32 %v2844_v9, 0.0 }
 0x299   :  { %v2850_v40 = vadd.f32 %v2849_v59, %v9855_v4  ;;  %v3781_v7 = vmax.f32 %v2846_v46, 0.0 }
 0x29a   :  { %v3782_v3 = vmax.f32 %v2848_v62, 0.0  ;;  %3112 = vmatmul.mubr.bf16.gmra.mrb[0].mxu1 %v9865_v53 }
 0x29b   :  { %v3783_v52 = vmax.f32 %v2850_v40, 0.0  ;;  %v10211_v12 = vpop.f32.mrb[180].mxu0  ;;  %3121 = vmatprep.mubr.bf16.mxu1 %v12600_v13 }
 0x29c   :  { %v4166_v48 = vpack.c.bf16 %v3782_v3, %v3780_v26  ;;  %v4786_v43 = vpop.f32.mrb[181].mxu0 }
 0x29d   :  { %v4167_v35 = vpack.c.bf16 %v3783_v52, %v3781_v7  ;;  %v2853_v14 = vpop.f32.mrb[152].mxu1  ;;  %v10214_v37 = vpop.f32.mrb[182].mxu0 }
 0x29e   :  { %v2854_v51 = vadd.f32 %v2853_v14, %v9851_v20  ;;  %v2855_v24 = vpop.f32.mrb[153].mxu1  ;;  %v4789_v38 = vpop.f32.mrb[183].mxu0 }
 0x29f   :  { %v2856_v31 = vadd.f32 %v2855_v24, %v9855_v4  ;;  %v2857_v41 = vpop.f32.mrb[154].mxu1  ;;  %7981 = vmatprep.mubr.msk.bf16.mxu0 %vm4419_vm1, %v4167_v35 }
 0x2a0   :  { %v2858_v53 = vadd.f32 %v2857_v41, %v9851_v20  ;;  %v2859_v56 = vpop.f32.mrb[155].mxu1  ;;  %4999 = vmatmul.mubr.bf16.gmra.mrb[32].mxu0 %v4166_v48  ;;  %v3784_v15 = vmax.f32 %v2854_v51, 0.0 }
 0x2a1   :  { %v2860_v61 = vadd.f32 %v2859_v56, %v9855_v4  ;;  %v3785_v49 = vmax.f32 %v2856_v31, 0.0 }
 0x2a2   :  { %v3786_v17 = vmax.f32 %v2858_v53, 0.0  ;;  %3122 = vmatmul.mubr.bf16.gmra.mrb[4].mxu1 %v9862_v54 }
 0x2a3   :  { %v3787_v11 = vmax.f32 %v2860_v61, 0.0  ;;  %v10222_v30 = vpop.f32.mrb[184].mxu0  ;;  %3131 = vmatprep.mubr.bf16.mxu1 %v12600_v13 }
 0x2a4   :  { %v4168_v45 = vpack.c.bf16 %v3786_v17, %v3784_v15  ;;  %v4794_v9 = vpop.f32.mrb[185].mxu0 }
 0x2a5   :  { %v4169_v10 = vpack.c.bf16 %v3787_v11, %v3785_v49  ;;  %v2863_v46 = vpop.f32.mrb[156].mxu1  ;;  %v10225_v16 = vpop.f32.mrb[186].mxu0 }
 0x2a6   :  { %v2864_v62 = vadd.f32 %v2863_v46, %v9851_v20  ;;  %v2865_v59 = vpop.f32.mrb[157].mxu1  ;;  %v4797_v40 = vpop.f32.mrb[187].mxu0 }
 0x2a7   :  { %v2866_v26 = vadd.f32 %v2865_v59, %v9855_v4  ;;  %v2867_v3 = vpop.f32.mrb[158].mxu1  ;;  %7982 = vmatprep.mubr.msk.bf16.mxu0 %vm4419_vm1, %v4169_v10 }
 0x2a8   :  { %v2868_v54 = vadd.f32 %v2867_v3, %v9851_v20  ;;  %v2869_v7 = vpop.f32.mrb[159].mxu1  ;;  %5007 = vmatmul.mubr.bf16.gmra.mrb[36].mxu0 %v4168_v45  ;;  %v3788_v48 = vmax.f32 %v2864_v62, 0.0 }
 0x2a9   :  { %v2870_v52 = vadd.f32 %v2869_v7, %v9855_v4  ;;  %v3789_v35 = vmax.f32 %v2866_v26, 0.0 }
 0x2aa   :  { %v3790_v43 = vmax.f32 %v2868_v54, 0.0  ;;  %3132 = vmatmul.mubr.bf16.gmra.mrb[8].mxu1 %v9880_v33 }
 0x2ab   :  { %v3791_v14 = vmax.f32 %v2870_v52, 0.0  ;;  %v10233_v51 = vpop.f32.mrb[188].mxu0  ;;  %3141 = vmatprep.mubr.bf16.mxu1 %v12600_v13 }
 0x2ac   :  { %v4170_v24 = vpack.c.bf16 %v3790_v43, %v3788_v48  ;;  %v4802_v38 = vpop.f32.mrb[189].mxu0 }
 0x2ad   :  { %v4171_v31 = vpack.c.bf16 %v3791_v14, %v3789_v35  ;;  %v2873_v41 = vpop.f32.mrb[160].mxu1  ;;  %v10236_v53 = vpop.f32.mrb[190].mxu0 }
 0x2ae   :  { %v2874_v56 = vadd.f32 %v2873_v41, %v9851_v20  ;;  %v2875_v61 = vpop.f32.mrb[161].mxu1  ;;  %v4805_v15 = vpop.f32.mrb[191].mxu0 }
 0x2af   :  { %v2876_v17 = vadd.f32 %v2875_v61, %v9855_v4  ;;  %v2877_v49 = vpop.f32.mrb[162].mxu1  ;;  %7983 = vmatprep.mubr.msk.bf16.mxu0 %vm4419_vm1, %v4171_v31  ;;  %v8749_v61 = vld [vmem:[%s12601_s4 + $0x24] ss:$8 sps:$4 sm:$0xff]  }
 0x2b0   :  { %v2878_v33 = vadd.f32 %v2877_v49, %v9851_v20  ;;  %v2879_v11 = vpop.f32.mrb[163].mxu1  ;;  %5015 = vmatmul.mubr.bf16.gmra.mrb[40].mxu0 %v4170_v24  ;;  %v3792_v9 = vmax.f32 %v2874_v56, 0.0  ;;  %v8747_v56 = vld [vmem:[%s12601_s4 + $0x20] ss:$8 sps:$4 sm:$0xff]   ;;  %6445 = vmatprep.subr.bf16.mxu1 %v8749_v61 }
 0x2b1   :  { %v2880_v45 = vadd.f32 %v2879_v11, %v9855_v4  ;;  %v3793_v46 = vmax.f32 %v2876_v17, 0.0  ;;  %6446 = vmatpush1.bf16.msra.mxu1 %v8747_v56 }
 0x2b2   :  { %v3794_v10 = vmax.f32 %v2878_v33, 0.0  ;;  %3142 = vmatmul.mubr.bf16.gmra.mrb[12].mxu1 %v9877_v29 }
 0x2b3   :  { %v3795_v62 = vmax.f32 %v2880_v45, 0.0  ;;  %v10244_v59 = vpop.f32.mrb[192].mxu0  ;;  %3151 = vmatprep.mubr.bf16.mxu1 %v12600_v13 }
 0x2b4   :  { %v4172_v40 = vpack.c.bf16 %v3794_v10, %v3792_v9  ;;  %v4810_v26 = vpop.f32.mrb[193].mxu0 }
 0x2b5   :  { %v4173_v3 = vpack.c.bf16 %v3795_v62, %v3793_v46  ;;  %v2883_v54 = vpop.f32.mrb[164].mxu1  ;;  %v10247_v7 = vpop.f32.mrb[194].mxu0 }
 0x2b6   :  { %v2884_v52 = vadd.f32 %v2883_v54, %v9851_v20  ;;  %v2885_v48 = vpop.f32.mrb[165].mxu1  ;;  %v4813_v43 = vpop.f32.mrb[195].mxu0 }
 0x2b7   :  { %v2886_v35 = vadd.f32 %v2885_v48, %v9855_v4  ;;  %v2887_v14 = vpop.f32.mrb[166].mxu1  ;;  %7984 = vmatprep.mubr.msk.bf16.mxu0 %vm4419_vm1, %v4173_v3 }
 0x2b8   :  { %v2888_v29 = vadd.f32 %v2887_v14, %v9851_v20  ;;  %v2889_v24 = vpop.f32.mrb[167].mxu1  ;;  %5023 = vmatmul.mubr.bf16.gmra.mrb[44].mxu0 %v4172_v40  ;;  %v3796_v31 = vmax.f32 %v2884_v52, 0.0 }
 0x2b9   :  { %v2890_v38 = vadd.f32 %v2889_v24, %v9855_v4  ;;  %v3797_v15 = vmax.f32 %v2886_v35, 0.0 }
 0x2ba   :  { %v3798_v41 = vmax.f32 %v2888_v29, 0.0  ;;  %3152 = vmatmul.mubr.bf16.gmra.mrb[16].mxu1 %v9895_v39 }
 0x2bb   :  { %v3799_v17 = vmax.f32 %v2890_v38, 0.0  ;;  %v10261_v49 = vpop.f32.mrb[196].mxu0  ;;  %3161 = vmatprep.mubr.bf16.mxu1 %v12600_v13 }
 0x2bc   :  { %v4174_v33 = vpack.c.bf16 %v3798_v41, %v3796_v31  ;;  %v4818_v11 = vpop.f32.mrb[197].mxu0 }
 0x2bd   :  { %v4175_v45 = vpack.c.bf16 %v3799_v17, %v3797_v15  ;;  %v2893_v9 = vpop.f32.mrb[168].mxu1  ;;  %v10264_v39 = vpop.f32.mrb[198].mxu0 }
 0x2be   :  { %v2894_v10 = vadd.f32 %v2893_v9, %v9851_v20  ;;  %v2895_v46 = vpop.f32.mrb[169].mxu1  ;;  %v4821_v62 = vpop.f32.mrb[199].mxu0 }
 0x2bf   :  { %v2896_v40 = vadd.f32 %v2895_v46, %v9855_v4  ;;  %v2897_v26 = vpop.f32.mrb[170].mxu1  ;;  %7985 = vmatprep.mubr.msk.bf16.mxu0 %vm4419_vm1, %v4175_v45 }
 0x2c0   :  { %v2898_v3 = vadd.f32 %v2897_v26, %v9851_v20  ;;  %v2899_v54 = vpop.f32.mrb[171].mxu1  ;;  %5031 = vmatmul.mubr.bf16.gmra.mrb[48].mxu0 %v4174_v33  ;;  %v3800_v48 = vmax.f32 %v2894_v10, 0.0 }
 0x2c1   :  { %v2900_v52 = vadd.f32 %v2899_v54, %v9855_v4  ;;  %v3801_v35 = vmax.f32 %v2896_v40, 0.0 }
 0x2c2   :  { %v3802_v43 = vmax.f32 %v2898_v3, 0.0  ;;  %3162 = vmatmul.mubr.bf16.gmra.mrb[20].mxu1 %v9892_v22 }
 0x2c3   :  { %v3803_v14 = vmax.f32 %v2900_v52, 0.0  ;;  %v10272_v29 = vpop.f32.mrb[200].mxu0  ;;  %3171 = vmatprep.mubr.bf16.mxu1 %v12600_v13 }
 0x2c4   :  { %v4176_v24 = vpack.c.bf16 %v3802_v43, %v3800_v48  ;;  %v4826_v38 = vpop.f32.mrb[201].mxu0 }
 0x2c5   :  { %v4177_v31 = vpack.c.bf16 %v3803_v14, %v3801_v35  ;;  %v2903_v41 = vpop.f32.mrb[172].mxu1  ;;  %v10275_v56 = vpop.f32.mrb[202].mxu0 }
 0x2c6   :  { %v2904_v61 = vadd.f32 %v2903_v41, %v9851_v20  ;;  %v2905_v15 = vpop.f32.mrb[173].mxu1  ;;  %v4829_v17 = vpop.f32.mrb[203].mxu0 }
 0x2c7   :  { %v2906_v33 = vadd.f32 %v2905_v15, %v9855_v4  ;;  %v2907_v11 = vpop.f32.mrb[174].mxu1  ;;  %7986 = vmatprep.mubr.msk.bf16.mxu0 %vm4419_vm1, %v4177_v31 }
 0x2c8   :  { %v2908_v22 = vadd.f32 %v2907_v11, %v9851_v20  ;;  %v2909_v45 = vpop.f32.mrb[175].mxu1  ;;  %5039 = vmatmul.mubr.bf16.gmra.mrb[52].mxu0 %v4176_v24  ;;  %v3804_v10 = vmax.f32 %v2904_v61, 0.0 }
 0x2c9   :  { %v2910_v9 = vadd.f32 %v2909_v45, %v9855_v4  ;;  %v3805_v62 = vmax.f32 %v2906_v33, 0.0 }
 0x2ca   :  { %v3806_v46 = vmax.f32 %v2908_v22, 0.0  ;;  %3172 = vmatmul.mubr.bf16.gmra.mrb[24].mxu1 %v9910_v25 }
 0x2cb   :  { %v3807_v40 = vmax.f32 %v2910_v9, 0.0  ;;  %v10283_v26 = vpop.f32.mrb[204].mxu0  ;;  %3181 = vmatprep.mubr.bf16.mxu1 %v12600_v13 }
 0x2cc   :  { %v4178_v3 = vpack.c.bf16 %v3806_v46, %v3804_v10  ;;  %v4834_v54 = vpop.f32.mrb[205].mxu0 }
 0x2cd   :  { %v4179_v52 = vpack.c.bf16 %v3807_v40, %v3805_v62  ;;  %v2913_v48 = vpop.f32.mrb[176].mxu1  ;;  %v10286_v43 = vpop.f32.mrb[206].mxu0 }
 0x2ce   :  { %v2914_v35 = vadd.f32 %v2913_v48, %v9851_v20  ;;  %v2915_v14 = vpop.f32.mrb[177].mxu1  ;;  %v4837_v24 = vpop.f32.mrb[207].mxu0 }
 0x2cf   :  { %v2916_v38 = vadd.f32 %v2915_v14, %v9855_v4  ;;  %v2917_v31 = vpop.f32.mrb[178].mxu1  ;;  %7987 = vmatprep.mubr.msk.bf16.mxu0 %vm4419_vm1, %v4179_v52 }
 0x2d0   :  { %v2918_v25 = vadd.f32 %v2917_v31, %v9851_v20  ;;  %v2919_v41 = vpop.f32.mrb[179].mxu1  ;;  %5047 = vmatmul.mubr.bf16.gmra.mrb[56].mxu0 %v4178_v3  ;;  %v3808_v15 = vmax.f32 %v2914_v35, 0.0 }
 0x2d1   :  { %v2920_v61 = vadd.f32 %v2919_v41, %v9855_v4  ;;  %v3809_v33 = vmax.f32 %v2916_v38, 0.0 }
 0x2d2   :  { %v3810_v17 = vmax.f32 %v2918_v25, 0.0  ;;  %3182 = vmatmul.mubr.bf16.gmra.mrb[28].mxu1 %v9907_v50 }
 0x2d3   :  { %v3811_v11 = vmax.f32 %v2920_v61, 0.0  ;;  %v10294_v22 = vpop.f32.mrb[208].mxu0  ;;  %3191 = vmatprep.mubr.bf16.mxu1 %v12600_v13 }
 0x2d4   :  { %v4180_v45 = vpack.c.bf16 %v3810_v17, %v3808_v15  ;;  %v4842_v9 = vpop.f32.mrb[209].mxu0 }
 0x2d5   :  { %v4181_v10 = vpack.c.bf16 %v3811_v11, %v3809_v33  ;;  %v2923_v46 = vpop.f32.mrb[180].mxu1  ;;  %v10297_v62 = vpop.f32.mrb[210].mxu0 }
 0x2d6   :  { %v2924_v40 = vadd.f32 %v2923_v46, %v9851_v20  ;;  %v2925_v3 = vpop.f32.mrb[181].mxu1  ;;  %v4845_v54 = vpop.f32.mrb[211].mxu0 }
 0x2d7   :  { %v2926_v52 = vadd.f32 %v2925_v3, %v9855_v4  ;;  %v2927_v48 = vpop.f32.mrb[182].mxu1  ;;  %7988 = vmatprep.mubr.msk.bf16.mxu0 %vm4419_vm1, %v4181_v10 }
 0x2d8   :  { %v2928_v50 = vadd.f32 %v2927_v48, %v9851_v20  ;;  %v2929_v35 = vpop.f32.mrb[183].mxu1  ;;  %5055 = vmatmul.mubr.bf16.gmra.mrb[60].mxu0 %v4180_v45  ;;  %v3812_v24 = vmax.f32 %v2924_v40, 0.0 }
 0x2d9   :  { %v2930_v14 = vadd.f32 %v2929_v35, %v9855_v4  ;;  %v3813_v31 = vmax.f32 %v2926_v52, 0.0 }
 0x2da   :  { %v3814_v38 = vmax.f32 %v2928_v50, 0.0  ;;  %3192 = vmatmul.mubr.bf16.gmra.mrb[32].mxu1 %v9931_v23 }
 0x2db   :  { %v3815_v25 = vmax.f32 %v2930_v14, 0.0  ;;  %v10305_v41 = vpop.f32.mrb[212].mxu0  ;;  %3201 = vmatprep.mubr.bf16.mxu1 %v12600_v13 }
 0x2dc   :  { %v4182_v61 = vpack.c.bf16 %v3814_v38, %v3812_v24  ;;  %v4850_v15 = vpop.f32.mrb[213].mxu0 }
 0x2dd   :  { %v4183_v17 = vpack.c.bf16 %v3815_v25, %v3813_v31  ;;  %v2933_v33 = vpop.f32.mrb[184].mxu1  ;;  %v10308_v11 = vpop.f32.mrb[214].mxu0 }
 0x2de   :  { %v2934_v45 = vadd.f32 %v2933_v33, %v9851_v20  ;;  %v2935_v9 = vpop.f32.mrb[185].mxu1  ;;  %v4853_v10 = vpop.f32.mrb[215].mxu0 }
 0x2df   :  { %v2936_v46 = vadd.f32 %v2935_v9, %v9855_v4  ;;  %v2937_v40 = vpop.f32.mrb[186].mxu1  ;;  %7989 = vmatprep.mubr.msk.bf16.mxu0 %vm4419_vm1, %v4183_v17 }
 0x2e0   :  { %v2938_v23 = vadd.f32 %v2937_v40, %v9851_v20  ;;  %v2939_v3 = vpop.f32.mrb[187].mxu1  ;;  %5063 = vmatmul.mubr.bf16.gmra.mrb[64].mxu0 %v4182_v61  ;;  %v3816_v52 = vmax.f32 %v2934_v45, 0.0 }
 0x2e1   :  { %v2940_v54 = vadd.f32 %v2939_v3, %v9855_v4  ;;  %v3817_v50 = vmax.f32 %v2936_v46, 0.0 }
 0x2e2   :  { %v3818_v48 = vmax.f32 %v2938_v23, 0.0  ;;  %3202 = vmatmul.mubr.bf16.gmra.mrb[36].mxu1 %v9925_v57  ;;  %v10325_v57 = vld [vmem:[%s12537_s6] ss:$0 sm:$0xff] }
 0x2e3   :  { %v3819_v35 = vmax.f32 %v2940_v54, 0.0  ;;  %v10316_v14 = vpop.f32.mrb[216].mxu0  ;;  %3211 = vmatprep.mubr.bf16.mxu1 %v12600_v13  ;;  %v4785_v23 = vadd.f32 %v10325_v57, %v10211_v12 }
 0x2e4   :  { %v4184_v24 = vpack.c.bf16 %v3818_v48, %v3816_v52  ;;  %v4858_v38 = vpop.f32.mrb[217].mxu0 }
 0x2e5   :  { %v4185_v31 = vpack.c.bf16 %v3819_v35, %v3817_v50  ;;  %v2943_v25 = vpop.f32.mrb[188].mxu1  ;;  %v10319_v15 = vpop.f32.mrb[218].mxu0  ;;  %v4788_v35 = vadd.f32 %v10325_v57, %v10214_v37  ;;  %v5663_v12 = vmax.f32 %v4785_v23, 0.0 }
 0x2e6   :  { %v2944_v61 = vadd.f32 %v2943_v25, %v9851_v20  ;;  %v2945_v17 = vpop.f32.mrb[189].mxu1  ;;  %v4861_v33 = vpop.f32.mrb[219].mxu0 }
 0x2e7   :  { %v2946_v45 = vadd.f32 %v2945_v17, %v9855_v4  ;;  %v2947_v9 = vpop.f32.mrb[190].mxu1  ;;  %7990 = vmatprep.mubr.msk.bf16.mxu0 %vm4419_vm1, %v4185_v31  ;;  %v5664_v37 = vmax.f32 %v4788_v35, 0.0 }
 0x2e8   :  { %v2948_v10 = vadd.f32 %v2947_v9, %v9851_v20  ;;  %v2949_v46 = vpop.f32.mrb[191].mxu1  ;;  %5071 = vmatmul.mubr.bf16.gmra.mrb[68].mxu0 %v4184_v24  ;;  %v3820_v3 = vmax.f32 %v2944_v61, 0.0 }
 0x2e9   :  { %v2950_v40 = vadd.f32 %v2949_v46, %v9855_v4  ;;  %v3821_v52 = vmax.f32 %v2946_v45, 0.0 }
 0x2ea   :  { %v3822_v54 = vmax.f32 %v2948_v10, 0.0  ;;  %3212 = vmatmul.mubr.bf16.gmra.mrb[40].mxu1 %v9946_v28 }
 0x2eb   :  { %v3823_v48 = vmax.f32 %v2950_v40, 0.0  ;;  %v4864_v50 = vpop.f32.mrb[220].mxu0  ;;  %3221 = vmatprep.mubr.bf16.mxu1 %v12600_v13 }
 0x2ec   :  { %v4186_v38 = vpack.c.bf16 %v3822_v54, %v3820_v3  ;;  %v4865_v24 = vadd.f32 %v10325_v57, %v4864_v50  ;;  %v4866_v31 = vpop.f32.mrb[221].mxu0 }
 0x2ed   :  { %v4187_v25 = vpack.c.bf16 %v3823_v48, %v3821_v52  ;;  %v2953_v17 = vpop.f32.mrb[192].mxu1  ;;  %v4867_v33 = vpop.f32.mrb[222].mxu0 }
 0x2ee   :  { %v5683_v61 = vmax.f32 %v4865_v24, 0.0  ;;  %v4868_v9 = vadd.f32 %v10325_v57, %v4867_v33  ;;  %v2955_v28 = vpop.f32.mrb[193].mxu1  ;;  %v4869_v45 = vpop.f32.mrb[223].mxu0  ;;  %v2954_v10 = vadd.f32 %v2953_v17, %v9851_v20  ;;  %v4793_v24 = vadd.f32 %v10325_v57, %v10222_v30 }
 0x2ef   :  { %v2956_v46 = vadd.f32 %v2955_v28, %v9855_v4  ;;  %v2957_v40 = vpop.f32.mrb[194].mxu1  ;;  %7991 = vmatprep.mubr.msk.bf16.mxu0 %vm4419_vm1, %v4187_v25 }
 0x2f0   :  { %v10342_v3 = vmax.f32 %v5663_v12, %v5683_v61  ;;  %v10344_v54 = vadd.f32 %v5683_v61, %v5663_v12  ;;  %v5684_v52 = vmax.f32 %v4868_v9, 0.0  ;;  %v2959_v48 = vpop.f32.mrb[195].mxu1  ;;  %5079 = vmatmul.mubr.bf16.gmra.mrb[72].mxu0 %v4186_v38  ;;  %v2958_v23 = vadd.f32 %v2957_v40, %v9851_v20 }
 0x2f1   :  { %v2960_v50 = vadd.f32 %v2959_v48, %v9855_v4  ;;  %v3824_v35 = vmax.f32 %v2954_v10, 0.0  ;;  %v3825_v25 = vmax.f32 %v2956_v46, 0.0  ;;  %v4796_v38 = vadd.f32 %v10325_v57, %v10225_v16 }
 0x2f2   :  { %v10350_v31 = vmax.f32 %v5664_v37, %v5684_v52  ;;  %v10352_v17 = vadd.f32 %v5684_v52, %v5664_v37  ;;  %3222 = vmatmul.mubr.bf16.gmra.mrb[44].mxu1 %v9943_v55  ;;  %v3826_v33 = vmax.f32 %v2958_v23, 0.0  ;;  %v5665_v52 = vmax.f32 %v4793_v24, 0.0 }
 0x2f3   :  { %v3827_v12 = vmax.f32 %v2960_v50, 0.0  ;;  %v4872_v61 = vpop.f32.mrb[224].mxu0  ;;  %3231 = vmatprep.mubr.bf16.mxu1 %v12600_v13  ;;  %v5666_v16 = vmax.f32 %v4796_v38, 0.0 }
 0x2f4   :  { %v4873_v9 = vadd.f32 %v10325_v57, %v4872_v61  ;;  %v4874_v28 = vpop.f32.mrb[225].mxu0  ;;  %v4188_v30 = vpack.c.bf16 %v3826_v33, %v3824_v35 }
 0x2f5   :  { %v4189_v45 = vpack.c.bf16 %v3827_v12, %v3825_v25  ;;  %v2963_v40 = vpop.f32.mrb[196].mxu1  ;;  %v4875_v37 = vpop.f32.mrb[226].mxu0 }
 0x2f6   :  { %v5685_v48 = vmax.f32 %v4873_v9, 0.0  ;;  %v4876_v55 = vadd.f32 %v10325_v57, %v4875_v37  ;;  %v2965_v10 = vpop.f32.mrb[197].mxu1  ;;  %v4877_v46 = vpop.f32.mrb[227].mxu0  ;;  %v2964_v23 = vadd.f32 %v2963_v40, %v9851_v20  ;;  %v4801_v9 = vadd.f32 %v10325_v57, %v10233_v51 }
 0x2f7   :  { %v2966_v50 = vadd.f32 %v2965_v10, %v9855_v4  ;;  %v2967_v21 = vpop.f32.mrb[198].mxu1  ;;  %7992 = vmatprep.mubr.msk.bf16.mxu0 %vm4419_vm1, %v4189_v45 }
 0x2f8   :  { %v10363_v61 = vmax.f32 %v5665_v52, %v5685_v48  ;;  %v10365_v35 = vadd.f32 %v5685_v48, %v5665_v52  ;;  %v5686_v25 = vmax.f32 %v4876_v55, 0.0  ;;  %v2969_v33 = vpop.f32.mrb[199].mxu1  ;;  %5087 = vmatmul.mubr.bf16.gmra.mrb[76].mxu0 %v4188_v30  ;;  %v2968_v24 = vadd.f32 %v2967_v21, %v9851_v20 }
 0x2f9   :  { %v2970_v12 = vadd.f32 %v2969_v33, %v9855_v4  ;;  %v3828_v38 = vmax.f32 %v2964_v23, 0.0  ;;  %v3829_v45 = vmax.f32 %v2966_v50, 0.0  ;;  %v4804_v21 = vadd.f32 %v10325_v57, %v10236_v53 }
 0x2fa   :  { %v10371_v28 = vmax.f32 %v5666_v16, %v5686_v25  ;;  %v10373_v40 = vadd.f32 %v5686_v25, %v5666_v16  ;;  %3232 = vmatmul.mubr.bf16.gmra.mrb[48].mxu1 %v9961_v27  ;;  %v3830_v37 = vmax.f32 %v2968_v24, 0.0  ;;  %v5667_v25 = vmax.f32 %v4801_v9, 0.0 }
 0x2fb   :  { %v3831_v52 = vmax.f32 %v2970_v12, 0.0  ;;  %v4880_v48 = vpop.f32.mrb[228].mxu0  ;;  %3241 = vmatprep.mubr.bf16.mxu1 %v12600_v13  ;;  %v5668_v53 = vmax.f32 %v4804_v21, 0.0 }
 0x2fc   :  { %v4881_v30 = vadd.f32 %v10325_v57, %v4880_v48  ;;  %v4882_v55 = vpop.f32.mrb[229].mxu0  ;;  %v4190_v51 = vpack.c.bf16 %v3830_v37, %v3828_v38 }
 0x2fd   :  { %v4191_v10 = vpack.c.bf16 %v3831_v52, %v3829_v45  ;;  %v2973_v46 = vpop.f32.mrb[200].mxu1  ;;  %v4883_v16 = vpop.f32.mrb[230].mxu0 }
 0x2fe   :  { %v5687_v33 = vmax.f32 %v4881_v30, 0.0  ;;  %v4884_v27 = vadd.f32 %v10325_v57, %v4883_v16  ;;  %v2975_v23 = vpop.f32.mrb[201].mxu1  ;;  %v4885_v50 = vpop.f32.mrb[231].mxu0  ;;  %v2974_v24 = vadd.f32 %v2973_v46, %v9851_v20  ;;  %v4809_v30 = vadd.f32 %v10325_v57, %v10244_v59 }
 0x2ff   :  { %v2976_v12 = vadd.f32 %v2975_v23, %v9855_v4  ;;  %v2977_v0 = vpop.f32.mrb[202].mxu1  ;;  %7993 = vmatprep.mubr.msk.bf16.mxu0 %vm4419_vm1, %v4191_v10 }
 0x300   :  { %v10384_v48 = vmax.f32 %v5667_v25, %v5687_v33  ;;  %v10386_v38 = vadd.f32 %v5687_v33, %v5667_v25  ;;  %v5688_v45 = vmax.f32 %v4884_v27, 0.0  ;;  %v2979_v37 = vpop.f32.mrb[203].mxu1  ;;  %5095 = vmatmul.mubr.bf16.gmra.mrb[80].mxu0 %v4190_v51  ;;  %v2978_v9 = vadd.f32 %v2977_v0, %v9851_v20 }
 0x301   :  { %v2980_v52 = vadd.f32 %v2979_v37, %v9855_v4  ;;  %v3832_v21 = vmax.f32 %v2974_v24, 0.0  ;;  %v3833_v10 = vmax.f32 %v2976_v12, 0.0  ;;  %v4812_v0 = vadd.f32 %v10325_v57, %v10247_v7 }
 0x302   :  { %v10392_v55 = vmax.f32 %v5668_v53, %v5688_v45  ;;  %v10394_v46 = vadd.f32 %v5688_v45, %v5668_v53  ;;  %3242 = vmatmul.mubr.bf16.gmra.mrb[52].mxu1 %v9958_v5  ;;  %v3834_v16 = vmax.f32 %v2978_v9, 0.0  ;;  %v5669_v45 = vmax.f32 %v4809_v30, 0.0 }
 0x303   :  { %v3835_v25 = vmax.f32 %v2980_v52, 0.0  ;;  %v4888_v33 = vpop.f32.mrb[232].mxu0  ;;  %3251 = vmatprep.mubr.bf16.mxu1 %v12600_v13  ;;  %v5670_v7 = vmax.f32 %v4812_v0, 0.0 }
 0x304   :  { %v4889_v51 = vadd.f32 %v10325_v57, %v4888_v33  ;;  %v4890_v27 = vpop.f32.mrb[233].mxu0  ;;  %v4192_v59 = vpack.c.bf16 %v3834_v16, %v3832_v21 }
 0x305   :  { %v4193_v23 = vpack.c.bf16 %v3835_v25, %v3833_v10  ;;  %v2983_v50 = vpop.f32.mrb[204].mxu1  ;;  %v4891_v53 = vpop.f32.mrb[234].mxu0 }
 0x306   :  { %v5689_v37 = vmax.f32 %v4889_v51, 0.0  ;;  %v4892_v5 = vadd.f32 %v10325_v57, %v4891_v53  ;;  %v2985_v24 = vpop.f32.mrb[205].mxu1  ;;  %v4893_v12 = vpop.f32.mrb[235].mxu0  ;;  %v2984_v9 = vadd.f32 %v2983_v50, %v9851_v20  ;;  %v4817_v51 = vadd.f32 %v10325_v57, %v10261_v49 }
 0x307   :  { %v2986_v52 = vadd.f32 %v2985_v24, %v9855_v4  ;;  %v2987_v34 = vpop.f32.mrb[206].mxu1  ;;  %7994 = vmatprep.mubr.msk.bf16.mxu0 %vm4419_vm1, %v4193_v23 }
 0x308   :  { %v10405_v33 = vmax.f32 %v5669_v45, %v5689_v37  ;;  %v10407_v21 = vadd.f32 %v5689_v37, %v5669_v45  ;;  %v5690_v10 = vmax.f32 %v4892_v5, 0.0  ;;  %v2989_v16 = vpop.f32.mrb[207].mxu1  ;;  %5103 = vmatmul.mubr.bf16.gmra.mrb[84].mxu0 %v4192_v59  ;;  %v2988_v30 = vadd.f32 %v2987_v34, %v9851_v20 }
 0x309   :  { %v2990_v25 = vadd.f32 %v2989_v16, %v9855_v4  ;;  %v3836_v0 = vmax.f32 %v2984_v9, 0.0  ;;  %v3837_v23 = vmax.f32 %v2986_v52, 0.0  ;;  %v4820_v34 = vadd.f32 %v10325_v57, %v10264_v39 }
 0x30a   :  { %v10413_v27 = vmax.f32 %v5670_v7, %v5690_v10  ;;  %v10415_v50 = vadd.f32 %v5690_v10, %v5670_v7  ;;  %3252 = vmatmul.mubr.bf16.gmra.mrb[56].mxu1 %v9976_v44  ;;  %v3838_v53 = vmax.f32 %v2988_v30, 0.0  ;;  %v5671_v10 = vmax.f32 %v4817_v51, 0.0 }
 0x30b   :  { %v3839_v45 = vmax.f32 %v2990_v25, 0.0  ;;  %v4896_v37 = vpop.f32.mrb[236].mxu0  ;;  %3261 = vmatprep.mubr.bf16.mxu1 %v12600_v13  ;;  %v5672_v39 = vmax.f32 %v4820_v34, 0.0 }
 0x30c   :  { %v4897_v59 = vadd.f32 %v10325_v57, %v4896_v37  ;;  %v4898_v5 = vpop.f32.mrb[237].mxu0  ;;  %v4194_v49 = vpack.c.bf16 %v3838_v53, %v3836_v0 }
 0x30d   :  { %v4195_v24 = vpack.c.bf16 %v3839_v45, %v3837_v23  ;;  %v2993_v12 = vpop.f32.mrb[208].mxu1  ;;  %v4899_v7 = vpop.f32.mrb[238].mxu0 }
 0x30e   :  { %v5691_v16 = vmax.f32 %v4897_v59, 0.0  ;;  %v4900_v44 = vadd.f32 %v10325_v57, %v4899_v7  ;;  %v2995_v9 = vpop.f32.mrb[209].mxu1  ;;  %v4901_v52 = vpop.f32.mrb[239].mxu0  ;;  %v2994_v30 = vadd.f32 %v2993_v12, %v9851_v20  ;;  %v4825_v59 = vadd.f32 %v10325_v57, %v10272_v29 }
 0x30f   :  { %v2996_v25 = vadd.f32 %v2995_v9, %v9855_v4  ;;  %v2997_v19 = vpop.f32.mrb[210].mxu1  ;;  %7995 = vmatprep.mubr.msk.bf16.mxu0 %vm4419_vm1, %v4195_v24 }
 0x310   :  { %v10426_v37 = vmax.f32 %v5671_v10, %v5691_v16  ;;  %v10428_v0 = vadd.f32 %v5691_v16, %v5671_v10  ;;  %v5692_v23 = vmax.f32 %v4900_v44, 0.0  ;;  %v2999_v53 = vpop.f32.mrb[211].mxu1  ;;  %5111 = vmatmul.mubr.bf16.gmra.mrb[88].mxu0 %v4194_v49  ;;  %v2998_v51 = vadd.f32 %v2997_v19, %v9851_v20 }
 0x311   :  { %v3000_v45 = vadd.f32 %v2999_v53, %v9855_v4  ;;  %v3840_v34 = vmax.f32 %v2994_v30, 0.0  ;;  %v3841_v24 = vmax.f32 %v2996_v25, 0.0  ;;  %v4828_v19 = vadd.f32 %v10325_v57, %v10275_v56 }
 0x312   :  { %v10434_v5 = vmax.f32 %v5672_v39, %v5692_v23  ;;  %v10436_v12 = vadd.f32 %v5692_v23, %v5672_v39  ;;  %3262 = vmatmul.mubr.bf16.gmra.mrb[60].mxu1 %v9973_v42  ;;  %v3842_v7 = vmax.f32 %v2998_v51, 0.0  ;;  %v5673_v23 = vmax.f32 %v4825_v59, 0.0 }
 0x313   :  { %v3843_v10 = vmax.f32 %v3000_v45, 0.0  ;;  %v4904_v16 = vpop.f32.mrb[240].mxu0  ;;  %3271 = vmatprep.mubr.bf16.mxu1 %v12600_v13  ;;  %v5674_v56 = vmax.f32 %v4828_v19, 0.0 }
 0x314   :  { %v4905_v49 = vadd.f32 %v10325_v57, %v4904_v16  ;;  %v4906_v44 = vpop.f32.mrb[241].mxu0  ;;  %v4196_v29 = vpack.c.bf16 %v3842_v7, %v3840_v34 }
 0x315   :  { %v4197_v9 = vpack.c.bf16 %v3843_v10, %v3841_v24  ;;  %v3003_v52 = vpop.f32.mrb[212].mxu1  ;;  %v4907_v39 = vpop.f32.mrb[242].mxu0 }
 0x316   :  { %v5693_v53 = vmax.f32 %v4905_v49, 0.0  ;;  %v4908_v42 = vadd.f32 %v10325_v57, %v4907_v39  ;;  %v3005_v30 = vpop.f32.mrb[213].mxu1  ;;  %v4909_v25 = vpop.f32.mrb[243].mxu0  ;;  %v3004_v51 = vadd.f32 %v3003_v52, %v9851_v20  ;;  %v4833_v49 = vadd.f32 %v10325_v57, %v10283_v26 }
 0x317   :  { %v3006_v45 = vadd.f32 %v3005_v30, %v9855_v4  ;;  %v3007_v18 = vpop.f32.mrb[214].mxu1  ;;  %7996 = vmatprep.mubr.msk.bf16.mxu0 %vm4419_vm1, %v4197_v9 }
 0x318   :  { %v10447_v16 = vmax.f32 %v5673_v23, %v5693_v53  ;;  %v10449_v34 = vadd.f32 %v5693_v53, %v5673_v23  ;;  %v5694_v24 = vmax.f32 %v4908_v42, 0.0  ;;  %v3009_v7 = vpop.f32.mrb[215].mxu1  ;;  %5119 = vmatmul.mubr.bf16.gmra.mrb[92].mxu0 %v4196_v29  ;;  %v3008_v59 = vadd.f32 %v3007_v18, %v9851_v20 }
 0x319   :  { %v3010_v10 = vadd.f32 %v3009_v7, %v9855_v4  ;;  %v3844_v19 = vmax.f32 %v3004_v51, 0.0  ;;  %v3845_v9 = vmax.f32 %v3006_v45, 0.0  ;;  %v4836_v18 = vadd.f32 %v10325_v57, %v10286_v43 }
 0x31a   :  { %v10455_v44 = vmax.f32 %v5674_v56, %v5694_v24  ;;  %v10457_v52 = vadd.f32 %v5694_v24, %v5674_v56  ;;  %3272 = vmatmul.mubr.bf16.gmra.mrb[64].mxu1 %v9991_v47  ;;  %v3846_v39 = vmax.f32 %v3008_v59, 0.0  ;;  %v5675_v24 = vmax.f32 %v4833_v49, 0.0 }
 0x31b   :  { %v3847_v23 = vmax.f32 %v3010_v10, 0.0  ;;  %v4912_v53 = vpop.f32.mrb[244].mxu0  ;;  %3281 = vmatprep.mubr.bf16.mxu1 %v12600_v13  ;;  %v5676_v43 = vmax.f32 %v4836_v18, 0.0 }
 0x31c   :  { %v4913_v29 = vadd.f32 %v10325_v57, %v4912_v53  ;;  %v4914_v42 = vpop.f32.mrb[245].mxu0  ;;  %v4198_v26 = vpack.c.bf16 %v3846_v39, %v3844_v19 }
 0x31d   :  { %v4199_v30 = vpack.c.bf16 %v3847_v23, %v3845_v9  ;;  %v3013_v25 = vpop.f32.mrb[216].mxu1  ;;  %v4915_v56 = vpop.f32.mrb[246].mxu0 }
 0x31e   :  { %v5695_v7 = vmax.f32 %v4913_v29, 0.0  ;;  %v4916_v47 = vadd.f32 %v10325_v57, %v4915_v56  ;;  %v3015_v51 = vpop.f32.mrb[217].mxu1  ;;  %v4917_v45 = vpop.f32.mrb[247].mxu0  ;;  %v3014_v59 = vadd.f32 %v3013_v25, %v9851_v20  ;;  %v4841_v29 = vadd.f32 %v10325_v57, %v10294_v22 }
 0x31f   :  { %v3016_v10 = vadd.f32 %v3015_v51, %v9855_v4  ;;  %v3017_v1 = vpop.f32.mrb[218].mxu1  ;;  %7997 = vmatprep.mubr.msk.bf16.mxu0 %vm4419_vm1, %v4199_v30 }
 0x320   :  { %v10468_v53 = vmax.f32 %v5675_v24, %v5695_v7  ;;  %v10470_v19 = vadd.f32 %v5695_v7, %v5675_v24  ;;  %v5696_v9 = vmax.f32 %v4916_v47, 0.0  ;;  %v3019_v39 = vpop.f32.mrb[219].mxu1  ;;  %5127 = vmatmul.mubr.bf16.gmra.mrb[96].mxu0 %v4198_v26  ;;  %v3018_v49 = vadd.f32 %v3017_v1, %v9851_v20 }
 0x321   :  { %v3020_v23 = vadd.f32 %v3019_v39, %v9855_v4  ;;  %v3848_v18 = vmax.f32 %v3014_v59, 0.0  ;;  %v3849_v30 = vmax.f32 %v3016_v10, 0.0  ;;  %v4844_v1 = vadd.f32 %v10325_v57, %v10297_v62 }
 0x322   :  { %v10476_v42 = vmax.f32 %v5676_v43, %v5696_v9  ;;  %v10478_v25 = vadd.f32 %v5696_v9, %v5676_v43  ;;  %3282 = vmatmul.mubr.bf16.gmra.mrb[68].mxu1 %v9988_v8  ;;  %v3850_v56 = vmax.f32 %v3018_v49, 0.0  ;;  %v5677_v9 = vmax.f32 %v4841_v29, 0.0  ;;  %v8750_v29 = vld [vmem:[%s12601_s4 + $0x30] ss:$8 sps:$4 sm:$0xff]  }
 0x323   :  { %v3851_v24 = vmax.f32 %v3020_v23, 0.0  ;;  %v4920_v7 = vpop.f32.mrb[248].mxu0  ;;  %3291 = vmatprep.mubr.bf16.mxu1 %v12600_v13  ;;  %v5678_v62 = vmax.f32 %v4844_v1, 0.0  ;;  %v4849_v1 = vadd.f32 %v10325_v57, %v10305_v41 }
 0x324   :  { %12613 = vst [vmem:[#allocation35_spill] sm:$0xff] %v10478_v25  ;;  %v4921_v26 = vadd.f32 %v10325_v57, %v4920_v7  ;;  %v4922_v47 = vpop.f32.mrb[249].mxu0  ;;  %v4200_v22 = vpack.c.bf16 %v3850_v56, %v3848_v18 }
 0x325   :  { %v4201_v51 = vpack.c.bf16 %v3851_v24, %v3849_v30  ;;  %v3023_v45 = vpop.f32.mrb[220].mxu1  ;;  %v4923_v43 = vpop.f32.mrb[250].mxu0  ;;  %v8752_v47 = vld [vmem:[%s12601_s4 + $0x34] ss:$8 sps:$4 sm:$0xff]  }
 0x326   :  { %v5697_v39 = vmax.f32 %v4921_v26, 0.0  ;;  %v4924_v8 = vadd.f32 %v10325_v57, %v4923_v43  ;;  %v3025_v59 = vpop.f32.mrb[221].mxu1  ;;  %v4925_v10 = vpop.f32.mrb[251].mxu0  ;;  %v3024_v49 = vadd.f32 %v3023_v45, %v9851_v20  ;;  %6447 = vmatprep.subr.bf16.mxu1 %v8752_v47 }
 0x327   :  { %v3026_v23 = vadd.f32 %v3025_v59, %v9855_v4  ;;  %v3027_v25 = vpop.f32.mrb[222].mxu1  ;;  %7998 = vmatprep.mubr.msk.bf16.mxu0 %vm4419_vm1, %v4201_v51  ;;  %6448 = vmatpush1.bf16.msra.mxu1 %v8750_v29 }
 0x328   :  { %v10489_v7 = vmax.f32 %v5677_v9, %v5697_v39  ;;  %v10491_v18 = vadd.f32 %v5697_v39, %v5677_v9  ;;  %v5698_v30 = vmax.f32 %v4924_v8, 0.0  ;;  %v3029_v56 = vpop.f32.mrb[223].mxu1  ;;  %5135 = vmatmul.mubr.bf16.gmra.mrb[100].mxu0 %v4200_v22  ;;  %v3028_v24 = vadd.f32 %v3027_v25, %v9851_v20 }
 0x329   :  { %v3030_v26 = vadd.f32 %v3029_v56, %v9855_v4  ;;  %v3852_v22 = vmax.f32 %v3024_v49, 0.0  ;;  %v3853_v43 = vmax.f32 %v3026_v23, 0.0  ;;  %v4852_v8 = vadd.f32 %v10325_v57, %v10308_v11 }
 0x32a   :  { %v10503_v51 = vmax.f32 %v5678_v62, %v5698_v30  ;;  %v10505_v45 = vadd.f32 %v5698_v30, %v5678_v62  ;;  %3292 = vmatmul.mubr.bf16.gmra.mrb[72].mxu1 %v10006_v6  ;;  %v3854_v9 = vmax.f32 %v3028_v24, 0.0  ;;  %v5679_v6 = vmax.f32 %v4849_v1, 0.0 }
 0x32b   :  { %v3855_v39 = vmax.f32 %v3030_v26, 0.0  ;;  %v4928_v25 = vpop.f32.mrb[252].mxu0  ;;  %3301 = vmatprep.mubr.bf16.mxu1 %v12600_v13  ;;  %v5680_v11 = vmax.f32 %v4852_v8, 0.0 }
 0x32c   :  { %12614 = vst [vmem:[#allocation36_spill] sm:$0xff] %v10503_v51  ;;  %12615 = vst [vmem:[#allocation37_spill] sm:$0xff] %v10505_v45  ;;  %v4929_v59 = vadd.f32 %v10325_v57, %v4928_v25  ;;  %v4930_v41 = vpop.f32.mrb[253].mxu0  ;;  %v4202_v10 = vpack.c.bf16 %v3854_v9, %v3852_v22 }
 0x32d   :  { %v4203_v62 = vpack.c.bf16 %v3855_v39, %v3853_v43  ;;  %v3033_v30 = vpop.f32.mrb[224].mxu1  ;;  %v4931_v56 = vpop.f32.mrb[254].mxu0  ;;  %v4857_v39 = vadd.f32 %v10325_v57, %v10316_v14 }
 0x32e   :  { %v5699_v49 = vmax.f32 %v4929_v59, 0.0  ;;  %v4932_v23 = vadd.f32 %v10325_v57, %v4931_v56  ;;  %v3035_v24 = vpop.f32.mrb[225].mxu1  ;;  %v4933_v26 = vpop.f32.mrb[255].mxu0  ;;  %v3034_v45 = vadd.f32 %v3033_v30, %v9851_v20 }
 0x32f   :  { %v3036_v47 = vadd.f32 %v3035_v24, %v9855_v4  ;;  %v3037_v51 = vpop.f32.mrb[226].mxu1  ;;  %7999 = vmatprep.mubr.msk.bf16.mxu0 %vm4419_vm1, %v4203_v62 }
 0x330   :  { %v10516_v25 = vmax.f32 %v5679_v6, %v5699_v49  ;;  %v10518_v29 = vadd.f32 %v5699_v49, %v5679_v6  ;;  %v5700_v22 = vmax.f32 %v4932_v23, 0.0  ;;  %v3039_v43 = vpop.f32.mrb[227].mxu1  ;;  %5143 = vmatmul.mubr.bf16.gmra.mrb[104].mxu0 %v4202_v10  ;;  %v3038_v1 = vadd.f32 %v3037_v51, %v9851_v20 }
 0x331   :  { %v3040_v9 = vadd.f32 %v3039_v43, %v9855_v4  ;;  %v3856_v8 = vmax.f32 %v3034_v45, 0.0  ;;  %v3857_v62 = vmax.f32 %v3036_v47, 0.0  ;;  %v4860_v51 = vadd.f32 %v10325_v57, %v10319_v15 }
 0x332   :  { %v10524_v59 = vmax.f32 %v5680_v11, %v5700_v22  ;;  %v10526_v41 = vadd.f32 %v5700_v22, %v5680_v11  ;;  %3302 = vmatmul.mubr.bf16.gmra.mrb[76].mxu1 %v10003_v63  ;;  %v3858_v30 = vmax.f32 %v3038_v1, 0.0  ;;  %v5681_v11 = vmax.f32 %v4857_v39, 0.0 }
 0x333   :  { %v3859_v56 = vmax.f32 %v3040_v9, 0.0  ;;  %v4936_v6 = vpop.f32.mrb[0].mxu0  ;;  %3311 = vmatprep.mubr.bf16.mxu1 %v12600_v13  ;;  %v5682_v15 = vmax.f32 %v4860_v51, 0.0 }
 0x334   :  { %v4937_v10 = vadd.f32 %v10325_v57, %v4936_v6  ;;  %v4938_v49 = vpop.f32.mrb[1].mxu0  ;;  %v4204_v14 = vpack.c.bf16 %v3858_v30, %v3856_v8 }
 0x335   :  { %v4205_v23 = vpack.c.bf16 %v3859_v56, %v3857_v62  ;;  %v3043_v24 = vpop.f32.mrb[228].mxu1  ;;  %v4939_v26 = vpop.f32.mrb[2].mxu0 }
 0x336   :  { %v5701_v22 = vmax.f32 %v4937_v10, 0.0  ;;  %v4940_v63 = vadd.f32 %v10325_v57, %v4939_v26  ;;  %v3045_v45 = vpop.f32.mrb[229].mxu1  ;;  %v4941_v47 = vpop.f32.mrb[3].mxu0  ;;  %v3044_v43 = vadd.f32 %v3043_v24, %v9851_v20 }
 0x337   :  { %v3046_v1 = vadd.f32 %v3045_v45, %v9855_v4  ;;  %v3047_v9 = vpop.f32.mrb[230].mxu1  ;;  %8000 = vmatprep.mubr.msk.bf16.mxu0 %vm4419_vm1, %v4205_v23 }
 0x338   :  { %v10537_v6 = vmax.f32 %v5681_v11, %v5701_v22  ;;  %v10539_v8 = vadd.f32 %v5701_v22, %v5681_v11  ;;  %v5702_v62 = vmax.f32 %v4940_v63, 0.0  ;;  %v3049_v30 = vpop.f32.mrb[231].mxu1  ;;  %5151 = vmatmul.mubr.bf16.gmra.mrb[108].mxu0 %v4204_v14  ;;  %v3048_v39 = vadd.f32 %v3047_v9, %v9851_v20 }
 0x339   :  { %v3050_v56 = vadd.f32 %v3049_v30, %v9855_v4  ;;  %v3860_v24 = vmax.f32 %v3044_v43, 0.0  ;;  %v3861_v23 = vmax.f32 %v3046_v1, 0.0 }
 0x33a   :  { %v10543_v10 = vmax.f32 %v5682_v15, %v5702_v62  ;;  %v10545_v49 = vadd.f32 %v5702_v62, %v5682_v15  ;;  %3312 = vmatmul.mubr.bf16.gmra.mrb[80].mxu1 %v10021_v36  ;;  %v3862_v51 = vmax.f32 %v3048_v39, 0.0 }
 0x33b   :  { %v3863_v26 = vmax.f32 %v3050_v56, 0.0  ;;  %v4944_v45 = vpop.f32.mrb[4].mxu0  ;;  %3321 = vmatprep.mubr.bf16.mxu1 %v12600_v13 }
 0x33c   :  { %12616 = vst [vmem:[#allocation38_spill] sm:$0xff] %v10545_v49  ;;  %v4945_v11 = vadd.f32 %v10325_v57, %v4944_v45  ;;  %v4946_v14 = vpop.f32.mrb[5].mxu0  ;;  %v4206_v22 = vpack.c.bf16 %v3862_v51, %v3860_v24 }
 0x33d   :  { %v4207_v63 = vpack.c.bf16 %v3863_v26, %v3861_v23  ;;  %v3053_v47 = vpop.f32.mrb[232].mxu1  ;;  %v4947_v9 = vpop.f32.mrb[6].mxu0 }
 0x33e   :  { %v5703_v30 = vmax.f32 %v4945_v11, 0.0  ;;  %v4948_v15 = vadd.f32 %v10325_v57, %v4947_v9  ;;  %v3055_v62 = vpop.f32.mrb[233].mxu1  ;;  %v4949_v49 = vpop.f32.mrb[7].mxu0  ;;  %v3054_v36 = vadd.f32 %v3053_v47, %v9851_v20 }
 0x33f   :  { %v3056_v43 = vadd.f32 %v3055_v62, %v9855_v4  ;;  %v3057_v1 = vpop.f32.mrb[234].mxu1  ;;  %8001 = vmatprep.mubr.msk.bf16.mxu0 %vm4419_vm1, %v4207_v63 }
 0x340   :  { %v10555_v39 = vmax.f32 %v10342_v3, %v5703_v30  ;;  %v10558_v56 = vadd.f32 %v10344_v54, %v5703_v30  ;;  %v5704_v24 = vmax.f32 %v4948_v15, 0.0  ;;  %v3059_v23 = vpop.f32.mrb[235].mxu1  ;;  %5159 = vmatmul.mubr.bf16.gmra.mrb[112].mxu0 %v4206_v22  ;;  %v3058_v51 = vadd.f32 %v3057_v1, %v9851_v20 }
 0x341   :  { %v3060_v49 = vadd.f32 %v3059_v23, %v9855_v4  ;;  %v3864_v3 = vmax.f32 %v3054_v36, 0.0  ;;  %v3865_v11 = vmax.f32 %v3056_v43, 0.0 }
 0x342   :  { %v10563_v26 = vmax.f32 %v10350_v31, %v5704_v24  ;;  %v10566_v45 = vadd.f32 %v10352_v17, %v5704_v24  ;;  %3322 = vmatmul.mubr.bf16.gmra.mrb[84].mxu1 %v10018_v2  ;;  %v3866_v14 = vmax.f32 %v3058_v51, 0.0 }
 0x343   :  { %v3867_v54 = vmax.f32 %v3060_v49, 0.0  ;;  %v4952_v63 = vpop.f32.mrb[8].mxu0  ;;  %3331 = vmatprep.mubr.bf16.mxu1 %v12600_v13 }
 0x344   :  { %v4953_v22 = vadd.f32 %v10325_v57, %v4952_v63  ;;  %v4954_v47 = vpop.f32.mrb[9].mxu0  ;;  %v4208_v9 = vpack.c.bf16 %v3866_v14, %v3864_v3 }
 0x345   :  { %v4209_v30 = vpack.c.bf16 %v3867_v54, %v3865_v11  ;;  %v3063_v15 = vpop.f32.mrb[236].mxu1  ;;  %v4955_v31 = vpop.f32.mrb[10].mxu0 }
 0x346   :  { %v5705_v62 = vmax.f32 %v4953_v22, 0.0  ;;  %v4956_v17 = vadd.f32 %v10325_v57, %v4955_v31  ;;  %v3065_v1 = vpop.f32.mrb[237].mxu1  ;;  %v4957_v24 = vpop.f32.mrb[11].mxu0  ;;  %v3064_v2 = vadd.f32 %v3063_v15, %v9851_v20 }
 0x347   :  { %v3066_v36 = vadd.f32 %v3065_v1, %v9855_v4  ;;  %v3067_v43 = vpop.f32.mrb[238].mxu1  ;;  %8002 = vmatprep.mubr.msk.bf16.mxu0 %vm4419_vm1, %v4209_v30 }
 0x348   :  { %v10576_v23 = vmax.f32 %v10363_v61, %v5705_v62  ;;  %v10579_v51 = vadd.f32 %v10365_v35, %v5705_v62  ;;  %v5706_v49 = vmax.f32 %v4956_v17, 0.0  ;;  %v3069_v3 = vpop.f32.mrb[239].mxu1  ;;  %5167 = vmatmul.mubr.bf16.gmra.mrb[116].mxu0 %v4208_v9  ;;  %v3068_v11 = vadd.f32 %v3067_v43, %v9851_v20 }
 0x349   :  { %v3070_v14 = vadd.f32 %v3069_v3, %v9855_v4  ;;  %v3868_v61 = vmax.f32 %v3064_v2, 0.0  ;;  %v3869_v22 = vmax.f32 %v3066_v36, 0.0 }
 0x34a   :  { %v10584_v54 = vmax.f32 %v10371_v28, %v5706_v49  ;;  %v10587_v63 = vadd.f32 %v10373_v40, %v5706_v49  ;;  %3332 = vmatmul.mubr.bf16.gmra.mrb[88].mxu1 %v10041_v32  ;;  %v3870_v47 = vmax.f32 %v3068_v11, 0.0 }
 0x34b   :  { %v3871_v35 = vmax.f32 %v3070_v14, 0.0  ;;  %v4960_v30 = vpop.f32.mrb[12].mxu0  ;;  %3341 = vmatprep.mubr.bf16.mxu1 %v12600_v13 }
 0x34c   :  { %v4961_v9 = vadd.f32 %v10325_v57, %v4960_v30  ;;  %v4962_v15 = vpop.f32.mrb[13].mxu0  ;;  %v4210_v31 = vpack.c.bf16 %v3870_v47, %v3868_v61 }
 0x34d   :  { %v4211_v62 = vpack.c.bf16 %v3871_v35, %v3869_v22  ;;  %v3073_v17 = vpop.f32.mrb[240].mxu1  ;;  %v4963_v28 = vpop.f32.mrb[14].mxu0 }
 0x34e   :  { %v5707_v1 = vmax.f32 %v4961_v9, 0.0  ;;  %v4964_v40 = vadd.f32 %v10325_v57, %v4963_v28  ;;  %v3075_v24 = vpop.f32.mrb[241].mxu1  ;;  %v4965_v43 = vpop.f32.mrb[15].mxu0  ;;  %v3074_v32 = vadd.f32 %v3073_v17, %v9851_v20 }
 0x34f   :  { %v3076_v2 = vadd.f32 %v3075_v24, %v9855_v4  ;;  %v3077_v36 = vpop.f32.mrb[242].mxu1  ;;  %8003 = vmatprep.mubr.msk.bf16.mxu0 %vm4419_vm1, %v4211_v62 }
 0x350   :  { %v10597_v49 = vmax.f32 %v10384_v48, %v5707_v1  ;;  %v10600_v3 = vadd.f32 %v10386_v38, %v5707_v1  ;;  %v5708_v11 = vmax.f32 %v4964_v40, 0.0  ;;  %v3079_v14 = vpop.f32.mrb[243].mxu1  ;;  %5175 = vmatmul.mubr.bf16.gmra.mrb[120].mxu0 %v4210_v31  ;;  %v3078_v61 = vadd.f32 %v3077_v36, %v9851_v20 }
 0x351   :  { %v3080_v22 = vadd.f32 %v3079_v14, %v9855_v4  ;;  %v3872_v48 = vmax.f32 %v3074_v32, 0.0  ;;  %v3873_v30 = vmax.f32 %v3076_v2, 0.0 }
 0x352   :  { %v10605_v47 = vmax.f32 %v10392_v55, %v5708_v11  ;;  %v10608_v35 = vadd.f32 %v10394_v46, %v5708_v11  ;;  %3342 = vmatmul.mubr.bf16.gmra.mrb[92].mxu1 %v10038_v60  ;;  %v3874_v9 = vmax.f32 %v3078_v61, 0.0 }
 0x353   :  { %v3875_v38 = vmax.f32 %v3080_v22, 0.0  ;;  %v4968_v15 = vpop.f32.mrb[16].mxu0  ;;  %3351 = vmatprep.mubr.bf16.mxu1 %v12600_v13 }
 0x354   :  { %v4969_v31 = vadd.f32 %v10325_v57, %v4968_v15  ;;  %v4970_v62 = vpop.f32.mrb[17].mxu0  ;;  %v4212_v17 = vpack.c.bf16 %v3874_v9, %v3872_v48 }
 0x355   :  { %v4213_v28 = vpack.c.bf16 %v3875_v38, %v3873_v30  ;;  %v3083_v1 = vpop.f32.mrb[244].mxu1  ;;  %v4971_v55 = vpop.f32.mrb[18].mxu0 }
 0x356   :  { %v5709_v40 = vmax.f32 %v4969_v31, 0.0  ;;  %v4972_v46 = vadd.f32 %v10325_v57, %v4971_v55  ;;  %v3085_v24 = vpop.f32.mrb[245].mxu1  ;;  %v4973_v43 = vpop.f32.mrb[19].mxu0  ;;  %v3084_v60 = vadd.f32 %v3083_v1, %v9851_v20 }
 0x357   :  { %v3086_v32 = vadd.f32 %v3085_v24, %v9855_v4  ;;  %v3087_v2 = vpop.f32.mrb[246].mxu1  ;;  %8004 = vmatprep.mubr.msk.bf16.mxu0 %vm4419_vm1, %v4213_v28 }
 0x358   :  { %v10618_v36 = vmax.f32 %v10405_v33, %v5709_v40  ;;  %v10621_v11 = vadd.f32 %v10407_v21, %v5709_v40  ;;  %v5710_v14 = vmax.f32 %v4972_v46, 0.0  ;;  %v3089_v61 = vpop.f32.mrb[247].mxu1  ;;  %5183 = vmatmul.mubr.bf16.gmra.mrb[124].mxu0 %v4212_v17  ;;  %v3088_v22 = vadd.f32 %v3087_v2, %v9851_v20 }
 0x359   :  { %v3090_v48 = vadd.f32 %v3089_v61, %v9855_v4  ;;  %v3876_v33 = vmax.f32 %v3084_v60, 0.0  ;;  %v3877_v38 = vmax.f32 %v3086_v32, 0.0 }
 0x35a   :  { %v10626_v30 = vmax.f32 %v10413_v27, %v5710_v14  ;;  %v10629_v9 = vadd.f32 %v10415_v50, %v5710_v14  ;;  %3352 = vmatmul.mubr.bf16.gmra.mrb[96].mxu1 %v10056_v58  ;;  %v3878_v15 = vmax.f32 %v3088_v22, 0.0 }
 0x35b   :  { %v3879_v21 = vmax.f32 %v3090_v48, 0.0  ;;  %v4976_v31 = vpop.f32.mrb[20].mxu0  ;;  %3361 = vmatprep.mubr.bf16.mxu1 %v12600_v13 }
 0x35c   :  { %v4977_v62 = vadd.f32 %v10325_v57, %v4976_v31  ;;  %v4978_v17 = vpop.f32.mrb[21].mxu0  ;;  %v4214_v28 = vpack.c.bf16 %v3878_v15, %v3876_v33  ;;  %v12617_v15 = vld [vmem:[#allocation24_spill] sm:$0xff] }
 0x35d   :  { %v4215_v1 = vpack.c.bf16 %v3879_v21, %v3877_v38  ;;  %v3093_v55 = vpop.f32.mrb[248].mxu1  ;;  %v4979_v27 = vpop.f32.mrb[22].mxu0 }
 0x35e   :  { %v5711_v40 = vmax.f32 %v4977_v62, 0.0  ;;  %v4980_v50 = vadd.f32 %v10325_v57, %v4979_v27  ;;  %v3095_v46 = vpop.f32.mrb[249].mxu1  ;;  %v4981_v24 = vpop.f32.mrb[23].mxu0  ;;  %v3094_v58 = vadd.f32 %v3093_v55, %v9851_v20 }
 0x35f   :  { %v3096_v43 = vadd.f32 %v3095_v46, %v9855_v4  ;;  %v3097_v60 = vpop.f32.mrb[250].mxu1  ;;  %8005 = vmatprep.mubr.msk.bf16.mxu0 %vm4419_vm1, %v4215_v1 }
 0x360   :  { %v10639_v32 = vmax.f32 %v10426_v37, %v5711_v40  ;;  %v10642_v2 = vadd.f32 %v10428_v0, %v5711_v40  ;;  %v5712_v14 = vmax.f32 %v4980_v50, 0.0  ;;  %v3099_v61 = vpop.f32.mrb[251].mxu1  ;;  %5191 = vmatmul.mubr.bf16.gmra.mrb[128].mxu0 %v4214_v28  ;;  %v3098_v22 = vadd.f32 %v3097_v60, %v9851_v20 }
 0x361   :  { %v3100_v48 = vadd.f32 %v3099_v61, %v9855_v4  ;;  %v3880_v37 = vmax.f32 %v3094_v58, 0.0  ;;  %v3881_v21 = vmax.f32 %v3096_v43, 0.0 }
 0x362   :  { %v10647_v33 = vmax.f32 %v10434_v5, %v5712_v14  ;;  %v10650_v38 = vadd.f32 %v10436_v12, %v5712_v14  ;;  %3362 = vmatmul.mubr.bf16.gmra.mrb[100].mxu1 %v12617_v15  ;;  %v3882_v31 = vmax.f32 %v3098_v22, 0.0  ;;  %v10658_v12 = vld [vmem:[%s12537_s6] ss:$0 sm:$0xff] }
 0x363   :  { %v3883_v0 = vmax.f32 %v3100_v48, 0.0  ;;  %v4984_v62 = vpop.f32.mrb[24].mxu0  ;;  %3371 = vmatprep.mubr.bf16.mxu1 %v12600_v13 }
 0x364   :  { %v4985_v17 = vadd.f32 %v10325_v57, %v4984_v62  ;;  %v4986_v28 = vpop.f32.mrb[25].mxu0  ;;  %v4216_v1 = vpack.c.bf16 %v3882_v31, %v3880_v37  ;;  %v12618_v31 = vld [vmem:[#allocation26_spill] sm:$0xff] }
 0x365   :  { %v4217_v55 = vpack.c.bf16 %v3883_v0, %v3881_v21  ;;  %v3103_v27 = vpop.f32.mrb[252].mxu1  ;;  %v4987_v5 = vpop.f32.mrb[26].mxu0 }
 0x366   :  { %v5713_v40 = vmax.f32 %v4985_v17, 0.0  ;;  %v4988_v50 = vadd.f32 %v10658_v12, %v4987_v5  ;;  %v3105_v46 = vpop.f32.mrb[253].mxu1  ;;  %v4989_v24 = vpop.f32.mrb[27].mxu0  ;;  %v3104_v58 = vadd.f32 %v3103_v27, %v9851_v20 }
 0x367   :  { %v3106_v43 = vadd.f32 %v3105_v46, %v9855_v4  ;;  %v3107_v57 = vpop.f32.mrb[254].mxu1  ;;  %8006 = vmatprep.mubr.msk.bf16.mxu0 %vm4419_vm1, %v4217_v55 }
 0x368   :  { %v10665_v60 = vmax.f32 %v10447_v16, %v5713_v40  ;;  %v10668_v14 = vadd.f32 %v10449_v34, %v5713_v40  ;;  %v5714_v61 = vmax.f32 %v4988_v50, 0.0  ;;  %v3109_v22 = vpop.f32.mrb[255].mxu1  ;;  %5199 = vmatmul.mubr.bf16.gmra.mrb[132].mxu0 %v4216_v1  ;;  %v3108_v48 = vadd.f32 %v3107_v57, %v9851_v20 }
 0x369   :  { %v3110_v15 = vadd.f32 %v3109_v22, %v9855_v4  ;;  %v3884_v16 = vmax.f32 %v3104_v58, 0.0  ;;  %v3885_v0 = vmax.f32 %v3106_v43, 0.0 }
 0x36a   :  { %v10673_v37 = vmax.f32 %v10455_v44, %v5714_v61  ;;  %v10676_v21 = vadd.f32 %v10457_v52, %v5714_v61  ;;  %3372 = vmatmul.mubr.bf16.gmra.mrb[104].mxu1 %v12618_v31  ;;  %v3886_v62 = vmax.f32 %v3108_v48, 0.0 }
 0x36b   :  { %v3887_v34 = vmax.f32 %v3110_v15, 0.0  ;;  %v4992_v17 = vpop.f32.mrb[28].mxu0  ;;  %3381 = vmatprep.mubr.bf16.mxu1 %v12600_v13 }
 0x36c   :  { %v4993_v28 = vadd.f32 %v10658_v12, %v4992_v17  ;;  %v4994_v1 = vpop.f32.mrb[29].mxu0  ;;  %v4218_v55 = vpack.c.bf16 %v3886_v62, %v3884_v16 }
 0x36d   :  { %v4219_v27 = vpack.c.bf16 %v3887_v34, %v3885_v0  ;;  %v3113_v5 = vpop.f32.mrb[0].mxu1  ;;  %v4995_v44 = vpop.f32.mrb[30].mxu0  ;;  %v12619_v0 = vld [vmem:[#allocation35_spill] sm:$0xff]  ;;  %v12620_v34 = vld [vmem:[#allocation25_spill] sm:$0xff] }
 0x36e   :  { %v5715_v40 = vmax.f32 %v4993_v28, 0.0  ;;  %v4996_v52 = vadd.f32 %v10658_v12, %v4995_v44  ;;  %v3115_v50 = vpop.f32.mrb[1].mxu1  ;;  %v4997_v46 = vpop.f32.mrb[31].mxu0  ;;  %v3114_v24 = vadd.f32 %v3113_v5, %v9851_v20 }
 0x36f   :  { %v3116_v58 = vadd.f32 %v3115_v50, %v9855_v4  ;;  %v3117_v43 = vpop.f32.mrb[2].mxu1  ;;  %8007 = vmatprep.mubr.msk.bf16.mxu0 %vm4419_vm1, %v4219_v27 }
 0x370   :  { %v10686_v57 = vmax.f32 %v10468_v53, %v5715_v40  ;;  %v10689_v61 = vadd.f32 %v10470_v19, %v5715_v40  ;;  %v5716_v22 = vmax.f32 %v4996_v52, 0.0  ;;  %v3119_v48 = vpop.f32.mrb[3].mxu1  ;;  %5207 = vmatmul.mubr.bf16.gmra.mrb[136].mxu0 %v4218_v55  ;;  %v3118_v15 = vadd.f32 %v3117_v43, %v9851_v20 }
 0x371   :  { %v3120_v31 = vadd.f32 %v3119_v48, %v9855_v4  ;;  %v3888_v53 = vmax.f32 %v3114_v24, 0.0  ;;  %v3889_v17 = vmax.f32 %v3116_v58, 0.0 }
 0x372   :  { %v10694_v16 = vmax.f32 %v10476_v42, %v5716_v22  ;;  %v10697_v62 = vadd.f32 %v12619_v0, %v5716_v22  ;;  %3382 = vmatmul.mubr.bf16.gmra.mrb[108].mxu1 %v12620_v34  ;;  %v3890_v28 = vmax.f32 %v3118_v15, 0.0 }
 0x373   :  { %v3891_v19 = vmax.f32 %v3120_v31, 0.0  ;;  %v5000_v1 = vpop.f32.mrb[32].mxu0  ;;  %3391 = vmatprep.mubr.bf16.mxu1 %v12600_v13 }
 0x374   :  { %v5001_v55 = vadd.f32 %v10658_v12, %v5000_v1  ;;  %v5002_v27 = vpop.f32.mrb[33].mxu0  ;;  %v4220_v5 = vpack.c.bf16 %v3890_v28, %v3888_v53 }
 0x375   :  { %v4221_v44 = vpack.c.bf16 %v3891_v19, %v3889_v17  ;;  %v3123_v40 = vpop.f32.mrb[4].mxu1  ;;  %v5003_v42 = vpop.f32.mrb[34].mxu0  ;;  %v12621_v17 = vld [vmem:[#allocation36_spill] sm:$0xff]  ;;  %v12622_v19 = vld [vmem:[#allocation37_spill] sm:$0xff] }
 0x376   :  { %v5717_v52 = vmax.f32 %v5001_v55, 0.0  ;;  %v5004_v50 = vadd.f32 %v10658_v12, %v5003_v42  ;;  %v3125_v46 = vpop.f32.mrb[5].mxu1  ;;  %v5005_v43 = vpop.f32.mrb[35].mxu0  ;;  %v3124_v24 = vadd.f32 %v3123_v40, %v9851_v20  ;;  %v12623_v55 = vld [vmem:[#allocation28_spill] sm:$0xff] }
 0x377   :  { %v3126_v58 = vadd.f32 %v3125_v46, %v9855_v4  ;;  %v3127_v22 = vpop.f32.mrb[6].mxu1  ;;  %8008 = vmatprep.mubr.msk.bf16.mxu0 %vm4419_vm1, %v4221_v44 }
 0x378   :  { %v10707_v48 = vmax.f32 %v10489_v7, %v5717_v52  ;;  %v10710_v15 = vadd.f32 %v10491_v18, %v5717_v52  ;;  %v5718_v31 = vmax.f32 %v5004_v50, 0.0  ;;  %v3129_v0 = vpop.f32.mrb[7].mxu1  ;;  %5215 = vmatmul.mubr.bf16.gmra.mrb[140].mxu0 %v4220_v5  ;;  %v3128_v34 = vadd.f32 %v3127_v22, %v9851_v20 }
 0x379   :  { %v3130_v53 = vadd.f32 %v3129_v0, %v9855_v4  ;;  %v3892_v7 = vmax.f32 %v3124_v24, 0.0  ;;  %v3893_v27 = vmax.f32 %v3126_v58, 0.0 }
 0x37a   :  { %v10715_v28 = vmax.f32 %v12621_v17, %v5718_v31  ;;  %v10718_v1 = vadd.f32 %v12622_v19, %v5718_v31  ;;  %3392 = vmatmul.mubr.bf16.gmra.mrb[112].mxu1 %v12623_v55  ;;  %v3894_v44 = vmax.f32 %v3128_v34, 0.0 }
 0x37b   :  { %v3895_v18 = vmax.f32 %v3130_v53, 0.0  ;;  %v5008_v40 = vpop.f32.mrb[36].mxu0  ;;  %3401 = vmatprep.mubr.bf16.mxu1 %v12600_v13 }
 0x37c   :  { %v5009_v5 = vadd.f32 %v10658_v12, %v5008_v40  ;;  %v5010_v42 = vpop.f32.mrb[37].mxu0  ;;  %v4222_v52 = vpack.c.bf16 %v3894_v44, %v3892_v7 }
 0x37d   :  { %v4223_v50 = vpack.c.bf16 %v3895_v18, %v3893_v27  ;;  %v3133_v46 = vpop.f32.mrb[8].mxu1  ;;  %v5011_v43 = vpop.f32.mrb[38].mxu0 }
 0x37e   :  { %v5719_v22 = vmax.f32 %v5009_v5, 0.0  ;;  %v5012_v31 = vadd.f32 %v10658_v12, %v5011_v43  ;;  %v3135_v0 = vpop.f32.mrb[9].mxu1  ;;  %v5013_v17 = vpop.f32.mrb[39].mxu0  ;;  %v3134_v24 = vadd.f32 %v3133_v46, %v9851_v20  ;;  %v12624_v5 = vld [vmem:[#allocation27_spill] sm:$0xff] }
 0x37f   :  { %v3136_v58 = vadd.f32 %v3135_v0, %v9855_v4  ;;  %v3137_v34 = vpop.f32.mrb[10].mxu1  ;;  %8009 = vmatprep.mubr.msk.bf16.mxu0 %vm4419_vm1, %v4223_v50 }
 0x380   :  { %v10728_v53 = vmax.f32 %v10516_v25, %v5719_v22  ;;  %v10731_v19 = vadd.f32 %v10518_v29, %v5719_v22  ;;  %v5720_v55 = vmax.f32 %v5012_v31, 0.0  ;;  %v3139_v7 = vpop.f32.mrb[11].mxu1  ;;  %5223 = vmatmul.mubr.bf16.gmra.mrb[144].mxu0 %v4222_v52  ;;  %v3138_v27 = vadd.f32 %v3137_v34, %v9851_v20 }
 0x381   :  { %v3140_v44 = vadd.f32 %v3139_v7, %v9855_v4  ;;  %v3896_v25 = vmax.f32 %v3134_v24, 0.0  ;;  %v3897_v42 = vmax.f32 %v3136_v58, 0.0 }
 0x382   :  { %v10736_v18 = vmax.f32 %v10524_v59, %v5720_v55  ;;  %v10739_v40 = vadd.f32 %v10526_v41, %v5720_v55  ;;  %3402 = vmatmul.mubr.bf16.gmra.mrb[116].mxu1 %v12624_v5  ;;  %v3898_v50 = vmax.f32 %v3138_v27, 0.0 }
 0x383   :  { %v3899_v29 = vmax.f32 %v3140_v44, 0.0  ;;  %v5016_v46 = vpop.f32.mrb[40].mxu0  ;;  %3411 = vmatprep.mubr.bf16.mxu1 %v12600_v13 }
 0x384   :  { %v5017_v52 = vadd.f32 %v10658_v12, %v5016_v46  ;;  %v5018_v43 = vpop.f32.mrb[41].mxu0  ;;  %v4224_v22 = vpack.c.bf16 %v3898_v50, %v3896_v25  ;;  %v12625_v46 = vld [vmem:[#allocation38_spill] sm:$0xff] }
 0x385   :  { %v4225_v31 = vpack.c.bf16 %v3899_v29, %v3897_v42  ;;  %v3143_v0 = vpop.f32.mrb[12].mxu1  ;;  %v5019_v59 = vpop.f32.mrb[42].mxu0  ;;  %v12626_v43 = vld [vmem:[#allocation30_spill] sm:$0xff] }
 0x386   :  { %v5721_v17 = vmax.f32 %v5017_v52, 0.0  ;;  %v5020_v41 = vadd.f32 %v10658_v12, %v5019_v59  ;;  %v3145_v34 = vpop.f32.mrb[13].mxu1  ;;  %v5021_v55 = vpop.f32.mrb[43].mxu0  ;;  %v3144_v24 = vadd.f32 %v3143_v0, %v9851_v20 }
 0x387   :  { %v3146_v58 = vadd.f32 %v3145_v34, %v9855_v4  ;;  %v3147_v7 = vpop.f32.mrb[14].mxu1  ;;  %8010 = vmatprep.mubr.msk.bf16.mxu0 %vm4419_vm1, %v4225_v31 }
 0x388   :  { %v10749_v27 = vmax.f32 %v10537_v6, %v5721_v17  ;;  %v10752_v44 = vadd.f32 %v10539_v8, %v5721_v17  ;;  %v5722_v5 = vmax.f32 %v5020_v41, 0.0  ;;  %v3149_v25 = vpop.f32.mrb[15].mxu1  ;;  %5231 = vmatmul.mubr.bf16.gmra.mrb[148].mxu0 %v4224_v22  ;;  %v3148_v42 = vadd.f32 %v3147_v7, %v9851_v20 }
 0x389   :  { %v3150_v50 = vadd.f32 %v3149_v25, %v9855_v4  ;;  %v3900_v6 = vmax.f32 %v3144_v24, 0.0  ;;  %v3901_v31 = vmax.f32 %v3146_v58, 0.0 }
 0x38a   :  { %v10757_v29 = vmax.f32 %v10543_v10, %v5722_v5  ;;  %v10760_v52 = vadd.f32 %v12625_v46, %v5722_v5  ;;  %3412 = vmatmul.mubr.bf16.gmra.mrb[120].mxu1 %v12626_v43  ;;  %v3902_v0 = vmax.f32 %v3148_v42, 0.0 }
 0x38b   :  { %v3903_v8 = vmax.f32 %v3150_v50, 0.0  ;;  %v5024_v59 = vpop.f32.mrb[44].mxu0  ;;  %3421 = vmatprep.mubr.bf16.mxu1 %v12600_v13 }
 0x38c   :  { %v5025_v22 = vadd.f32 %v10658_v12, %v5024_v59  ;;  %v5026_v17 = vpop.f32.mrb[45].mxu0  ;;  %v4226_v41 = vpack.c.bf16 %v3902_v0, %v3900_v6 }
 0x38d   :  { %v4227_v34 = vpack.c.bf16 %v3903_v8, %v3901_v31  ;;  %v3153_v55 = vpop.f32.mrb[16].mxu1  ;;  %v5027_v10 = vpop.f32.mrb[46].mxu0  ;;  %v12627_v17 = vld [vmem:[#allocation29_spill] sm:$0xff] }
 0x38e   :  { %v5723_v7 = vmax.f32 %v5025_v22, 0.0  ;;  %v5028_v5 = vadd.f32 %v10658_v12, %v5027_v10  ;;  %v3155_v25 = vpop.f32.mrb[17].mxu1  ;;  %v5029_v46 = vpop.f32.mrb[47].mxu0  ;;  %v3154_v24 = vadd.f32 %v3153_v55, %v9851_v20 }
 0x38f   :  { %v3156_v58 = vadd.f32 %v3155_v25, %v9855_v4  ;;  %v3157_v42 = vpop.f32.mrb[18].mxu1  ;;  %8011 = vmatprep.mubr.msk.bf16.mxu0 %vm4419_vm1, %v4227_v34 }
 0x390   :  { %v10770_v50 = vmax.f32 %v10555_v39, %v5723_v7  ;;  %v10773_v43 = vadd.f32 %v10558_v56, %v5723_v7  ;;  %v5724_v6 = vmax.f32 %v5028_v5, 0.0  ;;  %v3159_v31 = vpop.f32.mrb[19].mxu1  ;;  %5239 = vmatmul.mubr.bf16.gmra.mrb[152].mxu0 %v4226_v41  ;;  %v3158_v0 = vadd.f32 %v3157_v42, %v9851_v20 }
 0x391   :  { %v3160_v8 = vadd.f32 %v3159_v31, %v9855_v4  ;;  %v3904_v39 = vmax.f32 %v3154_v24, 0.0  ;;  %v3905_v34 = vmax.f32 %v3156_v58, 0.0  ;;  %v8755_v24 = vld [vmem:[%s12601_s4 + $0x44] ss:$8 sps:$4 sm:$0xff]  }
 0x392   :  { %v10778_v59 = vmax.f32 %v10563_v26, %v5724_v6  ;;  %v10781_v22 = vadd.f32 %v10566_v45, %v5724_v6  ;;  %3422 = vmatmul.mubr.bf16.gmra.mrb[124].mxu1 %v12627_v17  ;;  %v3906_v55 = vmax.f32 %v3158_v0, 0.0  ;;  %v8753_v45 = vld [vmem:[%s12601_s4 + $0x40] ss:$8 sps:$4 sm:$0xff]   ;;  %6449 = vmatprep.subr.bf16.mxu1 %v8755_v24 }
 0x393   :  { %v3907_v56 = vmax.f32 %v3160_v8, 0.0  ;;  %v5032_v10 = vpop.f32.mrb[48].mxu0  ;;  %3431 = vmatprep.mubr.bf16.mxu1 %v12600_v13  ;;  %6450 = vmatpush1.bf16.msra.mxu1 %v8753_v45 }
 0x394   :  { %v5033_v41 = vadd.f32 %v10658_v12, %v5032_v10  ;;  %v5034_v7 = vpop.f32.mrb[49].mxu0  ;;  %v4228_v5 = vpack.c.bf16 %v3906_v55, %v3904_v39 }
 0x395   :  { %v4229_v25 = vpack.c.bf16 %v3907_v56, %v3905_v34  ;;  %v3163_v46 = vpop.f32.mrb[20].mxu1  ;;  %v5035_v26 = vpop.f32.mrb[50].mxu0 }
 0x396   :  { %v5725_v58 = vmax.f32 %v5033_v41, 0.0  ;;  %v5036_v42 = vadd.f32 %v10658_v12, %v5035_v26  ;;  %v3165_v6 = vpop.f32.mrb[21].mxu1  ;;  %v5037_v31 = vpop.f32.mrb[51].mxu0  ;;  %v3164_v0 = vadd.f32 %v3163_v46, %v9851_v20  ;;  %v12628_v46 = vld [vmem:[#allocation32_spill] sm:$0xff] }
 0x397   :  { %v3166_v8 = vadd.f32 %v3165_v6, %v9855_v4  ;;  %v3167_v17 = vpop.f32.mrb[22].mxu1  ;;  %8012 = vmatprep.mubr.msk.bf16.mxu0 %vm4419_vm1, %v4229_v25 }
 0x398   :  { %v10797_v39 = vmax.f32 %v10576_v23, %v5725_v58  ;;  %v10800_v34 = vadd.f32 %v10579_v51, %v5725_v58  ;;  %v5726_v55 = vmax.f32 %v5036_v42, 0.0  ;;  %v3169_v56 = vpop.f32.mrb[23].mxu1  ;;  %5247 = vmatmul.mubr.bf16.gmra.mrb[156].mxu0 %v4228_v5  ;;  %v3168_v10 = vadd.f32 %v3167_v17, %v9851_v20 }
 0x399   :  { %v3170_v41 = vadd.f32 %v3169_v56, %v9855_v4  ;;  %v3908_v23 = vmax.f32 %v3164_v0, 0.0  ;;  %v3909_v26 = vmax.f32 %v3166_v8, 0.0 }
 0x39a   :  { %v10805_v7 = vmax.f32 %v10584_v54, %v5726_v55  ;;  %v10808_v25 = vadd.f32 %v10587_v63, %v5726_v55  ;;  %3432 = vmatmul.mubr.bf16.gmra.mrb[128].mxu1 %v12628_v46  ;;  %v3910_v51 = vmax.f32 %v3168_v10, 0.0 }
 0x39b   :  { %v3911_v24 = vmax.f32 %v3170_v41, 0.0  ;;  %v5040_v58 = vpop.f32.mrb[52].mxu0  ;;  %3441 = vmatprep.mubr.bf16.mxu1 %v12600_v13 }
 0x39c   :  { %v5041_v5 = vadd.f32 %v10658_v12, %v5040_v58  ;;  %v5042_v45 = vpop.f32.mrb[53].mxu0  ;;  %v4230_v42 = vpack.c.bf16 %v3910_v51, %v3908_v23 }
 0x39d   :  { %v4231_v6 = vpack.c.bf16 %v3911_v24, %v3909_v26  ;;  %v3173_v31 = vpop.f32.mrb[24].mxu1  ;;  %v5043_v54 = vpop.f32.mrb[54].mxu0  ;;  %v12629_v45 = vld [vmem:[#allocation31_spill] sm:$0xff] }
 0x39e   :  { %v5727_v17 = vmax.f32 %v5041_v5, 0.0  ;;  %v5044_v63 = vadd.f32 %v10658_v12, %v5043_v54  ;;  %v3175_v55 = vpop.f32.mrb[25].mxu1  ;;  %v5045_v56 = vpop.f32.mrb[55].mxu0  ;;  %v3174_v0 = vadd.f32 %v3173_v31, %v9851_v20 }
 0x39f   :  { %v3176_v8 = vadd.f32 %v3175_v55, %v9855_v4  ;;  %v3177_v10 = vpop.f32.mrb[26].mxu1  ;;  %8013 = vmatprep.mubr.msk.bf16.mxu0 %vm4419_vm1, %v4231_v6 }
 0x3a0   :  { %v10818_v41 = vmax.f32 %v10597_v49, %v5727_v17  ;;  %v10821_v46 = vadd.f32 %v10600_v3, %v5727_v17  ;;  %v5728_v23 = vmax.f32 %v5044_v63, 0.0  ;;  %v3179_v26 = vpop.f32.mrb[27].mxu1  ;;  %5255 = vmatmul.mubr.bf16.gmra.mrb[160].mxu0 %v4230_v42  ;;  %v3178_v51 = vadd.f32 %v3177_v10, %v9851_v20 }
 0x3a1   :  { %v3180_v24 = vadd.f32 %v3179_v26, %v9855_v4  ;;  %v3912_v49 = vmax.f32 %v3174_v0, 0.0  ;;  %v3913_v6 = vmax.f32 %v3176_v8, 0.0 }
 0x3a2   :  { %v10826_v58 = vmax.f32 %v10605_v47, %v5728_v23  ;;  %v10829_v5 = vadd.f32 %v10608_v35, %v5728_v23  ;;  %3442 = vmatmul.mubr.bf16.gmra.mrb[132].mxu1 %v12629_v45  ;;  %v3914_v31 = vmax.f32 %v3178_v51, 0.0 }
 0x3a3   :  { %v3915_v3 = vmax.f32 %v3180_v24, 0.0  ;;  %v5048_v54 = vpop.f32.mrb[56].mxu0  ;;  %3451 = vmatprep.mubr.bf16.mxu1 %v12600_v13 }
 0x3a4   :  { %v5049_v42 = vadd.f32 %v10658_v12, %v5048_v54  ;;  %v5050_v17 = vpop.f32.mrb[57].mxu0  ;;  %v4232_v63 = vpack.c.bf16 %v3914_v31, %v3912_v49 }
 0x3a5   :  { %v4233_v55 = vpack.c.bf16 %v3915_v3, %v3913_v6  ;;  %v3183_v56 = vpop.f32.mrb[28].mxu1  ;;  %v5051_v47 = vpop.f32.mrb[58].mxu0  ;;  %v12630_v17 = vld [vmem:[#allocation34_spill] sm:$0xff] }
 0x3a6   :  { %v5729_v10 = vmax.f32 %v5049_v42, 0.0  ;;  %v5052_v35 = vadd.f32 %v10658_v12, %v5051_v47  ;;  %v3185_v23 = vpop.f32.mrb[29].mxu1  ;;  %v5053_v26 = vpop.f32.mrb[59].mxu0  ;;  %v3184_v0 = vadd.f32 %v3183_v56, %v9851_v20 }
 0x3a7   :  { %v3186_v8 = vadd.f32 %v3185_v23, %v9855_v4  ;;  %v3187_v51 = vpop.f32.mrb[30].mxu1  ;;  %8014 = vmatprep.mubr.msk.bf16.mxu0 %vm4419_vm1, %v4233_v55 }
 0x3a8   :  { %v10839_v24 = vmax.f32 %v10618_v36, %v5729_v10  ;;  %v10842_v45 = vadd.f32 %v10621_v11, %v5729_v10  ;;  %v5730_v49 = vmax.f32 %v5052_v35, 0.0  ;;  %v3189_v6 = vpop.f32.mrb[31].mxu1  ;;  %5263 = vmatmul.mubr.bf16.gmra.mrb[164].mxu0 %v4232_v63  ;;  %v3188_v31 = vadd.f32 %v3187_v51, %v9851_v20 }
 0x3a9   :  { %v3190_v3 = vadd.f32 %v3189_v6, %v9855_v4  ;;  %v3916_v36 = vmax.f32 %v3184_v0, 0.0  ;;  %v3917_v55 = vmax.f32 %v3186_v8, 0.0 }
 0x3aa   :  { %v10847_v54 = vmax.f32 %v10626_v30, %v5730_v49  ;;  %v10850_v42 = vadd.f32 %v10629_v9, %v5730_v49  ;;  %3452 = vmatmul.mubr.bf16.gmra.mrb[136].mxu1 %v12630_v17  ;;  %v3918_v56 = vmax.f32 %v3188_v31, 0.0 }
 0x3ab   :  { %v3919_v11 = vmax.f32 %v3190_v3, 0.0  ;;  %v5056_v47 = vpop.f32.mrb[60].mxu0  ;;  %3461 = vmatprep.mubr.bf16.mxu1 %v12600_v13 }
 0x3ac   :  { %v5057_v63 = vadd.f32 %v10658_v12, %v5056_v47  ;;  %v5058_v10 = vpop.f32.mrb[61].mxu0  ;;  %v4234_v35 = vpack.c.bf16 %v3918_v56, %v3916_v36 }
 0x3ad   :  { %v4235_v23 = vpack.c.bf16 %v3919_v11, %v3917_v55  ;;  %v3193_v26 = vpop.f32.mrb[32].mxu1  ;;  %v5059_v30 = vpop.f32.mrb[62].mxu0  ;;  %v12631_v10 = vld [vmem:[#allocation33_spill] sm:$0xff] }
 0x3ae   :  { %v5731_v51 = vmax.f32 %v5057_v63, 0.0  ;;  %v5060_v9 = vadd.f32 %v10658_v12, %v5059_v30  ;;  %v3195_v49 = vpop.f32.mrb[33].mxu1  ;;  %v5061_v6 = vpop.f32.mrb[63].mxu0  ;;  %v3194_v0 = vadd.f32 %v3193_v26, %v9851_v20 }
 0x3af   :  { %v3196_v8 = vadd.f32 %v3195_v49, %v9855_v4  ;;  %v3197_v31 = vpop.f32.mrb[34].mxu1  ;;  %8015 = vmatprep.mubr.msk.bf16.mxu0 %vm4419_vm1, %v4235_v23 }
 0x3b0   :  { %v10860_v3 = vmax.f32 %v10639_v32, %v5731_v51  ;;  %v10863_v17 = vadd.f32 %v10642_v2, %v5731_v51  ;;  %v5732_v36 = vmax.f32 %v5060_v9, 0.0  ;;  %v3199_v55 = vpop.f32.mrb[35].mxu1  ;;  %5271 = vmatmul.mubr.bf16.gmra.mrb[168].mxu0 %v4234_v35  ;;  %v3198_v56 = vadd.f32 %v3197_v31, %v9851_v20 }
 0x3b1   :  { %v3200_v11 = vadd.f32 %v3199_v55, %v9855_v4  ;;  %v3920_v32 = vmax.f32 %v3194_v0, 0.0  ;;  %v3921_v23 = vmax.f32 %v3196_v8, 0.0 }
 0x3b2   :  { %v10868_v47 = vmax.f32 %v10647_v33, %v5732_v36  ;;  %v10871_v63 = vadd.f32 %v10650_v38, %v5732_v36  ;;  %3462 = vmatmul.mubr.bf16.gmra.mrb[140].mxu1 %v12631_v10  ;;  %v3922_v26 = vmax.f32 %v3198_v56, 0.0 }
 0x3b3   :  { %v3923_v2 = vmax.f32 %v3200_v11, 0.0  ;;  %v5064_v30 = vpop.f32.mrb[64].mxu0  ;;  %3471 = vmatprep.mubr.bf16.mxu1 %v12600_v13 }
 0x3b4   :  { %v5065_v35 = vadd.f32 %v10658_v12, %v5064_v30  ;;  %v5066_v51 = vpop.f32.mrb[65].mxu0  ;;  %v4236_v9 = vpack.c.bf16 %v3922_v26, %v3920_v32 }
 0x3b5   :  { %v4237_v49 = vpack.c.bf16 %v3923_v2, %v3921_v23  ;;  %v3203_v6 = vpop.f32.mrb[36].mxu1  ;;  %v5067_v33 = vpop.f32.mrb[66].mxu0  ;;  %v12632_v51 = vld [vmem:[#allocation3_spill] sm:$0xff] }
 0x3b6   :  { %v5733_v31 = vmax.f32 %v5065_v35, 0.0  ;;  %v5068_v38 = vadd.f32 %v10658_v12, %v5067_v33  ;;  %v3205_v36 = vpop.f32.mrb[37].mxu1  ;;  %v5069_v55 = vpop.f32.mrb[67].mxu0  ;;  %v3204_v0 = vadd.f32 %v3203_v6, %v9851_v20 }
 0x3b7   :  { %v3206_v8 = vadd.f32 %v3205_v36, %v9855_v4  ;;  %v3207_v56 = vpop.f32.mrb[38].mxu1  ;;  %8016 = vmatprep.mubr.msk.bf16.mxu0 %vm4419_vm1, %v4237_v49 }
 0x3b8   :  { %v10881_v11 = vmax.f32 %v10665_v60, %v5733_v31  ;;  %v10884_v10 = vadd.f32 %v10668_v14, %v5733_v31  ;;  %v5734_v32 = vmax.f32 %v5068_v38, 0.0  ;;  %v3209_v23 = vpop.f32.mrb[39].mxu1  ;;  %5279 = vmatmul.mubr.bf16.gmra.mrb[172].mxu0 %v4236_v9  ;;  %v3208_v26 = vadd.f32 %v3207_v56, %v9851_v20 }
 0x3b9   :  { %v3210_v2 = vadd.f32 %v3209_v23, %v9855_v4  ;;  %v3924_v60 = vmax.f32 %v3204_v0, 0.0  ;;  %v3925_v49 = vmax.f32 %v3206_v8, 0.0 }
 0x3ba   :  { %v10889_v30 = vmax.f32 %v10673_v37, %v5734_v32  ;;  %v10892_v35 = vadd.f32 %v10676_v21, %v5734_v32  ;;  %3472 = vmatmul.mubr.bf16.gmra.mrb[144].mxu1 %v12632_v51  ;;  %v3926_v6 = vmax.f32 %v3208_v26, 0.0 }
 0x3bb   :  { %v3927_v14 = vmax.f32 %v3210_v2, 0.0  ;;  %v5072_v33 = vpop.f32.mrb[68].mxu0  ;;  %3481 = vmatprep.mubr.bf16.mxu1 %v12600_v13 }
 0x3bc   :  { %v5073_v9 = vadd.f32 %v10658_v12, %v5072_v33  ;;  %v5074_v31 = vpop.f32.mrb[69].mxu0  ;;  %v4238_v38 = vpack.c.bf16 %v3926_v6, %v3924_v60 }
 0x3bd   :  { %v4239_v36 = vpack.c.bf16 %v3927_v14, %v3925_v49  ;;  %v3213_v55 = vpop.f32.mrb[40].mxu1  ;;  %v5075_v37 = vpop.f32.mrb[70].mxu0 }
 0x3be   :  { %v5735_v56 = vmax.f32 %v5073_v9, 0.0  ;;  %v3214_v21 = vadd.f32 %v3213_v55, %v9851_v20  ;;  %v5076_v32 = vadd.f32 %v10658_v12, %v5075_v37  ;;  %v3215_v23 = vpop.f32.mrb[41].mxu1  ;;  %v5077_v0 = vpop.f32.mrb[71].mxu0  ;;  %v12633_v55 = vld [vmem:[#allocation2_spill] sm:$0xff] }
 0x3bf   :  { %v3216_v8 = vadd.f32 %v3215_v23, %v9855_v4  ;;  %v3217_v26 = vpop.f32.mrb[42].mxu1  ;;  %8017 = vmatprep.mubr.msk.bf16.mxu0 %vm4419_vm1, %v4239_v36 }
 0x3c0   :  { %v10902_v2 = vmax.f32 %v10686_v57, %v5735_v56  ;;  %v5736_v51 = vmax.f32 %v5076_v32, 0.0  ;;  %v3218_v60 = vadd.f32 %v3217_v26, %v9851_v20  ;;  %v3219_v49 = vpop.f32.mrb[43].mxu1  ;;  %5287 = vmatmul.mubr.bf16.gmra.mrb[176].mxu0 %v4238_v38  ;;  %v10907_v14 = vadd.f32 %v10689_v61, %v5735_v56 }
 0x3c1   :  { %v3220_v6 = vadd.f32 %v3219_v49, %v9855_v4  ;;  %v3928_v33 = vmax.f32 %v3214_v21, 0.0  ;;  %v3929_v36 = vmax.f32 %v3216_v8, 0.0 }
 0x3c2   :  { %v10910_v9 = vmax.f32 %v10694_v16, %v5736_v51  ;;  %v3930_v31 = vmax.f32 %v3218_v60, 0.0  ;;  %3482 = vmatmul.mubr.bf16.gmra.mrb[148].mxu1 %v12633_v55  ;;  %v10914_v57 = vadd.f32 %v10697_v62, %v5736_v51 }
 0x3c3   :  { %v3931_v37 = vmax.f32 %v3220_v6, 0.0  ;;  %v5080_v32 = vpop.f32.mrb[72].mxu0  ;;  %3491 = vmatprep.mubr.bf16.mxu1 %v12600_v13 }
 0x3c4   :  { %v4240_v38 = vpack.c.bf16 %v3930_v31, %v3928_v33  ;;  %v5081_v23 = vadd.f32 %v10658_v12, %v5080_v32  ;;  %v5082_v61 = vpop.f32.mrb[73].mxu0 }
 0x3c5   :  { %v4241_v56 = vpack.c.bf16 %v3931_v37, %v3929_v36  ;;  %v3223_v21 = vpop.f32.mrb[44].mxu1  ;;  %v5083_v0 = vpop.f32.mrb[74].mxu0 }
 0x3c6   :  { %v5737_v16 = vmax.f32 %v5081_v23, 0.0  ;;  %v3224_v26 = vadd.f32 %v3223_v21, %v9851_v20  ;;  %v5084_v60 = vadd.f32 %v10658_v12, %v5083_v0  ;;  %v3225_v49 = vpop.f32.mrb[45].mxu1  ;;  %v5085_v62 = vpop.f32.mrb[75].mxu0  ;;  %v12634_v21 = vld [vmem:[#allocation5_spill] sm:$0xff] }
 0x3c7   :  { %v3226_v8 = vadd.f32 %v3225_v49, %v9855_v4  ;;  %v3227_v51 = vpop.f32.mrb[46].mxu1  ;;  %8018 = vmatprep.mubr.msk.bf16.mxu0 %vm4419_vm1, %v4241_v56 }
 0x3c8   :  { %v10923_v6 = vmax.f32 %v10707_v48, %v5737_v16  ;;  %v5738_v33 = vmax.f32 %v5084_v60, 0.0  ;;  %v3228_v31 = vadd.f32 %v3227_v51, %v9851_v20  ;;  %v3229_v55 = vpop.f32.mrb[47].mxu1  ;;  %5295 = vmatmul.mubr.bf16.gmra.mrb[180].mxu0 %v4240_v38  ;;  %v10928_v37 = vadd.f32 %v10710_v15, %v5737_v16 }
 0x3c9   :  { %v3230_v36 = vadd.f32 %v3229_v55, %v9855_v4  ;;  %v3932_v32 = vmax.f32 %v3224_v26, 0.0  ;;  %v3933_v56 = vmax.f32 %v3226_v8, 0.0 }
 0x3ca   :  { %v10931_v23 = vmax.f32 %v10715_v28, %v5738_v33  ;;  %v3934_v61 = vmax.f32 %v3228_v31, 0.0  ;;  %3492 = vmatmul.mubr.bf16.gmra.mrb[152].mxu1 %v12634_v21  ;;  %v10935_v48 = vadd.f32 %v10718_v1, %v5738_v33 }
 0x3cb   :  { %v3935_v0 = vmax.f32 %v3230_v36, 0.0  ;;  %v5088_v60 = vpop.f32.mrb[76].mxu0  ;;  %3501 = vmatprep.mubr.bf16.mxu1 %v12600_v13 }
 0x3cc   :  { %v4242_v38 = vpack.c.bf16 %v3934_v61, %v3932_v32  ;;  %v5089_v49 = vadd.f32 %v10658_v12, %v5088_v60  ;;  %v5090_v15 = vpop.f32.mrb[77].mxu0 }
 0x3cd   :  { %v4243_v16 = vpack.c.bf16 %v3935_v0, %v3933_v56  ;;  %v3233_v26 = vpop.f32.mrb[48].mxu1  ;;  %v5091_v62 = vpop.f32.mrb[78].mxu0 }
 0x3ce   :  { %v5739_v28 = vmax.f32 %v5089_v49, 0.0  ;;  %v3234_v51 = vadd.f32 %v3233_v26, %v9851_v20  ;;  %v5092_v31 = vadd.f32 %v10658_v12, %v5091_v62  ;;  %v3235_v55 = vpop.f32.mrb[49].mxu1  ;;  %v5093_v1 = vpop.f32.mrb[79].mxu0  ;;  %v12635_v26 = vld [vmem:[#allocation4_spill] sm:$0xff] }
 0x3cf   :  { %v3236_v8 = vadd.f32 %v3235_v55, %v9855_v4  ;;  %v3237_v33 = vpop.f32.mrb[50].mxu1  ;;  %8019 = vmatprep.mubr.msk.bf16.mxu0 %vm4419_vm1, %v4243_v16 }
 0x3d0   :  { %v10944_v36 = vmax.f32 %v10728_v53, %v5739_v28  ;;  %v5740_v32 = vmax.f32 %v5092_v31, 0.0  ;;  %v3238_v61 = vadd.f32 %v3237_v33, %v9851_v20  ;;  %v3239_v21 = vpop.f32.mrb[51].mxu1  ;;  %5303 = vmatmul.mubr.bf16.gmra.mrb[184].mxu0 %v4242_v38  ;;  %v10949_v0 = vadd.f32 %v10731_v19, %v5739_v28 }
 0x3d1   :  { %v3240_v56 = vadd.f32 %v3239_v21, %v9855_v4  ;;  %v3936_v60 = vmax.f32 %v3234_v51, 0.0  ;;  %v3937_v16 = vmax.f32 %v3236_v8, 0.0 }
 0x3d2   :  { %v10952_v49 = vmax.f32 %v10736_v18, %v5740_v32  ;;  %v3938_v15 = vmax.f32 %v3238_v61, 0.0  ;;  %3502 = vmatmul.mubr.bf16.gmra.mrb[156].mxu1 %v12635_v26  ;;  %v10956_v53 = vadd.f32 %v10739_v40, %v5740_v32 }
 0x3d3   :  { %v3939_v62 = vmax.f32 %v3240_v56, 0.0  ;;  %v5096_v31 = vpop.f32.mrb[80].mxu0  ;;  %3511 = vmatprep.mubr.bf16.mxu1 %v12600_v13 }
 0x3d4   :  { %v4244_v38 = vpack.c.bf16 %v3938_v15, %v3936_v60  ;;  %v5097_v55 = vadd.f32 %v10658_v12, %v5096_v31  ;;  %v5098_v19 = vpop.f32.mrb[81].mxu0 }
 0x3d5   :  { %v4245_v28 = vpack.c.bf16 %v3939_v62, %v3937_v16  ;;  %v3243_v51 = vpop.f32.mrb[52].mxu1  ;;  %v5099_v1 = vpop.f32.mrb[82].mxu0 }
 0x3d6   :  { %v5741_v18 = vmax.f32 %v5097_v55, 0.0  ;;  %v3244_v33 = vadd.f32 %v3243_v51, %v9851_v20  ;;  %v5100_v61 = vadd.f32 %v10658_v12, %v5099_v1  ;;  %v3245_v21 = vpop.f32.mrb[53].mxu1  ;;  %v5101_v40 = vpop.f32.mrb[83].mxu0  ;;  %v12636_v51 = vld [vmem:[#allocation7_spill] sm:$0xff] }
 0x3d7   :  { %v3246_v8 = vadd.f32 %v3245_v21, %v9855_v4  ;;  %v3247_v32 = vpop.f32.mrb[54].mxu1  ;;  %8020 = vmatprep.mubr.msk.bf16.mxu0 %vm4419_vm1, %v4245_v28 }
 0x3d8   :  { %v10965_v56 = vmax.f32 %v10749_v27, %v5741_v18  ;;  %v5742_v60 = vmax.f32 %v5100_v61, 0.0  ;;  %v3248_v15 = vadd.f32 %v3247_v32, %v9851_v20  ;;  %v3249_v26 = vpop.f32.mrb[55].mxu1  ;;  %5311 = vmatmul.mubr.bf16.gmra.mrb[188].mxu0 %v4244_v38  ;;  %v10970_v62 = vadd.f32 %v10752_v44, %v5741_v18 }
 0x3d9   :  { %v3250_v16 = vadd.f32 %v3249_v26, %v9855_v4  ;;  %v3940_v31 = vmax.f32 %v3244_v33, 0.0  ;;  %v3941_v28 = vmax.f32 %v3246_v8, 0.0 }
 0x3da   :  { %v10973_v55 = vmax.f32 %v10757_v29, %v5742_v60  ;;  %v3942_v19 = vmax.f32 %v3248_v15, 0.0  ;;  %3512 = vmatmul.mubr.bf16.gmra.mrb[160].mxu1 %v12636_v51  ;;  %v10977_v27 = vadd.f32 %v10760_v52, %v5742_v60 }
 0x3db   :  { %v3943_v1 = vmax.f32 %v3250_v16, 0.0  ;;  %v5104_v61 = vpop.f32.mrb[84].mxu0  ;;  %3521 = vmatprep.mubr.bf16.mxu1 %v12600_v13 }
 0x3dc   :  { %v4246_v38 = vpack.c.bf16 %v3942_v19, %v3940_v31  ;;  %v5105_v21 = vadd.f32 %v10658_v12, %v5104_v61  ;;  %v5106_v44 = vpop.f32.mrb[85].mxu0 }
 0x3dd   :  { %v4247_v18 = vpack.c.bf16 %v3943_v1, %v3941_v28  ;;  %v3253_v33 = vpop.f32.mrb[56].mxu1  ;;  %v5107_v40 = vpop.f32.mrb[86].mxu0 }
 0x3de   :  { %v5743_v29 = vmax.f32 %v5105_v21, 0.0  ;;  %v3254_v32 = vadd.f32 %v3253_v33, %v9851_v20  ;;  %v5108_v15 = vadd.f32 %v10658_v12, %v5107_v40  ;;  %v3255_v26 = vpop.f32.mrb[57].mxu1  ;;  %v5109_v52 = vpop.f32.mrb[87].mxu0  ;;  %v12637_v33 = vld [vmem:[#allocation6_spill] sm:$0xff] }
 0x3df   :  { %v3256_v8 = vadd.f32 %v3255_v26, %v9855_v4  ;;  %v3257_v60 = vpop.f32.mrb[58].mxu1  ;;  %8021 = vmatprep.mubr.msk.bf16.mxu0 %vm4419_vm1, %v4247_v18 }
 0x3e0   :  { %v10986_v16 = vmax.f32 %v10770_v50, %v5743_v29  ;;  %v5744_v31 = vmax.f32 %v5108_v15, 0.0  ;;  %v3258_v19 = vadd.f32 %v3257_v60, %v9851_v20  ;;  %v3259_v51 = vpop.f32.mrb[59].mxu1  ;;  %5319 = vmatmul.mubr.bf16.gmra.mrb[192].mxu0 %v4246_v38  ;;  %v10991_v1 = vadd.f32 %v10773_v43, %v5743_v29 }
 0x3e1   :  { %v3260_v28 = vadd.f32 %v3259_v51, %v9855_v4  ;;  %v3944_v61 = vmax.f32 %v3254_v32, 0.0  ;;  %v3945_v18 = vmax.f32 %v3256_v8, 0.0 }
 0x3e2   :  { %v10994_v21 = vmax.f32 %v10778_v59, %v5744_v31  ;;  %v3946_v44 = vmax.f32 %v3258_v19, 0.0  ;;  %3522 = vmatmul.mubr.bf16.gmra.mrb[164].mxu1 %v12637_v33  ;;  %v10998_v50 = vadd.f32 %v10781_v22, %v5744_v31 }
 0x3e3   :  { %v3947_v40 = vmax.f32 %v3260_v28, 0.0  ;;  %v5112_v15 = vpop.f32.mrb[88].mxu0  ;;  %3531 = vmatprep.mubr.bf16.mxu1 %v12600_v13 }
 0x3e4   :  { %v4248_v38 = vpack.c.bf16 %v3946_v44, %v3944_v61  ;;  %v5113_v26 = vadd.f32 %v10658_v12, %v5112_v15  ;;  %v5114_v43 = vpop.f32.mrb[89].mxu0 }
 0x3e5   :  { %v4249_v29 = vpack.c.bf16 %v3947_v40, %v3945_v18  ;;  %v3263_v32 = vpop.f32.mrb[60].mxu1  ;;  %v5115_v52 = vpop.f32.mrb[90].mxu0 }
 0x3e6   :  { %v5745_v59 = vmax.f32 %v5113_v26, 0.0  ;;  %v3264_v60 = vadd.f32 %v3263_v32, %v9851_v20  ;;  %v5116_v19 = vadd.f32 %v10658_v12, %v5115_v52  ;;  %v3265_v51 = vpop.f32.mrb[61].mxu1  ;;  %v5117_v22 = vpop.f32.mrb[91].mxu0  ;;  %v12638_v32 = vld [vmem:[#allocation9_spill] sm:$0xff] }
 0x3e7   :  { %v3266_v8 = vadd.f32 %v3265_v51, %v9855_v4  ;;  %v3267_v31 = vpop.f32.mrb[62].mxu1  ;;  %8022 = vmatprep.mubr.msk.bf16.mxu0 %vm4419_vm1, %v4249_v29 }
 0x3e8   :  { %v11007_v28 = vmax.f32 %v10797_v39, %v5745_v59  ;;  %v5746_v61 = vmax.f32 %v5116_v19, 0.0  ;;  %v3268_v44 = vadd.f32 %v3267_v31, %v9851_v20  ;;  %v3269_v33 = vpop.f32.mrb[63].mxu1  ;;  %5327 = vmatmul.mubr.bf16.gmra.mrb[196].mxu0 %v4248_v38  ;;  %v11012_v40 = vadd.f32 %v10800_v34, %v5745_v59 }
 0x3e9   :  { %v3270_v18 = vadd.f32 %v3269_v33, %v9855_v4  ;;  %v3948_v15 = vmax.f32 %v3264_v60, 0.0  ;;  %v3949_v29 = vmax.f32 %v3266_v8, 0.0 }
 0x3ea   :  { %v11015_v26 = vmax.f32 %v10805_v7, %v5746_v61  ;;  %v3950_v43 = vmax.f32 %v3268_v44, 0.0  ;;  %3532 = vmatmul.mubr.bf16.gmra.mrb[168].mxu1 %v12638_v32  ;;  %v11019_v39 = vadd.f32 %v10808_v25, %v5746_v61  ;;  %v11027_v25 = vld [vmem:[%s12537_s6] ss:$0 sm:$0xff] }
 0x3eb   :  { %v3951_v52 = vmax.f32 %v3270_v18, 0.0  ;;  %v5120_v19 = vpop.f32.mrb[92].mxu0  ;;  %3541 = vmatprep.mubr.bf16.mxu1 %v12600_v13 }
 0x3ec   :  { %v4250_v38 = vpack.c.bf16 %v3950_v43, %v3948_v15  ;;  %v5121_v51 = vadd.f32 %v10658_v12, %v5120_v19  ;;  %v5122_v34 = vpop.f32.mrb[93].mxu0 }
 0x3ed   :  { %v4251_v59 = vpack.c.bf16 %v3951_v52, %v3949_v29  ;;  %v3273_v60 = vpop.f32.mrb[64].mxu1  ;;  %v5123_v22 = vpop.f32.mrb[94].mxu0 }
 0x3ee   :  { %v5747_v7 = vmax.f32 %v5121_v51, 0.0  ;;  %v3274_v31 = vadd.f32 %v3273_v60, %v9851_v20  ;;  %v5124_v8 = vadd.f32 %v11027_v25, %v5123_v22  ;;  %v3275_v61 = vpop.f32.mrb[65].mxu1  ;;  %v5125_v44 = vpop.f32.mrb[95].mxu0  ;;  %v12639_v60 = vld [vmem:[#allocation8_spill] sm:$0xff] }
 0x3ef   :  { %v3276_v33 = vadd.f32 %v3275_v61, %v9855_v4  ;;  %v3277_v18 = vpop.f32.mrb[66].mxu1  ;;  %8023 = vmatprep.mubr.msk.bf16.mxu0 %vm4419_vm1, %v4251_v59 }
 0x3f0   :  { %v11033_v12 = vmax.f32 %v10818_v41, %v5747_v7  ;;  %v5748_v15 = vmax.f32 %v5124_v8, 0.0  ;;  %v3278_v43 = vadd.f32 %v3277_v18, %v9851_v20  ;;  %v3279_v32 = vpop.f32.mrb[67].mxu1  ;;  %5335 = vmatmul.mubr.bf16.gmra.mrb[200].mxu0 %v4250_v38  ;;  %v11038_v52 = vadd.f32 %v10821_v46, %v5747_v7 }
 0x3f1   :  { %v3280_v29 = vadd.f32 %v3279_v32, %v9855_v4  ;;  %v3952_v19 = vmax.f32 %v3274_v31, 0.0  ;;  %v3953_v59 = vmax.f32 %v3276_v33, 0.0 }
 0x3f2   :  { %v11041_v51 = vmax.f32 %v10826_v58, %v5748_v15  ;;  %v3954_v34 = vmax.f32 %v3278_v43, 0.0  ;;  %3542 = vmatmul.mubr.bf16.gmra.mrb[172].mxu1 %v12639_v60  ;;  %v11045_v41 = vadd.f32 %v10829_v5, %v5748_v15 }
 0x3f3   :  { %v3955_v22 = vmax.f32 %v3280_v29, 0.0  ;;  %v5128_v8 = vpop.f32.mrb[96].mxu0  ;;  %3551 = vmatprep.mubr.bf16.mxu1 %v12600_v13 }
 0x3f4   :  { %v4252_v38 = vpack.c.bf16 %v3954_v34, %v3952_v19  ;;  %v5129_v61 = vadd.f32 %v11027_v25, %v5128_v8  ;;  %v5130_v46 = vpop.f32.mrb[97].mxu0 }
 0x3f5   :  { %v4253_v7 = vpack.c.bf16 %v3955_v22, %v3953_v59  ;;  %v3283_v31 = vpop.f32.mrb[68].mxu1  ;;  %v5131_v44 = vpop.f32.mrb[98].mxu0 }
 0x3f6   :  { %v5749_v58 = vmax.f32 %v5129_v61, 0.0  ;;  %v3284_v18 = vadd.f32 %v3283_v31, %v9851_v20  ;;  %v5132_v43 = vadd.f32 %v11027_v25, %v5131_v44  ;;  %v3285_v32 = vpop.f32.mrb[69].mxu1  ;;  %v5133_v5 = vpop.f32.mrb[99].mxu0  ;;  %v12640_v31 = vld [vmem:[#allocation11_spill] sm:$0xff] }
 0x3f7   :  { %v3286_v33 = vadd.f32 %v3285_v32, %v9855_v4  ;;  %v3287_v15 = vpop.f32.mrb[70].mxu1  ;;  %8024 = vmatprep.mubr.msk.bf16.mxu0 %vm4419_vm1, %v4253_v7 }
 0x3f8   :  { %v11054_v29 = vmax.f32 %v10839_v24, %v5749_v58  ;;  %v5750_v19 = vmax.f32 %v5132_v43, 0.0  ;;  %v3288_v34 = vadd.f32 %v3287_v15, %v9851_v20  ;;  %v3289_v60 = vpop.f32.mrb[71].mxu1  ;;  %5343 = vmatmul.mubr.bf16.gmra.mrb[204].mxu0 %v4252_v38  ;;  %v11059_v22 = vadd.f32 %v10842_v45, %v5749_v58 }
 0x3f9   :  { %v3290_v59 = vadd.f32 %v3289_v60, %v9855_v4  ;;  %v3956_v8 = vmax.f32 %v3284_v18, 0.0  ;;  %v3957_v7 = vmax.f32 %v3286_v33, 0.0 }
 0x3fa   :  { %v11062_v61 = vmax.f32 %v10847_v54, %v5750_v19  ;;  %v3958_v46 = vmax.f32 %v3288_v34, 0.0  ;;  %3552 = vmatmul.mubr.bf16.gmra.mrb[176].mxu1 %v12640_v31  ;;  %v11066_v24 = vadd.f32 %v10850_v42, %v5750_v19 }
 0x3fb   :  { %v3959_v44 = vmax.f32 %v3290_v59, 0.0  ;;  %v5136_v43 = vpop.f32.mrb[100].mxu0  ;;  %3561 = vmatprep.mubr.bf16.mxu1 %v12600_v13 }
 0x3fc   :  { %v4254_v38 = vpack.c.bf16 %v3958_v46, %v3956_v8  ;;  %v5137_v32 = vadd.f32 %v11027_v25, %v5136_v43  ;;  %v5138_v45 = vpop.f32.mrb[101].mxu0 }
 0x3fd   :  { %v4255_v58 = vpack.c.bf16 %v3959_v44, %v3957_v7  ;;  %v3293_v18 = vpop.f32.mrb[72].mxu1  ;;  %v5139_v5 = vpop.f32.mrb[102].mxu0 }
 0x3fe   :  { %v5751_v54 = vmax.f32 %v5137_v32, 0.0  ;;  %v3294_v15 = vadd.f32 %v3293_v18, %v9851_v20  ;;  %v5140_v34 = vadd.f32 %v11027_v25, %v5139_v5  ;;  %v3295_v60 = vpop.f32.mrb[73].mxu1  ;;  %v5141_v42 = vpop.f32.mrb[103].mxu0  ;;  %v12641_v18 = vld [vmem:[#allocation10_spill] sm:$0xff] }
 0x3ff   :  { %v3296_v33 = vadd.f32 %v3295_v60, %v9855_v4  ;;  %v3297_v19 = vpop.f32.mrb[74].mxu1  ;;  %8025 = vmatprep.mubr.msk.bf16.mxu0 %vm4419_vm1, %v4255_v58 }
 0x400   :  { %v11075_v59 = vmax.f32 %v10860_v3, %v5751_v54  ;;  %v5752_v8 = vmax.f32 %v5140_v34, 0.0  ;;  %v3298_v46 = vadd.f32 %v3297_v19, %v9851_v20  ;;  %v3299_v31 = vpop.f32.mrb[75].mxu1  ;;  %5351 = vmatmul.mubr.bf16.gmra.mrb[208].mxu0 %v4254_v38  ;;  %v11080_v44 = vadd.f32 %v10863_v17, %v5751_v54 }
 0x401   :  { %v3300_v7 = vadd.f32 %v3299_v31, %v9855_v4  ;;  %v3960_v43 = vmax.f32 %v3294_v15, 0.0  ;;  %v3961_v58 = vmax.f32 %v3296_v33, 0.0 }
 0x402   :  { %v11083_v32 = vmax.f32 %v10868_v47, %v5752_v8  ;;  %v3962_v45 = vmax.f32 %v3298_v46, 0.0  ;;  %3562 = vmatmul.mubr.bf16.gmra.mrb[180].mxu1 %v12641_v18  ;;  %v11087_v3 = vadd.f32 %v10871_v63, %v5752_v8  ;;  %v8756_v47 = vld [vmem:[%s12601_s4 + $0x50] ss:$8 sps:$4 sm:$0xff]   ;;  %v8758_v63 = vld [vmem:[%s12601_s4 + $0x54] ss:$8 sps:$4 sm:$0xff]  }
 0x403   :  { %v3963_v5 = vmax.f32 %v3300_v7, 0.0  ;;  %v5144_v34 = vpop.f32.mrb[104].mxu0  ;;  %3571 = vmatprep.mubr.bf16.mxu1 %v12600_v13  ;;  %6451 = vmatprep.subr.bf16.mxu1 %v8758_v63 }
 0x404   :  { %v4256_v38 = vpack.c.bf16 %v3962_v45, %v3960_v43  ;;  %v5145_v60 = vadd.f32 %v11027_v25, %v5144_v34  ;;  %v5146_v17 = vpop.f32.mrb[105].mxu0  ;;  %6452 = vmatpush1.bf16.msra.mxu1 %v8756_v47 }
 0x405   :  { %v4257_v54 = vpack.c.bf16 %v3963_v5, %v3961_v58  ;;  %v3303_v15 = vpop.f32.mrb[76].mxu1  ;;  %v5147_v42 = vpop.f32.mrb[106].mxu0 }
 0x406   :  { %v5753_v33 = vmax.f32 %v5145_v60, 0.0  ;;  %v3304_v19 = vadd.f32 %v3303_v15, %v9851_v20  ;;  %v5148_v8 = vadd.f32 %v11027_v25, %v5147_v42  ;;  %v3305_v46 = vpop.f32.mrb[77].mxu1  ;;  %v5149_v31 = vpop.f32.mrb[107].mxu0  ;;  %v12642_v42 = vld [vmem:[#allocation13_spill] sm:$0xff] }
 0x407   :  { %v3306_v7 = vadd.f32 %v3305_v46, %v9855_v4  ;;  %v3307_v43 = vpop.f32.mrb[78].mxu1  ;;  %8026 = vmatprep.mubr.msk.bf16.mxu0 %vm4419_vm1, %v4257_v54 }
 0x408   :  { %v11102_v45 = vmax.f32 %v10881_v11, %v5753_v33  ;;  %v5754_v18 = vmax.f32 %v5148_v8, 0.0  ;;  %v3308_v58 = vadd.f32 %v3307_v43, %v9851_v20  ;;  %v3309_v5 = vpop.f32.mrb[79].mxu1  ;;  %5359 = vmatmul.mubr.bf16.gmra.mrb[212].mxu0 %v4256_v38  ;;  %v11107_v60 = vadd.f32 %v10884_v10, %v5753_v33 }
 0x409   :  { %v3310_v34 = vadd.f32 %v3309_v5, %v9855_v4  ;;  %v3964_v17 = vmax.f32 %v3304_v19, 0.0  ;;  %v3965_v63 = vmax.f32 %v3306_v7, 0.0 }
 0x40a   :  { %v11110_v15 = vmax.f32 %v10889_v30, %v5754_v18  ;;  %v3966_v54 = vmax.f32 %v3308_v58, 0.0  ;;  %3572 = vmatmul.mubr.bf16.gmra.mrb[184].mxu1 %v12642_v42  ;;  %v11114_v11 = vadd.f32 %v10892_v35, %v5754_v18 }
 0x40b   :  { %v3967_v8 = vmax.f32 %v3310_v34, 0.0  ;;  %v5152_v46 = vpop.f32.mrb[108].mxu0  ;;  %3581 = vmatprep.mubr.bf16.mxu1 %v12600_v13 }
 0x40c   :  { %v4258_v38 = vpack.c.bf16 %v3966_v54, %v3964_v17  ;;  %v5153_v47 = vadd.f32 %v11027_v25, %v5152_v46  ;;  %v5154_v10 = vpop.f32.mrb[109].mxu0 }
 0x40d   :  { %v4259_v33 = vpack.c.bf16 %v3967_v8, %v3965_v63  ;;  %v3313_v19 = vpop.f32.mrb[80].mxu1  ;;  %v5155_v31 = vpop.f32.mrb[110].mxu0  ;;  %v12643_v10 = vld [vmem:[#allocation12_spill] sm:$0xff] }
 0x40e   :  { %v5755_v30 = vmax.f32 %v5153_v47, 0.0  ;;  %v5156_v43 = vadd.f32 %v11027_v25, %v5155_v31  ;;  %v3315_v58 = vpop.f32.mrb[81].mxu1  ;;  %v5157_v5 = vpop.f32.mrb[111].mxu0  ;;  %v3314_v35 = vadd.f32 %v3313_v19, %v9851_v20 }
 0x40f   :  { %v3316_v7 = vadd.f32 %v3315_v58, %v9855_v4  ;;  %v3317_v18 = vpop.f32.mrb[82].mxu1  ;;  %8027 = vmatprep.mubr.msk.bf16.mxu0 %vm4419_vm1, %v4259_v33 }
 0x410   :  { %v11123_v34 = vmax.f32 %v10902_v2, %v5755_v30  ;;  %v11126_v17 = vadd.f32 %v10907_v14, %v5755_v30  ;;  %v5756_v54 = vmax.f32 %v5156_v43, 0.0  ;;  %v3319_v42 = vpop.f32.mrb[83].mxu1  ;;  %5367 = vmatmul.mubr.bf16.gmra.mrb[216].mxu0 %v4258_v38  ;;  %v3318_v63 = vadd.f32 %v3317_v18, %v9851_v20 }
 0x411   :  { %v3320_v8 = vadd.f32 %v3319_v42, %v9855_v4  ;;  %v3968_v2 = vmax.f32 %v3314_v35, 0.0  ;;  %v3969_v33 = vmax.f32 %v3316_v7, 0.0 }
 0x412   :  { %v11131_v46 = vmax.f32 %v10910_v9, %v5756_v54  ;;  %v11134_v47 = vadd.f32 %v10914_v57, %v5756_v54  ;;  %3582 = vmatmul.mubr.bf16.gmra.mrb[188].mxu1 %v12643_v10  ;;  %v3970_v19 = vmax.f32 %v3318_v63, 0.0 }
 0x413   :  { %v3971_v14 = vmax.f32 %v3320_v8, 0.0  ;;  %v5160_v31 = vpop.f32.mrb[112].mxu0  ;;  %3591 = vmatprep.mubr.bf16.mxu1 %v12600_v13 }
 0x414   :  { %v5161_v38 = vadd.f32 %v11027_v25, %v5160_v31  ;;  %v5162_v30 = vpop.f32.mrb[113].mxu0  ;;  %v4260_v43 = vpack.c.bf16 %v3970_v19, %v3968_v2 }
 0x415   :  { %v4261_v58 = vpack.c.bf16 %v3971_v14, %v3969_v33  ;;  %v3323_v5 = vpop.f32.mrb[84].mxu1  ;;  %v5163_v9 = vpop.f32.mrb[114].mxu0  ;;  %v12644_v30 = vld [vmem:[#allocation15_spill] sm:$0xff] }
 0x416   :  { %v5757_v18 = vmax.f32 %v5161_v38, 0.0  ;;  %v5164_v57 = vadd.f32 %v11027_v25, %v5163_v9  ;;  %v3325_v54 = vpop.f32.mrb[85].mxu1  ;;  %v5165_v42 = vpop.f32.mrb[115].mxu0  ;;  %v3324_v35 = vadd.f32 %v3323_v5, %v9851_v20 }
 0x417   :  { %v3326_v7 = vadd.f32 %v3325_v54, %v9855_v4  ;;  %v3327_v63 = vpop.f32.mrb[86].mxu1  ;;  %8028 = vmatprep.mubr.msk.bf16.mxu0 %vm4419_vm1, %v4261_v58 }
 0x418   :  { %v11144_v8 = vmax.f32 %v10923_v6, %v5757_v18  ;;  %v11147_v10 = vadd.f32 %v10928_v37, %v5757_v18  ;;  %v5758_v2 = vmax.f32 %v5164_v57, 0.0  ;;  %v3329_v33 = vpop.f32.mrb[87].mxu1  ;;  %5375 = vmatmul.mubr.bf16.gmra.mrb[220].mxu0 %v4260_v43  ;;  %v3328_v19 = vadd.f32 %v3327_v63, %v9851_v20 }
 0x419   :  { %v3330_v14 = vadd.f32 %v3329_v33, %v9855_v4  ;;  %v3972_v6 = vmax.f32 %v3324_v35, 0.0  ;;  %v3973_v58 = vmax.f32 %v3326_v7, 0.0 }
 0x41a   :  { %v11152_v31 = vmax.f32 %v10931_v23, %v5758_v2  ;;  %v11155_v38 = vadd.f32 %v10935_v48, %v5758_v2  ;;  %3592 = vmatmul.mubr.bf16.gmra.mrb[192].mxu1 %v12644_v30  ;;  %v3974_v5 = vmax.f32 %v3328_v19, 0.0 }
 0x41b   :  { %v3975_v37 = vmax.f32 %v3330_v14, 0.0  ;;  %v5168_v9 = vpop.f32.mrb[116].mxu0  ;;  %3601 = vmatprep.mubr.bf16.mxu1 %v12600_v13 }
 0x41c   :  { %v5169_v43 = vadd.f32 %v11027_v25, %v5168_v9  ;;  %v5170_v18 = vpop.f32.mrb[117].mxu0  ;;  %v4262_v57 = vpack.c.bf16 %v3974_v5, %v3972_v6 }
 0x41d   :  { %v4263_v54 = vpack.c.bf16 %v3975_v37, %v3973_v58  ;;  %v3333_v42 = vpop.f32.mrb[88].mxu1  ;;  %v5171_v23 = vpop.f32.mrb[118].mxu0  ;;  %v12645_v18 = vld [vmem:[#allocation14_spill] sm:$0xff] }
 0x41e   :  { %v5759_v63 = vmax.f32 %v5169_v43, 0.0  ;;  %v5172_v48 = vadd.f32 %v11027_v25, %v5171_v23  ;;  %v3335_v2 = vpop.f32.mrb[89].mxu1  ;;  %v5173_v33 = vpop.f32.mrb[119].mxu0  ;;  %v3334_v35 = vadd.f32 %v3333_v42, %v9851_v20 }
 0x41f   :  { %v3336_v7 = vadd.f32 %v3335_v2, %v9855_v4  ;;  %v3337_v19 = vpop.f32.mrb[90].mxu1  ;;  %8029 = vmatprep.mubr.msk.bf16.mxu0 %vm4419_vm1, %v4263_v54 }
 0x420   :  { %v11165_v14 = vmax.f32 %v10944_v36, %v5759_v63  ;;  %v11168_v30 = vadd.f32 %v10949_v0, %v5759_v63  ;;  %v5760_v6 = vmax.f32 %v5172_v48, 0.0  ;;  %v3339_v58 = vpop.f32.mrb[91].mxu1  ;;  %5383 = vmatmul.mubr.bf16.gmra.mrb[224].mxu0 %v4262_v57  ;;  %v3338_v5 = vadd.f32 %v3337_v19, %v9851_v20 }
 0x421   :  { %v3340_v37 = vadd.f32 %v3339_v58, %v9855_v4  ;;  %v3976_v36 = vmax.f32 %v3334_v35, 0.0  ;;  %v3977_v54 = vmax.f32 %v3336_v7, 0.0 }
 0x422   :  { %v11173_v9 = vmax.f32 %v10952_v49, %v5760_v6  ;;  %v11176_v43 = vadd.f32 %v10956_v53, %v5760_v6  ;;  %3602 = vmatmul.mubr.bf16.gmra.mrb[196].mxu1 %v12645_v18  ;;  %v3978_v42 = vmax.f32 %v3338_v5, 0.0 }
 0x423   :  { %v3979_v0 = vmax.f32 %v3340_v37, 0.0  ;;  %v5176_v23 = vpop.f32.mrb[120].mxu0  ;;  %3611 = vmatprep.mubr.bf16.mxu1 %v12600_v13 }
 0x424   :  { %v5177_v57 = vadd.f32 %v11027_v25, %v5176_v23  ;;  %v5178_v63 = vpop.f32.mrb[121].mxu0  ;;  %v4264_v48 = vpack.c.bf16 %v3978_v42, %v3976_v36 }
 0x425   :  { %v4265_v2 = vpack.c.bf16 %v3979_v0, %v3977_v54  ;;  %v3343_v33 = vpop.f32.mrb[92].mxu1  ;;  %v5179_v49 = vpop.f32.mrb[122].mxu0  ;;  %v12646_v63 = vld [vmem:[#allocation17_spill] sm:$0xff] }
 0x426   :  { %v5761_v19 = vmax.f32 %v5177_v57, 0.0  ;;  %v5180_v53 = vadd.f32 %v11027_v25, %v5179_v49  ;;  %v3345_v6 = vpop.f32.mrb[93].mxu1  ;;  %v5181_v58 = vpop.f32.mrb[123].mxu0  ;;  %v3344_v35 = vadd.f32 %v3343_v33, %v9851_v20 }
 0x427   :  { %v3346_v7 = vadd.f32 %v3345_v6, %v9855_v4  ;;  %v3347_v5 = vpop.f32.mrb[94].mxu1  ;;  %8030 = vmatprep.mubr.msk.bf16.mxu0 %vm4419_vm1, %v4265_v2 }
 0x428   :  { %v11186_v37 = vmax.f32 %v10965_v56, %v5761_v19  ;;  %v11189_v18 = vadd.f32 %v10970_v62, %v5761_v19  ;;  %v5762_v36 = vmax.f32 %v5180_v53, 0.0  ;;  %v3349_v54 = vpop.f32.mrb[95].mxu1  ;;  %5391 = vmatmul.mubr.bf16.gmra.mrb[228].mxu0 %v4264_v48  ;;  %v3348_v42 = vadd.f32 %v3347_v5, %v9851_v20 }
 0x429   :  { %v3350_v0 = vadd.f32 %v3349_v54, %v9855_v4  ;;  %v3980_v56 = vmax.f32 %v3344_v35, 0.0  ;;  %v3981_v2 = vmax.f32 %v3346_v7, 0.0 }
 0x42a   :  { %v11194_v23 = vmax.f32 %v10973_v55, %v5762_v36  ;;  %v11197_v57 = vadd.f32 %v10977_v27, %v5762_v36  ;;  %3612 = vmatmul.mubr.bf16.gmra.mrb[200].mxu1 %v12646_v63  ;;  %v3982_v33 = vmax.f32 %v3348_v42, 0.0 }
 0x42b   :  { %v3983_v62 = vmax.f32 %v3350_v0, 0.0  ;;  %v5184_v49 = vpop.f32.mrb[124].mxu0  ;;  %3621 = vmatprep.mubr.bf16.mxu1 %v12600_v13 }
 0x42c   :  { %v5185_v48 = vadd.f32 %v11027_v25, %v5184_v49  ;;  %v5186_v19 = vpop.f32.mrb[125].mxu0  ;;  %v4266_v53 = vpack.c.bf16 %v3982_v33, %v3980_v56 }
 0x42d   :  { %v4267_v6 = vpack.c.bf16 %v3983_v62, %v3981_v2  ;;  %v3353_v58 = vpop.f32.mrb[96].mxu1  ;;  %v5187_v55 = vpop.f32.mrb[126].mxu0  ;;  %v12647_v19 = vld [vmem:[#allocation16_spill] sm:$0xff] }
 0x42e   :  { %v5763_v5 = vmax.f32 %v5185_v48, 0.0  ;;  %v5188_v27 = vadd.f32 %v11027_v25, %v5187_v55  ;;  %v3355_v36 = vpop.f32.mrb[97].mxu1  ;;  %v5189_v54 = vpop.f32.mrb[127].mxu0  ;;  %v3354_v35 = vadd.f32 %v3353_v58, %v9851_v20 }
 0x42f   :  { %v3356_v7 = vadd.f32 %v3355_v36, %v9855_v4  ;;  %v3357_v42 = vpop.f32.mrb[98].mxu1  ;;  %8031 = vmatprep.mubr.msk.bf16.mxu0 %vm4419_vm1, %v4267_v6 }
 0x430   :  { %v11207_v0 = vmax.f32 %v10986_v16, %v5763_v5  ;;  %v11210_v63 = vadd.f32 %v10991_v1, %v5763_v5  ;;  %v5764_v56 = vmax.f32 %v5188_v27, 0.0  ;;  %v3359_v2 = vpop.f32.mrb[99].mxu1  ;;  %5399 = vmatmul.mubr.bf16.gmra.mrb[232].mxu0 %v4266_v53  ;;  %v3358_v33 = vadd.f32 %v3357_v42, %v9851_v20 }
 0x431   :  { %v3360_v62 = vadd.f32 %v3359_v2, %v9855_v4  ;;  %v3984_v16 = vmax.f32 %v3354_v35, 0.0  ;;  %v3985_v6 = vmax.f32 %v3356_v7, 0.0 }
 0x432   :  { %v11215_v49 = vmax.f32 %v10994_v21, %v5764_v56  ;;  %v11218_v48 = vadd.f32 %v10998_v50, %v5764_v56  ;;  %3622 = vmatmul.mubr.bf16.gmra.mrb[204].mxu1 %v12647_v19  ;;  %v3986_v58 = vmax.f32 %v3358_v33, 0.0 }
 0x433   :  { %v3987_v1 = vmax.f32 %v3360_v62, 0.0  ;;  %v5192_v55 = vpop.f32.mrb[128].mxu0  ;;  %3631 = vmatprep.mubr.bf16.mxu1 %v12600_v13 }
 0x434   :  { %v5193_v53 = vadd.f32 %v11027_v25, %v5192_v55  ;;  %v5194_v5 = vpop.f32.mrb[129].mxu0  ;;  %v4268_v27 = vpack.c.bf16 %v3986_v58, %v3984_v16 }
 0x435   :  { %v4269_v36 = vpack.c.bf16 %v3987_v1, %v3985_v6  ;;  %v3363_v54 = vpop.f32.mrb[100].mxu1  ;;  %v5195_v21 = vpop.f32.mrb[130].mxu0  ;;  %v12648_v5 = vld [vmem:[#allocation19_spill] sm:$0xff] }
 0x436   :  { %v5765_v42 = vmax.f32 %v5193_v53, 0.0  ;;  %v5196_v50 = vadd.f32 %v11027_v25, %v5195_v21  ;;  %v3365_v56 = vpop.f32.mrb[101].mxu1  ;;  %v5197_v2 = vpop.f32.mrb[131].mxu0  ;;  %v3364_v35 = vadd.f32 %v3363_v54, %v9851_v20 }
 0x437   :  { %v3366_v7 = vadd.f32 %v3365_v56, %v9855_v4  ;;  %v3367_v33 = vpop.f32.mrb[102].mxu1  ;;  %8032 = vmatprep.mubr.msk.bf16.mxu0 %vm4419_vm1, %v4269_v36 }
 0x438   :  { %v11228_v62 = vmax.f32 %v11007_v28, %v5765_v42  ;;  %v11231_v19 = vadd.f32 %v11012_v40, %v5765_v42  ;;  %v5766_v16 = vmax.f32 %v5196_v50, 0.0  ;;  %v3369_v6 = vpop.f32.mrb[103].mxu1  ;;  %5407 = vmatmul.mubr.bf16.gmra.mrb[236].mxu0 %v4268_v27  ;;  %v3368_v58 = vadd.f32 %v3367_v33, %v9851_v20 }
 0x439   :  { %v3370_v1 = vadd.f32 %v3369_v6, %v9855_v4  ;;  %v3988_v28 = vmax.f32 %v3364_v35, 0.0  ;;  %v3989_v36 = vmax.f32 %v3366_v7, 0.0 }
 0x43a   :  { %v11236_v55 = vmax.f32 %v11015_v26, %v5766_v16  ;;  %v11239_v53 = vadd.f32 %v11019_v39, %v5766_v16  ;;  %3632 = vmatmul.mubr.bf16.gmra.mrb[208].mxu1 %v12648_v5  ;;  %v3990_v54 = vmax.f32 %v3368_v58, 0.0 }
 0x43b   :  { %v3991_v40 = vmax.f32 %v3370_v1, 0.0  ;;  %v5200_v21 = vpop.f32.mrb[132].mxu0  ;;  %3641 = vmatprep.mubr.bf16.mxu1 %v12600_v13 }
 0x43c   :  { %v5201_v27 = vadd.f32 %v11027_v25, %v5200_v21  ;;  %v5202_v42 = vpop.f32.mrb[133].mxu0  ;;  %v4270_v50 = vpack.c.bf16 %v3990_v54, %v3988_v28 }
 0x43d   :  { %v4271_v56 = vpack.c.bf16 %v3991_v40, %v3989_v36  ;;  %v3373_v2 = vpop.f32.mrb[104].mxu1  ;;  %v5203_v26 = vpop.f32.mrb[134].mxu0  ;;  %v12649_v42 = vld [vmem:[#allocation18_spill] sm:$0xff] }
 0x43e   :  { %v5767_v33 = vmax.f32 %v5201_v27, 0.0  ;;  %v5204_v39 = vadd.f32 %v11027_v25, %v5203_v26  ;;  %v3375_v16 = vpop.f32.mrb[105].mxu1  ;;  %v5205_v6 = vpop.f32.mrb[135].mxu0  ;;  %v3374_v35 = vadd.f32 %v3373_v2, %v9851_v20 }
 0x43f   :  { %v3376_v7 = vadd.f32 %v3375_v16, %v9855_v4  ;;  %v3377_v58 = vpop.f32.mrb[106].mxu1  ;;  %8033 = vmatprep.mubr.msk.bf16.mxu0 %vm4419_vm1, %v4271_v56 }
 0x440   :  { %v11249_v1 = vmax.f32 %v11033_v12, %v5767_v33  ;;  %v11252_v5 = vadd.f32 %v11038_v52, %v5767_v33  ;;  %v5768_v28 = vmax.f32 %v5204_v39, 0.0  ;;  %v3379_v36 = vpop.f32.mrb[107].mxu1  ;;  %5415 = vmatmul.mubr.bf16.gmra.mrb[240].mxu0 %v4270_v50  ;;  %v3378_v54 = vadd.f32 %v3377_v58, %v9851_v20 }
 0x441   :  { %v3380_v40 = vadd.f32 %v3379_v36, %v9855_v4  ;;  %v3992_v12 = vmax.f32 %v3374_v35, 0.0  ;;  %v3993_v56 = vmax.f32 %v3376_v7, 0.0 }
 0x442   :  { %v11257_v21 = vmax.f32 %v11041_v51, %v5768_v28  ;;  %v11260_v27 = vadd.f32 %v11045_v41, %v5768_v28  ;;  %3642 = vmatmul.mubr.bf16.gmra.mrb[212].mxu1 %v12649_v42  ;;  %v3994_v2 = vmax.f32 %v3378_v54, 0.0 }
 0x443   :  { %v3995_v52 = vmax.f32 %v3380_v40, 0.0  ;;  %v5208_v26 = vpop.f32.mrb[136].mxu0  ;;  %3651 = vmatprep.mubr.bf16.mxu1 %v12600_v13 }
 0x444   :  { %v5209_v50 = vadd.f32 %v11027_v25, %v5208_v26  ;;  %v5210_v33 = vpop.f32.mrb[137].mxu0  ;;  %v4272_v39 = vpack.c.bf16 %v3994_v2, %v3992_v12 }
 0x445   :  { %v4273_v16 = vpack.c.bf16 %v3995_v52, %v3993_v56  ;;  %v3383_v6 = vpop.f32.mrb[108].mxu1  ;;  %v5211_v51 = vpop.f32.mrb[138].mxu0  ;;  %v12650_v33 = vld [vmem:[#allocation21_spill] sm:$0xff] }
 0x446   :  { %v5769_v58 = vmax.f32 %v5209_v50, 0.0  ;;  %v5212_v41 = vadd.f32 %v11027_v25, %v5211_v51  ;;  %v3385_v28 = vpop.f32.mrb[109].mxu1  ;;  %v5213_v36 = vpop.f32.mrb[139].mxu0  ;;  %v3384_v35 = vadd.f32 %v3383_v6, %v9851_v20 }
 0x447   :  { %v3386_v7 = vadd.f32 %v3385_v28, %v9855_v4  ;;  %v3387_v54 = vpop.f32.mrb[110].mxu1  ;;  %8034 = vmatprep.mubr.msk.bf16.mxu0 %vm4419_vm1, %v4273_v16 }
 0x448   :  { %v11270_v40 = vmax.f32 %v11054_v29, %v5769_v58  ;;  %v11273_v42 = vadd.f32 %v11059_v22, %v5769_v58  ;;  %v5770_v12 = vmax.f32 %v5212_v41, 0.0  ;;  %v3389_v56 = vpop.f32.mrb[111].mxu1  ;;  %5423 = vmatmul.mubr.bf16.gmra.mrb[244].mxu0 %v4272_v39  ;;  %v3388_v2 = vadd.f32 %v3387_v54, %v9851_v20 }
 0x449   :  { %v3390_v52 = vadd.f32 %v3389_v56, %v9855_v4  ;;  %v3996_v29 = vmax.f32 %v3384_v35, 0.0  ;;  %v3997_v16 = vmax.f32 %v3386_v7, 0.0 }
 0x44a   :  { %v11278_v26 = vmax.f32 %v11062_v61, %v5770_v12  ;;  %v11281_v50 = vadd.f32 %v11066_v24, %v5770_v12  ;;  %3652 = vmatmul.mubr.bf16.gmra.mrb[216].mxu1 %v12650_v33  ;;  %v3998_v6 = vmax.f32 %v3388_v2, 0.0 }
 0x44b   :  { %v3999_v22 = vmax.f32 %v3390_v52, 0.0  ;;  %v5216_v51 = vpop.f32.mrb[140].mxu0  ;;  %3661 = vmatprep.mubr.bf16.mxu1 %v12600_v13 }
 0x44c   :  { %v5217_v39 = vadd.f32 %v11027_v25, %v5216_v51  ;;  %v5218_v58 = vpop.f32.mrb[141].mxu0  ;;  %v4274_v41 = vpack.c.bf16 %v3998_v6, %v3996_v29 }
 0x44d   :  { %v4275_v28 = vpack.c.bf16 %v3999_v22, %v3997_v16  ;;  %v3393_v36 = vpop.f32.mrb[112].mxu1  ;;  %v5219_v61 = vpop.f32.mrb[142].mxu0  ;;  %v12651_v58 = vld [vmem:[#allocation20_spill] sm:$0xff] }
 0x44e   :  { %v5771_v54 = vmax.f32 %v5217_v39, 0.0  ;;  %v5220_v24 = vadd.f32 %v11027_v25, %v5219_v61  ;;  %v3395_v12 = vpop.f32.mrb[113].mxu1  ;;  %v5221_v56 = vpop.f32.mrb[143].mxu0  ;;  %v3394_v35 = vadd.f32 %v3393_v36, %v9851_v20 }
 0x44f   :  { %v3396_v7 = vadd.f32 %v3395_v12, %v9855_v4  ;;  %v3397_v2 = vpop.f32.mrb[114].mxu1  ;;  %8035 = vmatprep.mubr.msk.bf16.mxu0 %vm4419_vm1, %v4275_v28 }
 0x450   :  { %v11291_v52 = vmax.f32 %v11075_v59, %v5771_v54  ;;  %v11294_v33 = vadd.f32 %v11080_v44, %v5771_v54  ;;  %v5772_v29 = vmax.f32 %v5220_v24, 0.0  ;;  %v3399_v16 = vpop.f32.mrb[115].mxu1  ;;  %5431 = vmatmul.mubr.bf16.gmra.mrb[248].mxu0 %v4274_v41  ;;  %v3398_v6 = vadd.f32 %v3397_v2, %v9851_v20 }
 0x451   :  { %v3400_v22 = vadd.f32 %v3399_v16, %v9855_v4  ;;  %v4000_v59 = vmax.f32 %v3394_v35, 0.0  ;;  %v4001_v28 = vmax.f32 %v3396_v7, 0.0 }
 0x452   :  { %v11299_v51 = vmax.f32 %v11083_v32, %v5772_v29  ;;  %v11302_v39 = vadd.f32 %v11087_v3, %v5772_v29  ;;  %3662 = vmatmul.mubr.bf16.gmra.mrb[220].mxu1 %v12651_v58  ;;  %v4002_v36 = vmax.f32 %v3398_v6, 0.0 }
 0x453   :  { %v4003_v44 = vmax.f32 %v3400_v22, 0.0  ;;  %v5224_v61 = vpop.f32.mrb[144].mxu0  ;;  %6473 = vmatprep.mubr.bf16.mxu1 %v12600_v13 }
 0x454   :  { %v5225_v41 = vadd.f32 %v11027_v25, %v5224_v61  ;;  %v5226_v54 = vpop.f32.mrb[145].mxu0  ;;  %v4276_v24 = vpack.c.bf16 %v4002_v36, %v4000_v59 }
 0x455   :  { %v4277_v12 = vpack.c.bf16 %v4003_v44, %v4001_v28  ;;  %v3403_v56 = vpop.f32.mrb[116].mxu1  ;;  %v5227_v32 = vpop.f32.mrb[146].mxu0 }
 0x456   :  { %v5773_v2 = vmax.f32 %v5225_v41, 0.0  ;;  %v5228_v3 = vadd.f32 %v11027_v25, %v5227_v32  ;;  %v3405_v29 = vpop.f32.mrb[117].mxu1  ;;  %v5229_v16 = vpop.f32.mrb[147].mxu0  ;;  %v3404_v35 = vadd.f32 %v3403_v56, %v9851_v20 }
 0x457   :  { %v3406_v7 = vadd.f32 %v3405_v29, %v9855_v4  ;;  %v3407_v6 = vpop.f32.mrb[118].mxu1  ;;  %8036 = vmatprep.mubr.msk.bf16.mxu0 %vm4419_vm1, %v4277_v12 }
 0x458   :  { %v11312_v22 = vmax.f32 %v11102_v45, %v5773_v2  ;;  %v11315_v58 = vadd.f32 %v11107_v60, %v5773_v2  ;;  %v5774_v59 = vmax.f32 %v5228_v3, 0.0  ;;  %v3409_v28 = vpop.f32.mrb[119].mxu1  ;;  %5439 = vmatmul.mubr.bf16.gmra.mrb[252].mxu0 %v4276_v24  ;;  %v3408_v36 = vadd.f32 %v3407_v6, %v9851_v20 }
 0x459   :  { %v3410_v44 = vadd.f32 %v3409_v28, %v9855_v4  ;;  %v4004_v54 = vmax.f32 %v3404_v35, 0.0  ;;  %v4005_v12 = vmax.f32 %v3406_v7, 0.0 }
 0x45a   :  { %v11320_v61 = vmax.f32 %v11110_v15, %v5774_v59  ;;  %v11323_v41 = vadd.f32 %v11114_v11, %v5774_v59  ;;  %v4006_v45 = vmax.f32 %v3408_v36, 0.0 }
 0x45b   :  { %v4007_v56 = vmax.f32 %v3410_v44, 0.0  ;;  %v5232_v32 = vpop.f32.mrb[148].mxu0 }
 0x45c   :  { %v5233_v60 = vadd.f32 %v11027_v25, %v5232_v32  ;;  %v5234_v2 = vpop.f32.mrb[149].mxu0  ;;  %v4278_v3 = vpack.c.bf16 %v4006_v45, %v4004_v54 }
 0x45d   :  { %v4279_v24 = vpack.c.bf16 %v4007_v56, %v4005_v12  ;;  %v3413_v29 = vpop.f32.mrb[120].mxu1  ;;  %v5235_v16 = vpop.f32.mrb[150].mxu0 }
 0x45e   :  { %v5775_v6 = vmax.f32 %v5233_v60, 0.0  ;;  %v5236_v28 = vadd.f32 %v11027_v25, %v5235_v16  ;;  %v3415_v15 = vpop.f32.mrb[121].mxu1  ;;  %v5237_v13 = vpop.f32.mrb[151].mxu0  ;;  %v3414_v11 = vadd.f32 %v3413_v29, %v9851_v20 }
 0x45f   :  { %v3416_v35 = vadd.f32 %v3415_v15, %v9855_v4  ;;  %v3417_v7 = vpop.f32.mrb[122].mxu1  ;;  %8037 = vmatprep.mubr.msk.bf16.mxu0 %vm4419_vm1, %v4279_v24 }
 0x460   :  { %v11331_v59 = vmax.f32 %v11123_v34, %v5775_v6  ;;  %v11334_v36 = vadd.f32 %v11126_v17, %v5775_v6  ;;  %v5776_v44 = vmax.f32 %v5236_v28, 0.0  ;;  %v3419_v54 = vpop.f32.mrb[123].mxu1  ;;  %5447 = vmatmul.mubr.bf16.gmra.mrb[0].mxu0 %v4278_v3  ;;  %v3418_v12 = vadd.f32 %v3417_v7, %v9851_v20 }
 0x461   :  { %v3420_v13 = vadd.f32 %v3419_v54, %v9855_v4  ;;  %v4008_v32 = vmax.f32 %v3414_v11, 0.0  ;;  %v4009_v60 = vmax.f32 %v3416_v35, 0.0 }
 0x462   :  { %v11339_v45 = vmax.f32 %v11131_v46, %v5776_v44  ;;  %v11342_v56 = vadd.f32 %v11134_v47, %v5776_v44  ;;  %v4010_v34 = vmax.f32 %v3418_v12, 0.0 }
 0x463   :  { %v4011_v2 = vmax.f32 %v3420_v13, 0.0  ;;  %v5240_v24 = vpop.f32.mrb[152].mxu0 }
 0x464   :  { %v5241_v17 = vadd.f32 %v11027_v25, %v5240_v24  ;;  %v5242_v29 = vpop.f32.mrb[153].mxu0  ;;  %v4280_v16 = vpack.c.bf16 %v4010_v34, %v4008_v32 }
 0x465   :  { %v4281_v3 = vpack.c.bf16 %v4011_v2, %v4009_v60  ;;  %v3423_v6 = vpop.f32.mrb[124].mxu1  ;;  %v5243_v28 = vpop.f32.mrb[154].mxu0 }
 0x466   :  { %v5777_v15 = vmax.f32 %v5241_v17, 0.0  ;;  %v5244_v7 = vadd.f32 %v11027_v25, %v5243_v28  ;;  %v3425_v46 = vpop.f32.mrb[125].mxu1  ;;  %v5245_v54 = vpop.f32.mrb[155].mxu0  ;;  %v3424_v47 = vadd.f32 %v3423_v6, %v9851_v20 }
 0x467   :  { %v3426_v11 = vadd.f32 %v3425_v46, %v9855_v4  ;;  %v3427_v35 = vpop.f32.mrb[126].mxu1  ;;  %8038 = vmatprep.mubr.msk.bf16.mxu0 %vm4419_vm1, %v4281_v3 }
 0x468   :  { %v11350_v44 = vmax.f32 %v11144_v8, %v5777_v15  ;;  %v11353_v12 = vadd.f32 %v11147_v10, %v5777_v15  ;;  %v5778_v13 = vmax.f32 %v5244_v7, 0.0  ;;  %v3429_v32 = vpop.f32.mrb[127].mxu1  ;;  %5455 = vmatmul.mubr.bf16.gmra.mrb[4].mxu0 %v4280_v16  ;;  %v3428_v60 = vadd.f32 %v3427_v35, %v9851_v20 }
 0x469   :  { %v3430_v34 = vadd.f32 %v3429_v32, %v9855_v4  ;;  %v4012_v17 = vmax.f32 %v3424_v47, 0.0  ;;  %v4013_v29 = vmax.f32 %v3426_v11, 0.0 }
 0x46a   :  { %v11358_v2 = vmax.f32 %v11152_v31, %v5778_v13  ;;  %v11361_v24 = vadd.f32 %v11155_v38, %v5778_v13  ;;  %v4014_v8 = vmax.f32 %v3428_v60, 0.0 }
 0x46b   :  { %v4015_v3 = vmax.f32 %v3430_v34, 0.0  ;;  %v5248_v6 = vpop.f32.mrb[156].mxu0 }
 0x46c   :  { %v5249_v10 = vadd.f32 %v11027_v25, %v5248_v6  ;;  %v5250_v28 = vpop.f32.mrb[157].mxu0  ;;  %v4282_v15 = vpack.c.bf16 %v4014_v8, %v4012_v17 }
 0x46d   :  { %v4283_v16 = vpack.c.bf16 %v4015_v3, %v4013_v29  ;;  %v3433_v7 = vpop.f32.mrb[128].mxu1  ;;  %v5251_v46 = vpop.f32.mrb[158].mxu0 }
 0x46e   :  { %v5779_v54 = vmax.f32 %v5249_v10, 0.0  ;;  %v5252_v35 = vadd.f32 %v11027_v25, %v5251_v46  ;;  %v3435_v31 = vpop.f32.mrb[129].mxu1  ;;  %v5253_v32 = vpop.f32.mrb[159].mxu0  ;;  %v3434_v38 = vadd.f32 %v3433_v7, %v9851_v20 }
 0x46f   :  { %v3436_v47 = vadd.f32 %v3435_v31, %v9855_v4  ;;  %v3437_v11 = vpop.f32.mrb[130].mxu1  ;;  %8039 = vmatprep.mubr.msk.bf16.mxu0 %vm4419_vm1, %v4283_v16 }
 0x470   :  { %v11369_v13 = vmax.f32 %v11165_v14, %v5779_v54  ;;  %v11372_v60 = vadd.f32 %v11168_v30, %v5779_v54  ;;  %v5780_v34 = vmax.f32 %v5252_v35, 0.0  ;;  %v3439_v17 = vpop.f32.mrb[131].mxu1  ;;  %5463 = vmatmul.mubr.bf16.gmra.mrb[8].mxu0 %v4282_v15  ;;  %v3438_v29 = vadd.f32 %v3437_v11, %v9851_v20  ;;  %v8759_v14 = vld [vmem:[%s12601_s4 + $0x60] ss:$8 sps:$4 sm:$0xff]   ;;  %v8761_v30 = vld [vmem:[%s12601_s4 + $0x64] ss:$8 sps:$4 sm:$0xff]  }
 0x471   :  { %v3440_v8 = vadd.f32 %v3439_v17, %v9855_v4  ;;  %v4016_v10 = vmax.f32 %v3434_v38, 0.0  ;;  %v4017_v28 = vmax.f32 %v3436_v47, 0.0  ;;  %6453 = vmatprep.subr.bf16.mxu1 %v8761_v30 }
 0x472   :  { %v11377_v3 = vmax.f32 %v11173_v9, %v5780_v34  ;;  %v11380_v6 = vadd.f32 %v11176_v43, %v5780_v34  ;;  %v4018_v15 = vmax.f32 %v3438_v29, 0.0  ;;  %6454 = vmatpush1.bf16.msra.mxu1 %v8759_v14 }
 0x473   :  { %v4019_v16 = vmax.f32 %v3440_v8, 0.0  ;;  %v5256_v7 = vpop.f32.mrb[160].mxu0 }
 0x474   :  { %v5257_v46 = vadd.f32 %v11027_v25, %v5256_v7  ;;  %v5258_v9 = vpop.f32.mrb[161].mxu0  ;;  %v4284_v54 = vpack.c.bf16 %v4018_v15, %v4016_v10 }
 0x475   :  { %v4285_v43 = vpack.c.bf16 %v4019_v16, %v4017_v28  ;;  %v3443_v35 = vpop.f32.mrb[132].mxu1  ;;  %v5259_v31 = vpop.f32.mrb[162].mxu0 }
 0x476   :  { %v5781_v32 = vmax.f32 %v5257_v46, 0.0  ;;  %v5260_v11 = vadd.f32 %v11027_v25, %v5259_v31  ;;  %v3445_v34 = vpop.f32.mrb[133].mxu1  ;;  %v5261_v17 = vpop.f32.mrb[163].mxu0  ;;  %v3444_v38 = vadd.f32 %v3443_v35, %v9851_v20 }
 0x477   :  { %v3446_v47 = vadd.f32 %v3445_v34, %v9855_v4  ;;  %v3447_v29 = vpop.f32.mrb[134].mxu1  ;;  %8040 = vmatprep.mubr.msk.bf16.mxu0 %vm4419_vm1, %v4285_v43 }
 0x478   :  { %v11394_v8 = vmax.f32 %v11186_v37, %v5781_v32  ;;  %v11397_v30 = vadd.f32 %v11189_v18, %v5781_v32  ;;  %v5782_v10 = vmax.f32 %v5260_v11, 0.0  ;;  %v3449_v14 = vpop.f32.mrb[135].mxu1  ;;  %5471 = vmatmul.mubr.bf16.gmra.mrb[12].mxu0 %v4284_v54  ;;  %v3448_v25 = vadd.f32 %v3447_v29, %v9851_v20  ;;  %v11410_v18 = vld [vmem:[%s12537_s6] ss:$0 sm:$0xff] }
 0x479   :  { %v3450_v28 = vadd.f32 %v3449_v14, %v9855_v4  ;;  %v4020_v7 = vmax.f32 %v3444_v38, 0.0  ;;  %v4021_v46 = vmax.f32 %v3446_v47, 0.0 }
 0x47a   :  { %v11402_v15 = vmax.f32 %v11194_v23, %v5782_v10  ;;  %v11405_v16 = vadd.f32 %v11197_v57, %v5782_v10  ;;  %v4022_v37 = vmax.f32 %v3448_v25, 0.0 }
 0x47b   :  { %v4023_v9 = vmax.f32 %v3450_v28, 0.0  ;;  %v5264_v43 = vpop.f32.mrb[164].mxu0 }
 0x47c   :  { %v5265_v54 = vadd.f32 %v11410_v18, %v5264_v43  ;;  %v5266_v35 = vpop.f32.mrb[165].mxu0  ;;  %v4286_v31 = vpack.c.bf16 %v4022_v37, %v4020_v7 }
 0x47d   :  { %v4287_v32 = vpack.c.bf16 %v4023_v9, %v4021_v46  ;;  %v3453_v23 = vpop.f32.mrb[136].mxu1  ;;  %v5267_v11 = vpop.f32.mrb[166].mxu0 }
 0x47e   :  { %v5783_v34 = vmax.f32 %v5265_v54, 0.0  ;;  %v5268_v57 = vadd.f32 %v11410_v18, %v5267_v11  ;;  %v3455_v17 = vpop.f32.mrb[137].mxu1  ;;  %v5269_v38 = vpop.f32.mrb[167].mxu0  ;;  %v3454_v47 = vadd.f32 %v3453_v23, %v9851_v20 }
 0x47f   :  { %v3456_v29 = vadd.f32 %v3455_v17, %v9855_v4  ;;  %v3457_v10 = vpop.f32.mrb[138].mxu1  ;;  %8041 = vmatprep.mubr.msk.bf16.mxu0 %vm4419_vm1, %v4287_v32 }
 0x480   :  { %v11418_v14 = vmax.f32 %v11207_v0, %v5783_v34  ;;  %v11421_v25 = vadd.f32 %v11210_v63, %v5783_v34  ;;  %v5784_v28 = vmax.f32 %v5268_v57, 0.0  ;;  %v3459_v7 = vpop.f32.mrb[139].mxu1  ;;  %5479 = vmatmul.mubr.bf16.gmra.mrb[16].mxu0 %v4286_v31  ;;  %v3458_v46 = vadd.f32 %v3457_v10, %v9851_v20 }
 0x481   :  { %v3460_v37 = vadd.f32 %v3459_v7, %v9855_v4  ;;  %v4024_v54 = vmax.f32 %v3454_v47, 0.0  ;;  %v4025_v35 = vmax.f32 %v3456_v29, 0.0 }
 0x482   :  { %v11426_v9 = vmax.f32 %v11215_v49, %v5784_v28  ;;  %v11429_v43 = vadd.f32 %v11218_v48, %v5784_v28  ;;  %v4026_v0 = vmax.f32 %v3458_v46, 0.0 }
 0x483   :  { %v4027_v32 = vmax.f32 %v3460_v37, 0.0  ;;  %v5272_v23 = vpop.f32.mrb[168].mxu0 }
 0x484   :  { %v5273_v63 = vadd.f32 %v11410_v18, %v5272_v23  ;;  %v5274_v11 = vpop.f32.mrb[169].mxu0  ;;  %v4288_v34 = vpack.c.bf16 %v4026_v0, %v4024_v54 }
 0x485   :  { %v4289_v31 = vpack.c.bf16 %v4027_v32, %v4025_v35  ;;  %v3463_v57 = vpop.f32.mrb[140].mxu1  ;;  %v5275_v17 = vpop.f32.mrb[170].mxu0 }
 0x486   :  { %v5785_v38 = vmax.f32 %v5273_v63, 0.0  ;;  %v5276_v10 = vadd.f32 %v11410_v18, %v5275_v17  ;;  %v3465_v49 = vpop.f32.mrb[141].mxu1  ;;  %v5277_v7 = vpop.f32.mrb[171].mxu0  ;;  %v3464_v48 = vadd.f32 %v3463_v57, %v9851_v20 }
 0x487   :  { %v3466_v47 = vadd.f32 %v3465_v49, %v9855_v4  ;;  %v3467_v29 = vpop.f32.mrb[142].mxu1  ;;  %8042 = vmatprep.mubr.msk.bf16.mxu0 %vm4419_vm1, %v4289_v31 }
 0x488   :  { %v11437_v28 = vmax.f32 %v11228_v62, %v5785_v38  ;;  %v11440_v46 = vadd.f32 %v11231_v19, %v5785_v38  ;;  %v5786_v37 = vmax.f32 %v5276_v10, 0.0  ;;  %v3469_v54 = vpop.f32.mrb[143].mxu1  ;;  %5487 = vmatmul.mubr.bf16.gmra.mrb[20].mxu0 %v4288_v34  ;;  %v3468_v35 = vadd.f32 %v3467_v29, %v9851_v20 }
 0x489   :  { %v3470_v0 = vadd.f32 %v3469_v54, %v9855_v4  ;;  %v4028_v63 = vmax.f32 %v3464_v48, 0.0  ;;  %v4029_v11 = vmax.f32 %v3466_v47, 0.0 }
 0x48a   :  { %v11445_v32 = vmax.f32 %v11236_v55, %v5786_v37  ;;  %v11448_v23 = vadd.f32 %v11239_v53, %v5786_v37  ;;  %v4030_v62 = vmax.f32 %v3468_v35, 0.0 }
 0x48b   :  { %v4031_v31 = vmax.f32 %v3470_v0, 0.0  ;;  %v5280_v57 = vpop.f32.mrb[172].mxu0 }
 0x48c   :  { %v5281_v19 = vadd.f32 %v11410_v18, %v5280_v57  ;;  %v5282_v17 = vpop.f32.mrb[173].mxu0  ;;  %v4290_v38 = vpack.c.bf16 %v4030_v62, %v4028_v63 }
 0x48d   :  { %v4291_v34 = vpack.c.bf16 %v4031_v31, %v4029_v11  ;;  %v3473_v10 = vpop.f32.mrb[144].mxu1  ;;  %v5283_v49 = vpop.f32.mrb[174].mxu0 }
 0x48e   :  { %v5787_v7 = vmax.f32 %v5281_v19, 0.0  ;;  %v5284_v29 = vadd.f32 %v11410_v18, %v5283_v49  ;;  %v3475_v55 = vpop.f32.mrb[145].mxu1  ;;  %v5285_v54 = vpop.f32.mrb[175].mxu0  ;;  %v3474_v53 = vadd.f32 %v3473_v10, %v9851_v20 }
 0x48f   :  { %v3476_v48 = vadd.f32 %v3475_v55, %v9855_v4  ;;  %v3477_v47 = vpop.f32.mrb[146].mxu1  ;;  %8043 = vmatprep.mubr.msk.bf16.mxu0 %vm4419_vm1, %v4291_v34 }
 0x490   :  { %v11456_v37 = vmax.f32 %v11249_v1, %v5787_v7  ;;  %v11459_v35 = vadd.f32 %v11252_v5, %v5787_v7  ;;  %v5788_v0 = vmax.f32 %v5284_v29, 0.0  ;;  %v3479_v63 = vpop.f32.mrb[147].mxu1  ;;  %5495 = vmatmul.mubr.bf16.gmra.mrb[24].mxu0 %v4290_v38  ;;  %v3478_v11 = vadd.f32 %v3477_v47, %v9851_v20 }
 0x491   :  { %v3480_v62 = vadd.f32 %v3479_v63, %v9855_v4  ;;  %v4032_v19 = vmax.f32 %v3474_v53, 0.0  ;;  %v4033_v17 = vmax.f32 %v3476_v48, 0.0 }
 0x492   :  { %v11464_v31 = vmax.f32 %v11257_v21, %v5788_v0  ;;  %v11467_v57 = vadd.f32 %v11260_v27, %v5788_v0  ;;  %v4034_v1 = vmax.f32 %v3478_v11, 0.0 }
 0x493   :  { %v4035_v34 = vmax.f32 %v3480_v62, 0.0  ;;  %v5288_v10 = vpop.f32.mrb[176].mxu0 }
 0x494   :  { %v5289_v5 = vadd.f32 %v11410_v18, %v5288_v10  ;;  %v5290_v49 = vpop.f32.mrb[177].mxu0  ;;  %v4292_v7 = vpack.c.bf16 %v4034_v1, %v4032_v19 }
 0x495   :  { %v4293_v38 = vpack.c.bf16 %v4035_v34, %v4033_v17  ;;  %v3483_v29 = vpop.f32.mrb[148].mxu1  ;;  %v5291_v55 = vpop.f32.mrb[178].mxu0 }
 0x496   :  { %v5789_v54 = vmax.f32 %v5289_v5, 0.0  ;;  %v5292_v47 = vadd.f32 %v11410_v18, %v5291_v55  ;;  %v3485_v21 = vpop.f32.mrb[149].mxu1  ;;  %v5293_v63 = vpop.f32.mrb[179].mxu0  ;;  %v3484_v27 = vadd.f32 %v3483_v29, %v9851_v20 }
 0x497   :  { %v3486_v53 = vadd.f32 %v3485_v21, %v9855_v4  ;;  %v3487_v48 = vpop.f32.mrb[150].mxu1  ;;  %8044 = vmatprep.mubr.msk.bf16.mxu0 %vm4419_vm1, %v4293_v38 }
 0x498   :  { %v11475_v0 = vmax.f32 %v11270_v40, %v5789_v54  ;;  %v11478_v11 = vadd.f32 %v11273_v42, %v5789_v54  ;;  %v5790_v62 = vmax.f32 %v5292_v47, 0.0  ;;  %v3489_v19 = vpop.f32.mrb[151].mxu1  ;;  %5503 = vmatmul.mubr.bf16.gmra.mrb[28].mxu0 %v4292_v7  ;;  %v3488_v17 = vadd.f32 %v3487_v48, %v9851_v20 }
 0x499   :  { %v3490_v1 = vadd.f32 %v3489_v19, %v9855_v4  ;;  %v4036_v5 = vmax.f32 %v3484_v27, 0.0  ;;  %v4037_v49 = vmax.f32 %v3486_v53, 0.0 }
 0x49a   :  { %v11483_v34 = vmax.f32 %v11278_v26, %v5790_v62  ;;  %v11486_v10 = vadd.f32 %v11281_v50, %v5790_v62  ;;  %v4038_v40 = vmax.f32 %v3488_v17, 0.0 }
 0x49b   :  { %v4039_v38 = vmax.f32 %v3490_v1, 0.0  ;;  %v5296_v29 = vpop.f32.mrb[180].mxu0 }
 0x49c   :  { %v5297_v42 = vadd.f32 %v11410_v18, %v5296_v29  ;;  %v5298_v55 = vpop.f32.mrb[181].mxu0  ;;  %v4294_v54 = vpack.c.bf16 %v4038_v40, %v4036_v5 }
 0x49d   :  { %v4295_v7 = vpack.c.bf16 %v4039_v38, %v4037_v49  ;;  %v3493_v47 = vpop.f32.mrb[152].mxu1  ;;  %v5299_v21 = vpop.f32.mrb[182].mxu0 }
 0x49e   :  { %v5791_v63 = vmax.f32 %v5297_v42, 0.0  ;;  %v5300_v48 = vadd.f32 %v11410_v18, %v5299_v21  ;;  %v3495_v26 = vpop.f32.mrb[153].mxu1  ;;  %v5301_v19 = vpop.f32.mrb[183].mxu0  ;;  %v3494_v50 = vadd.f32 %v3493_v47, %v9851_v20 }
 0x49f   :  { %v3496_v27 = vadd.f32 %v3495_v26, %v9855_v4  ;;  %v3497_v53 = vpop.f32.mrb[154].mxu1  ;;  %8045 = vmatprep.mubr.msk.bf16.mxu0 %vm4419_vm1, %v4295_v7 }
 0x4a0   :  { %v11494_v62 = vmax.f32 %v11291_v52, %v5791_v63  ;;  %v11497_v17 = vadd.f32 %v11294_v33, %v5791_v63  ;;  %v5792_v1 = vmax.f32 %v5300_v48, 0.0  ;;  %v3499_v5 = vpop.f32.mrb[155].mxu1  ;;  %5511 = vmatmul.mubr.bf16.gmra.mrb[32].mxu0 %v4294_v54  ;;  %v3498_v49 = vadd.f32 %v3497_v53, %v9851_v20 }
 0x4a1   :  { %v3500_v40 = vadd.f32 %v3499_v5, %v9855_v4  ;;  %v4040_v42 = vmax.f32 %v3494_v50, 0.0  ;;  %v4041_v55 = vmax.f32 %v3496_v27, 0.0 }
 0x4a2   :  { %v11502_v38 = vmax.f32 %v11299_v51, %v5792_v1  ;;  %v11505_v29 = vadd.f32 %v11302_v39, %v5792_v1  ;;  %v4042_v52 = vmax.f32 %v3498_v49, 0.0 }
 0x4a3   :  { %v4043_v7 = vmax.f32 %v3500_v40, 0.0  ;;  %v5304_v47 = vpop.f32.mrb[184].mxu0 }
 0x4a4   :  { %v5305_v33 = vadd.f32 %v11410_v18, %v5304_v47  ;;  %v5306_v21 = vpop.f32.mrb[185].mxu0  ;;  %v4296_v63 = vpack.c.bf16 %v4042_v52, %v4040_v42 }
 0x4a5   :  { %v4297_v54 = vpack.c.bf16 %v4043_v7, %v4041_v55  ;;  %v3503_v48 = vpop.f32.mrb[156].mxu1  ;;  %v5307_v26 = vpop.f32.mrb[186].mxu0 }
 0x4a6   :  { %v5793_v19 = vmax.f32 %v5305_v33, 0.0  ;;  %v5308_v53 = vadd.f32 %v11410_v18, %v5307_v26  ;;  %v3505_v51 = vpop.f32.mrb[157].mxu1  ;;  %v5309_v5 = vpop.f32.mrb[187].mxu0  ;;  %v3504_v39 = vadd.f32 %v3503_v48, %v9851_v20 }
 0x4a7   :  { %v3506_v50 = vadd.f32 %v3505_v51, %v9855_v4  ;;  %v3507_v27 = vpop.f32.mrb[158].mxu1  ;;  %8046 = vmatprep.mubr.msk.bf16.mxu0 %vm4419_vm1, %v4297_v54 }
 0x4a8   :  { %v11513_v1 = vmax.f32 %v11312_v22, %v5793_v19  ;;  %v11516_v49 = vadd.f32 %v11315_v58, %v5793_v19  ;;  %v5794_v40 = vmax.f32 %v5308_v53, 0.0  ;;  %v3509_v42 = vpop.f32.mrb[159].mxu1  ;;  %5519 = vmatmul.mubr.bf16.gmra.mrb[36].mxu0 %v4296_v63  ;;  %v3508_v55 = vadd.f32 %v3507_v27, %v9851_v20 }
 0x4a9   :  { %v3510_v52 = vadd.f32 %v3509_v42, %v9855_v4  ;;  %v4044_v33 = vmax.f32 %v3504_v39, 0.0  ;;  %v4045_v21 = vmax.f32 %v3506_v50, 0.0 }
 0x4aa   :  { %v11521_v7 = vmax.f32 %v11320_v61, %v5794_v40  ;;  %v11524_v47 = vadd.f32 %v11323_v41, %v5794_v40  ;;  %v4046_v22 = vmax.f32 %v3508_v55, 0.0 }
 0x4ab   :  { %v4047_v54 = vmax.f32 %v3510_v52, 0.0  ;;  %v5312_v48 = vpop.f32.mrb[188].mxu0 }
 0x4ac   :  { %v5313_v58 = vadd.f32 %v11410_v18, %v5312_v48  ;;  %v5314_v26 = vpop.f32.mrb[189].mxu0  ;;  %v4298_v19 = vpack.c.bf16 %v4046_v22, %v4044_v33 }
 0x4ad   :  { %v4299_v63 = vpack.c.bf16 %v4047_v54, %v4045_v21  ;;  %v3513_v53 = vpop.f32.mrb[160].mxu1  ;;  %v5315_v51 = vpop.f32.mrb[190].mxu0 }
 0x4ae   :  { %v5795_v5 = vmax.f32 %v5313_v58, 0.0  ;;  %v5316_v27 = vadd.f32 %v11410_v18, %v5315_v51  ;;  %v3515_v61 = vpop.f32.mrb[161].mxu1  ;;  %v5317_v42 = vpop.f32.mrb[191].mxu0  ;;  %v3514_v41 = vadd.f32 %v3513_v53, %v9851_v20 }
 0x4af   :  { %v3516_v39 = vadd.f32 %v3515_v61, %v9855_v4  ;;  %v3517_v50 = vpop.f32.mrb[162].mxu1  ;;  %8047 = vmatprep.mubr.msk.bf16.mxu0 %vm4419_vm1, %v4299_v63 }
 0x4b0   :  { %v11532_v40 = vmax.f32 %v11331_v59, %v5795_v5  ;;  %v11535_v55 = vadd.f32 %v11334_v36, %v5795_v5  ;;  %v5796_v52 = vmax.f32 %v5316_v27, 0.0  ;;  %v3519_v33 = vpop.f32.mrb[163].mxu1  ;;  %5527 = vmatmul.mubr.bf16.gmra.mrb[40].mxu0 %v4298_v19  ;;  %v3518_v21 = vadd.f32 %v3517_v50, %v9851_v20 }
 0x4b1   :  { %v3520_v22 = vadd.f32 %v3519_v33, %v9855_v4  ;;  %v4048_v58 = vmax.f32 %v3514_v41, 0.0  ;;  %v4049_v26 = vmax.f32 %v3516_v39, 0.0 }
 0x4b2   :  { %v11540_v54 = vmax.f32 %v11339_v45, %v5796_v52  ;;  %v11543_v48 = vadd.f32 %v11342_v56, %v5796_v52  ;;  %v4050_v59 = vmax.f32 %v3518_v21, 0.0 }
 0x4b3   :  { %v4051_v63 = vmax.f32 %v3520_v22, 0.0  ;;  %v5320_v53 = vpop.f32.mrb[192].mxu0 }
 0x4b4   :  { %v5321_v36 = vadd.f32 %v11410_v18, %v5320_v53  ;;  %v5322_v51 = vpop.f32.mrb[193].mxu0  ;;  %v4300_v5 = vpack.c.bf16 %v4050_v59, %v4048_v58 }
 0x4b5   :  { %v4301_v19 = vpack.c.bf16 %v4051_v63, %v4049_v26  ;;  %v3523_v27 = vpop.f32.mrb[164].mxu1  ;;  %v5323_v61 = vpop.f32.mrb[194].mxu0 }
 0x4b6   :  { %v5797_v42 = vmax.f32 %v5321_v36, 0.0  ;;  %v5324_v50 = vadd.f32 %v11410_v18, %v5323_v61  ;;  %v3525_v45 = vpop.f32.mrb[165].mxu1  ;;  %v5325_v33 = vpop.f32.mrb[195].mxu0  ;;  %v3524_v56 = vadd.f32 %v3523_v27, %v9851_v20 }
 0x4b7   :  { %v3526_v41 = vadd.f32 %v3525_v45, %v9855_v4  ;;  %v3527_v39 = vpop.f32.mrb[166].mxu1  ;;  %8048 = vmatprep.mubr.msk.bf16.mxu0 %vm4419_vm1, %v4301_v19 }
 0x4b8   :  { %v11551_v52 = vmax.f32 %v11350_v44, %v5797_v42  ;;  %v11554_v21 = vadd.f32 %v11353_v12, %v5797_v42  ;;  %v5798_v22 = vmax.f32 %v5324_v50, 0.0  ;;  %v3529_v58 = vpop.f32.mrb[167].mxu1  ;;  %5535 = vmatmul.mubr.bf16.gmra.mrb[44].mxu0 %v4300_v5  ;;  %v3528_v26 = vadd.f32 %v3527_v39, %v9851_v20 }
 0x4b9   :  { %v3530_v59 = vadd.f32 %v3529_v58, %v9855_v4  ;;  %v4052_v36 = vmax.f32 %v3524_v56, 0.0  ;;  %v4053_v51 = vmax.f32 %v3526_v41, 0.0 }
 0x4ba   :  { %v11559_v63 = vmax.f32 %v11358_v2, %v5798_v22  ;;  %v11562_v53 = vadd.f32 %v11361_v24, %v5798_v22  ;;  %v4054_v44 = vmax.f32 %v3528_v26, 0.0 }
 0x4bb   :  { %v4055_v19 = vmax.f32 %v3530_v59, 0.0  ;;  %v5328_v27 = vpop.f32.mrb[196].mxu0 }
 0x4bc   :  { %v5329_v12 = vadd.f32 %v11410_v18, %v5328_v27  ;;  %v5330_v61 = vpop.f32.mrb[197].mxu0  ;;  %v4302_v42 = vpack.c.bf16 %v4054_v44, %v4052_v36 }
 0x4bd   :  { %v4303_v5 = vpack.c.bf16 %v4055_v19, %v4053_v51  ;;  %v3533_v50 = vpop.f32.mrb[168].mxu1  ;;  %v5331_v45 = vpop.f32.mrb[198].mxu0 }
 0x4be   :  { %v5799_v33 = vmax.f32 %v5329_v12, 0.0  ;;  %v5332_v39 = vadd.f32 %v11410_v18, %v5331_v45  ;;  %v3535_v2 = vpop.f32.mrb[169].mxu1  ;;  %v5333_v58 = vpop.f32.mrb[199].mxu0  ;;  %v3534_v24 = vadd.f32 %v3533_v50, %v9851_v20 }
 0x4bf   :  { %v3536_v56 = vadd.f32 %v3535_v2, %v9855_v4  ;;  %v3537_v41 = vpop.f32.mrb[170].mxu1  ;;  %8049 = vmatprep.mubr.msk.bf16.mxu0 %vm4419_vm1, %v4303_v5 }
 0x4c0   :  { %v11570_v22 = vmax.f32 %v11369_v13, %v5799_v33  ;;  %v11573_v26 = vadd.f32 %v11372_v60, %v5799_v33  ;;  %v5800_v59 = vmax.f32 %v5332_v39, 0.0  ;;  %v3539_v36 = vpop.f32.mrb[171].mxu1  ;;  %5543 = vmatmul.mubr.bf16.gmra.mrb[48].mxu0 %v4302_v42  ;;  %v3538_v51 = vadd.f32 %v3537_v41, %v9851_v20 }
 0x4c1   :  { %v3540_v44 = vadd.f32 %v3539_v36, %v9855_v4  ;;  %v4056_v12 = vmax.f32 %v3534_v24, 0.0  ;;  %v4057_v61 = vmax.f32 %v3536_v56, 0.0 }
 0x4c2   :  { %v11578_v19 = vmax.f32 %v11377_v3, %v5800_v59  ;;  %v11581_v27 = vadd.f32 %v11380_v6, %v5800_v59  ;;  %v4058_v13 = vmax.f32 %v3538_v51, 0.0 }
 0x4c3   :  { %v4059_v5 = vmax.f32 %v3540_v44, 0.0  ;;  %v5336_v50 = vpop.f32.mrb[200].mxu0 }
 0x4c4   :  { %v5337_v60 = vadd.f32 %v11410_v18, %v5336_v50  ;;  %v5338_v45 = vpop.f32.mrb[201].mxu0  ;;  %v4304_v33 = vpack.c.bf16 %v4058_v13, %v4056_v12 }
 0x4c5   :  { %v4305_v42 = vpack.c.bf16 %v4059_v5, %v4057_v61  ;;  %v3543_v39 = vpop.f32.mrb[172].mxu1  ;;  %v5339_v2 = vpop.f32.mrb[202].mxu0 }
 0x4c6   :  { %v5801_v58 = vmax.f32 %v5337_v60, 0.0  ;;  %v5340_v41 = vadd.f32 %v11410_v18, %v5339_v2  ;;  %v3545_v3 = vpop.f32.mrb[173].mxu1  ;;  %v5341_v36 = vpop.f32.mrb[203].mxu0  ;;  %v3544_v6 = vadd.f32 %v3543_v39, %v9851_v20 }
 0x4c7   :  { %v3546_v24 = vadd.f32 %v3545_v3, %v9855_v4  ;;  %v3547_v56 = vpop.f32.mrb[174].mxu1  ;;  %8050 = vmatprep.mubr.msk.bf16.mxu0 %vm4419_vm1, %v4305_v42 }
 0x4c8   :  { %v11589_v59 = vmax.f32 %v11394_v8, %v5801_v58  ;;  %v11592_v51 = vadd.f32 %v11397_v30, %v5801_v58  ;;  %v5802_v44 = vmax.f32 %v5340_v41, 0.0  ;;  %v3549_v12 = vpop.f32.mrb[175].mxu1  ;;  %5551 = vmatmul.mubr.bf16.gmra.mrb[52].mxu0 %v4304_v33  ;;  %v3548_v61 = vadd.f32 %v3547_v56, %v9851_v20 }
 0x4c9   :  { %v3550_v13 = vadd.f32 %v3549_v12, %v9855_v4  ;;  %v4060_v60 = vmax.f32 %v3544_v6, 0.0  ;;  %v4061_v45 = vmax.f32 %v3546_v24, 0.0 }
 0x4ca   :  { %v11597_v5 = vmax.f32 %v11402_v15, %v5802_v44  ;;  %v11600_v50 = vadd.f32 %v11405_v16, %v5802_v44  ;;  %v4062_v8 = vmax.f32 %v3548_v61, 0.0 }
 0x4cb   :  { %v4063_v42 = vmax.f32 %v3550_v13, 0.0  ;;  %v5344_v39 = vpop.f32.mrb[204].mxu0 }
 0x4cc   :  { %v5345_v30 = vadd.f32 %v11410_v18, %v5344_v39  ;;  %v5346_v2 = vpop.f32.mrb[205].mxu0  ;;  %v4306_v58 = vpack.c.bf16 %v4062_v8, %v4060_v60 }
 0x4cd   :  { %v4307_v33 = vpack.c.bf16 %v4063_v42, %v4061_v45  ;;  %v3553_v41 = vpop.f32.mrb[176].mxu1  ;;  %v5347_v3 = vpop.f32.mrb[206].mxu0 }
 0x4ce   :  { %v5803_v36 = vmax.f32 %v5345_v30, 0.0  ;;  %v5348_v56 = vadd.f32 %v11410_v18, %v5347_v3  ;;  %v3555_v15 = vpop.f32.mrb[177].mxu1  ;;  %v5349_v12 = vpop.f32.mrb[207].mxu0  ;;  %v3554_v16 = vadd.f32 %v3553_v41, %v9851_v20 }
 0x4cf   :  { %v3556_v6 = vadd.f32 %v3555_v15, %v9855_v4  ;;  %v3557_v24 = vpop.f32.mrb[178].mxu1  ;;  %8051 = vmatprep.mubr.msk.bf16.mxu0 %vm4419_vm1, %v4307_v33 }
 0x4d0   :  { %v11608_v44 = vmax.f32 %v11418_v14, %v5803_v36  ;;  %v11611_v61 = vadd.f32 %v11421_v25, %v5803_v36  ;;  %v5804_v13 = vmax.f32 %v5348_v56, 0.0  ;;  %v3559_v60 = vpop.f32.mrb[179].mxu1  ;;  %5559 = vmatmul.mubr.bf16.gmra.mrb[56].mxu0 %v4306_v58  ;;  %v3558_v45 = vadd.f32 %v3557_v24, %v9851_v20 }
 0x4d1   :  { %v3560_v8 = vadd.f32 %v3559_v60, %v9855_v4  ;;  %v4064_v30 = vmax.f32 %v3554_v16, 0.0  ;;  %v4065_v2 = vmax.f32 %v3556_v6, 0.0 }
 0x4d2   :  { %v11616_v42 = vmax.f32 %v11426_v9, %v5804_v13  ;;  %v11619_v39 = vadd.f32 %v11429_v43, %v5804_v13  ;;  %v4066_v14 = vmax.f32 %v3558_v45, 0.0 }
 0x4d3   :  { %v4067_v33 = vmax.f32 %v3560_v8, 0.0  ;;  %v5352_v41 = vpop.f32.mrb[208].mxu0 }
 0x4d4   :  { %v5353_v25 = vadd.f32 %v11410_v18, %v5352_v41  ;;  %v5354_v3 = vpop.f32.mrb[209].mxu0  ;;  %v4308_v36 = vpack.c.bf16 %v4066_v14, %v4064_v30 }
 0x4d5   :  { %v4309_v58 = vpack.c.bf16 %v4067_v33, %v4065_v2  ;;  %v3563_v56 = vpop.f32.mrb[180].mxu1  ;;  %v5355_v15 = vpop.f32.mrb[210].mxu0 }
 0x4d6   :  { %v5805_v12 = vmax.f32 %v5353_v25, 0.0  ;;  %v5356_v24 = vadd.f32 %v11410_v18, %v5355_v15  ;;  %v3565_v9 = vpop.f32.mrb[181].mxu1  ;;  %v5357_v60 = vpop.f32.mrb[211].mxu0  ;;  %v3564_v43 = vadd.f32 %v3563_v56, %v9851_v20 }
 0x4d7   :  { %v3566_v16 = vadd.f32 %v3565_v9, %v9855_v4  ;;  %v3567_v6 = vpop.f32.mrb[182].mxu1  ;;  %8052 = vmatprep.mubr.msk.bf16.mxu0 %vm4419_vm1, %v4309_v58 }
 0x4d8   :  { %v11627_v13 = vmax.f32 %v11437_v28, %v5805_v12  ;;  %v11630_v45 = vadd.f32 %v11440_v46, %v5805_v12  ;;  %v5806_v8 = vmax.f32 %v5356_v24, 0.0  ;;  %v3569_v30 = vpop.f32.mrb[183].mxu1  ;;  %5567 = vmatmul.mubr.bf16.gmra.mrb[60].mxu0 %v4308_v36  ;;  %v3568_v2 = vadd.f32 %v3567_v6, %v9851_v20 }
 0x4d9   :  { %v3570_v14 = vadd.f32 %v3569_v30, %v9855_v4  ;;  %v4068_v25 = vmax.f32 %v3564_v43, 0.0  ;;  %v4069_v3 = vmax.f32 %v3566_v16, 0.0 }
 0x4da   :  { %v11635_v33 = vmax.f32 %v11445_v32, %v5806_v8  ;;  %v11638_v41 = vadd.f32 %v11448_v23, %v5806_v8  ;;  %v4070_v28 = vmax.f32 %v3568_v2, 0.0 }
 0x4db   :  { %v4071_v58 = vmax.f32 %v3570_v14, 0.0  ;;  %v5360_v56 = vpop.f32.mrb[212].mxu0 }
 0x4dc   :  { %v5361_v46 = vadd.f32 %v11410_v18, %v5360_v56  ;;  %v5362_v15 = vpop.f32.mrb[213].mxu0  ;;  %v4310_v12 = vpack.c.bf16 %v4070_v28, %v4068_v25  ;;  %v8764_v56 = vld [vmem:[%s12601_s4 + $0x74] ss:$8 sps:$4 sm:$0xff]  }
 0x4dd   :  { %v4311_v36 = vpack.c.bf16 %v4071_v58, %v4069_v3  ;;  %v3573_v24 = vpop.f32.mrb[184].mxu1  ;;  %v5363_v9 = vpop.f32.mrb[214].mxu0  ;;  %v8762_v3 = vld [vmem:[%s12601_s4 + $0x70] ss:$8 sps:$4 sm:$0xff]   ;;  %6455 = vmatprep.subr.bf16.mxu1 %v8764_v56 }
 0x4de   :  { %v5807_v60 = vmax.f32 %v5361_v46, 0.0  ;;  %v5364_v6 = vadd.f32 %v11410_v18, %v5363_v9  ;;  %v3575_v32 = vpop.f32.mrb[185].mxu1  ;;  %v5365_v30 = vpop.f32.mrb[215].mxu0  ;;  %v3574_v23 = vadd.f32 %v3573_v24, %v9851_v20  ;;  %6456 = vmatpush1.bf16.msra.mxu1 %v8762_v3 }
 0x4df   :  { %v3576_v43 = vadd.f32 %v3575_v32, %v9855_v4  ;;  %v3577_v16 = vpop.f32.mrb[186].mxu1  ;;  %8053 = vmatprep.mubr.msk.bf16.mxu0 %vm4419_vm1, %v4311_v36 }
 0x4e0   :  { %v11646_v8 = vmax.f32 %v11456_v37, %v5807_v60  ;;  %v11649_v2 = vadd.f32 %v11459_v35, %v5807_v60  ;;  %v5808_v14 = vmax.f32 %v5364_v6, 0.0  ;;  %v3579_v25 = vpop.f32.mrb[187].mxu1  ;;  %5575 = vmatmul.mubr.bf16.gmra.mrb[64].mxu0 %v4310_v12  ;;  %v3578_v28 = vadd.f32 %v3577_v16, %v9851_v20 }
 0x4e1   :  { %v3580_v58 = vadd.f32 %v3579_v25, %v9855_v4  ;;  %v4072_v46 = vmax.f32 %v3574_v23, 0.0  ;;  %v4073_v15 = vmax.f32 %v3576_v43, 0.0  ;;  %v12652_v25 = vmov 0  }
 0x4e2   :  { %v11660_v37 = vmax.f32 %v11464_v31, %v5808_v14  ;;  %v11663_v35 = vadd.f32 %v11467_v57, %v5808_v14  ;;  %v4074_v12 = vmax.f32 %v3578_v28, 0.0  ;;  %6751 = vmatprep.subr.bf16.mxu1 %v12652_v25 }
 0x4e3   :  { %v4075_v36 = vmax.f32 %v3580_v58, 0.0  ;;  %v5368_v24 = vpop.f32.mrb[216].mxu0 }
 0x4e4   :  { %v5369_v9 = vadd.f32 %v11410_v18, %v5368_v24  ;;  %v5370_v60 = vpop.f32.mrb[217].mxu0  ;;  %v4312_v6 = vpack.c.bf16 %v4074_v12, %v4072_v46 }
 0x4e5   :  { %v4313_v32 = vpack.c.bf16 %v4075_v36, %v4073_v15  ;;  %v3583_v30 = vpop.f32.mrb[188].mxu1  ;;  %v5371_v16 = vpop.f32.mrb[218].mxu0 }
 0x4e6   :  { %v5809_v31 = vmax.f32 %v5369_v9, 0.0  ;;  %v5372_v57 = vadd.f32 %v11410_v18, %v5371_v16  ;;  %v3585_v14 = vpop.f32.mrb[189].mxu1  ;;  %v5373_v23 = vpop.f32.mrb[219].mxu0  ;;  %v3584_v43 = vadd.f32 %v3583_v30, %v9851_v20 }
 0x4e7   :  { %v3586_v28 = vadd.f32 %v3585_v14, %v9855_v4  ;;  %v3587_v58 = vpop.f32.mrb[190].mxu1  ;;  %8054 = vmatprep.mubr.msk.bf16.mxu0 %vm4419_vm1, %v4313_v32 }
 0x4e8   :  { %v11672_v3 = vmax.f32 %v11475_v0, %v5809_v31  ;;  %v11675_v56 = vadd.f32 %v11478_v11, %v5809_v31  ;;  %v5810_v46 = vmax.f32 %v5372_v57, 0.0  ;;  %v3589_v15 = vpop.f32.mrb[191].mxu1  ;;  %5583 = vmatmul.mubr.bf16.gmra.mrb[68].mxu0 %v4312_v6  ;;  %v3588_v12 = vadd.f32 %v3587_v58, %v9851_v20 }
 0x4e9   :  { %v3590_v36 = vadd.f32 %v3589_v15, %v9855_v4  ;;  %v4076_v60 = vmax.f32 %v3584_v43, 0.0  ;;  %v4077_v32 = vmax.f32 %v3586_v28, 0.0 }
 0x4ea   :  { %v11680_v24 = vmax.f32 %v11483_v34, %v5810_v46  ;;  %v11683_v9 = vadd.f32 %v11486_v10, %v5810_v46  ;;  %v4078_v0 = vmax.f32 %v3588_v12, 0.0 }
 0x4eb   :  { %v4079_v30 = vmax.f32 %v3590_v36, 0.0  ;;  %v5376_v16 = vpop.f32.mrb[220].mxu0 }
 0x4ec   :  { %v5377_v11 = vadd.f32 %v11410_v18, %v5376_v16  ;;  %v5378_v31 = vpop.f32.mrb[221].mxu0  ;;  %v4314_v57 = vpack.c.bf16 %v4078_v0, %v4076_v60 }
 0x4ed   :  { %v4315_v6 = vpack.c.bf16 %v4079_v30, %v4077_v32  ;;  %v3593_v14 = vpop.f32.mrb[192].mxu1  ;;  %v5379_v23 = vpop.f32.mrb[222].mxu0 }
 0x4ee   :  { %v5811_v58 = vmax.f32 %v5377_v11, 0.0  ;;  %v5380_v15 = vadd.f32 %v11410_v18, %v5379_v23  ;;  %v3595_v34 = vpop.f32.mrb[193].mxu1  ;;  %v5381_v25 = vpop.f32.mrb[223].mxu0  ;;  %v3594_v10 = vadd.f32 %v3593_v14, %v9851_v20 }
 0x4ef   :  { %v3596_v43 = vadd.f32 %v3595_v34, %v9855_v4  ;;  %v3597_v28 = vpop.f32.mrb[194].mxu1  ;;  %8055 = vmatprep.mubr.msk.bf16.mxu0 %vm4419_vm1, %v4315_v6 }
 0x4f0   :  { %v11691_v46 = vmax.f32 %v11494_v62, %v5811_v58  ;;  %v11694_v12 = vadd.f32 %v11497_v17, %v5811_v58  ;;  %v5812_v36 = vmax.f32 %v5380_v15, 0.0  ;;  %v3599_v60 = vpop.f32.mrb[195].mxu1  ;;  %5591 = vmatmul.mubr.bf16.gmra.mrb[72].mxu0 %v4314_v57  ;;  %v3598_v32 = vadd.f32 %v3597_v28, %v9851_v20 }
 0x4f1   :  { %v3600_v25 = vadd.f32 %v3599_v60, %v9855_v4  ;;  %v4080_v16 = vmax.f32 %v3594_v10, 0.0  ;;  %v4081_v11 = vmax.f32 %v3596_v43, 0.0 }
 0x4f2   :  { %v11699_v0 = vmax.f32 %v11502_v38, %v5812_v36  ;;  %v11702_v30 = vadd.f32 %v11505_v29, %v5812_v36  ;;  %v4082_v62 = vmax.f32 %v3598_v32, 0.0 }
 0x4f3   :  { %v4083_v31 = vmax.f32 %v3600_v25, 0.0  ;;  %v5384_v6 = vpop.f32.mrb[224].mxu0 }
 0x4f4   :  { %v5385_v17 = vadd.f32 %v11410_v18, %v5384_v6  ;;  %v5386_v14 = vpop.f32.mrb[225].mxu0  ;;  %v4316_v23 = vpack.c.bf16 %v4082_v62, %v4080_v16 }
 0x4f5   :  { %v4317_v57 = vpack.c.bf16 %v4083_v31, %v4081_v11  ;;  %v3603_v58 = vpop.f32.mrb[196].mxu1  ;;  %v5387_v15 = vpop.f32.mrb[226].mxu0 }
 0x4f6   :  { %v5813_v34 = vmax.f32 %v5385_v17, 0.0  ;;  %v5388_v28 = vadd.f32 %v11410_v18, %v5387_v15  ;;  %v3605_v38 = vpop.f32.mrb[197].mxu1  ;;  %v5389_v60 = vpop.f32.mrb[227].mxu0  ;;  %v3604_v29 = vadd.f32 %v3603_v58, %v9851_v20 }
 0x4f7   :  { %v3606_v10 = vadd.f32 %v3605_v38, %v9855_v4  ;;  %v3607_v43 = vpop.f32.mrb[198].mxu1  ;;  %8056 = vmatprep.mubr.msk.bf16.mxu0 %vm4419_vm1, %v4317_v57 }
 0x4f8   :  { %v11710_v36 = vmax.f32 %v11513_v1, %v5813_v34  ;;  %v11713_v32 = vadd.f32 %v11516_v49, %v5813_v34  ;;  %v5814_v25 = vmax.f32 %v5388_v28, 0.0  ;;  %v3609_v16 = vpop.f32.mrb[199].mxu1  ;;  %5599 = vmatmul.mubr.bf16.gmra.mrb[76].mxu0 %v4316_v23  ;;  %v3608_v11 = vadd.f32 %v3607_v43, %v9851_v20 }
 0x4f9   :  { %v3610_v62 = vadd.f32 %v3609_v16, %v9855_v4  ;;  %v4084_v17 = vmax.f32 %v3604_v29, 0.0  ;;  %v4085_v14 = vmax.f32 %v3606_v10, 0.0 }
 0x4fa   :  { %v11718_v31 = vmax.f32 %v11521_v7, %v5814_v25  ;;  %v11721_v6 = vadd.f32 %v11524_v47, %v5814_v25  ;;  %v4086_v1 = vmax.f32 %v3608_v11, 0.0 }
 0x4fb   :  { %v4087_v57 = vmax.f32 %v3610_v62, 0.0  ;;  %v5392_v58 = vpop.f32.mrb[228].mxu0 }
 0x4fc   :  { %v5393_v49 = vadd.f32 %v11410_v18, %v5392_v58  ;;  %v5394_v15 = vpop.f32.mrb[229].mxu0  ;;  %v4318_v34 = vpack.c.bf16 %v4086_v1, %v4084_v17 }
 0x4fd   :  { %v4319_v23 = vpack.c.bf16 %v4087_v57, %v4085_v14  ;;  %v3613_v28 = vpop.f32.mrb[200].mxu1  ;;  %v5395_v38 = vpop.f32.mrb[230].mxu0 }
 0x4fe   :  { %v5815_v60 = vmax.f32 %v5393_v49, 0.0  ;;  %v5396_v43 = vadd.f32 %v11410_v18, %v5395_v38  ;;  %v3615_v7 = vpop.f32.mrb[201].mxu1  ;;  %v5397_v16 = vpop.f32.mrb[231].mxu0  ;;  %v3614_v47 = vadd.f32 %v3613_v28, %v9851_v20 }
 0x4ff   :  { %v3616_v29 = vadd.f32 %v3615_v7, %v9855_v4  ;;  %v3617_v10 = vpop.f32.mrb[202].mxu1  ;;  %8057 = vmatprep.mubr.msk.bf16.mxu0 %vm4419_vm1, %v4319_v23 }
 0x500   :  { %v11729_v25 = vmax.f32 %v11532_v40, %v5815_v60  ;;  %v11732_v11 = vadd.f32 %v11535_v55, %v5815_v60  ;;  %v5816_v62 = vmax.f32 %v5396_v43, 0.0  ;;  %v3619_v17 = vpop.f32.mrb[203].mxu1  ;;  %5607 = vmatmul.mubr.bf16.gmra.mrb[80].mxu0 %v4318_v34  ;;  %v3618_v14 = vadd.f32 %v3617_v10, %v9851_v20 }
 0x501   :  { %v3620_v1 = vadd.f32 %v3619_v17, %v9855_v4  ;;  %v4088_v49 = vmax.f32 %v3614_v47, 0.0  ;;  %v4089_v15 = vmax.f32 %v3616_v29, 0.0 }
 0x502   :  { %v11737_v57 = vmax.f32 %v11540_v54, %v5816_v62  ;;  %v11740_v58 = vadd.f32 %v11543_v48, %v5816_v62  ;;  %v4090_v40 = vmax.f32 %v3618_v14, 0.0 }
 0x503   :  { %v4091_v23 = vmax.f32 %v3620_v1, 0.0  ;;  %v5400_v28 = vpop.f32.mrb[232].mxu0 }
 0x504   :  { %v5401_v55 = vadd.f32 %v11410_v18, %v5400_v28  ;;  %v5402_v38 = vpop.f32.mrb[233].mxu0  ;;  %v4320_v60 = vpack.c.bf16 %v4090_v40, %v4088_v49 }
 0x505   :  { %v4321_v34 = vpack.c.bf16 %v4091_v23, %v4089_v15  ;;  %v3623_v43 = vpop.f32.mrb[204].mxu1  ;;  %v5403_v7 = vpop.f32.mrb[234].mxu0 }
 0x506   :  { %v5817_v16 = vmax.f32 %v5401_v55, 0.0  ;;  %v5404_v10 = vadd.f32 %v11410_v18, %v5403_v7  ;;  %v3625_v54 = vpop.f32.mrb[205].mxu1  ;;  %v5405_v17 = vpop.f32.mrb[235].mxu0  ;;  %v3624_v48 = vadd.f32 %v3623_v43, %v9851_v20 }
 0x507   :  { %v3626_v47 = vadd.f32 %v3625_v54, %v9855_v4  ;;  %v3627_v29 = vpop.f32.mrb[206].mxu1  ;;  %8058 = vmatprep.mubr.msk.bf16.mxu0 %vm4419_vm1, %v4321_v34 }
 0x508   :  { %v11748_v62 = vmax.f32 %v11551_v52, %v5817_v16  ;;  %v11751_v14 = vadd.f32 %v11554_v21, %v5817_v16  ;;  %v5818_v1 = vmax.f32 %v5404_v10, 0.0  ;;  %v3629_v49 = vpop.f32.mrb[207].mxu1  ;;  %5615 = vmatmul.mubr.bf16.gmra.mrb[84].mxu0 %v4320_v60  ;;  %v3628_v15 = vadd.f32 %v3627_v29, %v9851_v20 }
 0x509   :  { %v3630_v40 = vadd.f32 %v3629_v49, %v9855_v4  ;;  %v4092_v55 = vmax.f32 %v3624_v48, 0.0  ;;  %v4093_v38 = vmax.f32 %v3626_v47, 0.0 }
 0x50a   :  { %v11756_v23 = vmax.f32 %v11559_v63, %v5818_v1  ;;  %v11759_v28 = vadd.f32 %v11562_v53, %v5818_v1  ;;  %v4094_v52 = vmax.f32 %v3628_v15, 0.0  ;;  %v11765_v63 = vld [vmem:[%s12537_s6] ss:$0 sm:$0xff] }
 0x50b   :  { %v4095_v34 = vmax.f32 %v3630_v40, 0.0  ;;  %v5408_v43 = vpop.f32.mrb[236].mxu0 }
 0x50c   :  { %v5409_v21 = vadd.f32 %v11410_v18, %v5408_v43  ;;  %v5410_v7 = vpop.f32.mrb[237].mxu0  ;;  %v4322_v16 = vpack.c.bf16 %v4094_v52, %v4092_v55 }
 0x50d   :  { %v4323_v60 = vpack.c.bf16 %v4095_v34, %v4093_v38  ;;  %v3633_v10 = vpop.f32.mrb[208].mxu1  ;;  %v5411_v54 = vpop.f32.mrb[238].mxu0 }
 0x50e   :  { %v5819_v17 = vmax.f32 %v5409_v21, 0.0  ;;  %v5412_v53 = vadd.f32 %v11765_v63, %v5411_v54  ;;  %v3635_v48 = vpop.f32.mrb[209].mxu1  ;;  %v5413_v47 = vpop.f32.mrb[239].mxu0  ;;  %v3634_v29 = vadd.f32 %v3633_v10, %v9851_v20 }
 0x50f   :  { %v3636_v1 = vadd.f32 %v3635_v48, %v9855_v4  ;;  %v3637_v18 = vpop.f32.mrb[210].mxu1  ;;  %8059 = vmatprep.mubr.msk.bf16.mxu0 %vm4419_vm1, %v4323_v60 }
 0x510   :  { %v11772_v49 = vmax.f32 %v11570_v22, %v5819_v17  ;;  %v11775_v15 = vadd.f32 %v11573_v26, %v5819_v17  ;;  %v5820_v40 = vmax.f32 %v5412_v53, 0.0  ;;  %v3639_v55 = vpop.f32.mrb[211].mxu1  ;;  %5623 = vmatmul.mubr.bf16.gmra.mrb[88].mxu0 %v4322_v16  ;;  %v3638_v38 = vadd.f32 %v3637_v18, %v9851_v20 }
 0x511   :  { %v3640_v52 = vadd.f32 %v3639_v55, %v9855_v4  ;;  %v4096_v21 = vmax.f32 %v3634_v29, 0.0  ;;  %v4097_v7 = vmax.f32 %v3636_v1, 0.0 }
 0x512   :  { %v11780_v34 = vmax.f32 %v11578_v19, %v5820_v40  ;;  %v11783_v43 = vadd.f32 %v11581_v27, %v5820_v40  ;;  %v4098_v22 = vmax.f32 %v3638_v38, 0.0 }
 0x513   :  { %v4099_v60 = vmax.f32 %v3640_v52, 0.0  ;;  %v5416_v10 = vpop.f32.mrb[240].mxu0 }
 0x514   :  { %v5417_v26 = vadd.f32 %v11765_v63, %v5416_v10  ;;  %v5418_v54 = vpop.f32.mrb[241].mxu0  ;;  %v4324_v17 = vpack.c.bf16 %v4098_v22, %v4096_v21 }
 0x515   :  { %v4325_v16 = vpack.c.bf16 %v4099_v60, %v4097_v7  ;;  %v3643_v53 = vpop.f32.mrb[212].mxu1  ;;  %v5419_v48 = vpop.f32.mrb[242].mxu0 }
 0x516   :  { %v5821_v47 = vmax.f32 %v5417_v26, 0.0  ;;  %v5420_v18 = vadd.f32 %v11765_v63, %v5419_v48  ;;  %v3645_v19 = vpop.f32.mrb[213].mxu1  ;;  %v5421_v55 = vpop.f32.mrb[243].mxu0  ;;  %v3644_v27 = vadd.f32 %v3643_v53, %v9851_v20 }
 0x517   :  { %v3646_v29 = vadd.f32 %v3645_v19, %v9855_v4  ;;  %v3647_v1 = vpop.f32.mrb[214].mxu1  ;;  %8060 = vmatprep.mubr.msk.bf16.mxu0 %vm4419_vm1, %v4325_v16 }
 0x518   :  { %v11791_v40 = vmax.f32 %v11589_v59, %v5821_v47  ;;  %v11794_v38 = vadd.f32 %v11592_v51, %v5821_v47  ;;  %v5822_v52 = vmax.f32 %v5420_v18, 0.0  ;;  %v3649_v21 = vpop.f32.mrb[215].mxu1  ;;  %5631 = vmatmul.mubr.bf16.gmra.mrb[92].mxu0 %v4324_v17  ;;  %v3648_v7 = vadd.f32 %v3647_v1, %v9851_v20 }
 0x519   :  { %v3650_v22 = vadd.f32 %v3649_v21, %v9855_v4  ;;  %v4100_v26 = vmax.f32 %v3644_v27, 0.0  ;;  %v4101_v54 = vmax.f32 %v3646_v29, 0.0 }
 0x51a   :  { %v11799_v60 = vmax.f32 %v11597_v5, %v5822_v52  ;;  %v11802_v10 = vadd.f32 %v11600_v50, %v5822_v52  ;;  %v4102_v59 = vmax.f32 %v3648_v7, 0.0 }
 0x51b   :  { %v4103_v16 = vmax.f32 %v3650_v22, 0.0  ;;  %v5424_v53 = vpop.f32.mrb[244].mxu0 }
 0x51c   :  { %v5425_v51 = vadd.f32 %v11765_v63, %v5424_v53  ;;  %v5426_v48 = vpop.f32.mrb[245].mxu0  ;;  %v4326_v47 = vpack.c.bf16 %v4102_v59, %v4100_v26 }
 0x51d   :  { %v4327_v17 = vpack.c.bf16 %v4103_v16, %v4101_v54  ;;  %v3653_v18 = vpop.f32.mrb[216].mxu1  ;;  %v5427_v19 = vpop.f32.mrb[246].mxu0 }
 0x51e   :  { %v5823_v55 = vmax.f32 %v5425_v51, 0.0  ;;  %v5428_v1 = vadd.f32 %v11765_v63, %v5427_v19  ;;  %v3655_v5 = vpop.f32.mrb[217].mxu1  ;;  %v5429_v21 = vpop.f32.mrb[247].mxu0  ;;  %v3654_v50 = vadd.f32 %v3653_v18, %v9851_v20 }
 0x51f   :  { %v3656_v27 = vadd.f32 %v3655_v5, %v9855_v4  ;;  %v3657_v29 = vpop.f32.mrb[218].mxu1  ;;  %8061 = vmatprep.mubr.msk.bf16.mxu0 %vm4419_vm1, %v4327_v17 }
 0x520   :  { %v11810_v52 = vmax.f32 %v11608_v44, %v5823_v55  ;;  %v11813_v7 = vadd.f32 %v11611_v61, %v5823_v55  ;;  %v5824_v22 = vmax.f32 %v5428_v1, 0.0  ;;  %v3659_v26 = vpop.f32.mrb[219].mxu1  ;;  %5639 = vmatmul.mubr.bf16.gmra.mrb[96].mxu0 %v4326_v47  ;;  %v3658_v54 = vadd.f32 %v3657_v29, %v9851_v20 }
 0x521   :  { %v3660_v59 = vadd.f32 %v3659_v26, %v9855_v4  ;;  %v4104_v51 = vmax.f32 %v3654_v50, 0.0  ;;  %v4105_v48 = vmax.f32 %v3656_v27, 0.0 }
 0x522   :  { %v11818_v16 = vmax.f32 %v11616_v42, %v5824_v22  ;;  %v11821_v53 = vadd.f32 %v11619_v39, %v5824_v22  ;;  %v4106_v44 = vmax.f32 %v3658_v54, 0.0 }
 0x523   :  { %v4107_v17 = vmax.f32 %v3660_v59, 0.0  ;;  %v5432_v18 = vpop.f32.mrb[248].mxu0 }
 0x524   :  { %v5433_v61 = vadd.f32 %v11765_v63, %v5432_v18  ;;  %v5434_v19 = vpop.f32.mrb[249].mxu0  ;;  %v4328_v55 = vpack.c.bf16 %v4106_v44, %v4104_v51 }
 0x525   :  { %v4329_v47 = vpack.c.bf16 %v4107_v17, %v4105_v48  ;;  %v3663_v1 = vpop.f32.mrb[220].mxu1  ;;  %v5435_v5 = vpop.f32.mrb[250].mxu0 }
 0x526   :  { %v5825_v21 = vmax.f32 %v5433_v61, 0.0  ;;  %v5436_v29 = vadd.f32 %v11765_v63, %v5435_v5  ;;  %v3665_v42 = vpop.f32.mrb[221].mxu1  ;;  %v5437_v26 = vpop.f32.mrb[251].mxu0  ;;  %v3664_v39 = vadd.f32 %v3663_v1, %v9851_v20 }
 0x527   :  { %v3666_v50 = vadd.f32 %v3665_v42, %v9855_v4  ;;  %v3667_v27 = vpop.f32.mrb[222].mxu1  ;;  %8062 = vmatprep.mubr.msk.bf16.mxu0 %vm4419_vm1, %v4329_v47 }
 0x528   :  { %v11829_v22 = vmax.f32 %v11627_v13, %v5825_v21  ;;  %v11832_v54 = vadd.f32 %v11630_v45, %v5825_v21  ;;  %v5826_v59 = vmax.f32 %v5436_v29, 0.0  ;;  %v3669_v51 = vpop.f32.mrb[223].mxu1  ;;  %5647 = vmatmul.mubr.bf16.gmra.mrb[100].mxu0 %v4328_v55  ;;  %v3668_v48 = vadd.f32 %v3667_v27, %v9851_v20 }
 0x529   :  { %v3670_v44 = vadd.f32 %v3669_v51, %v9855_v4  ;;  %v4108_v61 = vmax.f32 %v3664_v39, 0.0  ;;  %v4109_v19 = vmax.f32 %v3666_v50, 0.0 }
 0x52a   :  { %v11837_v17 = vmax.f32 %v11635_v33, %v5826_v59  ;;  %v11840_v18 = vadd.f32 %v11638_v41, %v5826_v59  ;;  %v4110_v13 = vmax.f32 %v3668_v48, 0.0 }
 0x52b   :  { %v4111_v47 = vmax.f32 %v3670_v44, 0.0  ;;  %v5440_v1 = vpop.f32.mrb[252].mxu0 }
 0x52c   :  { %v5441_v45 = vadd.f32 %v11765_v63, %v5440_v1  ;;  %v5442_v5 = vpop.f32.mrb[253].mxu0  ;;  %v4330_v21 = vpack.c.bf16 %v4110_v13, %v4108_v61 }
 0x52d   :  { %v4331_v55 = vpack.c.bf16 %v4111_v47, %v4109_v19  ;;  %v5443_v29 = vpop.f32.mrb[254].mxu0 }
 0x52e   :  { %v5827_v20 = vmax.f32 %v5441_v45, 0.0  ;;  %v5444_v4 = vadd.f32 %v11765_v63, %v5443_v29  ;;  %v5445_v42 = vpop.f32.mrb[255].mxu0 }
 0x52f   :  { %8063 = vmatprep.mubr.msk.bf16.mxu0 %vm4419_vm1, %v4331_v55 }
 0x530   :  { %v11846_v33 = vmax.f32 %v11646_v8, %v5827_v20  ;;  %v11849_v41 = vadd.f32 %v11649_v2, %v5827_v20  ;;  %v5828_v26 = vmax.f32 %v5444_v4, 0.0  ;;  %5655 = vmatmul.mubr.bf16.gmra.mrb[104].mxu0 %v4330_v21 }
 0x532   :  { %v11852_v39 = vmax.f32 %v11660_v37, %v5828_v26  ;;  %v11855_v50 = vadd.f32 %v11663_v35, %v5828_v26 }
 0x533   :  { %v5448_v27 = vpop.f32.mrb[0].mxu0 }
 0x534   :  { %v5449_v59 = vadd.f32 %v11765_v63, %v5448_v27  ;;  %v5450_v51 = vpop.f32.mrb[1].mxu0 }
 0x535   :  { %v5451_v48 = vpop.f32.mrb[2].mxu0 }
 0x536   :  { %v5829_v44 = vmax.f32 %v5449_v59, 0.0  ;;  %v5452_v8 = vadd.f32 %v11765_v63, %v5451_v48  ;;  %v5453_v61 = vpop.f32.mrb[3].mxu0 }
 0x538   :  { %v11860_v2 = vmax.f32 %v11672_v3, %v5829_v44  ;;  %v11863_v19 = vadd.f32 %v11675_v56, %v5829_v44  ;;  %v5830_v37 = vmax.f32 %v5452_v8, 0.0 }
 0x53a   :  { %v11866_v13 = vmax.f32 %v11680_v24, %v5830_v37  ;;  %v11869_v35 = vadd.f32 %v11683_v9, %v5830_v37 }
 0x53b   :  { %v5456_v47 = vpop.f32.mrb[4].mxu0 }
 0x53c   :  { %v5457_v1 = vadd.f32 %v11765_v63, %v5456_v47  ;;  %v5458_v45 = vpop.f32.mrb[5].mxu0 }
 0x53d   :  { %v5459_v5 = vpop.f32.mrb[6].mxu0 }
 0x53e   :  { %v5831_v21 = vmax.f32 %v5457_v1, 0.0  ;;  %v5460_v55 = vadd.f32 %v11765_v63, %v5459_v5  ;;  %v5461_v3 = vpop.f32.mrb[7].mxu0 }
 0x540   :  { %v11874_v29 = vmax.f32 %v11691_v46, %v5831_v21  ;;  %v11877_v56 = vadd.f32 %v11694_v12, %v5831_v21  ;;  %v5832_v24 = vmax.f32 %v5460_v55, 0.0 }
 0x542   :  { %v11880_v20 = vmax.f32 %v11699_v0, %v5832_v24  ;;  %v11883_v9 = vadd.f32 %v11702_v30, %v5832_v24 }
 0x543   :  { %v5464_v4 = vpop.f32.mrb[8].mxu0 }
 0x544   :  { %v5465_v42 = vadd.f32 %v11765_v63, %v5464_v4  ;;  %v5466_v26 = vpop.f32.mrb[9].mxu0 }
 0x545   :  { %v5467_v27 = vpop.f32.mrb[10].mxu0 }
 0x546   :  { %v5833_v59 = vmax.f32 %v5465_v42, 0.0  ;;  %v5468_v51 = vadd.f32 %v11765_v63, %v5467_v27  ;;  %v5469_v46 = vpop.f32.mrb[11].mxu0 }
 0x548   :  { %v11888_v48 = vmax.f32 %v11710_v36, %v5833_v59  ;;  %v11891_v12 = vadd.f32 %v11713_v32, %v5833_v59  ;;  %v5834_v0 = vmax.f32 %v5468_v51, 0.0 }
 0x54a   :  { %v11894_v44 = vmax.f32 %v11718_v31, %v5834_v0  ;;  %v11897_v30 = vadd.f32 %v11721_v6, %v5834_v0 }
 0x54b   :  { %v5472_v8 = vpop.f32.mrb[12].mxu0 }
 0x54c   :  { %v5473_v61 = vadd.f32 %v11765_v63, %v5472_v8  ;;  %v5474_v37 = vpop.f32.mrb[13].mxu0 }
 0x54d   :  { %v5475_v47 = vpop.f32.mrb[14].mxu0 }
 0x54e   :  { %v5835_v1 = vmax.f32 %v5473_v61, 0.0  ;;  %v5476_v45 = vadd.f32 %v11765_v63, %v5475_v47  ;;  %v5477_v36 = vpop.f32.mrb[15].mxu0 }
 0x550   :  { %v11902_v5 = vmax.f32 %v11729_v25, %v5835_v1  ;;  %v11905_v32 = vadd.f32 %v11732_v11, %v5835_v1  ;;  %v5836_v31 = vmax.f32 %v5476_v45, 0.0 }
 0x552   :  { %v11908_v21 = vmax.f32 %v11737_v57, %v5836_v31  ;;  %v11911_v6 = vadd.f32 %v11740_v58, %v5836_v31 }
 0x553   :  { %v5480_v55 = vpop.f32.mrb[16].mxu0 }
 0x554   :  { %v5481_v3 = vadd.f32 %v11765_v63, %v5480_v55  ;;  %v5482_v24 = vpop.f32.mrb[17].mxu0 }
 0x555   :  { %v5483_v4 = vpop.f32.mrb[18].mxu0 }
 0x556   :  { %v5837_v42 = vmax.f32 %v5481_v3, 0.0  ;;  %v5484_v26 = vadd.f32 %v11765_v63, %v5483_v4  ;;  %v5485_v25 = vpop.f32.mrb[19].mxu0 }
 0x558   :  { %v11916_v27 = vmax.f32 %v11748_v62, %v5837_v42  ;;  %v11919_v11 = vadd.f32 %v11751_v14, %v5837_v42  ;;  %v5838_v57 = vmax.f32 %v5484_v26, 0.0 }
 0x55a   :  { %v11922_v59 = vmax.f32 %v11756_v23, %v5838_v57  ;;  %v11925_v58 = vadd.f32 %v11759_v28, %v5838_v57 }
 0x55b   :  { %v5488_v51 = vpop.f32.mrb[20].mxu0 }
 0x55c   :  { %v5489_v46 = vadd.f32 %v11765_v63, %v5488_v51  ;;  %v5490_v0 = vpop.f32.mrb[21].mxu0 }
 0x55d   :  { %v5491_v8 = vpop.f32.mrb[22].mxu0 }
 0x55e   :  { %v5839_v61 = vmax.f32 %v5489_v46, 0.0  ;;  %v5492_v37 = vadd.f32 %v11765_v63, %v5491_v8  ;;  %v5493_v62 = vpop.f32.mrb[23].mxu0 }
 0x560   :  { %v11930_v47 = vmax.f32 %v11772_v49, %v5839_v61  ;;  %v11933_v14 = vadd.f32 %v11775_v15, %v5839_v61  ;;  %v5840_v23 = vmax.f32 %v5492_v37, 0.0 }
 0x562   :  { %v11936_v1 = vmax.f32 %v11780_v34, %v5840_v23  ;;  %v11939_v28 = vadd.f32 %v11783_v43, %v5840_v23 }
 0x563   :  { %v5496_v45 = vpop.f32.mrb[24].mxu0 }
 0x564   :  { %v5497_v36 = vadd.f32 %v11765_v63, %v5496_v45  ;;  %v5498_v31 = vpop.f32.mrb[25].mxu0 }
 0x565   :  { %v5499_v55 = vpop.f32.mrb[26].mxu0 }
 0x566   :  { %v5841_v3 = vmax.f32 %v5497_v36, 0.0  ;;  %v5500_v24 = vadd.f32 %v11765_v63, %v5499_v55  ;;  %v5501_v49 = vpop.f32.mrb[27].mxu0 }
 0x568   :  { %v11944_v4 = vmax.f32 %v11791_v40, %v5841_v3  ;;  %v11947_v15 = vadd.f32 %v11794_v38, %v5841_v3  ;;  %v5842_v34 = vmax.f32 %v5500_v24, 0.0 }
 0x56a   :  { %v11950_v42 = vmax.f32 %v11799_v60, %v5842_v34  ;;  %v11953_v43 = vadd.f32 %v11802_v10, %v5842_v34 }
 0x56b   :  { %v5504_v26 = vpop.f32.mrb[28].mxu0 }
 0x56c   :  { %v5505_v25 = vadd.f32 %v11765_v63, %v5504_v26  ;;  %v5506_v57 = vpop.f32.mrb[29].mxu0 }
 0x56d   :  { %v5507_v51 = vpop.f32.mrb[30].mxu0 }
 0x56e   :  { %v5843_v46 = vmax.f32 %v5505_v25, 0.0  ;;  %v5508_v0 = vadd.f32 %v11765_v63, %v5507_v51  ;;  %v5509_v40 = vpop.f32.mrb[31].mxu0 }
 0x570   :  { %v11958_v8 = vmax.f32 %v11810_v52, %v5843_v46  ;;  %v11961_v38 = vadd.f32 %v11813_v7, %v5843_v46  ;;  %v5844_v60 = vmax.f32 %v5508_v0, 0.0 }
 0x572   :  { %v11964_v61 = vmax.f32 %v11818_v16, %v5844_v60  ;;  %v11967_v10 = vadd.f32 %v11821_v53, %v5844_v60 }
 0x573   :  { %v5512_v37 = vpop.f32.mrb[32].mxu0 }
 0x574   :  { %v5513_v62 = vadd.f32 %v11765_v63, %v5512_v37  ;;  %v5514_v23 = vpop.f32.mrb[33].mxu0 }
 0x575   :  { %v5515_v45 = vpop.f32.mrb[34].mxu0 }
 0x576   :  { %v5845_v36 = vmax.f32 %v5513_v62, 0.0  ;;  %v5516_v31 = vadd.f32 %v11765_v63, %v5515_v45  ;;  %v5517_v52 = vpop.f32.mrb[35].mxu0 }
 0x578   :  { %v11972_v55 = vmax.f32 %v11829_v22, %v5845_v36  ;;  %v11975_v7 = vadd.f32 %v11832_v54, %v5845_v36  ;;  %v5846_v16 = vmax.f32 %v5516_v31, 0.0 }
 0x57a   :  { %v11978_v3 = vmax.f32 %v11837_v17, %v5846_v16  ;;  %v11981_v53 = vadd.f32 %v11840_v18, %v5846_v16 }
 0x57b   :  { %v5520_v24 = vpop.f32.mrb[36].mxu0 }
 0x57c   :  { %v5521_v49 = vadd.f32 %v11765_v63, %v5520_v24  ;;  %v5522_v34 = vpop.f32.mrb[37].mxu0 }
 0x57d   :  { %v5523_v26 = vpop.f32.mrb[38].mxu0 }
 0x57e   :  { %v5847_v25 = vmax.f32 %v5521_v49, 0.0  ;;  %v5524_v57 = vadd.f32 %v11765_v63, %v5523_v26  ;;  %v5525_v22 = vpop.f32.mrb[39].mxu0 }
 0x580   :  { %v11986_v51 = vmax.f32 %v11846_v33, %v5847_v25  ;;  %v11989_v54 = vadd.f32 %v11849_v41, %v5847_v25  ;;  %v5848_v17 = vmax.f32 %v5524_v57, 0.0 }
 0x582   :  { %v11992_v46 = vmax.f32 %v11852_v39, %v5848_v17  ;;  %v11995_v18 = vadd.f32 %v11855_v50, %v5848_v17 }
 0x583   :  { %v5528_v0 = vpop.f32.mrb[40].mxu0 }
 0x584   :  { %v5529_v40 = vadd.f32 %v11765_v63, %v5528_v0  ;;  %v5530_v60 = vpop.f32.mrb[41].mxu0 }
 0x585   :  { %v5531_v37 = vpop.f32.mrb[42].mxu0 }
 0x586   :  { %v5849_v62 = vmax.f32 %v5529_v40, 0.0  ;;  %v5532_v23 = vadd.f32 %v11765_v63, %v5531_v37  ;;  %v5533_v33 = vpop.f32.mrb[43].mxu0 }
 0x588   :  { %v12000_v45 = vmax.f32 %v11860_v2, %v5849_v62  ;;  %v12003_v41 = vadd.f32 %v11863_v19, %v5849_v62  ;;  %v5850_v39 = vmax.f32 %v5532_v23, 0.0 }
 0x58a   :  { %v12006_v36 = vmax.f32 %v11866_v13, %v5850_v39  ;;  %v12009_v50 = vadd.f32 %v11869_v35, %v5850_v39 }
 0x58b   :  { %v5536_v31 = vpop.f32.mrb[44].mxu0 }
 0x58c   :  { %v5537_v52 = vadd.f32 %v11765_v63, %v5536_v31  ;;  %v5538_v16 = vpop.f32.mrb[45].mxu0 }
 0x58d   :  { %v5539_v24 = vpop.f32.mrb[46].mxu0 }
 0x58e   :  { %v5851_v49 = vmax.f32 %v5537_v52, 0.0  ;;  %v5540_v34 = vadd.f32 %v11765_v63, %v5539_v24  ;;  %v5541_v2 = vpop.f32.mrb[47].mxu0 }
 0x590   :  { %v12014_v26 = vmax.f32 %v11874_v29, %v5851_v49  ;;  %v12017_v19 = vadd.f32 %v11877_v56, %v5851_v49  ;;  %v5852_v13 = vmax.f32 %v5540_v34, 0.0 }
 0x592   :  { %v12020_v25 = vmax.f32 %v11880_v20, %v5852_v13  ;;  %v12023_v35 = vadd.f32 %v11883_v9, %v5852_v13 }
 0x593   :  { %v5544_v57 = vpop.f32.mrb[48].mxu0 }
 0x594   :  { %v5545_v22 = vadd.f32 %v11765_v63, %v5544_v57  ;;  %v5546_v17 = vpop.f32.mrb[49].mxu0 }
 0x595   :  { %v5547_v0 = vpop.f32.mrb[50].mxu0 }
 0x596   :  { %v5853_v40 = vmax.f32 %v5545_v22, 0.0  ;;  %v5548_v60 = vadd.f32 %v11765_v63, %v5547_v0  ;;  %v5549_v29 = vpop.f32.mrb[51].mxu0 }
 0x598   :  { %v12028_v37 = vmax.f32 %v11888_v48, %v5853_v40  ;;  %v12031_v56 = vadd.f32 %v11891_v12, %v5853_v40  ;;  %v5854_v20 = vmax.f32 %v5548_v60, 0.0 }
 0x59a   :  { %v12034_v62 = vmax.f32 %v11894_v44, %v5854_v20  ;;  %v12037_v9 = vadd.f32 %v11897_v30, %v5854_v20 }
 0x59b   :  { %v5552_v23 = vpop.f32.mrb[52].mxu0 }
 0x59c   :  { %v5553_v33 = vadd.f32 %v11765_v63, %v5552_v23  ;;  %v5554_v39 = vpop.f32.mrb[53].mxu0 }
 0x59d   :  { %v5555_v31 = vpop.f32.mrb[54].mxu0 }
 0x59e   :  { %v5855_v52 = vmax.f32 %v5553_v33, 0.0  ;;  %v5556_v16 = vadd.f32 %v11765_v63, %v5555_v31  ;;  %v5557_v48 = vpop.f32.mrb[55].mxu0 }
 0x5a0   :  { %v12042_v24 = vmax.f32 %v11902_v5, %v5855_v52  ;;  %v12045_v12 = vadd.f32 %v11905_v32, %v5855_v52  ;;  %v5856_v44 = vmax.f32 %v5556_v16, 0.0 }
 0x5a2   :  { %v12048_v49 = vmax.f32 %v11908_v21, %v5856_v44  ;;  %v12051_v30 = vadd.f32 %v11911_v6, %v5856_v44 }
 0x5a3   :  { %v5560_v34 = vpop.f32.mrb[56].mxu0 }
 0x5a4   :  { %v5561_v2 = vadd.f32 %v11765_v63, %v5560_v34  ;;  %v5562_v13 = vpop.f32.mrb[57].mxu0 }
 0x5a5   :  { %v5563_v57 = vpop.f32.mrb[58].mxu0 }
 0x5a6   :  { %v5857_v22 = vmax.f32 %v5561_v2, 0.0  ;;  %v5564_v17 = vadd.f32 %v11765_v63, %v5563_v57  ;;  %v5565_v5 = vpop.f32.mrb[59].mxu0 }
 0x5a8   :  { %v12056_v0 = vmax.f32 %v11916_v27, %v5857_v22  ;;  %v12059_v32 = vadd.f32 %v11919_v11, %v5857_v22  ;;  %v5858_v21 = vmax.f32 %v5564_v17, 0.0 }
 0x5aa   :  { %v12062_v40 = vmax.f32 %v11922_v59, %v5858_v21  ;;  %v12065_v6 = vadd.f32 %v11925_v58, %v5858_v21 }
 0x5ab   :  { %v5568_v60 = vpop.f32.mrb[60].mxu0 }
 0x5ac   :  { %v5569_v29 = vadd.f32 %v11765_v63, %v5568_v60  ;;  %v5570_v20 = vpop.f32.mrb[61].mxu0 }
 0x5ad   :  { %v5571_v23 = vpop.f32.mrb[62].mxu0 }
 0x5ae   :  { %v5859_v33 = vmax.f32 %v5569_v29, 0.0  ;;  %v5572_v39 = vadd.f32 %v11765_v63, %v5571_v23  ;;  %v5573_v27 = vpop.f32.mrb[63].mxu0 }
 0x5b0   :  { %v12070_v31 = vmax.f32 %v11930_v47, %v5859_v33  ;;  %v12073_v11 = vadd.f32 %v11933_v14, %v5859_v33  ;;  %v5860_v59 = vmax.f32 %v5572_v39, 0.0 }
 0x5b2   :  { %v12076_v52 = vmax.f32 %v11936_v1, %v5860_v59  ;;  %v12079_v58 = vadd.f32 %v11939_v28, %v5860_v59 }
 0x5b3   :  { %v5576_v16 = vpop.f32.mrb[64].mxu0 }
 0x5b4   :  { %v5577_v48 = vadd.f32 %v11765_v63, %v5576_v16  ;;  %v5578_v44 = vpop.f32.mrb[65].mxu0 }
 0x5b5   :  { %v5579_v34 = vpop.f32.mrb[66].mxu0 }
 0x5b6   :  { %v5861_v2 = vmax.f32 %v5577_v48, 0.0  ;;  %v5580_v13 = vadd.f32 %v11765_v63, %v5579_v34  ;;  %v5581_v47 = vpop.f32.mrb[67].mxu0 }
 0x5b8   :  { %v12084_v57 = vmax.f32 %v11944_v4, %v5861_v2  ;;  %v12087_v14 = vadd.f32 %v11947_v15, %v5861_v2  ;;  %v5862_v1 = vmax.f32 %v5580_v13, 0.0 }
 0x5ba   :  { %v12090_v22 = vmax.f32 %v11950_v42, %v5862_v1  ;;  %v12093_v28 = vadd.f32 %v11953_v43, %v5862_v1 }
 0x5bb   :  { %v5584_v17 = vpop.f32.mrb[68].mxu0 }
 0x5bc   :  { %v5585_v5 = vadd.f32 %v11765_v63, %v5584_v17  ;;  %v5586_v21 = vpop.f32.mrb[69].mxu0 }
 0x5bd   :  { %v5587_v60 = vpop.f32.mrb[70].mxu0 }
 0x5be   :  { %v5863_v29 = vmax.f32 %v5585_v5, 0.0  ;;  %v5588_v20 = vadd.f32 %v11765_v63, %v5587_v60  ;;  %v5589_v4 = vpop.f32.mrb[71].mxu0 }
 0x5bf   :  { %v8766_v4 = vld [vmem:[%s12538_s9 + $0x8] sm:$0xff]  }
 0x5c0   :  { %v6243_v23 = vmax.f32 %v11958_v8, %v5863_v29  ;;  %v6263_v15 = vadd.f32 %v11961_v38, %v5863_v29  ;;  %v5864_v33 = vmax.f32 %v5588_v20, 0.0  ;;  %v8765_v38 = vld [vmem:[%s12538_s9] sm:$0xff]   ;;  %v12653_v20 = vmov 0  }
 0x5c2   :  { %v6283_v39 = vmul.f32 0.21212122, %v6263_v15  ;;  %v6244_v42 = vmax.f32 %v11964_v61, %v5864_v33  ;;  %v6264_v43 = vadd.f32 %v11967_v10, %v5864_v33 }
 0x5c3   :  { %v5592_v27 = vpop.f32.mrb[72].mxu0 }
 0x5c4   :  { %v6303_v59 = vadd.f32 %v6283_v39, %v6243_v23  ;;  %v6284_v16 = vmul.f32 0.21212122, %v6264_v43  ;;  %v5593_v48 = vadd.f32 %v11765_v63, %v5592_v27  ;;  %v5594_v44 = vpop.f32.mrb[73].mxu0  ;;  %v8767_v43 = vld [vmem:[%s12538_s9 + $0x10] sm:$0xff]  }
 0x5c5   :  { %v5595_v34 = vpop.f32.mrb[74].mxu0 }
 0x5c6   :  { %v6304_v2 = vadd.f32 %v6284_v16, %v6244_v42  ;;  %v5865_v13 = vmax.f32 %v5593_v48, 0.0  ;;  %v5596_v47 = vadd.f32 %v11765_v63, %v5595_v34  ;;  %v5597_v8 = vpop.f32.mrb[75].mxu0 }
 0x5c8   :  { %v6323_v1 = vpack.c.bf16 %v6304_v2, %v6303_v59  ;;  %v6245_v61 = vmax.f32 %v11972_v55, %v5865_v13  ;;  %v6265_v10 = vadd.f32 %v11975_v7, %v5865_v13  ;;  %v5866_v17 = vmax.f32 %v5596_v47, 0.0  ;;  %v8768_v47 = vld [vmem:[%s12538_s9 + $0x18] sm:$0xff]  }
 0x5ca   :  { %v6285_v5 = vmul.f32 0.21212122, %v6265_v10  ;;  %v6246_v21 = vmax.f32 %v11978_v3, %v5866_v17  ;;  %v6266_v60 = vadd.f32 %v11981_v53, %v5866_v17  ;;  %6474 = vmatmul.mubr.bf16.vlgmr.msra.gmra.mrb[224].mxu1 %v6323_v1  ;;  %v8769_v17 = vld [vmem:[%s12538_s9 + $0x20] sm:$0xff]  }
 0x5cb   :  { %v5600_v29 = vpop.f32.mrb[76].mxu0  ;;  %6483 = vmatprep.mubr.bf16.mxu1 %v12653_v20  ;;  %6752 = vmatpush1.bf16.msra.mxu1 %v8765_v38 }
 0x5cc   :  { %v6305_v23 = vadd.f32 %v6285_v5, %v6245_v61  ;;  %v6286_v15 = vmul.f32 0.21212122, %v6266_v60  ;;  %v5601_v55 = vadd.f32 %v11765_v63, %v5600_v29  ;;  %v5602_v7 = vpop.f32.mrb[77].mxu0  ;;  %6753 = vmatprep.subr.bf16.mxu1 %v12653_v20 }
 0x5cd   :  { %v5603_v33 = vpop.f32.mrb[78].mxu0  ;;  %v8770_v7 = vld [vmem:[%s12538_s9 + $0x28] sm:$0xff]  }
 0x5ce   :  { %v6306_v3 = vadd.f32 %v6286_v15, %v6246_v21  ;;  %v5867_v39 = vmax.f32 %v5601_v55, 0.0  ;;  %v5604_v53 = vadd.f32 %v11765_v63, %v5603_v33  ;;  %v5605_v42 = vpop.f32.mrb[79].mxu0 }
 0x5cf   :  { %6754 = vmatpush1.bf16.msra.mxu1 %v8766_v4 }
 0x5d0   :  { %v6324_v27 = vpack.c.bf16 %v6306_v3, %v6305_v23  ;;  %v6247_v59 = vmax.f32 %v11986_v51, %v5867_v39  ;;  %v6267_v16 = vadd.f32 %v11989_v54, %v5867_v39  ;;  %v5868_v48 = vmax.f32 %v5604_v53, 0.0  ;;  %6755 = vmatprep.subr.bf16.mxu1 %v12653_v20 }
 0x5d2   :  { %v6287_v44 = vmul.f32 0.21212122, %v6267_v16  ;;  %v6248_v34 = vmax.f32 %v11992_v46, %v5868_v48  ;;  %v6268_v2 = vadd.f32 %v11995_v18, %v5868_v48  ;;  %6484 = vmatmul.mubr.bf16.gmra.mrb[228].mxu1 %v6324_v27 }
 0x5d3   :  { %v5608_v13 = vpop.f32.mrb[80].mxu0  ;;  %6493 = vmatprep.mubr.bf16.mxu1 %v12653_v20  ;;  %6756 = vmatpush1.bf16.msra.mxu1 %v8767_v43  ;;  %v8771_v43 = vld [vmem:[%s12538_s9 + $0x30] sm:$0xff]  }
 0x5d4   :  { %v6307_v51 = vadd.f32 %v6287_v44, %v6247_v59  ;;  %v6288_v8 = vmul.f32 0.21212122, %v6268_v2  ;;  %v5609_v54 = vadd.f32 %v11765_v63, %v5608_v13  ;;  %v5610_v38 = vpop.f32.mrb[81].mxu0  ;;  %6757 = vmatprep.subr.bf16.mxu1 %v12653_v20 }
 0x5d5   :  { %v5611_v1 = vpop.f32.mrb[82].mxu0 }
 0x5d6   :  { %v6308_v46 = vadd.f32 %v6288_v8, %v6248_v34  ;;  %v5869_v61 = vmax.f32 %v5609_v54, 0.0  ;;  %v5612_v18 = vadd.f32 %v11765_v63, %v5611_v1  ;;  %v5613_v10 = vpop.f32.mrb[83].mxu0 }
 0x5d7   :  { %6758 = vmatpush1.bf16.msra.mxu1 %v8768_v47  ;;  %v8772_v47 = vld [vmem:[%s12538_s9 + $0x38] sm:$0xff]  }
 0x5d8   :  { %v6325_v5 = vpack.c.bf16 %v6308_v46, %v6307_v51  ;;  %v6249_v21 = vmax.f32 %v12000_v45, %v5869_v61  ;;  %v6269_v60 = vadd.f32 %v12003_v41, %v5869_v61  ;;  %v5870_v29 = vmax.f32 %v5612_v18, 0.0  ;;  %6759 = vmatprep.subr.bf16.mxu1 %v12653_v20  ;;  %v8773_v46 = vld [vmem:[%s12538_s9 + $0x40] sm:$0xff]  }
 0x5da   :  { %v6289_v4 = vmul.f32 0.21212122, %v6269_v60  ;;  %v6250_v23 = vmax.f32 %v12006_v36, %v5870_v29  ;;  %v6270_v15 = vadd.f32 %v12009_v50, %v5870_v29  ;;  %6494 = vmatmul.mubr.bf16.gmra.mrb[232].mxu1 %v6325_v5 }
 0x5db   :  { %v5616_v55 = vpop.f32.mrb[84].mxu0  ;;  %6503 = vmatprep.mubr.bf16.mxu1 %v12653_v20  ;;  %6760 = vmatpush1.bf16.msra.mxu1 %v8769_v17 }
 0x5dc   :  { %v6309_v45 = vadd.f32 %v6289_v4, %v6249_v21  ;;  %v6290_v33 = vmul.f32 0.21212122, %v6270_v15  ;;  %v5617_v41 = vadd.f32 %v11765_v63, %v5616_v55  ;;  %v5618_v3 = vpop.f32.mrb[85].mxu0  ;;  %6761 = vmatprep.subr.bf16.mxu1 %v12653_v20 }
 0x5dd   :  { %v5619_v39 = vpop.f32.mrb[86].mxu0 }
 0x5de   :  { %v6310_v36 = vadd.f32 %v6290_v33, %v6250_v23  ;;  %v5871_v53 = vmax.f32 %v5617_v41, 0.0  ;;  %v5620_v50 = vadd.f32 %v11765_v63, %v5619_v39  ;;  %v5621_v42 = vpop.f32.mrb[87].mxu0 }
 0x5df   :  { %6762 = vmatpush1.bf16.msra.mxu1 %v8770_v7 }
 0x5e0   :  { %v6326_v27 = vpack.c.bf16 %v6310_v36, %v6309_v45  ;;  %v6251_v59 = vmax.f32 %v12014_v26, %v5871_v53  ;;  %v6271_v16 = vadd.f32 %v12017_v19, %v5871_v53  ;;  %v5872_v48 = vmax.f32 %v5620_v50, 0.0  ;;  %6763 = vmatprep.subr.bf16.mxu1 %v12653_v20 }
 0x5e2   :  { %v6291_v44 = vmul.f32 0.21212122, %v6271_v16  ;;  %v6252_v34 = vmax.f32 %v12020_v25, %v5872_v48  ;;  %v6272_v2 = vadd.f32 %v12023_v35, %v5872_v48  ;;  %6504 = vmatmul.mubr.bf16.gmra.mrb[236].mxu1 %v6326_v27 }
 0x5e3   :  { %v5624_v13 = vpop.f32.mrb[88].mxu0  ;;  %6513 = vmatprep.mubr.bf16.mxu1 %v12653_v20  ;;  %6764 = vmatpush1.bf16.msra.mxu1 %v8771_v43 }
 0x5e4   :  { %v6311_v26 = vadd.f32 %v6291_v44, %v6251_v59  ;;  %v6292_v51 = vmul.f32 0.21212122, %v6272_v2  ;;  %v5625_v19 = vadd.f32 %v11765_v63, %v5624_v13  ;;  %v5626_v8 = vpop.f32.mrb[89].mxu0  ;;  %6765 = vmatprep.subr.bf16.mxu1 %v12653_v20 }
 0x5e5   :  { %v5627_v54 = vpop.f32.mrb[90].mxu0 }
 0x5e6   :  { %v6312_v25 = vadd.f32 %v6292_v51, %v6252_v34  ;;  %v5873_v38 = vmax.f32 %v5625_v19, 0.0  ;;  %v5628_v35 = vadd.f32 %v11765_v63, %v5627_v54  ;;  %v5629_v1 = vpop.f32.mrb[91].mxu0 }
 0x5e7   :  { %6766 = vmatpush1.bf16.msra.mxu1 %v8772_v47 }
 0x5e8   :  { %v6327_v61 = vpack.c.bf16 %v6312_v25, %v6311_v26  ;;  %v6253_v18 = vmax.f32 %v12028_v37, %v5873_v38  ;;  %v6273_v10 = vadd.f32 %v12031_v56, %v5873_v38  ;;  %v5874_v17 = vmax.f32 %v5628_v35, 0.0  ;;  %6767 = vmatprep.subr.bf16.mxu1 %v12653_v20 }
 0x5ea   :  { %v6293_v5 = vmul.f32 0.21212122, %v6273_v10  ;;  %v6254_v21 = vmax.f32 %v12034_v62, %v5874_v17  ;;  %v6274_v60 = vadd.f32 %v12037_v9, %v5874_v17  ;;  %6514 = vmatmul.mubr.bf16.gmra.mrb[240].mxu1 %v6327_v61 }
 0x5eb   :  { %v5632_v29 = vpop.f32.mrb[92].mxu0  ;;  %6523 = vmatprep.mubr.bf16.mxu1 %v12653_v20  ;;  %6768 = vmatpush1.bf16.msra.mxu1 %v8773_v46 }
 0x5ec   :  { %v6313_v4 = vadd.f32 %v6293_v5, %v6253_v18  ;;  %v6294_v23 = vmul.f32 0.21212122, %v6274_v60  ;;  %v5633_v15 = vadd.f32 %v11765_v63, %v5632_v29  ;;  %v5634_v37 = vpop.f32.mrb[93].mxu0  ;;  %6769 = vmatprep.subr.bf16.mxu1 %v12653_v20 }
 0x5ed   :  { %v5635_v56 = vpop.f32.mrb[94].mxu0 }
 0x5ee   :  { %v6314_v55 = vadd.f32 %v6294_v23, %v6254_v21  ;;  %v5875_v7 = vmax.f32 %v5633_v15, 0.0  ;;  %v5636_v45 = vadd.f32 %v11765_v63, %v5635_v56  ;;  %v5637_v62 = vpop.f32.mrb[95].mxu0 }
 0x5f0   :  { %v6328_v33 = vpack.c.bf16 %v6314_v55, %v6313_v4  ;;  %v6255_v9 = vmax.f32 %v12042_v24, %v5875_v7  ;;  %v6275_v41 = vadd.f32 %v12045_v12, %v5875_v7  ;;  %v5876_v3 = vmax.f32 %v5636_v45, 0.0 }
 0x5f2   :  { %v6295_v39 = vmul.f32 0.21212122, %v6275_v41  ;;  %v6256_v36 = vmax.f32 %v12048_v49, %v5876_v3  ;;  %v6276_v53 = vadd.f32 %v12051_v30, %v5876_v3  ;;  %6524 = vmatmul.mubr.bf16.gmra.mrb[244].mxu1 %v6328_v33 }
 0x5f3   :  { %v5640_v50 = vpop.f32.mrb[96].mxu0  ;;  %6533 = vmatprep.mubr.bf16.mxu1 %v12653_v20 }
 0x5f4   :  { %v6315_v42 = vadd.f32 %v6295_v39, %v6255_v9  ;;  %v6296_v43 = vmul.f32 0.21212122, %v6276_v53  ;;  %v5641_v27 = vadd.f32 %v11765_v63, %v5640_v50  ;;  %v5642_v59 = vpop.f32.mrb[97].mxu0 }
 0x5f5   :  { %v5643_v16 = vpop.f32.mrb[98].mxu0 }
 0x5f6   :  { %v6316_v48 = vadd.f32 %v6296_v43, %v6256_v36  ;;  %v5877_v24 = vmax.f32 %v5641_v27, 0.0  ;;  %v5644_v12 = vadd.f32 %v11765_v63, %v5643_v16  ;;  %v5645_v44 = vpop.f32.mrb[99].mxu0  ;;  %v8841_v63 = vld [vmem:[%s12537_s6] ss:$0 sm:$0xff]  ;;  %v12655_v36 = vld [vmem:[#allocation23_spill] sm:$0xff] }
 0x5f8   :  { %v6329_v34 = vpack.c.bf16 %v6316_v48, %v6315_v42  ;;  %v6257_v49 = vmax.f32 %v12056_v0, %v5877_v24  ;;  %v6277_v30 = vadd.f32 %v12059_v32, %v5877_v24  ;;  %v5878_v2 = vmax.f32 %v5644_v12, 0.0 }
 0x5fa   :  { %v6297_v13 = vmul.f32 0.21212122, %v6277_v30  ;;  %v6258_v47 = vmax.f32 %v12062_v40, %v5878_v2  ;;  %v6278_v26 = vadd.f32 %v12065_v6, %v5878_v2  ;;  %6534 = vmatmul.mubr.bf16.gmra.mrb[248].mxu1 %v6329_v34 }
 0x5fb   :  { %v5648_v51 = vpop.f32.mrb[100].mxu0  ;;  %6543 = vmatprep.mubr.bf16.mxu1 %v12653_v20 }
 0x5fc   :  { %v6317_v19 = vadd.f32 %v6297_v13, %v6257_v49  ;;  %v6298_v8 = vmul.f32 0.21212122, %v6278_v26  ;;  %v5649_v54 = vadd.f32 %v8841_v63, %v5648_v51  ;;  %v5650_v0 = vpop.f32.mrb[101].mxu0  ;;  %v8776_v51 = vld [vmem:[%s12539_s11 + $0x8] sm:$0xff]  }
 0x5fd   :  { %v5651_v25 = vpop.f32.mrb[102].mxu0 }
 0x5fe   :  { %v6318_v32 = vadd.f32 %v6298_v8, %v6258_v47  ;;  %v5879_v38 = vmax.f32 %v5649_v54, 0.0  ;;  %v5652_v35 = vadd.f32 %v8841_v63, %v5651_v25  ;;  %v5653_v1 = vpop.f32.mrb[103].mxu0 }
 0x600   :  { %v6330_v40 = vpack.c.bf16 %v6318_v32, %v6317_v19  ;;  %v6259_v6 = vmax.f32 %v12070_v31, %v5879_v38  ;;  %v6279_v46 = vadd.f32 %v12073_v11, %v5879_v38  ;;  %v5880_v61 = vmax.f32 %v5652_v35, 0.0  ;;  %v8777_v38 = vld [vmem:[%s12539_s11 + $0x10] sm:$0xff]  }
 0x602   :  { %v6299_v18 = vmul.f32 0.21212122, %v6279_v46  ;;  %v6260_v10 = vmax.f32 %v12076_v52, %v5880_v61  ;;  %v6280_v17 = vadd.f32 %v12079_v58, %v5880_v61  ;;  %6544 = vmatmul.mubr.bf16.gmra.mrb[252].mxu1 %v6330_v40 }
 0x603   :  { %v5656_v5 = vpop.f32.mrb[104].mxu0  ;;  %6553 = vmatprep.mubr.bf16.mxu1 %v12653_v20 }
 0x604   :  { %v6319_v21 = vadd.f32 %v6299_v18, %v6259_v6  ;;  %v6300_v60 = vmul.f32 0.21212122, %v6280_v17  ;;  %v5657_v29 = vadd.f32 %v8841_v63, %v5656_v5  ;;  %v5658_v4 = vpop.f32.mrb[105].mxu0 }
 0x605   :  { %v5659_v23 = vpop.f32.mrb[106].mxu0 }
 0x606   :  { %v6320_v15 = vadd.f32 %v6300_v60, %v6260_v10  ;;  %v5881_v37 = vmax.f32 %v5657_v29, 0.0  ;;  %v5660_v31 = vadd.f32 %v8841_v63, %v5659_v23  ;;  %v5661_v56 = vpop.f32.mrb[107].mxu0  ;;  %v8778_v10 = vld [vmem:[%s12539_s11 + $0x18] sm:$0xff]  }
 0x608   :  { %v6331_v11 = vpack.c.bf16 %v6320_v15, %v6319_v21  ;;  %v6261_v55 = vmax.f32 %v12084_v57, %v5881_v37  ;;  %v6281_v52 = vadd.f32 %v12087_v14, %v5881_v37  ;;  %v5882_v7 = vmax.f32 %v5660_v31, 0.0  ;;  %v8774_v57 = vld [vmem:[%s12538_s9 + $0x48] sm:$0xff]   ;;  %v8775_v14 = vld [vmem:[%s12539_s11] sm:$0xff]  }
 0x609   :  { %6770 = vmatpush1.bf16.msra.mxu1 %v8774_v57 }
 0x60a   :  { %v6301_v58 = vmul.f32 0.21212122, %v6281_v52  ;;  %v6262_v45 = vmax.f32 %v12090_v22, %v5882_v7  ;;  %v6282_v62 = vadd.f32 %v12093_v28, %v5882_v7  ;;  %6554 = vmatmul.mubr.bf16.gmra.mrb[0].mxu1 %v6331_v11  ;;  %8535 = vmatprep.subr.bf16.mxu1 %v8775_v14  ;;  %v6349_v22 = vld [vmem:[%s12540_s8] sm:$0x3] }
 0x60b   :  { %6563 = vmatprep.mubr.bf16.mxu1 %v12653_v20  ;;  %v12654_v28 = vld [vmem:[#allocation22_spill] sm:$0xff]  ;;  %v12212_v53 = vrot.slane %v6349_v22, %v12655_v36 }
 0x60c   :  { %v6321_v33 = vadd.f32 %v6301_v58, %v6261_v55  ;;  %v6302_v9 = vmul.f32 0.21212122, %v6282_v62  ;;  %v12209_v39 = vrot.slane %v6349_v22, %v12654_v28 }
 0x60e   :  { %v6322_v41 = vadd.f32 %v6302_v9, %v6262_v45 }
 0x610   :  { %v6332_v3 = vpack.c.bf16 %v6322_v41, %v6321_v33 }
 0x612   :  { %6564 = vmatmul.mubr.bf16.gmra.mrb[4].mxu1 %v6332_v3 }
 0x69d   :  { %v6475_v50 = vpop.f32.mrb[224].mxu1 }
 0x69e   :  { %v6476_v42 = vadd.f32 %v6475_v50, %v12209_v39  ;;  %v6477_v43 = vpop.f32.mrb[225].mxu1 }
 0x69f   :  { %v6478_v27 = vadd.f32 %v6477_v43, %v12212_v53  ;;  %v6479_v59 = vpop.f32.mrb[226].mxu1 }
 0x6a0   :  { %v6480_v16 = vadd.f32 %v6479_v59, %v12209_v39  ;;  %v6481_v48 = vpop.f32.mrb[227].mxu1  ;;  %v6574_v12 = vmax.f32 %v6476_v42, 0.0 }
 0x6a1   :  { %v6482_v24 = vadd.f32 %v6481_v48, %v12212_v53  ;;  %v6575_v34 = vmax.f32 %v6478_v27, 0.0 }
 0x6a2   :  { %v6576_v44 = vmax.f32 %v6480_v16, 0.0 }
 0x6a3   :  { %v6577_v49 = vmax.f32 %v6482_v24, 0.0 }
 0x6a4   :  { %v6614_v30 = vpack.c.bf16 %v6576_v44, %v6574_v12 }
 0x6a5   :  { %v6615_v2 = vpack.c.bf16 %v6577_v49, %v6575_v34  ;;  %v6485_v13 = vpop.f32.mrb[228].mxu1 }
 0x6a6   :  { %v6486_v47 = vadd.f32 %v6485_v13, %v12209_v39  ;;  %v6487_v26 = vpop.f32.mrb[229].mxu1 }
 0x6a7   :  { %v6488_v19 = vadd.f32 %v6487_v26, %v12212_v53  ;;  %v6489_v8 = vpop.f32.mrb[230].mxu1  ;;  %8091 = vmatprep.mubr.msk.bf16.mxu1 %vm4419_vm1, %v6615_v2 }
 0x6a8   :  { %v6490_v63 = vadd.f32 %v6489_v8, %v12209_v39  ;;  %v6491_v54 = vpop.f32.mrb[231].mxu1  ;;  %6784 = vmatmul.mubr.bf16.vlgmr.msra.gmra.mrb[8].mxu1 %v6614_v30  ;;  %v6578_v25 = vmax.f32 %v6486_v47, 0.0 }
 0x6a9   :  { %v6492_v0 = vadd.f32 %v6491_v54, %v12212_v53  ;;  %8536 = vmatpush3.bf16.msra.mxu1 %v8775_v14  ;;  %v6579_v35 = vmax.f32 %v6488_v19, 0.0 }
 0x6aa   :  { %v6580_v32 = vmax.f32 %v6490_v63, 0.0  ;;  %8537 = vmatprep.subr.bf16.mxu1 %v8776_v51 }
 0x6ab   :  { %v6581_v1 = vmax.f32 %v6492_v0, 0.0 }
 0x6ac   :  { %v6616_v40 = vpack.c.bf16 %v6580_v32, %v6578_v25 }
 0x6ad   :  { %v6617_v6 = vpack.c.bf16 %v6581_v1, %v6579_v35  ;;  %v6495_v46 = vpop.f32.mrb[232].mxu1  ;;  %8538 = vmatpush3.bf16.msra.mxu1 %v8776_v51 }
 0x6ae   :  { %v6496_v61 = vadd.f32 %v6495_v46, %v12209_v39  ;;  %v6497_v18 = vpop.f32.mrb[233].mxu1  ;;  %8539 = vmatprep.subr.bf16.mxu1 %v8777_v38 }
 0x6af   :  { %v6498_v17 = vadd.f32 %v6497_v18, %v12212_v53  ;;  %v6499_v5 = vpop.f32.mrb[234].mxu1  ;;  %8092 = vmatprep.mubr.msk.bf16.mxu1 %vm4419_vm1, %v6617_v6 }
 0x6b0   :  { %v6500_v21 = vadd.f32 %v6499_v5, %v12209_v39  ;;  %v6501_v60 = vpop.f32.mrb[235].mxu1  ;;  %6792 = vmatmul.mubr.bf16.gmra.mrb[12].mxu1 %v6616_v40  ;;  %v6582_v4 = vmax.f32 %v6496_v61, 0.0 }
 0x6b1   :  { %v6502_v29 = vadd.f32 %v6501_v60, %v12212_v53  ;;  %8540 = vmatpush3.bf16.msra.mxu1 %v8777_v38  ;;  %v6583_v15 = vmax.f32 %v6498_v17, 0.0 }
 0x6b2   :  { %v6584_v23 = vmax.f32 %v6500_v21, 0.0  ;;  %8541 = vmatprep.subr.bf16.mxu1 %v8778_v10 }
 0x6b3   :  { %v6585_v37 = vmax.f32 %v6502_v29, 0.0 }
 0x6b4   :  { %v6618_v31 = vpack.c.bf16 %v6584_v23, %v6582_v4 }
 0x6b5   :  { %v6619_v56 = vpack.c.bf16 %v6585_v37, %v6583_v15  ;;  %v6505_v11 = vpop.f32.mrb[236].mxu1  ;;  %8542 = vmatpush3.bf16.msra.mxu1 %v8778_v10 }
 0x6b6   :  { %v6506_v55 = vadd.f32 %v6505_v11, %v12209_v39  ;;  %v6507_v52 = vpop.f32.mrb[237].mxu1 }
 0x6b7   :  { %v6508_v7 = vadd.f32 %v6507_v52, %v12212_v53  ;;  %v6509_v58 = vpop.f32.mrb[238].mxu1  ;;  %8093 = vmatprep.mubr.msk.bf16.mxu1 %vm4419_vm1, %v6619_v56 }
 0x6b8   :  { %v6510_v45 = vadd.f32 %v6509_v58, %v12209_v39  ;;  %v6511_v62 = vpop.f32.mrb[239].mxu1  ;;  %6800 = vmatmul.mubr.bf16.gmra.mrb[16].mxu1 %v6618_v31  ;;  %v6586_v9 = vmax.f32 %v6506_v55, 0.0 }
 0x6b9   :  { %v6512_v33 = vadd.f32 %v6511_v62, %v12212_v53  ;;  %v6587_v3 = vmax.f32 %v6508_v7, 0.0 }
 0x6ba   :  { %v6588_v41 = vmax.f32 %v6510_v45, 0.0 }
 0x6bb   :  { %v6589_v57 = vmax.f32 %v6512_v33, 0.0 }
 0x6bc   :  { %v6620_v14 = vpack.c.bf16 %v6588_v41, %v6586_v9 }
 0x6bd   :  { %v6621_v22 = vpack.c.bf16 %v6589_v57, %v6587_v3  ;;  %v6515_v50 = vpop.f32.mrb[240].mxu1 }
 0x6be   :  { %v6516_v42 = vadd.f32 %v6515_v50, %v12209_v39  ;;  %v6517_v43 = vpop.f32.mrb[241].mxu1 }
 0x6bf   :  { %v6518_v27 = vadd.f32 %v6517_v43, %v12212_v53  ;;  %v6519_v59 = vpop.f32.mrb[242].mxu1  ;;  %8094 = vmatprep.mubr.msk.bf16.mxu1 %vm4419_vm1, %v6621_v22 }
 0x6c0   :  { %v6520_v16 = vadd.f32 %v6519_v59, %v12209_v39  ;;  %v6521_v48 = vpop.f32.mrb[243].mxu1  ;;  %6808 = vmatmul.mubr.bf16.gmra.mrb[20].mxu1 %v6620_v14  ;;  %v6590_v12 = vmax.f32 %v6516_v42, 0.0 }
 0x6c1   :  { %v6522_v24 = vadd.f32 %v6521_v48, %v12212_v53  ;;  %v6591_v34 = vmax.f32 %v6518_v27, 0.0 }
 0x6c2   :  { %v6592_v44 = vmax.f32 %v6520_v16, 0.0 }
 0x6c3   :  { %v6593_v49 = vmax.f32 %v6522_v24, 0.0 }
 0x6c4   :  { %v6622_v30 = vpack.c.bf16 %v6592_v44, %v6590_v12 }
 0x6c5   :  { %v6623_v2 = vpack.c.bf16 %v6593_v49, %v6591_v34  ;;  %v6525_v13 = vpop.f32.mrb[244].mxu1 }
 0x6c6   :  { %v6526_v47 = vadd.f32 %v6525_v13, %v12209_v39  ;;  %v6527_v26 = vpop.f32.mrb[245].mxu1 }
 0x6c7   :  { %v6528_v51 = vadd.f32 %v6527_v26, %v12212_v53  ;;  %v6529_v19 = vpop.f32.mrb[246].mxu1  ;;  %8095 = vmatprep.mubr.msk.bf16.mxu1 %vm4419_vm1, %v6623_v2 }
 0x6c8   :  { %v6530_v8 = vadd.f32 %v6529_v19, %v12209_v39  ;;  %v6531_v63 = vpop.f32.mrb[247].mxu1  ;;  %6816 = vmatmul.mubr.bf16.gmra.mrb[24].mxu1 %v6622_v30  ;;  %v6594_v0 = vmax.f32 %v6526_v47, 0.0 }
 0x6c9   :  { %v6532_v54 = vadd.f32 %v6531_v63, %v12212_v53  ;;  %v6595_v32 = vmax.f32 %v6528_v51, 0.0 }
 0x6ca   :  { %v6596_v25 = vmax.f32 %v6530_v8, 0.0 }
 0x6cb   :  { %v6597_v38 = vmax.f32 %v6532_v54, 0.0 }
 0x6cc   :  { %v6624_v35 = vpack.c.bf16 %v6596_v25, %v6594_v0 }
 0x6cd   :  { %v6625_v1 = vpack.c.bf16 %v6597_v38, %v6595_v32  ;;  %v6535_v40 = vpop.f32.mrb[248].mxu1  ;;  %v8779_v38 = vld [vmem:[%s12539_s11 + $0x20] sm:$0xff]  }
 0x6ce   :  { %v6536_v6 = vadd.f32 %v6535_v40, %v12209_v39  ;;  %v6537_v46 = vpop.f32.mrb[249].mxu1  ;;  %8543 = vmatprep.subr.bf16.mxu1 %v8779_v38 }
 0x6cf   :  { %v6538_v61 = vadd.f32 %v6537_v46, %v12212_v53  ;;  %v6539_v18 = vpop.f32.mrb[250].mxu1  ;;  %8096 = vmatprep.mubr.msk.bf16.mxu1 %vm4419_vm1, %v6625_v1  ;;  %8544 = vmatpush3.bf16.msra.mxu1 %v8779_v38  ;;  %v12288_v1 = vld [vmem:[%s12541_s10] ss:$0 sm:$0xff] }
 0x6d0   :  { %v6540_v10 = vadd.f32 %v6539_v18, %v12209_v39  ;;  %v6541_v17 = vpop.f32.mrb[251].mxu1  ;;  %6824 = vmatmul.mubr.bf16.gmra.mrb[28].mxu1 %v6624_v35  ;;  %v6598_v21 = vmax.f32 %v6536_v6, 0.0  ;;  %v8782_v35 = vld [vmem:[%s12539_s11 + $0x38] sm:$0xff]  }
 0x6d1   :  { %v6542_v5 = vadd.f32 %v6541_v17, %v12212_v53  ;;  %v6599_v29 = vmax.f32 %v6538_v61, 0.0 }
 0x6d2   :  { %v6600_v60 = vmax.f32 %v6540_v10, 0.0 }
 0x6d3   :  { %v6601_v4 = vmax.f32 %v6542_v5, 0.0 }
 0x6d4   :  { %v6626_v23 = vpack.c.bf16 %v6600_v60, %v6598_v21 }
 0x6d5   :  { %v6627_v15 = vpack.c.bf16 %v6601_v4, %v6599_v29  ;;  %v6545_v37 = vpop.f32.mrb[252].mxu1 }
 0x6d6   :  { %v6546_v31 = vadd.f32 %v6545_v37, %v12209_v39  ;;  %v6547_v56 = vpop.f32.mrb[253].mxu1 }
 0x6d7   :  { %v6548_v11 = vadd.f32 %v6547_v56, %v12212_v53  ;;  %v6549_v55 = vpop.f32.mrb[254].mxu1  ;;  %8097 = vmatprep.mubr.msk.bf16.mxu1 %vm4419_vm1, %v6627_v15 }
 0x6d8   :  { %v6550_v52 = vadd.f32 %v6549_v55, %v12209_v39  ;;  %v6551_v7 = vpop.f32.mrb[255].mxu1  ;;  %6832 = vmatmul.mubr.bf16.gmra.mrb[32].mxu1 %v6626_v23  ;;  %v6602_v45 = vmax.f32 %v6546_v31, 0.0 }
 0x6d9   :  { %v6552_v58 = vadd.f32 %v6551_v7, %v12212_v53  ;;  %v6603_v33 = vmax.f32 %v6548_v11, 0.0 }
 0x6da   :  { %v6604_v62 = vmax.f32 %v6550_v52, 0.0 }
 0x6db   :  { %v6605_v9 = vmax.f32 %v6552_v58, 0.0 }
 0x6dc   :  { %v6628_v41 = vpack.c.bf16 %v6604_v62, %v6602_v45 }
 0x6dd   :  { %v6629_v3 = vpack.c.bf16 %v6605_v9, %v6603_v33  ;;  %v6555_v57 = vpop.f32.mrb[0].mxu1 }
 0x6de   :  { %v6556_v14 = vadd.f32 %v6555_v57, %v12209_v39  ;;  %v6557_v22 = vpop.f32.mrb[1].mxu1 }
 0x6df   :  { %v6558_v50 = vadd.f32 %v6557_v22, %v12212_v53  ;;  %v6559_v42 = vpop.f32.mrb[2].mxu1  ;;  %8098 = vmatprep.mubr.msk.bf16.mxu1 %vm4419_vm1, %v6629_v3 }
 0x6e0   :  { %v6560_v43 = vadd.f32 %v6559_v42, %v12209_v39  ;;  %v6561_v27 = vpop.f32.mrb[3].mxu1  ;;  %6840 = vmatmul.mubr.bf16.gmra.mrb[36].mxu1 %v6628_v41  ;;  %v6606_v16 = vmax.f32 %v6556_v14, 0.0 }
 0x6e1   :  { %v6562_v59 = vadd.f32 %v6561_v27, %v12212_v53  ;;  %v6607_v24 = vmax.f32 %v6558_v50, 0.0 }
 0x6e2   :  { %v6608_v48 = vmax.f32 %v6560_v43, 0.0 }
 0x6e3   :  { %v6609_v12 = vmax.f32 %v6562_v59, 0.0 }
 0x6e4   :  { %v6630_v44 = vpack.c.bf16 %v6608_v48, %v6606_v16 }
 0x6e5   :  { %v6631_v34 = vpack.c.bf16 %v6609_v12, %v6607_v24  ;;  %v6565_v49 = vpop.f32.mrb[4].mxu1 }
 0x6e6   :  { %v6566_v30 = vadd.f32 %v6565_v49, %v12209_v39  ;;  %v6567_v2 = vpop.f32.mrb[5].mxu1 }
 0x6e7   :  { %v6568_v13 = vadd.f32 %v6567_v2, %v12212_v53  ;;  %v6569_v47 = vpop.f32.mrb[6].mxu1  ;;  %8099 = vmatprep.mubr.msk.bf16.mxu1 %vm4419_vm1, %v6631_v34 }
 0x6e8   :  { %v6570_v26 = vadd.f32 %v6569_v47, %v12209_v39  ;;  %v6571_v51 = vpop.f32.mrb[7].mxu1  ;;  %6848 = vmatmul.mubr.bf16.gmra.mrb[40].mxu1 %v6630_v44  ;;  %v6610_v8 = vmax.f32 %v6566_v30, 0.0  ;;  %v8780_v39 = vld [vmem:[%s12539_s11 + $0x28] sm:$0xff]  }
 0x6e9   :  { %v6572_v19 = vadd.f32 %v6571_v51, %v12212_v53  ;;  %v6611_v54 = vmax.f32 %v6568_v13, 0.0  ;;  %8545 = vmatprep.subr.bf16.mxu1 %v8780_v39  ;;  %v8781_v53 = vld [vmem:[%s12539_s11 + $0x30] sm:$0xff]  }
 0x6ea   :  { %v6612_v63 = vmax.f32 %v6570_v26, 0.0  ;;  %8546 = vmatpush3.bf16.msra.mxu1 %v8780_v39 }
 0x6eb   :  { %v6613_v0 = vmax.f32 %v6572_v19, 0.0  ;;  %8547 = vmatprep.subr.bf16.mxu1 %v8781_v53 }
 0x6ec   :  { %v6632_v25 = vpack.c.bf16 %v6612_v63, %v6610_v8 }
 0x6ed   :  { %v6633_v32 = vpack.c.bf16 %v6613_v0, %v6611_v54 }
 0x6ee   :  { %8548 = vmatpush3.bf16.msra.mxu1 %v8781_v53 }
 0x6ef   :  { %8100 = vmatprep.mubr.msk.bf16.mxu1 %vm4419_vm1, %v6633_v32  ;;  %8549 = vmatprep.subr.bf16.mxu1 %v8782_v35 }
 0x6f0   :  { %6856 = vmatmul.mubr.bf16.gmra.mrb[44].mxu1 %v6632_v25 }
 0x6f2   :  { %8550 = vmatpush3.bf16.msra.mxu1 %v8782_v35 }
 0x77b   :  { %v6785_v40 = vpop.f32.mrb[8].mxu1 }
 0x77c   :  { %v6786_v6 = vadd.f32 %v12288_v1, %v6785_v40  ;;  %v6787_v46 = vpop.f32.mrb[9].mxu1 }
 0x77d   :  { %v6788_v61 = vpop.f32.mrb[10].mxu1 }
 0x77e   :  { %v6789_v18 = vadd.f32 %v12288_v1, %v6788_v61  ;;  %v6790_v10 = vpop.f32.mrb[11].mxu1  ;;  %v6864_v17 = vmax.f32 %v6786_v6, 0.0 }
 0x780   :  { %v6865_v5 = vmax.f32 %v6789_v18, 0.0 }
 0x782   :  { %v6884_v21 = vpack.c.bf16 %v6865_v5, %v6864_v17 }
 0x783   :  { %v6793_v60 = vpop.f32.mrb[12].mxu1 }
 0x784   :  { %v6794_v29 = vadd.f32 %v12288_v1, %v6793_v60  ;;  %v6795_v4 = vpop.f32.mrb[13].mxu1  ;;  %8551 = vmatprep.mubr.bf16.mxu1 %v6884_v21 }
 0x785   :  { %v6796_v23 = vpop.f32.mrb[14].mxu1 }
 0x786   :  { %v6797_v15 = vadd.f32 %v12288_v1, %v6796_v23  ;;  %v6798_v37 = vpop.f32.mrb[15].mxu1  ;;  %v6866_v31 = vmax.f32 %v6794_v29, 0.0 }
 0x788   :  { %v6867_v56 = vmax.f32 %v6797_v15, 0.0 }
 0x78a   :  { %v6885_v11 = vpack.c.bf16 %v6867_v56, %v6866_v31 }
 0x78b   :  { %v6801_v55 = vpop.f32.mrb[16].mxu1 }
 0x78c   :  { %v6802_v52 = vadd.f32 %v12288_v1, %v6801_v55  ;;  %v6803_v7 = vpop.f32.mrb[17].mxu1  ;;  %8552 = vmatmul.mubr.bf16.vlgmr.msra.gmra.mrb[48].mxu1 %v6885_v11 }
 0x78d   :  { %v6804_v58 = vpop.f32.mrb[18].mxu1 }
 0x78e   :  { %v6805_v45 = vadd.f32 %v12288_v1, %v6804_v58  ;;  %v6806_v62 = vpop.f32.mrb[19].mxu1  ;;  %v6868_v33 = vmax.f32 %v6802_v52, 0.0 }
 0x790   :  { %v6869_v9 = vmax.f32 %v6805_v45, 0.0 }
 0x792   :  { %v6886_v41 = vpack.c.bf16 %v6869_v9, %v6868_v33 }
 0x793   :  { %v6809_v3 = vpop.f32.mrb[20].mxu1 }
 0x794   :  { %v6810_v57 = vadd.f32 %v12288_v1, %v6809_v3  ;;  %v6811_v14 = vpop.f32.mrb[21].mxu1  ;;  %8555 = vmatprep.mubr.bf16.mxu1 %v6886_v41 }
 0x795   :  { %v6812_v22 = vpop.f32.mrb[22].mxu1 }
 0x796   :  { %v6813_v50 = vadd.f32 %v12288_v1, %v6812_v22  ;;  %v6814_v42 = vpop.f32.mrb[23].mxu1  ;;  %v6870_v43 = vmax.f32 %v6810_v57, 0.0  ;;  %v8843_v22 = vmov 0.0  }
 0x797   :  { %8571 = vmatprep.subr.bf16.mxu1 %v8843_v22  ;;  %v8784_v42 = vld [vmem:[%s12542_s15 + $0x8] sm:$0xff]  }
 0x798   :  { %v6871_v27 = vmax.f32 %v6813_v50, 0.0  ;;  %v8783_v50 = vld [vmem:[%s12542_s15] sm:$0xff]  }
 0x799   :  { %8572 = vmatpush3.bf16.msra.mxu1 %v8783_v50 }
 0x79a   :  { %v6887_v59 = vpack.c.bf16 %v6871_v27, %v6870_v43  ;;  %8573 = vmatprep.subr.bf16.mxu1 %v8843_v22  ;;  %v8786_v43 = vld [vmem:[%s12542_s15 + $0x18] sm:$0xff]   ;;  %v8787_v27 = vld [vmem:[%s12542_s15 + $0x20] sm:$0xff]  }
 0x79b   :  { %v6817_v16 = vpop.f32.mrb[24].mxu1 }
 0x79c   :  { %v6818_v48 = vadd.f32 %v12288_v1, %v6817_v16  ;;  %v6819_v24 = vpop.f32.mrb[25].mxu1  ;;  %8556 = vmatmul.mubr.bf16.gmra.mrb[52].mxu1 %v6887_v59  ;;  %v8788_v59 = vld [vmem:[%s12542_s15 + $0x28] sm:$0xff]   ;;  %v8789_v16 = vld [vmem:[%s12542_s15 + $0x30] sm:$0xff]  }
 0x79d   :  { %v6820_v12 = vpop.f32.mrb[26].mxu1  ;;  %8574 = vmatpush3.bf16.msra.mxu1 %v8784_v42  ;;  %v8793_v24 = vld [vmem:[%s12543_s16 + $0x4] ss:$8 sps:$4 sm:$0xff]  }
 0x79e   :  { %v6821_v44 = vadd.f32 %v12288_v1, %v6820_v12  ;;  %v6822_v34 = vpop.f32.mrb[27].mxu1  ;;  %v6872_v49 = vmax.f32 %v6818_v48, 0.0  ;;  %8575 = vmatprep.subr.bf16.mxu1 %v8843_v22  ;;  %v8790_v48 = vld [vmem:[%s12542_s15 + $0x38] sm:$0xff]   ;;  %v12340_v12 = vld [vmem:[%s12544_s12] ss:$0 sm:$0xff] }
 0x7a0   :  { %v6873_v30 = vmax.f32 %v6821_v44, 0.0 }
 0x7a2   :  { %v6888_v2 = vpack.c.bf16 %v6873_v30, %v6872_v49  ;;  %v12346_v30 = vld [vmem:[%s12545_s13] ss:$0 sm:$0xff] }
 0x7a3   :  { %v6825_v13 = vpop.f32.mrb[28].mxu1 }
 0x7a4   :  { %v6826_v47 = vadd.f32 %v12288_v1, %v6825_v13  ;;  %v6827_v26 = vpop.f32.mrb[29].mxu1  ;;  %8559 = vmatprep.mubr.bf16.mxu1 %v6888_v2 }
 0x7a5   :  { %v6828_v51 = vpop.f32.mrb[30].mxu1 }
 0x7a6   :  { %v6829_v19 = vadd.f32 %v12288_v1, %v6828_v51  ;;  %v6830_v8 = vpop.f32.mrb[31].mxu1  ;;  %v6874_v63 = vmax.f32 %v6826_v47, 0.0 }
 0x7a8   :  { %v6875_v54 = vmax.f32 %v6829_v19, 0.0  ;;  %v12353_v19 = vld [vmem:[%s12546_s14] ss:$0 sm:$0xff] }
 0x7aa   :  { %v6889_v0 = vpack.c.bf16 %v6875_v54, %v6874_v63 }
 0x7ab   :  { %v6833_v25 = vpop.f32.mrb[32].mxu1 }
 0x7ac   :  { %v6834_v32 = vadd.f32 %v12288_v1, %v6833_v25  ;;  %v6835_v38 = vpop.f32.mrb[33].mxu1  ;;  %8560 = vmatmul.mubr.bf16.gmra.mrb[56].mxu1 %v6889_v0 }
 0x7ad   :  { %v6836_v39 = vpop.f32.mrb[34].mxu1 }
 0x7ae   :  { %v6837_v53 = vadd.f32 %v12288_v1, %v6836_v39  ;;  %v6838_v35 = vpop.f32.mrb[35].mxu1  ;;  %v6876_v40 = vmax.f32 %v6834_v32, 0.0 }
 0x7b0   :  { %v6877_v6 = vmax.f32 %v6837_v53, 0.0 }
 0x7b2   :  { %v6890_v46 = vpack.c.bf16 %v6877_v6, %v6876_v40 }
 0x7b3   :  { %v6841_v61 = vpop.f32.mrb[36].mxu1 }
 0x7b4   :  { %v6842_v18 = vadd.f32 %v12288_v1, %v6841_v61  ;;  %v6843_v10 = vpop.f32.mrb[37].mxu1  ;;  %8563 = vmatprep.mubr.bf16.mxu1 %v6890_v46 }
 0x7b5   :  { %v6844_v17 = vpop.f32.mrb[38].mxu1 }
 0x7b6   :  { %v6845_v5 = vadd.f32 %v12288_v1, %v6844_v17  ;;  %v6846_v21 = vpop.f32.mrb[39].mxu1  ;;  %v6878_v60 = vmax.f32 %v6842_v18, 0.0 }
 0x7b8   :  { %v6879_v29 = vmax.f32 %v6845_v5, 0.0 }
 0x7ba   :  { %v6891_v4 = vpack.c.bf16 %v6879_v29, %v6878_v60 }
 0x7bb   :  { %v6849_v23 = vpop.f32.mrb[40].mxu1 }
 0x7bc   :  { %v6850_v15 = vadd.f32 %v12288_v1, %v6849_v23  ;;  %v6851_v37 = vpop.f32.mrb[41].mxu1  ;;  %8564 = vmatmul.mubr.bf16.gmra.mrb[60].mxu1 %v6891_v4 }
 0x7bd   :  { %v6852_v31 = vpop.f32.mrb[42].mxu1 }
 0x7be   :  { %v6853_v56 = vadd.f32 %v12288_v1, %v6852_v31  ;;  %v6854_v11 = vpop.f32.mrb[43].mxu1  ;;  %v6880_v55 = vmax.f32 %v6850_v15, 0.0 }
 0x7c0   :  { %v6881_v52 = vmax.f32 %v6853_v56, 0.0 }
 0x7c2   :  { %v6892_v7 = vpack.c.bf16 %v6881_v52, %v6880_v55 }
 0x7c3   :  { %v6857_v58 = vpop.f32.mrb[44].mxu1 }
 0x7c4   :  { %v6858_v45 = vadd.f32 %v12288_v1, %v6857_v58  ;;  %v6859_v62 = vpop.f32.mrb[45].mxu1  ;;  %8567 = vmatprep.mubr.bf16.mxu1 %v6892_v7 }
 0x7c5   :  { %v6860_v33 = vpop.f32.mrb[46].mxu1 }
 0x7c6   :  { %v6861_v9 = vadd.f32 %v12288_v1, %v6860_v33  ;;  %v6862_v41 = vpop.f32.mrb[47].mxu1  ;;  %v6882_v3 = vmax.f32 %v6858_v45, 0.0  ;;  %v8785_v1 = vld [vmem:[%s12542_s15 + $0x10] sm:$0xff]  }
 0x7c7   :  { %8576 = vmatpush3.bf16.msra.mxu1 %v8785_v1 }
 0x7c8   :  { %v6883_v57 = vmax.f32 %v6861_v9, 0.0  ;;  %8577 = vmatprep.subr.bf16.mxu1 %v8843_v22 }
 0x7ca   :  { %v6893_v14 = vpack.c.bf16 %v6883_v57, %v6882_v3 }
 0x7cb   :  { %8578 = vmatpush3.bf16.msra.mxu1 %v8786_v43 }
 0x7cc   :  { %8568 = vmatmul.mubr.bf16.gmra.mrb[64].mxu1 %v6893_v14  ;;  %8579 = vmatprep.subr.bf16.mxu1 %v8843_v22 }
 0x7cd   :  { %8587 = vmatprep.mubr.msk.bf16.mxu1 %vm8844_vm2, %v8843_v22 }
 0x7cf   :  { %8580 = vmatpush3.bf16.msra.mxu1 %v8787_v27 }
 0x7d0   :  { %8581 = vmatprep.subr.bf16.mxu1 %v8843_v22 }
 0x7d3   :  { %8582 = vmatpush3.bf16.msra.mxu1 %v8788_v59 }
 0x7d4   :  { %8583 = vmatprep.subr.bf16.mxu1 %v8843_v22 }
 0x7d7   :  { %8584 = vmatpush3.bf16.msra.mxu1 %v8789_v16 }
 0x7d8   :  { %8585 = vmatprep.subr.bf16.mxu1 %v8843_v22 }
 0x7db   :  { %8586 = vmatpush3.bf16.msra.mxu1 %v8790_v48 }
 0x7dc   :  { %7409 = vmatprep.subr.bf16.mxu1 %v8793_v24 }
 0x85f   :  { %v8553_v44 = vpop.f32.mrb[48].mxu1 }
 0x860   :  { %v7008_v34 = vadd.f32 %v8553_v44, %v12340_v12  ;;  %v6999_v49 = vpop.f32.mrb[49].mxu1 }
 0x861   :  { %v7000_v2 = vadd.f32 %v12340_v12, %v6999_v49  ;;  %v8554_v13 = vpop.f32.mrb[50].mxu1 }
 0x862   :  { %v7080_v47 = vmax.f32 %v7008_v34, 0.0  ;;  %v7011_v26 = vadd.f32 %v8554_v13, %v12340_v12  ;;  %v7002_v51 = vpop.f32.mrb[51].mxu1 }
 0x863   :  { %v7078_v8 = vmax.f32 %v7000_v2, 0.0  ;;  %v7003_v63 = vadd.f32 %v12340_v12, %v7002_v51 }
 0x864   :  { %v7107_v54 = vmul.f32 %v12346_v30, %v7080_v47  ;;  %v7081_v0 = vmax.f32 %v7011_v26, 0.0 }
 0x865   :  { %v7105_v25 = vmul.f32 %v12346_v30, %v7078_v8  ;;  %v7079_v32 = vmax.f32 %v7003_v63, 0.0 }
 0x866   :  { %v7134_v38 = vadd.f32 %v12353_v19, %v7107_v54  ;;  %v7108_v39 = vmul.f32 %v12346_v30, %v7081_v0 }
 0x867   :  { %v7132_v53 = vadd.f32 %v12353_v19, %v7105_v25  ;;  %v7106_v35 = vmul.f32 %v12346_v30, %v7079_v32 }
 0x868   :  { %v7135_v40 = vadd.f32 %v12353_v19, %v7108_v39 }
 0x869   :  { %v7152_v6 = vmax.f32 %v7132_v53, %v7134_v38  ;;  %v7154_v46 = vadd.f32 %v7134_v38, %v7132_v53  ;;  %v7133_v61 = vadd.f32 %v12353_v19, %v7106_v35 }
 0x86b   :  { %v7153_v18 = vmax.f32 %v7133_v61, %v7135_v40  ;;  %v7155_v10 = vadd.f32 %v7135_v40, %v7133_v61 }
 0x86f   :  { %v8557_v17 = vpop.f32.mrb[52].mxu1 }
 0x870   :  { %v7024_v5 = vadd.f32 %v8557_v17, %v12340_v12  ;;  %v7015_v21 = vpop.f32.mrb[53].mxu1 }
 0x871   :  { %v7016_v60 = vadd.f32 %v12340_v12, %v7015_v21  ;;  %v8558_v29 = vpop.f32.mrb[54].mxu1 }
 0x872   :  { %v7084_v4 = vmax.f32 %v7024_v5, 0.0  ;;  %v7027_v23 = vadd.f32 %v8558_v29, %v12340_v12  ;;  %v7018_v15 = vpop.f32.mrb[55].mxu1 }
 0x873   :  { %v7082_v37 = vmax.f32 %v7016_v60, 0.0  ;;  %v7019_v31 = vadd.f32 %v12340_v12, %v7018_v15 }
 0x874   :  { %v7085_v56 = vmax.f32 %v7027_v23, 0.0  ;;  %v7111_v11 = vmul.f32 %v12346_v30, %v7084_v4 }
 0x875   :  { %v7109_v55 = vmul.f32 %v12346_v30, %v7082_v37  ;;  %v7083_v52 = vmax.f32 %v7019_v31, 0.0 }
 0x876   :  { %v7112_v7 = vmul.f32 %v12346_v30, %v7085_v56  ;;  %v7138_v62 = vadd.f32 %v12353_v19, %v7111_v11 }
 0x877   :  { %v7136_v58 = vadd.f32 %v12353_v19, %v7109_v55  ;;  %v7110_v45 = vmul.f32 %v12346_v30, %v7083_v52 }
 0x878   :  { %v7139_v3 = vadd.f32 %v12353_v19, %v7112_v7 }
 0x879   :  { %v7156_v33 = vmax.f32 %v7152_v6, %v7136_v58  ;;  %v7158_v9 = vadd.f32 %v7154_v46, %v7136_v58  ;;  %v7137_v41 = vadd.f32 %v12353_v19, %v7110_v45 }
 0x87b   :  { %v7157_v57 = vmax.f32 %v7153_v18, %v7137_v41  ;;  %v7159_v14 = vadd.f32 %v7155_v10, %v7137_v41  ;;  %v7160_v22 = vmax.f32 %v7156_v33, %v7138_v62  ;;  %v7162_v50 = vadd.f32 %v7158_v9, %v7138_v62 }
 0x87d   :  { %v7161_v42 = vmax.f32 %v7157_v57, %v7139_v3  ;;  %v7163_v1 = vadd.f32 %v7159_v14, %v7139_v3 }
 0x87f   :  { %v8561_v43 = vpop.f32.mrb[56].mxu1 }
 0x880   :  { %v7040_v27 = vadd.f32 %v8561_v43, %v12340_v12  ;;  %v7031_v59 = vpop.f32.mrb[57].mxu1 }
 0x881   :  { %v7032_v16 = vadd.f32 %v12340_v12, %v7031_v59  ;;  %v8562_v48 = vpop.f32.mrb[58].mxu1 }
 0x882   :  { %v7088_v24 = vmax.f32 %v7040_v27, 0.0  ;;  %v7043_v44 = vadd.f32 %v8562_v48, %v12340_v12  ;;  %v7034_v34 = vpop.f32.mrb[59].mxu1 }
 0x883   :  { %v7086_v49 = vmax.f32 %v7032_v16, 0.0  ;;  %v7035_v2 = vadd.f32 %v12340_v12, %v7034_v34 }
 0x884   :  { %v7089_v13 = vmax.f32 %v7043_v44, 0.0  ;;  %v7115_v47 = vmul.f32 %v12346_v30, %v7088_v24 }
 0x885   :  { %v7113_v26 = vmul.f32 %v12346_v30, %v7086_v49  ;;  %v7087_v51 = vmax.f32 %v7035_v2, 0.0 }
 0x886   :  { %v7116_v8 = vmul.f32 %v12346_v30, %v7089_v13  ;;  %v7142_v0 = vadd.f32 %v12353_v19, %v7115_v47 }
 0x887   :  { %v7140_v63 = vadd.f32 %v12353_v19, %v7113_v26  ;;  %v7114_v54 = vmul.f32 %v12346_v30, %v7087_v51 }
 0x888   :  { %v7143_v39 = vadd.f32 %v12353_v19, %v7116_v8 }
 0x889   :  { %v7164_v25 = vmax.f32 %v7160_v22, %v7140_v63  ;;  %v7166_v32 = vadd.f32 %v7162_v50, %v7140_v63  ;;  %v7141_v38 = vadd.f32 %v12353_v19, %v7114_v54 }
 0x88b   :  { %v7165_v53 = vmax.f32 %v7161_v42, %v7141_v38  ;;  %v7167_v35 = vadd.f32 %v7163_v1, %v7141_v38  ;;  %v7168_v40 = vmax.f32 %v7164_v25, %v7142_v0  ;;  %v7170_v6 = vadd.f32 %v7166_v32, %v7142_v0 }
 0x88d   :  { %v7169_v46 = vmax.f32 %v7165_v53, %v7143_v39  ;;  %v7171_v61 = vadd.f32 %v7167_v35, %v7143_v39 }
 0x88f   :  { %v8565_v18 = vpop.f32.mrb[60].mxu1 }
 0x890   :  { %v7056_v10 = vadd.f32 %v8565_v18, %v12340_v12  ;;  %v7047_v17 = vpop.f32.mrb[61].mxu1 }
 0x891   :  { %v7048_v5 = vadd.f32 %v12340_v12, %v7047_v17  ;;  %v8566_v21 = vpop.f32.mrb[62].mxu1  ;;  %v8796_v17 = vld [vmem:[%s12543_s16 + $0x14] ss:$8 sps:$4 sm:$0xff]  }
 0x892   :  { %v7092_v60 = vmax.f32 %v7056_v10, 0.0  ;;  %v7059_v29 = vadd.f32 %v8566_v21, %v12340_v12  ;;  %v7050_v4 = vpop.f32.mrb[63].mxu1  ;;  %v8797_v21 = vld [vmem:[%s12543_s16 + $0x20] ss:$8 sps:$4 sm:$0xff]  }
 0x893   :  { %v7090_v23 = vmax.f32 %v7048_v5, 0.0  ;;  %v7051_v15 = vadd.f32 %v12340_v12, %v7050_v4  ;;  %v8799_v5 = vld [vmem:[%s12543_s16 + $0x24] ss:$8 sps:$4 sm:$0xff]   ;;  %v8803_v4 = vld [vmem:[%s12543_s16 + $0x40] ss:$8 sps:$4 sm:$0xff]  }
 0x894   :  { %v7093_v37 = vmax.f32 %v7059_v29, 0.0  ;;  %v7119_v31 = vmul.f32 %v12346_v30, %v7092_v60  ;;  %v8802_v60 = vld [vmem:[%s12543_s16 + $0x34] ss:$8 sps:$4 sm:$0xff]   ;;  %v8805_v29 = vld [vmem:[%s12543_s16 + $0x44] ss:$8 sps:$4 sm:$0xff]  }
 0x895   :  { %v7117_v56 = vmul.f32 %v12346_v30, %v7090_v23  ;;  %v7091_v11 = vmax.f32 %v7051_v15, 0.0  ;;  %v8808_v23 = vld [vmem:[%s12543_s16 + $0x54] ss:$8 sps:$4 sm:$0xff]   ;;  %v8806_v15 = vld [vmem:[%s12543_s16 + $0x50] ss:$8 sps:$4 sm:$0xff]  }
 0x896   :  { %v7120_v55 = vmul.f32 %v12346_v30, %v7093_v37  ;;  %v7146_v58 = vadd.f32 %v12353_v19, %v7119_v31  ;;  %v8811_v37 = vld [vmem:[%s12543_s16 + $0x64] ss:$8 sps:$4 sm:$0xff]   ;;  %v8809_v31 = vld [vmem:[%s12543_s16 + $0x60] ss:$8 sps:$4 sm:$0xff]  }
 0x897   :  { %v7144_v52 = vadd.f32 %v12353_v19, %v7117_v56  ;;  %v7118_v7 = vmul.f32 %v12346_v30, %v7091_v11  ;;  %v8814_v56 = vld [vmem:[%s12543_s16 + $0x74] ss:$8 sps:$4 sm:$0xff]   ;;  %v8812_v11 = vld [vmem:[%s12543_s16 + $0x70] ss:$8 sps:$4 sm:$0xff]  }
 0x898   :  { %v7147_v9 = vadd.f32 %v12353_v19, %v7120_v55 }
 0x899   :  { %v7172_v45 = vmax.f32 %v7168_v40, %v7144_v52  ;;  %v7174_v62 = vadd.f32 %v7170_v6, %v7144_v52  ;;  %v7145_v33 = vadd.f32 %v12353_v19, %v7118_v7 }
 0x89b   :  { %v7173_v41 = vmax.f32 %v7169_v46, %v7145_v33  ;;  %v7175_v3 = vadd.f32 %v7171_v61, %v7145_v33  ;;  %v7176_v57 = vmax.f32 %v7172_v45, %v7146_v58  ;;  %v7178_v14 = vadd.f32 %v7174_v62, %v7146_v58 }
 0x89d   :  { %v7177_v22 = vmax.f32 %v7173_v41, %v7147_v9  ;;  %v7179_v50 = vadd.f32 %v7175_v3, %v7147_v9  ;;  %v7317_v9 = vld [vmem:[%s12547_s17] sm:$0x3] }
 0x89e   :  { %v7322_v41 = vrot.slane %v7317_v9, %v12654_v28  ;;  %v7326_v3 = vrot.slane %v7317_v9, %v12655_v36 }
 0x89f   :  { %v8569_v42 = vpop.f32.mrb[64].mxu1 }
 0x8a0   :  { %v7072_v1 = vadd.f32 %v8569_v42, %v12340_v12  ;;  %v7063_v43 = vpop.f32.mrb[65].mxu1 }
 0x8a1   :  { %v7064_v27 = vadd.f32 %v12340_v12, %v7063_v43  ;;  %v8570_v59 = vpop.f32.mrb[66].mxu1 }
 0x8a2   :  { %v7096_v16 = vmax.f32 %v7072_v1, 0.0  ;;  %v7075_v48 = vadd.f32 %v8570_v59, %v12340_v12  ;;  %v7066_v24 = vpop.f32.mrb[67].mxu1 }
 0x8a3   :  { %v7094_v44 = vmax.f32 %v7064_v27, 0.0  ;;  %v7067_v34 = vadd.f32 %v12340_v12, %v7066_v24 }
 0x8a4   :  { %v7097_v49 = vmax.f32 %v7075_v48, 0.0  ;;  %v7123_v2 = vmul.f32 %v12346_v30, %v7096_v16 }
 0x8a5   :  { %v7121_v13 = vmul.f32 %v12346_v30, %v7094_v44  ;;  %v7095_v47 = vmax.f32 %v7067_v34, 0.0 }
 0x8a6   :  { %v7124_v26 = vmul.f32 %v12346_v30, %v7097_v49  ;;  %v7150_v63 = vadd.f32 %v12353_v19, %v7123_v2  ;;  %v8815_v49 = vld [vmem:[%s12548_s20 + $0x40] sm:$0xff]  }
 0x8a7   :  { %v7148_v51 = vadd.f32 %v12353_v19, %v7121_v13  ;;  %v7122_v8 = vmul.f32 %v12346_v30, %v7095_v47  ;;  %v8791_v30 = vld [vmem:[%s12543_s16] ss:$8 sps:$4 sm:$0xff]  }
 0x8a8   :  { %v7151_v12 = vadd.f32 %v12353_v19, %v7124_v26  ;;  %v8816_v2 = vld [vmem:[%s12548_s20] sm:$0xff]  }
 0x8a9   :  { %v7180_v54 = vmax.f32 %v7176_v57, %v7148_v51  ;;  %v7182_v0 = vadd.f32 %v7178_v14, %v7148_v51  ;;  %v7149_v25 = vadd.f32 %v12353_v19, %v7122_v8  ;;  %v8794_v19 = vld [vmem:[%s12543_s16 + $0x10] ss:$8 sps:$4 sm:$0xff]  }
 0x8ab   :  { %v7184_v32 = vmax.f32 %v7180_v54, %v7150_v63  ;;  %v7186_v38 = vadd.f32 %v7182_v0, %v7150_v63  ;;  %v7181_v39 = vmax.f32 %v7177_v22, %v7149_v25  ;;  %v7183_v53 = vadd.f32 %v7179_v50, %v7149_v25 }
 0x8ad   :  { %v7188_v35 = vmul.f32 0.23333333, %v7186_v38  ;;  %v7185_v40 = vmax.f32 %v7181_v39, %v7151_v12  ;;  %v7187_v6 = vadd.f32 %v7183_v53, %v7151_v12 }
 0x8af   :  { %v7190_v46 = vadd.f32 %v7188_v35, %v7184_v32  ;;  %v7189_v61 = vmul.f32 0.23333333, %v7187_v6  ;;  %v8817_v35 = vld [vmem:[%s12548_s20 + $0x48] sm:$0xff]   ;;  %v8819_v6 = vld [vmem:[%s12548_s20 + $0x50] sm:$0xff]  }
 0x8b1   :  { %v7191_v18 = vadd.f32 %v7189_v61, %v7185_v40  ;;  %v8818_v40 = vld [vmem:[%s12548_s20 + $0x8] sm:$0xff]   ;;  %v8821_v61 = vld [vmem:[%s12548_s20 + $0x58] sm:$0xff]  }
 0x8b3   :  { %v7192_v10 = vpack.c.bf16 %v7191_v18, %v7190_v46  ;;  %v8820_v46 = vld [vmem:[%s12548_s20 + $0x10] sm:$0xff]   ;;  %v8822_v18 = vld [vmem:[%s12548_s20 + $0x18] sm:$0xff]  }
 0x8b5   :  { %8588 = vmatmul.mubr.bf16.vlgmr.msra.gmra.mrb[68].mxu1 %v7192_v10  ;;  %v8824_v10 = vld [vmem:[%s12548_s20 + $0x20] sm:$0xff]  }
 0x8b6   :  { %7410 = vmatpush1.bf16.msra.mxu1 %v8791_v30  ;;  %7441 = vmatprep.mubr.bf16.mxu1 %v12653_v20  ;;  %v8800_v20 = vld [vmem:[%s12543_s16 + $0x30] ss:$8 sps:$4 sm:$0xff]   ;;  %v8823_v30 = vld [vmem:[%s12548_s20 + $0x60] sm:$0xff]  }
 0x8b7   :  { %7411 = vmatprep.subr.bf16.mxu1 %v8796_v17  ;;  %v8825_v17 = vld [vmem:[%s12548_s20 + $0x68] sm:$0xff]  }
 0x8ba   :  { %7412 = vmatpush1.bf16.msra.mxu1 %v8794_v19  ;;  %v8826_v19 = vld [vmem:[%s12548_s20 + $0x28] sm:$0xff]  }
 0x8bb   :  { %7413 = vmatprep.subr.bf16.mxu1 %v8799_v5  ;;  %v8827_v5 = vld [vmem:[%s12548_s20 + $0x70] sm:$0xff]  }
 0x8be   :  { %7414 = vmatpush1.bf16.msra.mxu1 %v8797_v21  ;;  %v8828_v21 = vld [vmem:[%s12548_s20 + $0x30] sm:$0xff]  }
 0x8bf   :  { %7415 = vmatprep.subr.bf16.mxu1 %v8802_v60  ;;  %v8829_v60 = vld [vmem:[%s12548_s20 + $0x78] sm:$0xff]  }
 0x8c2   :  { %7416 = vmatpush1.bf16.msra.mxu1 %v8800_v20  ;;  %v8830_v20 = vld [vmem:[%s12548_s20 + $0x38] sm:$0xff]  }
 0x8c3   :  { %7417 = vmatprep.subr.bf16.mxu1 %v8805_v29 }
 0x8c6   :  { %7418 = vmatpush1.bf16.msra.mxu1 %v8803_v4 }
 0x8c7   :  { %7419 = vmatprep.subr.bf16.mxu1 %v8808_v23 }
 0x8ca   :  { %7420 = vmatpush1.bf16.msra.mxu1 %v8806_v15 }
 0x8cb   :  { %7421 = vmatprep.subr.bf16.mxu1 %v8811_v37 }
 0x8ce   :  { %7422 = vmatpush1.bf16.msra.mxu1 %v8809_v31 }
 0x8cf   :  { %7423 = vmatprep.subr.bf16.mxu1 %v8814_v56  ;;  %v7489_v56 = vld [vmem:[%s12549_s18] sm:$0x3] }
 0x8d2   :  { %7424 = vmatpush1.bf16.msra.mxu1 %v8812_v11 }
 0x8d3   :  { %8291 = vmatprep.subr.bf16.mxu1 %v8815_v49 }
 0x988   :  { %v7291_v55 = vpop.f32.mrb[68].mxu1 }
 0x989   :  { %v8589_v52 = vpop.f32.mrb[69].mxu1  ;;  %v7298_v58 = vmax.f32 %v7291_v55, 0.0 }
 0x98a   :  { %v7294_v7 = vpop.f32.mrb[70].mxu1 }
 0x98b   :  { %v7299_v45 = vmax.f32 %v7294_v7, 0.0  ;;  %v8590_v62 = vpop.f32.mrb[71].mxu1  ;;  %v7494_v7 = vrot.slane %v7489_v56, %v12654_v28 }
 0x98d   :  { %v7300_v33 = vpack.c.bf16 %v7299_v45, %v7298_v58  ;;  %v7498_v58 = vrot.slane %v7489_v56, %v12655_v36  ;;  %v7505_v45 = vld [vmem:[%s12550_s19] sm:$0x3] }
 0x98e   :  { %v7514_v9 = vrot.slane %v7505_v45, %v12655_v36 }
 0x98f   :  { %7442 = vmatmul.mubr.bf16.vlgmr.msra.gmra.mrb[72].mxu1 %v7300_v33  ;;  %v7510_v33 = vrot.slane %v7505_v45, %v12654_v28  ;;  %v8136_v28 = vld [vmem:[%s12551_s21] ss:$0 sm:$0xff] }
 0x990   :  { %8292 = vmatpush3.bf16.msra.mxu1 %v8816_v2 }
 0x991   :  { %8293 = vmatprep.subr.bf16.mxu1 %v8817_v35 }
 0x994   :  { %8294 = vmatpush3.bf16.msra.mxu1 %v8818_v40 }
 0x995   :  { %8295 = vmatprep.subr.bf16.mxu1 %v8819_v6 }
 0x998   :  { %8296 = vmatpush3.bf16.msra.mxu1 %v8820_v46 }
 0x999   :  { %8297 = vmatprep.subr.bf16.mxu1 %v8821_v61 }
 0x99c   :  { %8298 = vmatpush3.bf16.msra.mxu1 %v8822_v18 }
 0x99d   :  { %8299 = vmatprep.subr.bf16.mxu1 %v8823_v30 }
 0x9a0   :  { %8300 = vmatpush3.bf16.msra.mxu1 %v8824_v10 }
 0x9a1   :  { %8301 = vmatprep.subr.bf16.mxu1 %v8825_v17 }
 0x9a4   :  { %8302 = vmatpush3.bf16.msra.mxu1 %v8826_v19 }
 0x9a5   :  { %8303 = vmatprep.subr.bf16.mxu1 %v8827_v5 }
 0x9a8   :  { %8304 = vmatpush3.bf16.msra.mxu1 %v8828_v21 }
 0x9a9   :  { %8305 = vmatprep.subr.bf16.mxu1 %v8829_v60 }
 0x9ac   :  { %8306 = vmatpush3.bf16.msra.mxu1 %v8830_v20 }
 0xa62   :  { %v7443_v57 = vpop.f32.mrb[72].mxu1 }
 0xa63   :  { %v7444_v14 = vadd.f32 %v7443_v57, %v7322_v41  ;;  %v7445_v22 = vpop.f32.mrb[73].mxu1 }
 0xa64   :  { %v7446_v50 = vadd.f32 %v7445_v22, %v7326_v3  ;;  %v7447_v42 = vpop.f32.mrb[74].mxu1 }
 0xa65   :  { %v7452_v1 = vmax.f32 %v7444_v14, 0.0  ;;  %v7448_v43 = vadd.f32 %v7447_v42, %v7322_v41  ;;  %v7449_v27 = vpop.f32.mrb[75].mxu1 }
 0xa66   :  { %v7453_v59 = vmax.f32 %v7446_v50, 0.0  ;;  %v7450_v16 = vadd.f32 %v7449_v27, %v7326_v3 }
 0xa67   :  { %v7454_v48 = vmax.f32 %v7448_v43, 0.0 }
 0xa68   :  { %v7455_v24 = vmax.f32 %v7450_v16, 0.0  ;;  %v7456_v44 = vadd.f32 %v7453_v59, %v7452_v1 }
 0xa6a   :  { %7457 = vadd.xlane.f32.xlu0 %v7456_v44  ;;  %v7459_v34 = vadd.f32 %v7455_v24, %v7454_v48 }
 0xa6e   :  { %7460 = vadd.xlane.f32.xlu0 %v7459_v34 }
 0xaf7   :  { %v7458_v13 = vpop.xlane.xlu0 %7457 }
 0xaf8   :  { %v7463_v47 = vmul.f32 0.00390625, %v7458_v13 }
 0xafa   :  { %v7465_v26 = vsub.f32 %v7452_v1, %v7463_v47  ;;  %v7466_v51 = vsub.f32 %v7453_v59, %v7463_v47 }
 0xafb   :  { %v7461_v8 = vpop.xlane.xlu0 %7460 }
 0xafc   :  { %v7464_v63 = vmul.f32 0.00390625, %v7461_v8  ;;  %v7469_v54 = vmul.f32 %v7465_v26, %v7465_v26  ;;  %v7470_v0 = vmul.f32 %v7466_v51, %v7466_v51 }
 0xafe   :  { %v7467_v25 = vsub.f32 %v7454_v48, %v7464_v63  ;;  %v7468_v12 = vsub.f32 %v7455_v24, %v7464_v63  ;;  %v7473_v32 = vadd.f32 %v7470_v0, %v7469_v54 }
 0xb00   :  { %7474 = vadd.xlane.f32.xlu1 %v7473_v32  ;;  %v7471_v38 = vmul.f32 %v7467_v25, %v7467_v25  ;;  %v7472_v39 = vmul.f32 %v7468_v12, %v7468_v12 }
 0xb02   :  { %v7476_v53 = vadd.f32 %v7472_v39, %v7471_v38 }
 0xb04   :  { %7477 = vadd.xlane.f32.xlu1 %v7476_v53 }
 0xb8d   :  { %v7475_v29 = vpop.xlane.xlu1 %7474 }
 0xb8e   :  { %v7479_v4 = vmul.f32 0.00390625, %v7475_v29 }
 0xb90   :  { %v7481_v23 = vadd.f32 1e-05, %v7479_v4 }
 0xb91   :  { %v7478_v15 = vpop.xlane.xlu1 %7477 }
 0xb92   :  { %8831 = vrsqrt.f32 %v7481_v23  ;;  %v7480_v37 = vmul.f32 0.00390625, %v7478_v15 }
 0xb94   :  { %v7482_v31 = vadd.f32 1e-05, %v7480_v37 }
 0xb96   :  { %8833 = vrsqrt.f32 %v7482_v31 }
 0xb9c   :  { %v8832_v11 = vpop.eup %8831 }
 0xb9d   :  { %v7485_v55 = vmul.f32 %v8832_v11, %v7465_v26  ;;  %v7486_v52 = vmul.f32 %v8832_v11, %v7466_v51 }
 0xb9f   :  { %v7501_v57 = vmul.f32 %v7494_v7, %v7485_v55  ;;  %v7502_v14 = vmul.f32 %v7498_v58, %v7486_v52 }
 0xba0   :  { %v8834_v62 = vpop.eup %8833 }
 0xba1   :  { %v7487_v41 = vmul.f32 %v8834_v62, %v7467_v25  ;;  %v7488_v3 = vmul.f32 %v8834_v62, %v7468_v12  ;;  %v7517_v42 = vadd.f32 %v7510_v33, %v7501_v57  ;;  %v7518_v1 = vadd.f32 %v7514_v9, %v7502_v14 }
 0xba3   :  { %v7503_v22 = vmul.f32 %v7494_v7, %v7487_v41  ;;  %v7504_v50 = vmul.f32 %v7498_v58, %v7488_v3 }
 0xba5   :  { %v7519_v43 = vadd.f32 %v7510_v33, %v7503_v22  ;;  %v7520_v27 = vadd.f32 %v7514_v9, %v7504_v50 }
 0xba7   :  { %v7521_v59 = vpack.c.bf16 %v7519_v43, %v7517_v42  ;;  %v7522_v16 = vpack.c.bf16 %v7520_v27, %v7518_v1 }
 0xba9   :  { %7690 = vmatprep.mubr.bf16.mxu1 %v7522_v16 }
 0xbaa   :  { %7691 = vmatmul.mubr.bf16.vlgmr.msra.gmra.mrb[76].mxu1 %v7521_v59 }
 0xc7d   :  { %v8307_v48 = vpop.f32.mrb[76].mxu1 }
 0xc7e   :  { %v8308_v36 = vpop.f32.mrb[77].mxu1 }
 0xc7f   :  { %v8309_v24 = vadd.f32 %v8308_v36, %v8307_v48  ;;  %v8310_v44 = vpop.f32.mrb[78].mxu1 }
 0xc80   :  { %v8311_v34 = vpop.f32.mrb[79].mxu1 }
 0xc81   :  { %v7693_v49 = vadd.f32 %v8309_v24, %v8136_v28  ;;  %v8312_v2 = vadd.f32 %v8311_v34, %v8310_v44 }
 0xc83   :  { %7699 = vst [vmem:[%s12552_s22] sm:$0xff] %v7693_v49  ;;  %v7696_v13 = vadd.f32 %v8312_v2, %v8136_v28 }
 0xc85   :  { %7700 = vst [vmem:[%s12552_s22 + $0x8] sm:$0xff] %v7696_v13 }

</bundles_post_ra>
